<compile_context>
chip_gen: v7x
topology: tpu7x:2x2x1
jax: 0.10.0
libtpu: 0.0.40
codegen_flags: <defaults>
</compile_context>

<pallas_src>
import functools

import jax
import jax.numpy as jnp
from jax.experimental import pallas as pl
from jax.experimental.pallas import tpu as pltpu


# ----------------------------------------------------------------------------
# Fused kernel: residual conv + SwiftAttnGate + SpatialAttention + conv1x1
# ----------------------------------------------------------------------------
def _cmfa_fused_kernel(x_ref, sk_ref,
                       wg_ref, bg_ref, wx_ref, bx_ref,
                       wpsi_ref, bpsi_ref, wr_ref, br_ref,
                       w1_ref, b1_ref, wdw_ref, wpw_ref,
                       out_ref,
                       pad_ref, sh_ref,
                       *, C, Fi, D, H, W, K):
    HW = H * W
    P = K // 2
    Dp = D + 2 * P
    L0 = P * W + P                       # lane halo on each side of the HW axis
    N = float(D * HW)

    def sigmoid(v):                      # exact: review flagged approx reciprocal
        return 1.0 / (1.0 + jnp.exp(-v))

    def inorm(v):                        # InstanceNorm3d(affine=False), eps=1e-5
        mu = jnp.sum(v) * (1.0 / N)      # one-pass statistics
        var = jnp.sum(v * v) * (1.0 / N) - mu * mu
        return (v - mu) * jax.lax.rsqrt(var + 1e-5)

    # Per-input-channel (D, HW) blocks; with D == 8 each block is exactly one
    # vreg row and all slices below are sublane-aligned vlds.
    xb = [x_ref[pl.ds(c * D, D), :] for c in range(C)]
    skb = [sk_ref[pl.ds(c * D, D), :] for c in range(C)]

    # ---- SwiftAttnGate(g=x, x=skip) --------------------------------------
    # p = sigmoid(IN(Wpsi @ (relu(IN(Wg x + bg)) + relu(IN(Wx sk + bx))) + bpsi))
    psi = None
    for o in range(Fi):
        g1 = wg_ref[o * C] * xb[0]
        x1 = wx_ref[o * C] * skb[0]
        for c in range(1, C):
            g1 = g1 + wg_ref[o * C + c] * xb[c]
            x1 = x1 + wx_ref[o * C + c] * skb[c]
        g1 = jnp.maximum(inorm(g1 + bg_ref[o]), 0.0)
        x1 = jnp.maximum(inorm(x1 + bx_ref[o]), 0.0)
        term = wpsi_ref[o] * (g1 + x1)
        psi = term if psi is None else psi + term
    # trailing ReLU of the reference is a no-op on a sigmoid output -> dropped
    p = sigmoid(inorm(psi + bpsi_ref[0]))                        # (D, HW)

    # ---- SAG output + SpatialAttention front-end (channel mean / max) ----
    p1 = 1.0 + p
    sag = [xb[c] * p1 for c in range(C)]                         # x*p + x
    sum_x = xb[0]
    mx = jnp.maximum(sag[0], xb[0])
    for c in range(1, C):
        sum_x = sum_x + xb[c]
        mx = jnp.maximum(mx, jnp.maximum(sag[c], xb[c]))
    # mean over xcat = [sag ; x]  ==  (sum_c x_c) * (2 + p) / (2C)
    avg = sum_x * (2.0 + p) * (1.0 / (2 * C))                    # (D, HW)

    # ---- depthwise KxKxK conv (groups=2) ---------------------------------
    # pad_ref row (c*Dp + P + d), lanes [L0, L0+HW) = slice d of channel c;
    # halo rows / lanes stay zero (zeroed every step: scratch persists across
    # the "parallel" batch grid, so a first-iteration-only init is unsafe).
    pad_ref[...] = jnp.zeros(pad_ref.shape, jnp.float32)
    pad_ref[pl.ds(P, D), pl.ds(L0, HW)] = avg
    pad_ref[pl.ds(Dp + P, D), pl.ds(L0, HW)] = mx

    # kw lane-shifts can wrap across H rows of the flattened HW axis -> mask.
    wpos = jax.lax.broadcasted_iota(jnp.int32, (D, HW), 1) % W

    acc = [jnp.zeros((D, HW), jnp.float32), jnp.zeros((D, HW), jnp.float32)]
    for kw in range(K):
        t = [jnp.zeros((D, HW), jnp.float32), jnp.zeros((D, HW), jnp.float32)]
        for kh in range(K):
            # ONE lane-shifted copy of the whole padded buffer per (kh, kw):
            # 25 lane shifts total; the 2*K taps below are sublane-offset vlds.
            start = L0 + (kh - P) * W + (kw - P)
            slot = ((kw * K + kh) % 2) * (2 * Dp)                # 2-deep rotation
            sh_ref[pl.ds(slot, 2 * Dp), pl.ds(0, HW)] = \
                pad_ref[pl.ds(0, 2 * Dp), pl.ds(start, HW)]
            for kd in range(K):
                for c in range(2):
                    wgt = wdw_ref[((kd * K + kh) * K + kw) * 2 + c]   # SMEM scalar
                    t[c] = t[c] + wgt * sh_ref[pl.ds(slot + c * Dp + kd, D),
                                               pl.ds(0, HW)]
        keep = (wpos >= P - kw) & (wpos < W + P - kw)
        acc[0] = acc[0] + jnp.where(keep, t[0], 0.0)
        acc[1] = acc[1] + jnp.where(keep, t[1], 0.0)

    # pointwise 2->1 conv + sigmoid
    att = sigmoid(wpw_ref[0] * acc[0] + wpw_ref[1] * acc[1])     # (D, HW)

    # ---- finalize: att * conv1x1([sag ; x]) + b1 + residual ---------------
    for o in range(C):
        u = w1_ref[o * 2 * C] * sag[0]
        for c in range(1, C):
            u = u + w1_ref[o * 2 * C + c] * sag[c]
        for c in range(C):
            u = u + w1_ref[o * 2 * C + C + c] * xb[c]
        r = wr_ref[o * C] * xb[0]
        for c in range(1, C):
            r = r + wr_ref[o * C + c] * xb[c]
        out_ref[pl.ds(o * D, D), :] = att * u + r + (br_ref[o] + b1_ref[o])


# ----------------------------------------------------------------------------
# Parameter init (deterministic, synthetic).  Layout is PyTorch-native
# (out_ch, in_ch) for all 1x1 convs; depthwise weights are (kd, kh, kw, ch) —
# importing real torch Conv3d weights (2,1,K,K,K) needs a transpose.
# ----------------------------------------------------------------------------
def init_params(key, in_dim, out_dim, kernel_size=5):
    C, Fi, K = in_dim, out_dim, kernel_size
    ks = jax.random.split(key, 12)

    def u(k, shape, fan_in):
        bound = 1.0 / (fan_in ** 0.5)
        return jax.random.uniform(k, shape, jnp.float32, -bound, bound)

    return dict(
        # SwiftAttnGate
        wg=u(ks[0], (Fi, C), C),         bg=u(ks[1], (Fi,), C),
        wx=u(ks[2], (Fi, C), C),         bx=u(ks[3], (Fi,), C),
        wpsi=u(ks[4], (Fi,), Fi),        bpsi=u(ks[5], (1,), Fi),
        # CMFA residual conv and final conv1x1
        wr=u(ks[6], (C, C), C),          br=u(ks[7], (C,), C),
        w1=u(ks[8], (C, 2 * C), 2 * C),  b1=u(ks[9], (C,), 2 * C),
        # SpatialAttention: depthwise (kd,kh,kw,channel) and pointwise weights
        wdw=u(ks[10], (K, K, K, 2), K * K * K),
        wpw=u(ks[11], (2,), 2),
    )


# ----------------------------------------------------------------------------
# Forward wrapper (NCDHW in / NCDHW out)
# ----------------------------------------------------------------------------
def cmfa_forward(x_ncdhw, skip_ncdhw, params, kernel_size=5):
    B, C, D, H, W = x_ncdhw.shape
    HW = H * W
    K = kernel_size
    P = K // 2
    Dp = D + 2 * P
    L0 = P * W + P
    LBUF = HW + 2 * L0
    Fi = params['wg'].shape[0]

    # NCDHW -> (B, C*D, HW) is a pure reshape (channels/depth -> sublanes).
    x = x_ncdhw.reshape(B, C * D, HW)
    sk = skip_ncdhw.reshape(B, C * D, HW)

    act_spec = pl.BlockSpec((None, C * D, HW), lambda b: (b, 0, 0))
    smem_spec = pl.BlockSpec(memory_space=pltpu.MemorySpace.SMEM)

    kernel = functools.partial(_cmfa_fused_kernel, C=C, Fi=Fi, D=D, H=H, W=W, K=K)

    out = pl.pallas_call(
        kernel,
        grid=(B,),
        in_specs=[act_spec, act_spec] + [smem_spec] * 12,
        out_specs=act_spec,
        out_shape=jax.ShapeDtypeStruct((B, C * D, HW), jnp.float32),
        scratch_shapes=[
            pltpu.VMEM((2 * Dp, LBUF), jnp.float32),   # zero-padded depthwise buffer
            pltpu.VMEM((2 * 2 * Dp, HW), jnp.float32), # lane-shifted copies (2 slots)
        ],
        compiler_params=pltpu.CompilerParams(dimension_semantics=("parallel",)),
    )(x, sk,
      params['wg'].reshape(-1), params['bg'].reshape(-1),
      params['wx'].reshape(-1), params['bx'].reshape(-1),
      params['wpsi'].reshape(-1), params['bpsi'].reshape(-1),
      params['wr'].reshape(-1), params['br'].reshape(-1),
      params['w1'].reshape(-1), params['b1'].reshape(-1),
      params['wdw'].reshape(-1), params['wpw'].reshape(-1))

    return out.reshape(B, C, D, H, W)


if __name__ == "__main__":
    B, C, D, H, W = 2, 4, 8, 8, 8     # in_dim = 4
    OUT_DIM = 8                        # F_int of SwiftAttnGate

    key = jax.random.PRNGKey(0)
    kx, ksk, kp = jax.random.split(key, 3)
    x = jax.random.normal(kx, (B, C, D, H, W), jnp.float32)
    skip = jax.random.normal(ksk, (B, C, D, H, W), jnp.float32)
    params = init_params(kp, C, OUT_DIM)

    fwd = jax.jit(cmfa_forward)
    out = jax.block_until_ready(fwd(x, skip, params))

    assert out.shape == (B, C, D, H, W), out.shape
    assert bool(jnp.all(jnp.isfinite(out)))
    print("KERNEL_OK")
</pallas_src>

<mosaic_0001>
module attributes {stable_mosaic.version = 11 : i64} {
  func.func @_cmfa_fused_kernel(%arg0: i32, %arg1: memref<1x32x64xf32, #tpu.memory_space<vmem>>, %arg2: memref<1x32x64xf32, #tpu.memory_space<vmem>>, %arg3: memref<32xf32, #tpu.memory_space<smem>>, %arg4: memref<8xf32, #tpu.memory_space<smem>>, %arg5: memref<32xf32, #tpu.memory_space<smem>>, %arg6: memref<8xf32, #tpu.memory_space<smem>>, %arg7: memref<8xf32, #tpu.memory_space<smem>>, %arg8: memref<1xf32, #tpu.memory_space<smem>>, %arg9: memref<16xf32, #tpu.memory_space<smem>>, %arg10: memref<4xf32, #tpu.memory_space<smem>>, %arg11: memref<32xf32, #tpu.memory_space<smem>>, %arg12: memref<4xf32, #tpu.memory_space<smem>>, %arg13: memref<250xf32, #tpu.memory_space<smem>>, %arg14: memref<2xf32, #tpu.memory_space<smem>>, %arg15: memref<1x32x64xf32, #tpu.memory_space<vmem>>, %arg16: memref<24x100xf32, #tpu.memory_space<vmem>>, %arg17: memref<48x64xf32, #tpu.memory_space<vmem>>) attributes {dimension_semantics = [#tpu.dimension_semantics<parallel>], iteration_bounds = array<i64: 2>, scalar_prefetch = 0 : i64, scratch_operands = 2 : i64, tpu.core_type = #tpu.core_type<tc>, window_params = [{transform_indices = @transform_0, window_bounds = array<i64: 1, 32, 64>}, {transform_indices = @transform_1, window_bounds = array<i64: 1, 32, 64>}, {transform_indices = @transform_2, window_bounds = array<i64: 32>}, {transform_indices = @transform_3, window_bounds = array<i64: 8>}, {transform_indices = @transform_4, window_bounds = array<i64: 32>}, {transform_indices = @transform_5, window_bounds = array<i64: 8>}, {transform_indices = @transform_6, window_bounds = array<i64: 8>}, {transform_indices = @transform_7, window_bounds = array<i64: 1>}, {transform_indices = @transform_8, window_bounds = array<i64: 16>}, {transform_indices = @transform_9, window_bounds = array<i64: 4>}, {transform_indices = @transform_10, window_bounds = array<i64: 32>}, {transform_indices = @transform_11, window_bounds = array<i64: 4>}, {transform_indices = @transform_12, window_bounds = array<i64: 250>}, {transform_indices = @transform_13, window_bounds = array<i64: 2>}, {transform_indices = @transform_14, window_bounds = array<i64: 1, 32, 64>}]} {
    %c0 = arith.constant 0 : index
    %c0_0 = arith.constant 0 : index
    %c0_1 = arith.constant 0 : index
    %0 = vector.load %arg1[%c0, %c0_0, %c0_1] : memref<1x32x64xf32, #tpu.memory_space<vmem>>, vector<1x8x64xf32>
    %1 = vector.shape_cast %0 : vector<1x8x64xf32> to vector<8x64xf32>
    %c0_2 = arith.constant 0 : index
    %c8 = arith.constant 8 : index
    %c0_3 = arith.constant 0 : index
    %2 = vector.load %arg1[%c0_2, %c8, %c0_3] : memref<1x32x64xf32, #tpu.memory_space<vmem>>, vector<1x8x64xf32>
    %3 = vector.shape_cast %2 : vector<1x8x64xf32> to vector<8x64xf32>
    %c0_4 = arith.constant 0 : index
    %c16 = arith.constant 16 : index
    %c0_5 = arith.constant 0 : index
    %4 = vector.load %arg1[%c0_4, %c16, %c0_5] : memref<1x32x64xf32, #tpu.memory_space<vmem>>, vector<1x8x64xf32>
    %5 = vector.shape_cast %4 : vector<1x8x64xf32> to vector<8x64xf32>
    %c0_6 = arith.constant 0 : index
    %c24 = arith.constant 24 : index
    %c0_7 = arith.constant 0 : index
    %6 = vector.load %arg1[%c0_6, %c24, %c0_7] : memref<1x32x64xf32, #tpu.memory_space<vmem>>, vector<1x8x64xf32>
    %7 = vector.shape_cast %6 : vector<1x8x64xf32> to vector<8x64xf32>
    %c0_8 = arith.constant 0 : index
    %c0_9 = arith.constant 0 : index
    %c0_10 = arith.constant 0 : index
    %8 = vector.load %arg2[%c0_8, %c0_9, %c0_10] : memref<1x32x64xf32, #tpu.memory_space<vmem>>, vector<1x8x64xf32>
    %9 = vector.shape_cast %8 : vector<1x8x64xf32> to vector<8x64xf32>
    %c0_11 = arith.constant 0 : index
    %c8_12 = arith.constant 8 : index
    %c0_13 = arith.constant 0 : index
    %10 = vector.load %arg2[%c0_11, %c8_12, %c0_13] : memref<1x32x64xf32, #tpu.memory_space<vmem>>, vector<1x8x64xf32>
    %11 = vector.shape_cast %10 : vector<1x8x64xf32> to vector<8x64xf32>
    %c0_14 = arith.constant 0 : index
    %c16_15 = arith.constant 16 : index
    %c0_16 = arith.constant 0 : index
    %12 = vector.load %arg2[%c0_14, %c16_15, %c0_16] : memref<1x32x64xf32, #tpu.memory_space<vmem>>, vector<1x8x64xf32>
    %13 = vector.shape_cast %12 : vector<1x8x64xf32> to vector<8x64xf32>
    %c0_17 = arith.constant 0 : index
    %c24_18 = arith.constant 24 : index
    %c0_19 = arith.constant 0 : index
    %14 = vector.load %arg2[%c0_17, %c24_18, %c0_19] : memref<1x32x64xf32, #tpu.memory_space<vmem>>, vector<1x8x64xf32>
    %15 = vector.shape_cast %14 : vector<1x8x64xf32> to vector<8x64xf32>
    %c0_20 = arith.constant 0 : index
    %16 = memref.load %arg3[%c0_20] : memref<32xf32, #tpu.memory_space<smem>>
    %17 = vector.broadcast %16 : f32 to vector<8x64xf32>
    %18 = arith.mulf %17, %1 : vector<8x64xf32>
    %c0_21 = arith.constant 0 : index
    %19 = memref.load %arg5[%c0_21] : memref<32xf32, #tpu.memory_space<smem>>
    %20 = vector.broadcast %19 : f32 to vector<8x64xf32>
    %21 = arith.mulf %20, %9 : vector<8x64xf32>
    %c1 = arith.constant 1 : index
    %22 = memref.load %arg3[%c1] : memref<32xf32, #tpu.memory_space<smem>>
    %23 = vector.broadcast %22 : f32 to vector<8x64xf32>
    %24 = arith.mulf %23, %3 : vector<8x64xf32>
    %25 = arith.addf %18, %24 : vector<8x64xf32>
    %c1_22 = arith.constant 1 : index
    %26 = memref.load %arg5[%c1_22] : memref<32xf32, #tpu.memory_space<smem>>
    %27 = vector.broadcast %26 : f32 to vector<8x64xf32>
    %28 = arith.mulf %27, %11 : vector<8x64xf32>
    %29 = arith.addf %21, %28 : vector<8x64xf32>
    %c2 = arith.constant 2 : index
    %30 = memref.load %arg3[%c2] : memref<32xf32, #tpu.memory_space<smem>>
    %31 = vector.broadcast %30 : f32 to vector<8x64xf32>
    %32 = arith.mulf %31, %5 : vector<8x64xf32>
    %33 = arith.addf %25, %32 : vector<8x64xf32>
    %c2_23 = arith.constant 2 : index
    %34 = memref.load %arg5[%c2_23] : memref<32xf32, #tpu.memory_space<smem>>
    %35 = vector.broadcast %34 : f32 to vector<8x64xf32>
    %36 = arith.mulf %35, %13 : vector<8x64xf32>
    %37 = arith.addf %29, %36 : vector<8x64xf32>
    %c3 = arith.constant 3 : index
    %38 = memref.load %arg3[%c3] : memref<32xf32, #tpu.memory_space<smem>>
    %39 = vector.broadcast %38 : f32 to vector<8x64xf32>
    %40 = arith.mulf %39, %7 : vector<8x64xf32>
    %41 = arith.addf %33, %40 : vector<8x64xf32>
    %c3_24 = arith.constant 3 : index
    %42 = memref.load %arg5[%c3_24] : memref<32xf32, #tpu.memory_space<smem>>
    %43 = vector.broadcast %42 : f32 to vector<8x64xf32>
    %44 = arith.mulf %43, %15 : vector<8x64xf32>
    %45 = arith.addf %37, %44 : vector<8x64xf32>
    %c0_25 = arith.constant 0 : index
    %46 = memref.load %arg4[%c0_25] : memref<8xf32, #tpu.memory_space<smem>>
    %47 = vector.broadcast %46 : f32 to vector<8x64xf32>
    %48 = arith.addf %41, %47 : vector<8x64xf32>
    %49 = vector.shape_cast %48 : vector<8x64xf32> to vector<1x8x64xf32>
    %cst = arith.constant dense<0.000000e+00> : vector<1xf32>
    %50 = vector.multi_reduction <add>, %49, %cst [1, 2] : vector<1x8x64xf32> to vector<1xf32>
    %51 = vector.shape_cast %50 : vector<1xf32> to vector<1x1x1xf32>
    %52 = vector.extract %51[0, 0, 0] : f32 from vector<1x1x1xf32>
    %cst_26 = arith.constant 0.001953125 : f32
    %53 = arith.mulf %52, %cst_26 : f32
    %54 = arith.mulf %48, %48 : vector<8x64xf32>
    %55 = vector.shape_cast %54 : vector<8x64xf32> to vector<1x8x64xf32>
    %cst_27 = arith.constant dense<0.000000e+00> : vector<1xf32>
    %56 = vector.multi_reduction <add>, %55, %cst_27 [1, 2] : vector<1x8x64xf32> to vector<1xf32>
    %57 = vector.shape_cast %56 : vector<1xf32> to vector<1x1x1xf32>
    %58 = vector.extract %57[0, 0, 0] : f32 from vector<1x1x1xf32>
    %cst_28 = arith.constant 0.001953125 : f32
    %59 = arith.mulf %58, %cst_28 : f32
    %60 = arith.mulf %53, %53 : f32
    %61 = arith.subf %59, %60 : f32
    %62 = vector.broadcast %53 : f32 to vector<8x64xf32>
    %63 = arith.subf %48, %62 : vector<8x64xf32>
    %cst_29 = arith.constant 9.99999974E-6 : f32
    %64 = arith.addf %61, %cst_29 : f32
    %65 = math.rsqrt %64 : f32
    %66 = vector.broadcast %65 : f32 to vector<8x64xf32>
    %67 = arith.mulf %63, %66 : vector<8x64xf32>
    %cst_30 = arith.constant 0.000000e+00 : f32
    %68 = vector.broadcast %cst_30 : f32 to vector<8x64xf32>
    %69 = arith.maximumf %67, %68 : vector<8x64xf32>
    %c0_31 = arith.constant 0 : index
    %70 = memref.load %arg6[%c0_31] : memref<8xf32, #tpu.memory_space<smem>>
    %71 = vector.broadcast %70 : f32 to vector<8x64xf32>
    %72 = arith.addf %45, %71 : vector<8x64xf32>
    %73 = vector.shape_cast %72 : vector<8x64xf32> to vector<1x8x64xf32>
    %cst_32 = arith.constant dense<0.000000e+00> : vector<1xf32>
    %74 = vector.multi_reduction <add>, %73, %cst_32 [1, 2] : vector<1x8x64xf32> to vector<1xf32>
    %75 = vector.shape_cast %74 : vector<1xf32> to vector<1x1x1xf32>
    %76 = vector.extract %75[0, 0, 0] : f32 from vector<1x1x1xf32>
    %cst_33 = arith.constant 0.001953125 : f32
    %77 = arith.mulf %76, %cst_33 : f32
    %78 = arith.mulf %72, %72 : vector<8x64xf32>
    %79 = vector.shape_cast %78 : vector<8x64xf32> to vector<1x8x64xf32>
    %cst_34 = arith.constant dense<0.000000e+00> : vector<1xf32>
    %80 = vector.multi_reduction <add>, %79, %cst_34 [1, 2] : vector<1x8x64xf32> to vector<1xf32>
    %81 = vector.shape_cast %80 : vector<1xf32> to vector<1x1x1xf32>
    %82 = vector.extract %81[0, 0, 0] : f32 from vector<1x1x1xf32>
    %cst_35 = arith.constant 0.001953125 : f32
    %83 = arith.mulf %82, %cst_35 : f32
    %84 = arith.mulf %77, %77 : f32
    %85 = arith.subf %83, %84 : f32
    %86 = vector.broadcast %77 : f32 to vector<8x64xf32>
    %87 = arith.subf %72, %86 : vector<8x64xf32>
    %cst_36 = arith.constant 9.99999974E-6 : f32
    %88 = arith.addf %85, %cst_36 : f32
    %89 = math.rsqrt %88 : f32
    %90 = vector.broadcast %89 : f32 to vector<8x64xf32>
    %91 = arith.mulf %87, %90 : vector<8x64xf32>
    %cst_37 = arith.constant 0.000000e+00 : f32
    %92 = vector.broadcast %cst_37 : f32 to vector<8x64xf32>
    %93 = arith.maximumf %91, %92 : vector<8x64xf32>
    %c0_38 = arith.constant 0 : index
    %94 = memref.load %arg7[%c0_38] : memref<8xf32, #tpu.memory_space<smem>>
    %95 = arith.addf %69, %93 : vector<8x64xf32>
    %96 = vector.broadcast %94 : f32 to vector<8x64xf32>
    %97 = arith.mulf %96, %95 : vector<8x64xf32>
    %c4 = arith.constant 4 : index
    %98 = memref.load %arg3[%c4] : memref<32xf32, #tpu.memory_space<smem>>
    %99 = vector.broadcast %98 : f32 to vector<8x64xf32>
    %100 = arith.mulf %99, %1 : vector<8x64xf32>
    %c4_39 = arith.constant 4 : index
    %101 = memref.load %arg5[%c4_39] : memref<32xf32, #tpu.memory_space<smem>>
    %102 = vector.broadcast %101 : f32 to vector<8x64xf32>
    %103 = arith.mulf %102, %9 : vector<8x64xf32>
    %c5 = arith.constant 5 : index
    %104 = memref.load %arg3[%c5] : memref<32xf32, #tpu.memory_space<smem>>
    %105 = vector.broadcast %104 : f32 to vector<8x64xf32>
    %106 = arith.mulf %105, %3 : vector<8x64xf32>
    %107 = arith.addf %100, %106 : vector<8x64xf32>
    %c5_40 = arith.constant 5 : index
    %108 = memref.load %arg5[%c5_40] : memref<32xf32, #tpu.memory_space<smem>>
    %109 = vector.broadcast %108 : f32 to vector<8x64xf32>
    %110 = arith.mulf %109, %11 : vector<8x64xf32>
    %111 = arith.addf %103, %110 : vector<8x64xf32>
    %c6 = arith.constant 6 : index
    %112 = memref.load %arg3[%c6] : memref<32xf32, #tpu.memory_space<smem>>
    %113 = vector.broadcast %112 : f32 to vector<8x64xf32>
    %114 = arith.mulf %113, %5 : vector<8x64xf32>
    %115 = arith.addf %107, %114 : vector<8x64xf32>
    %c6_41 = arith.constant 6 : index
    %116 = memref.load %arg5[%c6_41] : memref<32xf32, #tpu.memory_space<smem>>
    %117 = vector.broadcast %116 : f32 to vector<8x64xf32>
    %118 = arith.mulf %117, %13 : vector<8x64xf32>
    %119 = arith.addf %111, %118 : vector<8x64xf32>
    %c7 = arith.constant 7 : index
    %120 = memref.load %arg3[%c7] : memref<32xf32, #tpu.memory_space<smem>>
    %121 = vector.broadcast %120 : f32 to vector<8x64xf32>
    %122 = arith.mulf %121, %7 : vector<8x64xf32>
    %123 = arith.addf %115, %122 : vector<8x64xf32>
    %c7_42 = arith.constant 7 : index
    %124 = memref.load %arg5[%c7_42] : memref<32xf32, #tpu.memory_space<smem>>
    %125 = vector.broadcast %124 : f32 to vector<8x64xf32>
    %126 = arith.mulf %125, %15 : vector<8x64xf32>
    %127 = arith.addf %119, %126 : vector<8x64xf32>
    %c1_43 = arith.constant 1 : index
    %128 = memref.load %arg4[%c1_43] : memref<8xf32, #tpu.memory_space<smem>>
    %129 = vector.broadcast %128 : f32 to vector<8x64xf32>
    %130 = arith.addf %123, %129 : vector<8x64xf32>
    %131 = vector.shape_cast %130 : vector<8x64xf32> to vector<1x8x64xf32>
    %cst_44 = arith.constant dense<0.000000e+00> : vector<1xf32>
    %132 = vector.multi_reduction <add>, %131, %cst_44 [1, 2] : vector<1x8x64xf32> to vector<1xf32>
    %133 = vector.shape_cast %132 : vector<1xf32> to vector<1x1x1xf32>
    %134 = vector.extract %133[0, 0, 0] : f32 from vector<1x1x1xf32>
    %cst_45 = arith.constant 0.001953125 : f32
    %135 = arith.mulf %134, %cst_45 : f32
    %136 = arith.mulf %130, %130 : vector<8x64xf32>
    %137 = vector.shape_cast %136 : vector<8x64xf32> to vector<1x8x64xf32>
    %cst_46 = arith.constant dense<0.000000e+00> : vector<1xf32>
    %138 = vector.multi_reduction <add>, %137, %cst_46 [1, 2] : vector<1x8x64xf32> to vector<1xf32>
    %139 = vector.shape_cast %138 : vector<1xf32> to vector<1x1x1xf32>
    %140 = vector.extract %139[0, 0, 0] : f32 from vector<1x1x1xf32>
    %cst_47 = arith.constant 0.001953125 : f32
    %141 = arith.mulf %140, %cst_47 : f32
    %142 = arith.mulf %135, %135 : f32
    %143 = arith.subf %141, %142 : f32
    %144 = vector.broadcast %135 : f32 to vector<8x64xf32>
    %145 = arith.subf %130, %144 : vector<8x64xf32>
    %cst_48 = arith.constant 9.99999974E-6 : f32
    %146 = arith.addf %143, %cst_48 : f32
    %147 = math.rsqrt %146 : f32
    %148 = vector.broadcast %147 : f32 to vector<8x64xf32>
    %149 = arith.mulf %145, %148 : vector<8x64xf32>
    %cst_49 = arith.constant 0.000000e+00 : f32
    %150 = vector.broadcast %cst_49 : f32 to vector<8x64xf32>
    %151 = arith.maximumf %149, %150 : vector<8x64xf32>
    %c1_50 = arith.constant 1 : index
    %152 = memref.load %arg6[%c1_50] : memref<8xf32, #tpu.memory_space<smem>>
    %153 = vector.broadcast %152 : f32 to vector<8x64xf32>
    %154 = arith.addf %127, %153 : vector<8x64xf32>
    %155 = vector.shape_cast %154 : vector<8x64xf32> to vector<1x8x64xf32>
    %cst_51 = arith.constant dense<0.000000e+00> : vector<1xf32>
    %156 = vector.multi_reduction <add>, %155, %cst_51 [1, 2] : vector<1x8x64xf32> to vector<1xf32>
    %157 = vector.shape_cast %156 : vector<1xf32> to vector<1x1x1xf32>
    %158 = vector.extract %157[0, 0, 0] : f32 from vector<1x1x1xf32>
    %cst_52 = arith.constant 0.001953125 : f32
    %159 = arith.mulf %158, %cst_52 : f32
    %160 = arith.mulf %154, %154 : vector<8x64xf32>
    %161 = vector.shape_cast %160 : vector<8x64xf32> to vector<1x8x64xf32>
    %cst_53 = arith.constant dense<0.000000e+00> : vector<1xf32>
    %162 = vector.multi_reduction <add>, %161, %cst_53 [1, 2] : vector<1x8x64xf32> to vector<1xf32>
    %163 = vector.shape_cast %162 : vector<1xf32> to vector<1x1x1xf32>
    %164 = vector.extract %163[0, 0, 0] : f32 from vector<1x1x1xf32>
    %cst_54 = arith.constant 0.001953125 : f32
    %165 = arith.mulf %164, %cst_54 : f32
    %166 = arith.mulf %159, %159 : f32
    %167 = arith.subf %165, %166 : f32
    %168 = vector.broadcast %159 : f32 to vector<8x64xf32>
    %169 = arith.subf %154, %168 : vector<8x64xf32>
    %cst_55 = arith.constant 9.99999974E-6 : f32
    %170 = arith.addf %167, %cst_55 : f32
    %171 = math.rsqrt %170 : f32
    %172 = vector.broadcast %171 : f32 to vector<8x64xf32>
    %173 = arith.mulf %169, %172 : vector<8x64xf32>
    %cst_56 = arith.constant 0.000000e+00 : f32
    %174 = vector.broadcast %cst_56 : f32 to vector<8x64xf32>
    %175 = arith.maximumf %173, %174 : vector<8x64xf32>
    %c1_57 = arith.constant 1 : index
    %176 = memref.load %arg7[%c1_57] : memref<8xf32, #tpu.memory_space<smem>>
    %177 = arith.addf %151, %175 : vector<8x64xf32>
    %178 = vector.broadcast %176 : f32 to vector<8x64xf32>
    %179 = arith.mulf %178, %177 : vector<8x64xf32>
    %180 = arith.addf %97, %179 : vector<8x64xf32>
    %c8_58 = arith.constant 8 : index
    %181 = memref.load %arg3[%c8_58] : memref<32xf32, #tpu.memory_space<smem>>
    %182 = vector.broadcast %181 : f32 to vector<8x64xf32>
    %183 = arith.mulf %182, %1 : vector<8x64xf32>
    %c8_59 = arith.constant 8 : index
    %184 = memref.load %arg5[%c8_59] : memref<32xf32, #tpu.memory_space<smem>>
    %185 = vector.broadcast %184 : f32 to vector<8x64xf32>
    %186 = arith.mulf %185, %9 : vector<8x64xf32>
    %c9 = arith.constant 9 : index
    %187 = memref.load %arg3[%c9] : memref<32xf32, #tpu.memory_space<smem>>
    %188 = vector.broadcast %187 : f32 to vector<8x64xf32>
    %189 = arith.mulf %188, %3 : vector<8x64xf32>
    %190 = arith.addf %183, %189 : vector<8x64xf32>
    %c9_60 = arith.constant 9 : index
    %191 = memref.load %arg5[%c9_60] : memref<32xf32, #tpu.memory_space<smem>>
    %192 = vector.broadcast %191 : f32 to vector<8x64xf32>
    %193 = arith.mulf %192, %11 : vector<8x64xf32>
    %194 = arith.addf %186, %193 : vector<8x64xf32>
    %c10 = arith.constant 10 : index
    %195 = memref.load %arg3[%c10] : memref<32xf32, #tpu.memory_space<smem>>
    %196 = vector.broadcast %195 : f32 to vector<8x64xf32>
    %197 = arith.mulf %196, %5 : vector<8x64xf32>
    %198 = arith.addf %190, %197 : vector<8x64xf32>
    %c10_61 = arith.constant 10 : index
    %199 = memref.load %arg5[%c10_61] : memref<32xf32, #tpu.memory_space<smem>>
    %200 = vector.broadcast %199 : f32 to vector<8x64xf32>
    %201 = arith.mulf %200, %13 : vector<8x64xf32>
    %202 = arith.addf %194, %201 : vector<8x64xf32>
    %c11 = arith.constant 11 : index
    %203 = memref.load %arg3[%c11] : memref<32xf32, #tpu.memory_space<smem>>
    %204 = vector.broadcast %203 : f32 to vector<8x64xf32>
    %205 = arith.mulf %204, %7 : vector<8x64xf32>
    %206 = arith.addf %198, %205 : vector<8x64xf32>
    %c11_62 = arith.constant 11 : index
    %207 = memref.load %arg5[%c11_62] : memref<32xf32, #tpu.memory_space<smem>>
    %208 = vector.broadcast %207 : f32 to vector<8x64xf32>
    %209 = arith.mulf %208, %15 : vector<8x64xf32>
    %210 = arith.addf %202, %209 : vector<8x64xf32>
    %c2_63 = arith.constant 2 : index
    %211 = memref.load %arg4[%c2_63] : memref<8xf32, #tpu.memory_space<smem>>
    %212 = vector.broadcast %211 : f32 to vector<8x64xf32>
    %213 = arith.addf %206, %212 : vector<8x64xf32>
    %214 = vector.shape_cast %213 : vector<8x64xf32> to vector<1x8x64xf32>
    %cst_64 = arith.constant dense<0.000000e+00> : vector<1xf32>
    %215 = vector.multi_reduction <add>, %214, %cst_64 [1, 2] : vector<1x8x64xf32> to vector<1xf32>
    %216 = vector.shape_cast %215 : vector<1xf32> to vector<1x1x1xf32>
    %217 = vector.extract %216[0, 0, 0] : f32 from vector<1x1x1xf32>
    %cst_65 = arith.constant 0.001953125 : f32
    %218 = arith.mulf %217, %cst_65 : f32
    %219 = arith.mulf %213, %213 : vector<8x64xf32>
    %220 = vector.shape_cast %219 : vector<8x64xf32> to vector<1x8x64xf32>
    %cst_66 = arith.constant dense<0.000000e+00> : vector<1xf32>
    %221 = vector.multi_reduction <add>, %220, %cst_66 [1, 2] : vector<1x8x64xf32> to vector<1xf32>
    %222 = vector.shape_cast %221 : vector<1xf32> to vector<1x1x1xf32>
    %223 = vector.extract %222[0, 0, 0] : f32 from vector<1x1x1xf32>
    %cst_67 = arith.constant 0.001953125 : f32
    %224 = arith.mulf %223, %cst_67 : f32
    %225 = arith.mulf %218, %218 : f32
    %226 = arith.subf %224, %225 : f32
    %227 = vector.broadcast %218 : f32 to vector<8x64xf32>
    %228 = arith.subf %213, %227 : vector<8x64xf32>
    %cst_68 = arith.constant 9.99999974E-6 : f32
    %229 = arith.addf %226, %cst_68 : f32
    %230 = math.rsqrt %229 : f32
    %231 = vector.broadcast %230 : f32 to vector<8x64xf32>
    %232 = arith.mulf %228, %231 : vector<8x64xf32>
    %cst_69 = arith.constant 0.000000e+00 : f32
    %233 = vector.broadcast %cst_69 : f32 to vector<8x64xf32>
    %234 = arith.maximumf %232, %233 : vector<8x64xf32>
    %c2_70 = arith.constant 2 : index
    %235 = memref.load %arg6[%c2_70] : memref<8xf32, #tpu.memory_space<smem>>
    %236 = vector.broadcast %235 : f32 to vector<8x64xf32>
    %237 = arith.addf %210, %236 : vector<8x64xf32>
    %238 = vector.shape_cast %237 : vector<8x64xf32> to vector<1x8x64xf32>
    %cst_71 = arith.constant dense<0.000000e+00> : vector<1xf32>
    %239 = vector.multi_reduction <add>, %238, %cst_71 [1, 2] : vector<1x8x64xf32> to vector<1xf32>
    %240 = vector.shape_cast %239 : vector<1xf32> to vector<1x1x1xf32>
    %241 = vector.extract %240[0, 0, 0] : f32 from vector<1x1x1xf32>
    %cst_72 = arith.constant 0.001953125 : f32
    %242 = arith.mulf %241, %cst_72 : f32
    %243 = arith.mulf %237, %237 : vector<8x64xf32>
    %244 = vector.shape_cast %243 : vector<8x64xf32> to vector<1x8x64xf32>
    %cst_73 = arith.constant dense<0.000000e+00> : vector<1xf32>
    %245 = vector.multi_reduction <add>, %244, %cst_73 [1, 2] : vector<1x8x64xf32> to vector<1xf32>
    %246 = vector.shape_cast %245 : vector<1xf32> to vector<1x1x1xf32>
    %247 = vector.extract %246[0, 0, 0] : f32 from vector<1x1x1xf32>
    %cst_74 = arith.constant 0.001953125 : f32
    %248 = arith.mulf %247, %cst_74 : f32
    %249 = arith.mulf %242, %242 : f32
    %250 = arith.subf %248, %249 : f32
    %251 = vector.broadcast %242 : f32 to vector<8x64xf32>
    %252 = arith.subf %237, %251 : vector<8x64xf32>
    %cst_75 = arith.constant 9.99999974E-6 : f32
    %253 = arith.addf %250, %cst_75 : f32
    %254 = math.rsqrt %253 : f32
    %255 = vector.broadcast %254 : f32 to vector<8x64xf32>
    %256 = arith.mulf %252, %255 : vector<8x64xf32>
    %cst_76 = arith.constant 0.000000e+00 : f32
    %257 = vector.broadcast %cst_76 : f32 to vector<8x64xf32>
    %258 = arith.maximumf %256, %257 : vector<8x64xf32>
    %c2_77 = arith.constant 2 : index
    %259 = memref.load %arg7[%c2_77] : memref<8xf32, #tpu.memory_space<smem>>
    %260 = arith.addf %234, %258 : vector<8x64xf32>
    %261 = vector.broadcast %259 : f32 to vector<8x64xf32>
    %262 = arith.mulf %261, %260 : vector<8x64xf32>
    %263 = arith.addf %180, %262 : vector<8x64xf32>
    %c12 = arith.constant 12 : index
    %264 = memref.load %arg3[%c12] : memref<32xf32, #tpu.memory_space<smem>>
    %265 = vector.broadcast %264 : f32 to vector<8x64xf32>
    %266 = arith.mulf %265, %1 : vector<8x64xf32>
    %c12_78 = arith.constant 12 : index
    %267 = memref.load %arg5[%c12_78] : memref<32xf32, #tpu.memory_space<smem>>
    %268 = vector.broadcast %267 : f32 to vector<8x64xf32>
    %269 = arith.mulf %268, %9 : vector<8x64xf32>
    %c13 = arith.constant 13 : index
    %270 = memref.load %arg3[%c13] : memref<32xf32, #tpu.memory_space<smem>>
    %271 = vector.broadcast %270 : f32 to vector<8x64xf32>
    %272 = arith.mulf %271, %3 : vector<8x64xf32>
    %273 = arith.addf %266, %272 : vector<8x64xf32>
    %c13_79 = arith.constant 13 : index
    %274 = memref.load %arg5[%c13_79] : memref<32xf32, #tpu.memory_space<smem>>
    %275 = vector.broadcast %274 : f32 to vector<8x64xf32>
    %276 = arith.mulf %275, %11 : vector<8x64xf32>
    %277 = arith.addf %269, %276 : vector<8x64xf32>
    %c14 = arith.constant 14 : index
    %278 = memref.load %arg3[%c14] : memref<32xf32, #tpu.memory_space<smem>>
    %279 = vector.broadcast %278 : f32 to vector<8x64xf32>
    %280 = arith.mulf %279, %5 : vector<8x64xf32>
    %281 = arith.addf %273, %280 : vector<8x64xf32>
    %c14_80 = arith.constant 14 : index
    %282 = memref.load %arg5[%c14_80] : memref<32xf32, #tpu.memory_space<smem>>
    %283 = vector.broadcast %282 : f32 to vector<8x64xf32>
    %284 = arith.mulf %283, %13 : vector<8x64xf32>
    %285 = arith.addf %277, %284 : vector<8x64xf32>
    %c15 = arith.constant 15 : index
    %286 = memref.load %arg3[%c15] : memref<32xf32, #tpu.memory_space<smem>>
    %287 = vector.broadcast %286 : f32 to vector<8x64xf32>
    %288 = arith.mulf %287, %7 : vector<8x64xf32>
    %289 = arith.addf %281, %288 : vector<8x64xf32>
    %c15_81 = arith.constant 15 : index
    %290 = memref.load %arg5[%c15_81] : memref<32xf32, #tpu.memory_space<smem>>
    %291 = vector.broadcast %290 : f32 to vector<8x64xf32>
    %292 = arith.mulf %291, %15 : vector<8x64xf32>
    %293 = arith.addf %285, %292 : vector<8x64xf32>
    %c3_82 = arith.constant 3 : index
    %294 = memref.load %arg4[%c3_82] : memref<8xf32, #tpu.memory_space<smem>>
    %295 = vector.broadcast %294 : f32 to vector<8x64xf32>
    %296 = arith.addf %289, %295 : vector<8x64xf32>
    %297 = vector.shape_cast %296 : vector<8x64xf32> to vector<1x8x64xf32>
    %cst_83 = arith.constant dense<0.000000e+00> : vector<1xf32>
    %298 = vector.multi_reduction <add>, %297, %cst_83 [1, 2] : vector<1x8x64xf32> to vector<1xf32>
    %299 = vector.shape_cast %298 : vector<1xf32> to vector<1x1x1xf32>
    %300 = vector.extract %299[0, 0, 0] : f32 from vector<1x1x1xf32>
    %cst_84 = arith.constant 0.001953125 : f32
    %301 = arith.mulf %300, %cst_84 : f32
    %302 = arith.mulf %296, %296 : vector<8x64xf32>
    %303 = vector.shape_cast %302 : vector<8x64xf32> to vector<1x8x64xf32>
    %cst_85 = arith.constant dense<0.000000e+00> : vector<1xf32>
    %304 = vector.multi_reduction <add>, %303, %cst_85 [1, 2] : vector<1x8x64xf32> to vector<1xf32>
    %305 = vector.shape_cast %304 : vector<1xf32> to vector<1x1x1xf32>
    %306 = vector.extract %305[0, 0, 0] : f32 from vector<1x1x1xf32>
    %cst_86 = arith.constant 0.001953125 : f32
    %307 = arith.mulf %306, %cst_86 : f32
    %308 = arith.mulf %301, %301 : f32
    %309 = arith.subf %307, %308 : f32
    %310 = vector.broadcast %301 : f32 to vector<8x64xf32>
    %311 = arith.subf %296, %310 : vector<8x64xf32>
    %cst_87 = arith.constant 9.99999974E-6 : f32
    %312 = arith.addf %309, %cst_87 : f32
    %313 = math.rsqrt %312 : f32
    %314 = vector.broadcast %313 : f32 to vector<8x64xf32>
    %315 = arith.mulf %311, %314 : vector<8x64xf32>
    %cst_88 = arith.constant 0.000000e+00 : f32
    %316 = vector.broadcast %cst_88 : f32 to vector<8x64xf32>
    %317 = arith.maximumf %315, %316 : vector<8x64xf32>
    %c3_89 = arith.constant 3 : index
    %318 = memref.load %arg6[%c3_89] : memref<8xf32, #tpu.memory_space<smem>>
    %319 = vector.broadcast %318 : f32 to vector<8x64xf32>
    %320 = arith.addf %293, %319 : vector<8x64xf32>
    %321 = vector.shape_cast %320 : vector<8x64xf32> to vector<1x8x64xf32>
    %cst_90 = arith.constant dense<0.000000e+00> : vector<1xf32>
    %322 = vector.multi_reduction <add>, %321, %cst_90 [1, 2] : vector<1x8x64xf32> to vector<1xf32>
    %323 = vector.shape_cast %322 : vector<1xf32> to vector<1x1x1xf32>
    %324 = vector.extract %323[0, 0, 0] : f32 from vector<1x1x1xf32>
    %cst_91 = arith.constant 0.001953125 : f32
    %325 = arith.mulf %324, %cst_91 : f32
    %326 = arith.mulf %320, %320 : vector<8x64xf32>
    %327 = vector.shape_cast %326 : vector<8x64xf32> to vector<1x8x64xf32>
    %cst_92 = arith.constant dense<0.000000e+00> : vector<1xf32>
    %328 = vector.multi_reduction <add>, %327, %cst_92 [1, 2] : vector<1x8x64xf32> to vector<1xf32>
    %329 = vector.shape_cast %328 : vector<1xf32> to vector<1x1x1xf32>
    %330 = vector.extract %329[0, 0, 0] : f32 from vector<1x1x1xf32>
    %cst_93 = arith.constant 0.001953125 : f32
    %331 = arith.mulf %330, %cst_93 : f32
    %332 = arith.mulf %325, %325 : f32
    %333 = arith.subf %331, %332 : f32
    %334 = vector.broadcast %325 : f32 to vector<8x64xf32>
    %335 = arith.subf %320, %334 : vector<8x64xf32>
    %cst_94 = arith.constant 9.99999974E-6 : f32
    %336 = arith.addf %333, %cst_94 : f32
    %337 = math.rsqrt %336 : f32
    %338 = vector.broadcast %337 : f32 to vector<8x64xf32>
    %339 = arith.mulf %335, %338 : vector<8x64xf32>
    %cst_95 = arith.constant 0.000000e+00 : f32
    %340 = vector.broadcast %cst_95 : f32 to vector<8x64xf32>
    %341 = arith.maximumf %339, %340 : vector<8x64xf32>
    %c3_96 = arith.constant 3 : index
    %342 = memref.load %arg7[%c3_96] : memref<8xf32, #tpu.memory_space<smem>>
    %343 = arith.addf %317, %341 : vector<8x64xf32>
    %344 = vector.broadcast %342 : f32 to vector<8x64xf32>
    %345 = arith.mulf %344, %343 : vector<8x64xf32>
    %346 = arith.addf %263, %345 : vector<8x64xf32>
    %c16_97 = arith.constant 16 : index
    %347 = memref.load %arg3[%c16_97] : memref<32xf32, #tpu.memory_space<smem>>
    %348 = vector.broadcast %347 : f32 to vector<8x64xf32>
    %349 = arith.mulf %348, %1 : vector<8x64xf32>
    %c16_98 = arith.constant 16 : index
    %350 = memref.load %arg5[%c16_98] : memref<32xf32, #tpu.memory_space<smem>>
    %351 = vector.broadcast %350 : f32 to vector<8x64xf32>
    %352 = arith.mulf %351, %9 : vector<8x64xf32>
    %c17 = arith.constant 17 : index
    %353 = memref.load %arg3[%c17] : memref<32xf32, #tpu.memory_space<smem>>
    %354 = vector.broadcast %353 : f32 to vector<8x64xf32>
    %355 = arith.mulf %354, %3 : vector<8x64xf32>
    %356 = arith.addf %349, %355 : vector<8x64xf32>
    %c17_99 = arith.constant 17 : index
    %357 = memref.load %arg5[%c17_99] : memref<32xf32, #tpu.memory_space<smem>>
    %358 = vector.broadcast %357 : f32 to vector<8x64xf32>
    %359 = arith.mulf %358, %11 : vector<8x64xf32>
    %360 = arith.addf %352, %359 : vector<8x64xf32>
    %c18 = arith.constant 18 : index
    %361 = memref.load %arg3[%c18] : memref<32xf32, #tpu.memory_space<smem>>
    %362 = vector.broadcast %361 : f32 to vector<8x64xf32>
    %363 = arith.mulf %362, %5 : vector<8x64xf32>
    %364 = arith.addf %356, %363 : vector<8x64xf32>
    %c18_100 = arith.constant 18 : index
    %365 = memref.load %arg5[%c18_100] : memref<32xf32, #tpu.memory_space<smem>>
    %366 = vector.broadcast %365 : f32 to vector<8x64xf32>
    %367 = arith.mulf %366, %13 : vector<8x64xf32>
    %368 = arith.addf %360, %367 : vector<8x64xf32>
    %c19 = arith.constant 19 : index
    %369 = memref.load %arg3[%c19] : memref<32xf32, #tpu.memory_space<smem>>
    %370 = vector.broadcast %369 : f32 to vector<8x64xf32>
    %371 = arith.mulf %370, %7 : vector<8x64xf32>
    %372 = arith.addf %364, %371 : vector<8x64xf32>
    %c19_101 = arith.constant 19 : index
    %373 = memref.load %arg5[%c19_101] : memref<32xf32, #tpu.memory_space<smem>>
    %374 = vector.broadcast %373 : f32 to vector<8x64xf32>
    %375 = arith.mulf %374, %15 : vector<8x64xf32>
    %376 = arith.addf %368, %375 : vector<8x64xf32>
    %c4_102 = arith.constant 4 : index
    %377 = memref.load %arg4[%c4_102] : memref<8xf32, #tpu.memory_space<smem>>
    %378 = vector.broadcast %377 : f32 to vector<8x64xf32>
    %379 = arith.addf %372, %378 : vector<8x64xf32>
    %380 = vector.shape_cast %379 : vector<8x64xf32> to vector<1x8x64xf32>
    %cst_103 = arith.constant dense<0.000000e+00> : vector<1xf32>
    %381 = vector.multi_reduction <add>, %380, %cst_103 [1, 2] : vector<1x8x64xf32> to vector<1xf32>
    %382 = vector.shape_cast %381 : vector<1xf32> to vector<1x1x1xf32>
    %383 = vector.extract %382[0, 0, 0] : f32 from vector<1x1x1xf32>
    %cst_104 = arith.constant 0.001953125 : f32
    %384 = arith.mulf %383, %cst_104 : f32
    %385 = arith.mulf %379, %379 : vector<8x64xf32>
    %386 = vector.shape_cast %385 : vector<8x64xf32> to vector<1x8x64xf32>
    %cst_105 = arith.constant dense<0.000000e+00> : vector<1xf32>
    %387 = vector.multi_reduction <add>, %386, %cst_105 [1, 2] : vector<1x8x64xf32> to vector<1xf32>
    %388 = vector.shape_cast %387 : vector<1xf32> to vector<1x1x1xf32>
    %389 = vector.extract %388[0, 0, 0] : f32 from vector<1x1x1xf32>
    %cst_106 = arith.constant 0.001953125 : f32
    %390 = arith.mulf %389, %cst_106 : f32
    %391 = arith.mulf %384, %384 : f32
    %392 = arith.subf %390, %391 : f32
    %393 = vector.broadcast %384 : f32 to vector<8x64xf32>
    %394 = arith.subf %379, %393 : vector<8x64xf32>
    %cst_107 = arith.constant 9.99999974E-6 : f32
    %395 = arith.addf %392, %cst_107 : f32
    %396 = math.rsqrt %395 : f32
    %397 = vector.broadcast %396 : f32 to vector<8x64xf32>
    %398 = arith.mulf %394, %397 : vector<8x64xf32>
    %cst_108 = arith.constant 0.000000e+00 : f32
    %399 = vector.broadcast %cst_108 : f32 to vector<8x64xf32>
    %400 = arith.maximumf %398, %399 : vector<8x64xf32>
    %c4_109 = arith.constant 4 : index
    %401 = memref.load %arg6[%c4_109] : memref<8xf32, #tpu.memory_space<smem>>
    %402 = vector.broadcast %401 : f32 to vector<8x64xf32>
    %403 = arith.addf %376, %402 : vector<8x64xf32>
    %404 = vector.shape_cast %403 : vector<8x64xf32> to vector<1x8x64xf32>
    %cst_110 = arith.constant dense<0.000000e+00> : vector<1xf32>
    %405 = vector.multi_reduction <add>, %404, %cst_110 [1, 2] : vector<1x8x64xf32> to vector<1xf32>
    %406 = vector.shape_cast %405 : vector<1xf32> to vector<1x1x1xf32>
    %407 = vector.extract %406[0, 0, 0] : f32 from vector<1x1x1xf32>
    %cst_111 = arith.constant 0.001953125 : f32
    %408 = arith.mulf %407, %cst_111 : f32
    %409 = arith.mulf %403, %403 : vector<8x64xf32>
    %410 = vector.shape_cast %409 : vector<8x64xf32> to vector<1x8x64xf32>
    %cst_112 = arith.constant dense<0.000000e+00> : vector<1xf32>
    %411 = vector.multi_reduction <add>, %410, %cst_112 [1, 2] : vector<1x8x64xf32> to vector<1xf32>
    %412 = vector.shape_cast %411 : vector<1xf32> to vector<1x1x1xf32>
    %413 = vector.extract %412[0, 0, 0] : f32 from vector<1x1x1xf32>
    %cst_113 = arith.constant 0.001953125 : f32
    %414 = arith.mulf %413, %cst_113 : f32
    %415 = arith.mulf %408, %408 : f32
    %416 = arith.subf %414, %415 : f32
    %417 = vector.broadcast %408 : f32 to vector<8x64xf32>
    %418 = arith.subf %403, %417 : vector<8x64xf32>
    %cst_114 = arith.constant 9.99999974E-6 : f32
    %419 = arith.addf %416, %cst_114 : f32
    %420 = math.rsqrt %419 : f32
    %421 = vector.broadcast %420 : f32 to vector<8x64xf32>
    %422 = arith.mulf %418, %421 : vector<8x64xf32>
    %cst_115 = arith.constant 0.000000e+00 : f32
    %423 = vector.broadcast %cst_115 : f32 to vector<8x64xf32>
    %424 = arith.maximumf %422, %423 : vector<8x64xf32>
    %c4_116 = arith.constant 4 : index
    %425 = memref.load %arg7[%c4_116] : memref<8xf32, #tpu.memory_space<smem>>
    %426 = arith.addf %400, %424 : vector<8x64xf32>
    %427 = vector.broadcast %425 : f32 to vector<8x64xf32>
    %428 = arith.mulf %427, %426 : vector<8x64xf32>
    %429 = arith.addf %346, %428 : vector<8x64xf32>
    %c20 = arith.constant 20 : index
    %430 = memref.load %arg3[%c20] : memref<32xf32, #tpu.memory_space<smem>>
    %431 = vector.broadcast %430 : f32 to vector<8x64xf32>
    %432 = arith.mulf %431, %1 : vector<8x64xf32>
    %c20_117 = arith.constant 20 : index
    %433 = memref.load %arg5[%c20_117] : memref<32xf32, #tpu.memory_space<smem>>
    %434 = vector.broadcast %433 : f32 to vector<8x64xf32>
    %435 = arith.mulf %434, %9 : vector<8x64xf32>
    %c21 = arith.constant 21 : index
    %436 = memref.load %arg3[%c21] : memref<32xf32, #tpu.memory_space<smem>>
    %437 = vector.broadcast %436 : f32 to vector<8x64xf32>
    %438 = arith.mulf %437, %3 : vector<8x64xf32>
    %439 = arith.addf %432, %438 : vector<8x64xf32>
    %c21_118 = arith.constant 21 : index
    %440 = memref.load %arg5[%c21_118] : memref<32xf32, #tpu.memory_space<smem>>
    %441 = vector.broadcast %440 : f32 to vector<8x64xf32>
    %442 = arith.mulf %441, %11 : vector<8x64xf32>
    %443 = arith.addf %435, %442 : vector<8x64xf32>
    %c22 = arith.constant 22 : index
    %444 = memref.load %arg3[%c22] : memref<32xf32, #tpu.memory_space<smem>>
    %445 = vector.broadcast %444 : f32 to vector<8x64xf32>
    %446 = arith.mulf %445, %5 : vector<8x64xf32>
    %447 = arith.addf %439, %446 : vector<8x64xf32>
    %c22_119 = arith.constant 22 : index
    %448 = memref.load %arg5[%c22_119] : memref<32xf32, #tpu.memory_space<smem>>
    %449 = vector.broadcast %448 : f32 to vector<8x64xf32>
    %450 = arith.mulf %449, %13 : vector<8x64xf32>
    %451 = arith.addf %443, %450 : vector<8x64xf32>
    %c23 = arith.constant 23 : index
    %452 = memref.load %arg3[%c23] : memref<32xf32, #tpu.memory_space<smem>>
    %453 = vector.broadcast %452 : f32 to vector<8x64xf32>
    %454 = arith.mulf %453, %7 : vector<8x64xf32>
    %455 = arith.addf %447, %454 : vector<8x64xf32>
    %c23_120 = arith.constant 23 : index
    %456 = memref.load %arg5[%c23_120] : memref<32xf32, #tpu.memory_space<smem>>
    %457 = vector.broadcast %456 : f32 to vector<8x64xf32>
    %458 = arith.mulf %457, %15 : vector<8x64xf32>
    %459 = arith.addf %451, %458 : vector<8x64xf32>
    %c5_121 = arith.constant 5 : index
    %460 = memref.load %arg4[%c5_121] : memref<8xf32, #tpu.memory_space<smem>>
    %461 = vector.broadcast %460 : f32 to vector<8x64xf32>
    %462 = arith.addf %455, %461 : vector<8x64xf32>
    %463 = vector.shape_cast %462 : vector<8x64xf32> to vector<1x8x64xf32>
    %cst_122 = arith.constant dense<0.000000e+00> : vector<1xf32>
    %464 = vector.multi_reduction <add>, %463, %cst_122 [1, 2] : vector<1x8x64xf32> to vector<1xf32>
    %465 = vector.shape_cast %464 : vector<1xf32> to vector<1x1x1xf32>
    %466 = vector.extract %465[0, 0, 0] : f32 from vector<1x1x1xf32>
    %cst_123 = arith.constant 0.001953125 : f32
    %467 = arith.mulf %466, %cst_123 : f32
    %468 = arith.mulf %462, %462 : vector<8x64xf32>
    %469 = vector.shape_cast %468 : vector<8x64xf32> to vector<1x8x64xf32>
    %cst_124 = arith.constant dense<0.000000e+00> : vector<1xf32>
    %470 = vector.multi_reduction <add>, %469, %cst_124 [1, 2] : vector<1x8x64xf32> to vector<1xf32>
    %471 = vector.shape_cast %470 : vector<1xf32> to vector<1x1x1xf32>
    %472 = vector.extract %471[0, 0, 0] : f32 from vector<1x1x1xf32>
    %cst_125 = arith.constant 0.001953125 : f32
    %473 = arith.mulf %472, %cst_125 : f32
    %474 = arith.mulf %467, %467 : f32
    %475 = arith.subf %473, %474 : f32
    %476 = vector.broadcast %467 : f32 to vector<8x64xf32>
    %477 = arith.subf %462, %476 : vector<8x64xf32>
    %cst_126 = arith.constant 9.99999974E-6 : f32
    %478 = arith.addf %475, %cst_126 : f32
    %479 = math.rsqrt %478 : f32
    %480 = vector.broadcast %479 : f32 to vector<8x64xf32>
    %481 = arith.mulf %477, %480 : vector<8x64xf32>
    %cst_127 = arith.constant 0.000000e+00 : f32
    %482 = vector.broadcast %cst_127 : f32 to vector<8x64xf32>
    %483 = arith.maximumf %481, %482 : vector<8x64xf32>
    %c5_128 = arith.constant 5 : index
    %484 = memref.load %arg6[%c5_128] : memref<8xf32, #tpu.memory_space<smem>>
    %485 = vector.broadcast %484 : f32 to vector<8x64xf32>
    %486 = arith.addf %459, %485 : vector<8x64xf32>
    %487 = vector.shape_cast %486 : vector<8x64xf32> to vector<1x8x64xf32>
    %cst_129 = arith.constant dense<0.000000e+00> : vector<1xf32>
    %488 = vector.multi_reduction <add>, %487, %cst_129 [1, 2] : vector<1x8x64xf32> to vector<1xf32>
    %489 = vector.shape_cast %488 : vector<1xf32> to vector<1x1x1xf32>
    %490 = vector.extract %489[0, 0, 0] : f32 from vector<1x1x1xf32>
    %cst_130 = arith.constant 0.001953125 : f32
    %491 = arith.mulf %490, %cst_130 : f32
    %492 = arith.mulf %486, %486 : vector<8x64xf32>
    %493 = vector.shape_cast %492 : vector<8x64xf32> to vector<1x8x64xf32>
    %cst_131 = arith.constant dense<0.000000e+00> : vector<1xf32>
    %494 = vector.multi_reduction <add>, %493, %cst_131 [1, 2] : vector<1x8x64xf32> to vector<1xf32>
    %495 = vector.shape_cast %494 : vector<1xf32> to vector<1x1x1xf32>
    %496 = vector.extract %495[0, 0, 0] : f32 from vector<1x1x1xf32>
    %cst_132 = arith.constant 0.001953125 : f32
    %497 = arith.mulf %496, %cst_132 : f32
    %498 = arith.mulf %491, %491 : f32
    %499 = arith.subf %497, %498 : f32
    %500 = vector.broadcast %491 : f32 to vector<8x64xf32>
    %501 = arith.subf %486, %500 : vector<8x64xf32>
    %cst_133 = arith.constant 9.99999974E-6 : f32
    %502 = arith.addf %499, %cst_133 : f32
    %503 = math.rsqrt %502 : f32
    %504 = vector.broadcast %503 : f32 to vector<8x64xf32>
    %505 = arith.mulf %501, %504 : vector<8x64xf32>
    %cst_134 = arith.constant 0.000000e+00 : f32
    %506 = vector.broadcast %cst_134 : f32 to vector<8x64xf32>
    %507 = arith.maximumf %505, %506 : vector<8x64xf32>
    %c5_135 = arith.constant 5 : index
    %508 = memref.load %arg7[%c5_135] : memref<8xf32, #tpu.memory_space<smem>>
    %509 = arith.addf %483, %507 : vector<8x64xf32>
    %510 = vector.broadcast %508 : f32 to vector<8x64xf32>
    %511 = arith.mulf %510, %509 : vector<8x64xf32>
    %512 = arith.addf %429, %511 : vector<8x64xf32>
    %c24_136 = arith.constant 24 : index
    %513 = memref.load %arg3[%c24_136] : memref<32xf32, #tpu.memory_space<smem>>
    %514 = vector.broadcast %513 : f32 to vector<8x64xf32>
    %515 = arith.mulf %514, %1 : vector<8x64xf32>
    %c24_137 = arith.constant 24 : index
    %516 = memref.load %arg5[%c24_137] : memref<32xf32, #tpu.memory_space<smem>>
    %517 = vector.broadcast %516 : f32 to vector<8x64xf32>
    %518 = arith.mulf %517, %9 : vector<8x64xf32>
    %c25 = arith.constant 25 : index
    %519 = memref.load %arg3[%c25] : memref<32xf32, #tpu.memory_space<smem>>
    %520 = vector.broadcast %519 : f32 to vector<8x64xf32>
    %521 = arith.mulf %520, %3 : vector<8x64xf32>
    %522 = arith.addf %515, %521 : vector<8x64xf32>
    %c25_138 = arith.constant 25 : index
    %523 = memref.load %arg5[%c25_138] : memref<32xf32, #tpu.memory_space<smem>>
    %524 = vector.broadcast %523 : f32 to vector<8x64xf32>
    %525 = arith.mulf %524, %11 : vector<8x64xf32>
    %526 = arith.addf %518, %525 : vector<8x64xf32>
    %c26 = arith.constant 26 : index
    %527 = memref.load %arg3[%c26] : memref<32xf32, #tpu.memory_space<smem>>
    %528 = vector.broadcast %527 : f32 to vector<8x64xf32>
    %529 = arith.mulf %528, %5 : vector<8x64xf32>
    %530 = arith.addf %522, %529 : vector<8x64xf32>
    %c26_139 = arith.constant 26 : index
    %531 = memref.load %arg5[%c26_139] : memref<32xf32, #tpu.memory_space<smem>>
    %532 = vector.broadcast %531 : f32 to vector<8x64xf32>
    %533 = arith.mulf %532, %13 : vector<8x64xf32>
    %534 = arith.addf %526, %533 : vector<8x64xf32>
    %c27 = arith.constant 27 : index
    %535 = memref.load %arg3[%c27] : memref<32xf32, #tpu.memory_space<smem>>
    %536 = vector.broadcast %535 : f32 to vector<8x64xf32>
    %537 = arith.mulf %536, %7 : vector<8x64xf32>
    %538 = arith.addf %530, %537 : vector<8x64xf32>
    %c27_140 = arith.constant 27 : index
    %539 = memref.load %arg5[%c27_140] : memref<32xf32, #tpu.memory_space<smem>>
    %540 = vector.broadcast %539 : f32 to vector<8x64xf32>
    %541 = arith.mulf %540, %15 : vector<8x64xf32>
    %542 = arith.addf %534, %541 : vector<8x64xf32>
    %c6_141 = arith.constant 6 : index
    %543 = memref.load %arg4[%c6_141] : memref<8xf32, #tpu.memory_space<smem>>
    %544 = vector.broadcast %543 : f32 to vector<8x64xf32>
    %545 = arith.addf %538, %544 : vector<8x64xf32>
    %546 = vector.shape_cast %545 : vector<8x64xf32> to vector<1x8x64xf32>
    %cst_142 = arith.constant dense<0.000000e+00> : vector<1xf32>
    %547 = vector.multi_reduction <add>, %546, %cst_142 [1, 2] : vector<1x8x64xf32> to vector<1xf32>
    %548 = vector.shape_cast %547 : vector<1xf32> to vector<1x1x1xf32>
    %549 = vector.extract %548[0, 0, 0] : f32 from vector<1x1x1xf32>
    %cst_143 = arith.constant 0.001953125 : f32
    %550 = arith.mulf %549, %cst_143 : f32
    %551 = arith.mulf %545, %545 : vector<8x64xf32>
    %552 = vector.shape_cast %551 : vector<8x64xf32> to vector<1x8x64xf32>
    %cst_144 = arith.constant dense<0.000000e+00> : vector<1xf32>
    %553 = vector.multi_reduction <add>, %552, %cst_144 [1, 2] : vector<1x8x64xf32> to vector<1xf32>
    %554 = vector.shape_cast %553 : vector<1xf32> to vector<1x1x1xf32>
    %555 = vector.extract %554[0, 0, 0] : f32 from vector<1x1x1xf32>
    %cst_145 = arith.constant 0.001953125 : f32
    %556 = arith.mulf %555, %cst_145 : f32
    %557 = arith.mulf %550, %550 : f32
    %558 = arith.subf %556, %557 : f32
    %559 = vector.broadcast %550 : f32 to vector<8x64xf32>
    %560 = arith.subf %545, %559 : vector<8x64xf32>
    %cst_146 = arith.constant 9.99999974E-6 : f32
    %561 = arith.addf %558, %cst_146 : f32
    %562 = math.rsqrt %561 : f32
    %563 = vector.broadcast %562 : f32 to vector<8x64xf32>
    %564 = arith.mulf %560, %563 : vector<8x64xf32>
    %cst_147 = arith.constant 0.000000e+00 : f32
    %565 = vector.broadcast %cst_147 : f32 to vector<8x64xf32>
    %566 = arith.maximumf %564, %565 : vector<8x64xf32>
    %c6_148 = arith.constant 6 : index
    %567 = memref.load %arg6[%c6_148] : memref<8xf32, #tpu.memory_space<smem>>
    %568 = vector.broadcast %567 : f32 to vector<8x64xf32>
    %569 = arith.addf %542, %568 : vector<8x64xf32>
    %570 = vector.shape_cast %569 : vector<8x64xf32> to vector<1x8x64xf32>
    %cst_149 = arith.constant dense<0.000000e+00> : vector<1xf32>
    %571 = vector.multi_reduction <add>, %570, %cst_149 [1, 2] : vector<1x8x64xf32> to vector<1xf32>
    %572 = vector.shape_cast %571 : vector<1xf32> to vector<1x1x1xf32>
    %573 = vector.extract %572[0, 0, 0] : f32 from vector<1x1x1xf32>
    %cst_150 = arith.constant 0.001953125 : f32
    %574 = arith.mulf %573, %cst_150 : f32
    %575 = arith.mulf %569, %569 : vector<8x64xf32>
    %576 = vector.shape_cast %575 : vector<8x64xf32> to vector<1x8x64xf32>
    %cst_151 = arith.constant dense<0.000000e+00> : vector<1xf32>
    %577 = vector.multi_reduction <add>, %576, %cst_151 [1, 2] : vector<1x8x64xf32> to vector<1xf32>
    %578 = vector.shape_cast %577 : vector<1xf32> to vector<1x1x1xf32>
    %579 = vector.extract %578[0, 0, 0] : f32 from vector<1x1x1xf32>
    %cst_152 = arith.constant 0.001953125 : f32
    %580 = arith.mulf %579, %cst_152 : f32
    %581 = arith.mulf %574, %574 : f32
    %582 = arith.subf %580, %581 : f32
    %583 = vector.broadcast %574 : f32 to vector<8x64xf32>
    %584 = arith.subf %569, %583 : vector<8x64xf32>
    %cst_153 = arith.constant 9.99999974E-6 : f32
    %585 = arith.addf %582, %cst_153 : f32
    %586 = math.rsqrt %585 : f32
    %587 = vector.broadcast %586 : f32 to vector<8x64xf32>
    %588 = arith.mulf %584, %587 : vector<8x64xf32>
    %cst_154 = arith.constant 0.000000e+00 : f32
    %589 = vector.broadcast %cst_154 : f32 to vector<8x64xf32>
    %590 = arith.maximumf %588, %589 : vector<8x64xf32>
    %c6_155 = arith.constant 6 : index
    %591 = memref.load %arg7[%c6_155] : memref<8xf32, #tpu.memory_space<smem>>
    %592 = arith.addf %566, %590 : vector<8x64xf32>
    %593 = vector.broadcast %591 : f32 to vector<8x64xf32>
    %594 = arith.mulf %593, %592 : vector<8x64xf32>
    %595 = arith.addf %512, %594 : vector<8x64xf32>
    %c28 = arith.constant 28 : index
    %596 = memref.load %arg3[%c28] : memref<32xf32, #tpu.memory_space<smem>>
    %597 = vector.broadcast %596 : f32 to vector<8x64xf32>
    %598 = arith.mulf %597, %1 : vector<8x64xf32>
    %c28_156 = arith.constant 28 : index
    %599 = memref.load %arg5[%c28_156] : memref<32xf32, #tpu.memory_space<smem>>
    %600 = vector.broadcast %599 : f32 to vector<8x64xf32>
    %601 = arith.mulf %600, %9 : vector<8x64xf32>
    %c29 = arith.constant 29 : index
    %602 = memref.load %arg3[%c29] : memref<32xf32, #tpu.memory_space<smem>>
    %603 = vector.broadcast %602 : f32 to vector<8x64xf32>
    %604 = arith.mulf %603, %3 : vector<8x64xf32>
    %605 = arith.addf %598, %604 : vector<8x64xf32>
    %c29_157 = arith.constant 29 : index
    %606 = memref.load %arg5[%c29_157] : memref<32xf32, #tpu.memory_space<smem>>
    %607 = vector.broadcast %606 : f32 to vector<8x64xf32>
    %608 = arith.mulf %607, %11 : vector<8x64xf32>
    %609 = arith.addf %601, %608 : vector<8x64xf32>
    %c30 = arith.constant 30 : index
    %610 = memref.load %arg3[%c30] : memref<32xf32, #tpu.memory_space<smem>>
    %611 = vector.broadcast %610 : f32 to vector<8x64xf32>
    %612 = arith.mulf %611, %5 : vector<8x64xf32>
    %613 = arith.addf %605, %612 : vector<8x64xf32>
    %c30_158 = arith.constant 30 : index
    %614 = memref.load %arg5[%c30_158] : memref<32xf32, #tpu.memory_space<smem>>
    %615 = vector.broadcast %614 : f32 to vector<8x64xf32>
    %616 = arith.mulf %615, %13 : vector<8x64xf32>
    %617 = arith.addf %609, %616 : vector<8x64xf32>
    %c31 = arith.constant 31 : index
    %618 = memref.load %arg3[%c31] : memref<32xf32, #tpu.memory_space<smem>>
    %619 = vector.broadcast %618 : f32 to vector<8x64xf32>
    %620 = arith.mulf %619, %7 : vector<8x64xf32>
    %621 = arith.addf %613, %620 : vector<8x64xf32>
    %c31_159 = arith.constant 31 : index
    %622 = memref.load %arg5[%c31_159] : memref<32xf32, #tpu.memory_space<smem>>
    %623 = vector.broadcast %622 : f32 to vector<8x64xf32>
    %624 = arith.mulf %623, %15 : vector<8x64xf32>
    %625 = arith.addf %617, %624 : vector<8x64xf32>
    %c7_160 = arith.constant 7 : index
    %626 = memref.load %arg4[%c7_160] : memref<8xf32, #tpu.memory_space<smem>>
    %627 = vector.broadcast %626 : f32 to vector<8x64xf32>
    %628 = arith.addf %621, %627 : vector<8x64xf32>
    %629 = vector.shape_cast %628 : vector<8x64xf32> to vector<1x8x64xf32>
    %cst_161 = arith.constant dense<0.000000e+00> : vector<1xf32>
    %630 = vector.multi_reduction <add>, %629, %cst_161 [1, 2] : vector<1x8x64xf32> to vector<1xf32>
    %631 = vector.shape_cast %630 : vector<1xf32> to vector<1x1x1xf32>
    %632 = vector.extract %631[0, 0, 0] : f32 from vector<1x1x1xf32>
    %cst_162 = arith.constant 0.001953125 : f32
    %633 = arith.mulf %632, %cst_162 : f32
    %634 = arith.mulf %628, %628 : vector<8x64xf32>
    %635 = vector.shape_cast %634 : vector<8x64xf32> to vector<1x8x64xf32>
    %cst_163 = arith.constant dense<0.000000e+00> : vector<1xf32>
    %636 = vector.multi_reduction <add>, %635, %cst_163 [1, 2] : vector<1x8x64xf32> to vector<1xf32>
    %637 = vector.shape_cast %636 : vector<1xf32> to vector<1x1x1xf32>
    %638 = vector.extract %637[0, 0, 0] : f32 from vector<1x1x1xf32>
    %cst_164 = arith.constant 0.001953125 : f32
    %639 = arith.mulf %638, %cst_164 : f32
    %640 = arith.mulf %633, %633 : f32
    %641 = arith.subf %639, %640 : f32
    %642 = vector.broadcast %633 : f32 to vector<8x64xf32>
    %643 = arith.subf %628, %642 : vector<8x64xf32>
    %cst_165 = arith.constant 9.99999974E-6 : f32
    %644 = arith.addf %641, %cst_165 : f32
    %645 = math.rsqrt %644 : f32
    %646 = vector.broadcast %645 : f32 to vector<8x64xf32>
    %647 = arith.mulf %643, %646 : vector<8x64xf32>
    %cst_166 = arith.constant 0.000000e+00 : f32
    %648 = vector.broadcast %cst_166 : f32 to vector<8x64xf32>
    %649 = arith.maximumf %647, %648 : vector<8x64xf32>
    %c7_167 = arith.constant 7 : index
    %650 = memref.load %arg6[%c7_167] : memref<8xf32, #tpu.memory_space<smem>>
    %651 = vector.broadcast %650 : f32 to vector<8x64xf32>
    %652 = arith.addf %625, %651 : vector<8x64xf32>
    %653 = vector.shape_cast %652 : vector<8x64xf32> to vector<1x8x64xf32>
    %cst_168 = arith.constant dense<0.000000e+00> : vector<1xf32>
    %654 = vector.multi_reduction <add>, %653, %cst_168 [1, 2] : vector<1x8x64xf32> to vector<1xf32>
    %655 = vector.shape_cast %654 : vector<1xf32> to vector<1x1x1xf32>
    %656 = vector.extract %655[0, 0, 0] : f32 from vector<1x1x1xf32>
    %cst_169 = arith.constant 0.001953125 : f32
    %657 = arith.mulf %656, %cst_169 : f32
    %658 = arith.mulf %652, %652 : vector<8x64xf32>
    %659 = vector.shape_cast %658 : vector<8x64xf32> to vector<1x8x64xf32>
    %cst_170 = arith.constant dense<0.000000e+00> : vector<1xf32>
    %660 = vector.multi_reduction <add>, %659, %cst_170 [1, 2] : vector<1x8x64xf32> to vector<1xf32>
    %661 = vector.shape_cast %660 : vector<1xf32> to vector<1x1x1xf32>
    %662 = vector.extract %661[0, 0, 0] : f32 from vector<1x1x1xf32>
    %cst_171 = arith.constant 0.001953125 : f32
    %663 = arith.mulf %662, %cst_171 : f32
    %664 = arith.mulf %657, %657 : f32
    %665 = arith.subf %663, %664 : f32
    %666 = vector.broadcast %657 : f32 to vector<8x64xf32>
    %667 = arith.subf %652, %666 : vector<8x64xf32>
    %cst_172 = arith.constant 9.99999974E-6 : f32
    %668 = arith.addf %665, %cst_172 : f32
    %669 = math.rsqrt %668 : f32
    %670 = vector.broadcast %669 : f32 to vector<8x64xf32>
    %671 = arith.mulf %667, %670 : vector<8x64xf32>
    %cst_173 = arith.constant 0.000000e+00 : f32
    %672 = vector.broadcast %cst_173 : f32 to vector<8x64xf32>
    %673 = arith.maximumf %671, %672 : vector<8x64xf32>
    %c7_174 = arith.constant 7 : index
    %674 = memref.load %arg7[%c7_174] : memref<8xf32, #tpu.memory_space<smem>>
    %675 = arith.addf %649, %673 : vector<8x64xf32>
    %676 = vector.broadcast %674 : f32 to vector<8x64xf32>
    %677 = arith.mulf %676, %675 : vector<8x64xf32>
    %678 = arith.addf %595, %677 : vector<8x64xf32>
    %c0_175 = arith.constant 0 : index
    %679 = memref.load %arg8[%c0_175] : memref<1xf32, #tpu.memory_space<smem>>
    %680 = vector.broadcast %679 : f32 to vector<8x64xf32>
    %681 = arith.addf %678, %680 : vector<8x64xf32>
    %682 = vector.shape_cast %681 : vector<8x64xf32> to vector<1x8x64xf32>
    %cst_176 = arith.constant dense<0.000000e+00> : vector<1xf32>
    %683 = vector.multi_reduction <add>, %682, %cst_176 [1, 2] : vector<1x8x64xf32> to vector<1xf32>
    %684 = vector.shape_cast %683 : vector<1xf32> to vector<1x1x1xf32>
    %685 = vector.extract %684[0, 0, 0] : f32 from vector<1x1x1xf32>
    %cst_177 = arith.constant 0.001953125 : f32
    %686 = arith.mulf %685, %cst_177 : f32
    %687 = arith.mulf %681, %681 : vector<8x64xf32>
    %688 = vector.shape_cast %687 : vector<8x64xf32> to vector<1x8x64xf32>
    %cst_178 = arith.constant dense<0.000000e+00> : vector<1xf32>
    %689 = vector.multi_reduction <add>, %688, %cst_178 [1, 2] : vector<1x8x64xf32> to vector<1xf32>
    %690 = vector.shape_cast %689 : vector<1xf32> to vector<1x1x1xf32>
    %691 = vector.extract %690[0, 0, 0] : f32 from vector<1x1x1xf32>
    %cst_179 = arith.constant 0.001953125 : f32
    %692 = arith.mulf %691, %cst_179 : f32
    %693 = arith.mulf %686, %686 : f32
    %694 = arith.subf %692, %693 : f32
    %695 = vector.broadcast %686 : f32 to vector<8x64xf32>
    %696 = arith.subf %681, %695 : vector<8x64xf32>
    %cst_180 = arith.constant 9.99999974E-6 : f32
    %697 = arith.addf %694, %cst_180 : f32
    %698 = math.rsqrt %697 : f32
    %699 = vector.broadcast %698 : f32 to vector<8x64xf32>
    %700 = arith.mulf %696, %699 : vector<8x64xf32>
    %cst_181 = arith.constant 0.000000e+00 : f32
    %701 = vector.broadcast %cst_181 : f32 to vector<8x64xf32>
    %702 = arith.subf %701, %700 : vector<8x64xf32>
    %703 = math.exp %702 : vector<8x64xf32>
    %cst_182 = arith.constant 1.000000e+00 : f32
    %704 = vector.broadcast %cst_182 : f32 to vector<8x64xf32>
    %705 = arith.addf %704, %703 : vector<8x64xf32>
    %cst_183 = arith.constant 1.000000e+00 : f32
    %706 = vector.broadcast %cst_183 : f32 to vector<8x64xf32>
    %707 = arith.divf %706, %705 : vector<8x64xf32>
    %cst_184 = arith.constant 1.000000e+00 : f32
    %708 = vector.broadcast %cst_184 : f32 to vector<8x64xf32>
    %709 = arith.addf %708, %707 : vector<8x64xf32>
    %710 = arith.mulf %1, %709 : vector<8x64xf32>
    %711 = arith.mulf %3, %709 : vector<8x64xf32>
    %712 = arith.mulf %5, %709 : vector<8x64xf32>
    %713 = arith.mulf %7, %709 : vector<8x64xf32>
    %714 = arith.maximumf %710, %1 : vector<8x64xf32>
    %715 = arith.addf %1, %3 : vector<8x64xf32>
    %716 = arith.maximumf %711, %3 : vector<8x64xf32>
    %717 = arith.maximumf %714, %716 : vector<8x64xf32>
    %718 = arith.addf %715, %5 : vector<8x64xf32>
    %719 = arith.maximumf %712, %5 : vector<8x64xf32>
    %720 = arith.maximumf %717, %719 : vector<8x64xf32>
    %721 = arith.addf %718, %7 : vector<8x64xf32>
    %722 = arith.maximumf %713, %7 : vector<8x64xf32>
    %723 = arith.maximumf %720, %722 : vector<8x64xf32>
    %cst_185 = arith.constant 2.000000e+00 : f32
    %724 = vector.broadcast %cst_185 : f32 to vector<8x64xf32>
    %725 = arith.addf %724, %707 : vector<8x64xf32>
    %726 = arith.mulf %721, %725 : vector<8x64xf32>
    %cst_186 = arith.constant 1.250000e-01 : f32
    %727 = vector.broadcast %cst_186 : f32 to vector<8x64xf32>
    %728 = arith.mulf %726, %727 : vector<8x64xf32>
    %cst_187 = arith.constant 0.000000e+00 : f32
    %729 = vector.broadcast %cst_187 : f32 to vector<24x100xf32>
    %c0_188 = arith.constant 0 : index
    %c0_189 = arith.constant 0 : index
    %730 = vector.load %arg16[%c0_188, %c0_189] : memref<24x100xf32, #tpu.memory_space<vmem>>, vector<24x100xf32>
    tpu.vector_store %arg16[%c0_188, %c0_189], %729 {strides = array<i32>} : memref<24x100xf32, #tpu.memory_space<vmem>>, vector<24x100xf32>,
    %c2_190 = arith.constant 2 : index
    %c18_191 = arith.constant 18 : index
    %731 = vector.load %arg16[%c2_190, %c18_191] : memref<24x100xf32, #tpu.memory_space<vmem>>, vector<8x64xf32>
    tpu.vector_store %arg16[%c2_190, %c18_191], %728 {strides = array<i32>} : memref<24x100xf32, #tpu.memory_space<vmem>>, vector<8x64xf32>,
    %c14_192 = arith.constant 14 : index
    %c18_193 = arith.constant 18 : index
    %732 = vector.load %arg16[%c14_192, %c18_193] : memref<24x100xf32, #tpu.memory_space<vmem>>, vector<8x64xf32>
    tpu.vector_store %arg16[%c14_192, %c18_193], %723 {strides = array<i32>} : memref<24x100xf32, #tpu.memory_space<vmem>>, vector<8x64xf32>,
    %733 = tpu.iota {dimensions = array<i32: 1>} : vector<8x64xi32>
    %c8_i32 = arith.constant 8 : i32
    %c0_i32 = arith.constant 0 : i32
    %734 = arith.cmpi eq, %c8_i32, %c0_i32 : i32
    %c1_i32 = arith.constant 1 : i32
    %735 = arith.select %734, %c1_i32, %c8_i32 : i32
    %736 = vector.broadcast %735 : i32 to vector<8x64xi32>
    %737 = arith.remsi %733, %736 : vector<8x64xi32>
    %c0_i32_194 = arith.constant 0 : i32
    %738 = vector.broadcast %c0_i32_194 : i32 to vector<8x64xi32>
    %739 = arith.cmpi ne, %737, %738 : vector<8x64xi32>
    %c0_i32_195 = arith.constant 0 : i32
    %740 = vector.broadcast %c0_i32_195 : i32 to vector<8x64xi32>
    %741 = arith.cmpi slt, %737, %740 : vector<8x64xi32>
    %c0_i32_196 = arith.constant 0 : i32
    %742 = arith.cmpi slt, %735, %c0_i32_196 : i32
    %743 = vector.broadcast %742 : i1 to vector<8x64xi1>
    %744 = vector.broadcast %743 : vector<8x64xi1> to vector<8x64xi1>
    %745 = arith.xori %741, %744 : vector<8x64xi1>
    %746 = arith.andi %745, %739 : vector<8x64xi1>
    %747 = vector.broadcast %735 : i32 to vector<8x64xi32>
    %748 = arith.addi %737, %747 : vector<8x64xi32>
    %749 = arith.select %746, %748, %737 : vector<8x64xi1>, vector<8x64xi32>
    %cst_197 = arith.constant 0.000000e+00 : f32
    %750 = vector.broadcast %cst_197 : f32 to vector<8x64xf32>
    %cst_198 = arith.constant 0.000000e+00 : f32
    %751 = vector.broadcast %cst_198 : f32 to vector<8x64xf32>
    %cst_199 = arith.constant 0.000000e+00 : f32
    %752 = vector.broadcast %cst_199 : f32 to vector<8x64xf32>
    %cst_200 = arith.constant 0.000000e+00 : f32
    %753 = vector.broadcast %cst_200 : f32 to vector<8x64xf32>
    %c0_201 = arith.constant 0 : index
    %c0_202 = arith.constant 0 : index
    %754 = vector.load %arg16[%c0_201, %c0_202] : memref<24x100xf32, #tpu.memory_space<vmem>>, vector<24x64xf32>
    %c0_203 = arith.constant 0 : index
    %c0_204 = arith.constant 0 : index
    %755 = vector.load %arg17[%c0_203, %c0_204] : memref<48x64xf32, #tpu.memory_space<vmem>>, vector<24x64xf32>
    tpu.vector_store %arg17[%c0_203, %c0_204], %754 {strides = array<i32>} : memref<48x64xf32, #tpu.memory_space<vmem>>, vector<24x64xf32>,
    %c0_205 = arith.constant 0 : index
    %756 = memref.load %arg13[%c0_205] : memref<250xf32, #tpu.memory_space<smem>>
    %c0_206 = arith.constant 0 : index
    %c0_207 = arith.constant 0 : index
    %757 = vector.load %arg17[%c0_206, %c0_207] : memref<48x64xf32, #tpu.memory_space<vmem>>, vector<8x64xf32>
    %758 = vector.broadcast %756 : f32 to vector<8x64xf32>
    %759 = arith.mulf %758, %757 : vector<8x64xf32>
    %760 = arith.addf %752, %759 : vector<8x64xf32>
    %c1_208 = arith.constant 1 : index
    %761 = memref.load %arg13[%c1_208] : memref<250xf32, #tpu.memory_space<smem>>
    %c12_209 = arith.constant 12 : index
    %c0_210 = arith.constant 0 : index
    %762 = vector.load %arg17[%c12_209, %c0_210] : memref<48x64xf32, #tpu.memory_space<vmem>>, vector<8x64xf32>
    %763 = vector.broadcast %761 : f32 to vector<8x64xf32>
    %764 = arith.mulf %763, %762 : vector<8x64xf32>
    %765 = arith.addf %753, %764 : vector<8x64xf32>
    %c50 = arith.constant 50 : index
    %766 = memref.load %arg13[%c50] : memref<250xf32, #tpu.memory_space<smem>>
    %c1_211 = arith.constant 1 : index
    %c0_212 = arith.constant 0 : index
    %767 = vector.load %arg17[%c1_211, %c0_212] : memref<48x64xf32, #tpu.memory_space<vmem>>, vector<8x64xf32>
    %768 = vector.broadcast %766 : f32 to vector<8x64xf32>
    %769 = arith.mulf %768, %767 : vector<8x64xf32>
    %770 = arith.addf %760, %769 : vector<8x64xf32>
    %c51 = arith.constant 51 : index
    %771 = memref.load %arg13[%c51] : memref<250xf32, #tpu.memory_space<smem>>
    %c13_213 = arith.constant 13 : index
    %c0_214 = arith.constant 0 : index
    %772 = vector.load %arg17[%c13_213, %c0_214] : memref<48x64xf32, #tpu.memory_space<vmem>>, vector<8x64xf32>
    %773 = vector.broadcast %771 : f32 to vector<8x64xf32>
    %774 = arith.mulf %773, %772 : vector<8x64xf32>
    %775 = arith.addf %765, %774 : vector<8x64xf32>
    %c100 = arith.constant 100 : index
    %776 = memref.load %arg13[%c100] : memref<250xf32, #tpu.memory_space<smem>>
    %c2_215 = arith.constant 2 : index
    %c0_216 = arith.constant 0 : index
    %777 = vector.load %arg17[%c2_215, %c0_216] : memref<48x64xf32, #tpu.memory_space<vmem>>, vector<8x64xf32>
    %778 = vector.broadcast %776 : f32 to vector<8x64xf32>
    %779 = arith.mulf %778, %777 : vector<8x64xf32>
    %780 = arith.addf %770, %779 : vector<8x64xf32>
    %c101 = arith.constant 101 : index
    %781 = memref.load %arg13[%c101] : memref<250xf32, #tpu.memory_space<smem>>
    %c14_217 = arith.constant 14 : index
    %c0_218 = arith.constant 0 : index
    %782 = vector.load %arg17[%c14_217, %c0_218] : memref<48x64xf32, #tpu.memory_space<vmem>>, vector<8x64xf32>
    %783 = vector.broadcast %781 : f32 to vector<8x64xf32>
    %784 = arith.mulf %783, %782 : vector<8x64xf32>
    %785 = arith.addf %775, %784 : vector<8x64xf32>
    %c150 = arith.constant 150 : index
    %786 = memref.load %arg13[%c150] : memref<250xf32, #tpu.memory_space<smem>>
    %c3_219 = arith.constant 3 : index
    %c0_220 = arith.constant 0 : index
    %787 = vector.load %arg17[%c3_219, %c0_220] : memref<48x64xf32, #tpu.memory_space<vmem>>, vector<8x64xf32>
    %788 = vector.broadcast %786 : f32 to vector<8x64xf32>
    %789 = arith.mulf %788, %787 : vector<8x64xf32>
    %790 = arith.addf %780, %789 : vector<8x64xf32>
    %c151 = arith.constant 151 : index
    %791 = memref.load %arg13[%c151] : memref<250xf32, #tpu.memory_space<smem>>
    %c15_221 = arith.constant 15 : index
    %c0_222 = arith.constant 0 : index
    %792 = vector.load %arg17[%c15_221, %c0_222] : memref<48x64xf32, #tpu.memory_space<vmem>>, vector<8x64xf32>
    %793 = vector.broadcast %791 : f32 to vector<8x64xf32>
    %794 = arith.mulf %793, %792 : vector<8x64xf32>
    %795 = arith.addf %785, %794 : vector<8x64xf32>
    %c200 = arith.constant 200 : index
    %796 = memref.load %arg13[%c200] : memref<250xf32, #tpu.memory_space<smem>>
    %c4_223 = arith.constant 4 : index
    %c0_224 = arith.constant 0 : index
    %797 = vector.load %arg17[%c4_223, %c0_224] : memref<48x64xf32, #tpu.memory_space<vmem>>, vector<8x64xf32>
    %798 = vector.broadcast %796 : f32 to vector<8x64xf32>
    %799 = arith.mulf %798, %797 : vector<8x64xf32>
    %800 = arith.addf %790, %799 : vector<8x64xf32>
    %c201 = arith.constant 201 : index
    %801 = memref.load %arg13[%c201] : memref<250xf32, #tpu.memory_space<smem>>
    %c16_225 = arith.constant 16 : index
    %c0_226 = arith.constant 0 : index
    %802 = vector.load %arg17[%c16_225, %c0_226] : memref<48x64xf32, #tpu.memory_space<vmem>>, vector<8x64xf32>
    %803 = vector.broadcast %801 : f32 to vector<8x64xf32>
    %804 = arith.mulf %803, %802 : vector<8x64xf32>
    %805 = arith.addf %795, %804 : vector<8x64xf32>
    %c0_227 = arith.constant 0 : index
    %c8_228 = arith.constant 8 : index
    %806 = vector.load %arg16[%c0_227, %c8_228] : memref<24x100xf32, #tpu.memory_space<vmem>>, vector<24x64xf32>
    %c24_229 = arith.constant 24 : index
    %c0_230 = arith.constant 0 : index
    %807 = vector.load %arg17[%c24_229, %c0_230] : memref<48x64xf32, #tpu.memory_space<vmem>>, vector<24x64xf32>
    tpu.vector_store %arg17[%c24_229, %c0_230], %806 {strides = array<i32>} : memref<48x64xf32, #tpu.memory_space<vmem>>, vector<24x64xf32>,
    %c10_231 = arith.constant 10 : index
    %808 = memref.load %arg13[%c10_231] : memref<250xf32, #tpu.memory_space<smem>>
    %c24_232 = arith.constant 24 : index
    %c0_233 = arith.constant 0 : index
    %809 = vector.load %arg17[%c24_232, %c0_233] : memref<48x64xf32, #tpu.memory_space<vmem>>, vector<8x64xf32>
    %810 = vector.broadcast %808 : f32 to vector<8x64xf32>
    %811 = arith.mulf %810, %809 : vector<8x64xf32>
    %812 = arith.addf %800, %811 : vector<8x64xf32>
    %c11_234 = arith.constant 11 : index
    %813 = memref.load %arg13[%c11_234] : memref<250xf32, #tpu.memory_space<smem>>
    %c36 = arith.constant 36 : index
    %c0_235 = arith.constant 0 : index
    %814 = vector.load %arg17[%c36, %c0_235] : memref<48x64xf32, #tpu.memory_space<vmem>>, vector<8x64xf32>
    %815 = vector.broadcast %813 : f32 to vector<8x64xf32>
    %816 = arith.mulf %815, %814 : vector<8x64xf32>
    %817 = arith.addf %805, %816 : vector<8x64xf32>
    %c60 = arith.constant 60 : index
    %818 = memref.load %arg13[%c60] : memref<250xf32, #tpu.memory_space<smem>>
    %c25_236 = arith.constant 25 : index
    %c0_237 = arith.constant 0 : index
    %819 = vector.load %arg17[%c25_236, %c0_237] : memref<48x64xf32, #tpu.memory_space<vmem>>, vector<8x64xf32>
    %820 = vector.broadcast %818 : f32 to vector<8x64xf32>
    %821 = arith.mulf %820, %819 : vector<8x64xf32>
    %822 = arith.addf %812, %821 : vector<8x64xf32>
    %c61 = arith.constant 61 : index
    %823 = memref.load %arg13[%c61] : memref<250xf32, #tpu.memory_space<smem>>
    %c37 = arith.constant 37 : index
    %c0_238 = arith.constant 0 : index
    %824 = vector.load %arg17[%c37, %c0_238] : memref<48x64xf32, #tpu.memory_space<vmem>>, vector<8x64xf32>
    %825 = vector.broadcast %823 : f32 to vector<8x64xf32>
    %826 = arith.mulf %825, %824 : vector<8x64xf32>
    %827 = arith.addf %817, %826 : vector<8x64xf32>
    %c110 = arith.constant 110 : index
    %828 = memref.load %arg13[%c110] : memref<250xf32, #tpu.memory_space<smem>>
    %c26_239 = arith.constant 26 : index
    %c0_240 = arith.constant 0 : index
    %829 = vector.load %arg17[%c26_239, %c0_240] : memref<48x64xf32, #tpu.memory_space<vmem>>, vector<8x64xf32>
    %830 = vector.broadcast %828 : f32 to vector<8x64xf32>
    %831 = arith.mulf %830, %829 : vector<8x64xf32>
    %832 = arith.addf %822, %831 : vector<8x64xf32>
    %c111 = arith.constant 111 : index
    %833 = memref.load %arg13[%c111] : memref<250xf32, #tpu.memory_space<smem>>
    %c38 = arith.constant 38 : index
    %c0_241 = arith.constant 0 : index
    %834 = vector.load %arg17[%c38, %c0_241] : memref<48x64xf32, #tpu.memory_space<vmem>>, vector<8x64xf32>
    %835 = vector.broadcast %833 : f32 to vector<8x64xf32>
    %836 = arith.mulf %835, %834 : vector<8x64xf32>
    %837 = arith.addf %827, %836 : vector<8x64xf32>
    %c160 = arith.constant 160 : index
    %838 = memref.load %arg13[%c160] : memref<250xf32, #tpu.memory_space<smem>>
    %c27_242 = arith.constant 27 : index
    %c0_243 = arith.constant 0 : index
    %839 = vector.load %arg17[%c27_242, %c0_243] : memref<48x64xf32, #tpu.memory_space<vmem>>, vector<8x64xf32>
    %840 = vector.broadcast %838 : f32 to vector<8x64xf32>
    %841 = arith.mulf %840, %839 : vector<8x64xf32>
    %842 = arith.addf %832, %841 : vector<8x64xf32>
    %c161 = arith.constant 161 : index
    %843 = memref.load %arg13[%c161] : memref<250xf32, #tpu.memory_space<smem>>
    %c39 = arith.constant 39 : index
    %c0_244 = arith.constant 0 : index
    %844 = vector.load %arg17[%c39, %c0_244] : memref<48x64xf32, #tpu.memory_space<vmem>>, vector<8x64xf32>
    %845 = vector.broadcast %843 : f32 to vector<8x64xf32>
    %846 = arith.mulf %845, %844 : vector<8x64xf32>
    %847 = arith.addf %837, %846 : vector<8x64xf32>
    %c210 = arith.constant 210 : index
    %848 = memref.load %arg13[%c210] : memref<250xf32, #tpu.memory_space<smem>>
    %c28_245 = arith.constant 28 : index
    %c0_246 = arith.constant 0 : index
    %849 = vector.load %arg17[%c28_245, %c0_246] : memref<48x64xf32, #tpu.memory_space<vmem>>, vector<8x64xf32>
    %850 = vector.broadcast %848 : f32 to vector<8x64xf32>
    %851 = arith.mulf %850, %849 : vector<8x64xf32>
    %852 = arith.addf %842, %851 : vector<8x64xf32>
    %c211 = arith.constant 211 : index
    %853 = memref.load %arg13[%c211] : memref<250xf32, #tpu.memory_space<smem>>
    %c40 = arith.constant 40 : index
    %c0_247 = arith.constant 0 : index
    %854 = vector.load %arg17[%c40, %c0_247] : memref<48x64xf32, #tpu.memory_space<vmem>>, vector<8x64xf32>
    %855 = vector.broadcast %853 : f32 to vector<8x64xf32>
    %856 = arith.mulf %855, %854 : vector<8x64xf32>
    %857 = arith.addf %847, %856 : vector<8x64xf32>
    %c0_248 = arith.constant 0 : index
    %c16_249 = arith.constant 16 : index
    %858 = vector.load %arg16[%c0_248, %c16_249] : memref<24x100xf32, #tpu.memory_space<vmem>>, vector<24x64xf32>
    %c0_250 = arith.constant 0 : index
    %c0_251 = arith.constant 0 : index
    %859 = vector.load %arg17[%c0_250, %c0_251] : memref<48x64xf32, #tpu.memory_space<vmem>>, vector<24x64xf32>
    tpu.vector_store %arg17[%c0_250, %c0_251], %858 {strides = array<i32>} : memref<48x64xf32, #tpu.memory_space<vmem>>, vector<24x64xf32>,
    %c20_252 = arith.constant 20 : index
    %860 = memref.load %arg13[%c20_252] : memref<250xf32, #tpu.memory_space<smem>>
    %c0_253 = arith.constant 0 : index
    %c0_254 = arith.constant 0 : index
    %861 = vector.load %arg17[%c0_253, %c0_254] : memref<48x64xf32, #tpu.memory_space<vmem>>, vector<8x64xf32>
    %862 = vector.broadcast %860 : f32 to vector<8x64xf32>
    %863 = arith.mulf %862, %861 : vector<8x64xf32>
    %864 = arith.addf %852, %863 : vector<8x64xf32>
    %c21_255 = arith.constant 21 : index
    %865 = memref.load %arg13[%c21_255] : memref<250xf32, #tpu.memory_space<smem>>
    %c12_256 = arith.constant 12 : index
    %c0_257 = arith.constant 0 : index
    %866 = vector.load %arg17[%c12_256, %c0_257] : memref<48x64xf32, #tpu.memory_space<vmem>>, vector<8x64xf32>
    %867 = vector.broadcast %865 : f32 to vector<8x64xf32>
    %868 = arith.mulf %867, %866 : vector<8x64xf32>
    %869 = arith.addf %857, %868 : vector<8x64xf32>
    %c70 = arith.constant 70 : index
    %870 = memref.load %arg13[%c70] : memref<250xf32, #tpu.memory_space<smem>>
    %c1_258 = arith.constant 1 : index
    %c0_259 = arith.constant 0 : index
    %871 = vector.load %arg17[%c1_258, %c0_259] : memref<48x64xf32, #tpu.memory_space<vmem>>, vector<8x64xf32>
    %872 = vector.broadcast %870 : f32 to vector<8x64xf32>
    %873 = arith.mulf %872, %871 : vector<8x64xf32>
    %874 = arith.addf %864, %873 : vector<8x64xf32>
    %c71 = arith.constant 71 : index
    %875 = memref.load %arg13[%c71] : memref<250xf32, #tpu.memory_space<smem>>
    %c13_260 = arith.constant 13 : index
    %c0_261 = arith.constant 0 : index
    %876 = vector.load %arg17[%c13_260, %c0_261] : memref<48x64xf32, #tpu.memory_space<vmem>>, vector<8x64xf32>
    %877 = vector.broadcast %875 : f32 to vector<8x64xf32>
    %878 = arith.mulf %877, %876 : vector<8x64xf32>
    %879 = arith.addf %869, %878 : vector<8x64xf32>
    %c120 = arith.constant 120 : index
    %880 = memref.load %arg13[%c120] : memref<250xf32, #tpu.memory_space<smem>>
    %c2_262 = arith.constant 2 : index
    %c0_263 = arith.constant 0 : index
    %881 = vector.load %arg17[%c2_262, %c0_263] : memref<48x64xf32, #tpu.memory_space<vmem>>, vector<8x64xf32>
    %882 = vector.broadcast %880 : f32 to vector<8x64xf32>
    %883 = arith.mulf %882, %881 : vector<8x64xf32>
    %884 = arith.addf %874, %883 : vector<8x64xf32>
    %c121 = arith.constant 121 : index
    %885 = memref.load %arg13[%c121] : memref<250xf32, #tpu.memory_space<smem>>
    %c14_264 = arith.constant 14 : index
    %c0_265 = arith.constant 0 : index
    %886 = vector.load %arg17[%c14_264, %c0_265] : memref<48x64xf32, #tpu.memory_space<vmem>>, vector<8x64xf32>
    %887 = vector.broadcast %885 : f32 to vector<8x64xf32>
    %888 = arith.mulf %887, %886 : vector<8x64xf32>
    %889 = arith.addf %879, %888 : vector<8x64xf32>
    %c170 = arith.constant 170 : index
    %890 = memref.load %arg13[%c170] : memref<250xf32, #tpu.memory_space<smem>>
    %c3_266 = arith.constant 3 : index
    %c0_267 = arith.constant 0 : index
    %891 = vector.load %arg17[%c3_266, %c0_267] : memref<48x64xf32, #tpu.memory_space<vmem>>, vector<8x64xf32>
    %892 = vector.broadcast %890 : f32 to vector<8x64xf32>
    %893 = arith.mulf %892, %891 : vector<8x64xf32>
    %894 = arith.addf %884, %893 : vector<8x64xf32>
    %c171 = arith.constant 171 : index
    %895 = memref.load %arg13[%c171] : memref<250xf32, #tpu.memory_space<smem>>
    %c15_268 = arith.constant 15 : index
    %c0_269 = arith.constant 0 : index
    %896 = vector.load %arg17[%c15_268, %c0_269] : memref<48x64xf32, #tpu.memory_space<vmem>>, vector<8x64xf32>
    %897 = vector.broadcast %895 : f32 to vector<8x64xf32>
    %898 = arith.mulf %897, %896 : vector<8x64xf32>
    %899 = arith.addf %889, %898 : vector<8x64xf32>
    %c220 = arith.constant 220 : index
    %900 = memref.load %arg13[%c220] : memref<250xf32, #tpu.memory_space<smem>>
    %c4_270 = arith.constant 4 : index
    %c0_271 = arith.constant 0 : index
    %901 = vector.load %arg17[%c4_270, %c0_271] : memref<48x64xf32, #tpu.memory_space<vmem>>, vector<8x64xf32>
    %902 = vector.broadcast %900 : f32 to vector<8x64xf32>
    %903 = arith.mulf %902, %901 : vector<8x64xf32>
    %904 = arith.addf %894, %903 : vector<8x64xf32>
    %c221 = arith.constant 221 : index
    %905 = memref.load %arg13[%c221] : memref<250xf32, #tpu.memory_space<smem>>
    %c16_272 = arith.constant 16 : index
    %c0_273 = arith.constant 0 : index
    %906 = vector.load %arg17[%c16_272, %c0_273] : memref<48x64xf32, #tpu.memory_space<vmem>>, vector<8x64xf32>
    %907 = vector.broadcast %905 : f32 to vector<8x64xf32>
    %908 = arith.mulf %907, %906 : vector<8x64xf32>
    %909 = arith.addf %899, %908 : vector<8x64xf32>
    %c0_274 = arith.constant 0 : index
    %c24_275 = arith.constant 24 : index
    %910 = vector.load %arg16[%c0_274, %c24_275] : memref<24x100xf32, #tpu.memory_space<vmem>>, vector<24x64xf32>
    %c24_276 = arith.constant 24 : index
    %c0_277 = arith.constant 0 : index
    %911 = vector.load %arg17[%c24_276, %c0_277] : memref<48x64xf32, #tpu.memory_space<vmem>>, vector<24x64xf32>
    tpu.vector_store %arg17[%c24_276, %c0_277], %910 {strides = array<i32>} : memref<48x64xf32, #tpu.memory_space<vmem>>, vector<24x64xf32>,
    %c30_278 = arith.constant 30 : index
    %912 = memref.load %arg13[%c30_278] : memref<250xf32, #tpu.memory_space<smem>>
    %c24_279 = arith.constant 24 : index
    %c0_280 = arith.constant 0 : index
    %913 = vector.load %arg17[%c24_279, %c0_280] : memref<48x64xf32, #tpu.memory_space<vmem>>, vector<8x64xf32>
    %914 = vector.broadcast %912 : f32 to vector<8x64xf32>
    %915 = arith.mulf %914, %913 : vector<8x64xf32>
    %916 = arith.addf %904, %915 : vector<8x64xf32>
    %c31_281 = arith.constant 31 : index
    %917 = memref.load %arg13[%c31_281] : memref<250xf32, #tpu.memory_space<smem>>
    %c36_282 = arith.constant 36 : index
    %c0_283 = arith.constant 0 : index
    %918 = vector.load %arg17[%c36_282, %c0_283] : memref<48x64xf32, #tpu.memory_space<vmem>>, vector<8x64xf32>
    %919 = vector.broadcast %917 : f32 to vector<8x64xf32>
    %920 = arith.mulf %919, %918 : vector<8x64xf32>
    %921 = arith.addf %909, %920 : vector<8x64xf32>
    %c80 = arith.constant 80 : index
    %922 = memref.load %arg13[%c80] : memref<250xf32, #tpu.memory_space<smem>>
    %c25_284 = arith.constant 25 : index
    %c0_285 = arith.constant 0 : index
    %923 = vector.load %arg17[%c25_284, %c0_285] : memref<48x64xf32, #tpu.memory_space<vmem>>, vector<8x64xf32>
    %924 = vector.broadcast %922 : f32 to vector<8x64xf32>
    %925 = arith.mulf %924, %923 : vector<8x64xf32>
    %926 = arith.addf %916, %925 : vector<8x64xf32>
    %c81 = arith.constant 81 : index
    %927 = memref.load %arg13[%c81] : memref<250xf32, #tpu.memory_space<smem>>
    %c37_286 = arith.constant 37 : index
    %c0_287 = arith.constant 0 : index
    %928 = vector.load %arg17[%c37_286, %c0_287] : memref<48x64xf32, #tpu.memory_space<vmem>>, vector<8x64xf32>
    %929 = vector.broadcast %927 : f32 to vector<8x64xf32>
    %930 = arith.mulf %929, %928 : vector<8x64xf32>
    %931 = arith.addf %921, %930 : vector<8x64xf32>
    %c130 = arith.constant 130 : index
    %932 = memref.load %arg13[%c130] : memref<250xf32, #tpu.memory_space<smem>>
    %c26_288 = arith.constant 26 : index
    %c0_289 = arith.constant 0 : index
    %933 = vector.load %arg17[%c26_288, %c0_289] : memref<48x64xf32, #tpu.memory_space<vmem>>, vector<8x64xf32>
    %934 = vector.broadcast %932 : f32 to vector<8x64xf32>
    %935 = arith.mulf %934, %933 : vector<8x64xf32>
    %936 = arith.addf %926, %935 : vector<8x64xf32>
    %c131 = arith.constant 131 : index
    %937 = memref.load %arg13[%c131] : memref<250xf32, #tpu.memory_space<smem>>
    %c38_290 = arith.constant 38 : index
    %c0_291 = arith.constant 0 : index
    %938 = vector.load %arg17[%c38_290, %c0_291] : memref<48x64xf32, #tpu.memory_space<vmem>>, vector<8x64xf32>
    %939 = vector.broadcast %937 : f32 to vector<8x64xf32>
    %940 = arith.mulf %939, %938 : vector<8x64xf32>
    %941 = arith.addf %931, %940 : vector<8x64xf32>
    %c180 = arith.constant 180 : index
    %942 = memref.load %arg13[%c180] : memref<250xf32, #tpu.memory_space<smem>>
    %c27_292 = arith.constant 27 : index
    %c0_293 = arith.constant 0 : index
    %943 = vector.load %arg17[%c27_292, %c0_293] : memref<48x64xf32, #tpu.memory_space<vmem>>, vector<8x64xf32>
    %944 = vector.broadcast %942 : f32 to vector<8x64xf32>
    %945 = arith.mulf %944, %943 : vector<8x64xf32>
    %946 = arith.addf %936, %945 : vector<8x64xf32>
    %c181 = arith.constant 181 : index
    %947 = memref.load %arg13[%c181] : memref<250xf32, #tpu.memory_space<smem>>
    %c39_294 = arith.constant 39 : index
    %c0_295 = arith.constant 0 : index
    %948 = vector.load %arg17[%c39_294, %c0_295] : memref<48x64xf32, #tpu.memory_space<vmem>>, vector<8x64xf32>
    %949 = vector.broadcast %947 : f32 to vector<8x64xf32>
    %950 = arith.mulf %949, %948 : vector<8x64xf32>
    %951 = arith.addf %941, %950 : vector<8x64xf32>
    %c230 = arith.constant 230 : index
    %952 = memref.load %arg13[%c230] : memref<250xf32, #tpu.memory_space<smem>>
    %c28_296 = arith.constant 28 : index
    %c0_297 = arith.constant 0 : index
    %953 = vector.load %arg17[%c28_296, %c0_297] : memref<48x64xf32, #tpu.memory_space<vmem>>, vector<8x64xf32>
    %954 = vector.broadcast %952 : f32 to vector<8x64xf32>
    %955 = arith.mulf %954, %953 : vector<8x64xf32>
    %956 = arith.addf %946, %955 : vector<8x64xf32>
    %c231 = arith.constant 231 : index
    %957 = memref.load %arg13[%c231] : memref<250xf32, #tpu.memory_space<smem>>
    %c40_298 = arith.constant 40 : index
    %c0_299 = arith.constant 0 : index
    %958 = vector.load %arg17[%c40_298, %c0_299] : memref<48x64xf32, #tpu.memory_space<vmem>>, vector<8x64xf32>
    %959 = vector.broadcast %957 : f32 to vector<8x64xf32>
    %960 = arith.mulf %959, %958 : vector<8x64xf32>
    %961 = arith.addf %951, %960 : vector<8x64xf32>
    %c0_300 = arith.constant 0 : index
    %c32 = arith.constant 32 : index
    %962 = vector.load %arg16[%c0_300, %c32] : memref<24x100xf32, #tpu.memory_space<vmem>>, vector<24x64xf32>
    %c0_301 = arith.constant 0 : index
    %c0_302 = arith.constant 0 : index
    %963 = vector.load %arg17[%c0_301, %c0_302] : memref<48x64xf32, #tpu.memory_space<vmem>>, vector<24x64xf32>
    tpu.vector_store %arg17[%c0_301, %c0_302], %962 {strides = array<i32>} : memref<48x64xf32, #tpu.memory_space<vmem>>, vector<24x64xf32>,
    %c40_303 = arith.constant 40 : index
    %964 = memref.load %arg13[%c40_303] : memref<250xf32, #tpu.memory_space<smem>>
    %c0_304 = arith.constant 0 : index
    %c0_305 = arith.constant 0 : index
    %965 = vector.load %arg17[%c0_304, %c0_305] : memref<48x64xf32, #tpu.memory_space<vmem>>, vector<8x64xf32>
    %966 = vector.broadcast %964 : f32 to vector<8x64xf32>
    %967 = arith.mulf %966, %965 : vector<8x64xf32>
    %968 = arith.addf %956, %967 : vector<8x64xf32>
    %c41 = arith.constant 41 : index
    %969 = memref.load %arg13[%c41] : memref<250xf32, #tpu.memory_space<smem>>
    %c12_306 = arith.constant 12 : index
    %c0_307 = arith.constant 0 : index
    %970 = vector.load %arg17[%c12_306, %c0_307] : memref<48x64xf32, #tpu.memory_space<vmem>>, vector<8x64xf32>
    %971 = vector.broadcast %969 : f32 to vector<8x64xf32>
    %972 = arith.mulf %971, %970 : vector<8x64xf32>
    %973 = arith.addf %961, %972 : vector<8x64xf32>
    %c90 = arith.constant 90 : index
    %974 = memref.load %arg13[%c90] : memref<250xf32, #tpu.memory_space<smem>>
    %c1_308 = arith.constant 1 : index
    %c0_309 = arith.constant 0 : index
    %975 = vector.load %arg17[%c1_308, %c0_309] : memref<48x64xf32, #tpu.memory_space<vmem>>, vector<8x64xf32>
    %976 = vector.broadcast %974 : f32 to vector<8x64xf32>
    %977 = arith.mulf %976, %975 : vector<8x64xf32>
    %978 = arith.addf %968, %977 : vector<8x64xf32>
    %c91 = arith.constant 91 : index
    %979 = memref.load %arg13[%c91] : memref<250xf32, #tpu.memory_space<smem>>
    %c13_310 = arith.constant 13 : index
    %c0_311 = arith.constant 0 : index
    %980 = vector.load %arg17[%c13_310, %c0_311] : memref<48x64xf32, #tpu.memory_space<vmem>>, vector<8x64xf32>
    %981 = vector.broadcast %979 : f32 to vector<8x64xf32>
    %982 = arith.mulf %981, %980 : vector<8x64xf32>
    %983 = arith.addf %973, %982 : vector<8x64xf32>
    %c140 = arith.constant 140 : index
    %984 = memref.load %arg13[%c140] : memref<250xf32, #tpu.memory_space<smem>>
    %c2_312 = arith.constant 2 : index
    %c0_313 = arith.constant 0 : index
    %985 = vector.load %arg17[%c2_312, %c0_313] : memref<48x64xf32, #tpu.memory_space<vmem>>, vector<8x64xf32>
    %986 = vector.broadcast %984 : f32 to vector<8x64xf32>
    %987 = arith.mulf %986, %985 : vector<8x64xf32>
    %988 = arith.addf %978, %987 : vector<8x64xf32>
    %c141 = arith.constant 141 : index
    %989 = memref.load %arg13[%c141] : memref<250xf32, #tpu.memory_space<smem>>
    %c14_314 = arith.constant 14 : index
    %c0_315 = arith.constant 0 : index
    %990 = vector.load %arg17[%c14_314, %c0_315] : memref<48x64xf32, #tpu.memory_space<vmem>>, vector<8x64xf32>
    %991 = vector.broadcast %989 : f32 to vector<8x64xf32>
    %992 = arith.mulf %991, %990 : vector<8x64xf32>
    %993 = arith.addf %983, %992 : vector<8x64xf32>
    %c190 = arith.constant 190 : index
    %994 = memref.load %arg13[%c190] : memref<250xf32, #tpu.memory_space<smem>>
    %c3_316 = arith.constant 3 : index
    %c0_317 = arith.constant 0 : index
    %995 = vector.load %arg17[%c3_316, %c0_317] : memref<48x64xf32, #tpu.memory_space<vmem>>, vector<8x64xf32>
    %996 = vector.broadcast %994 : f32 to vector<8x64xf32>
    %997 = arith.mulf %996, %995 : vector<8x64xf32>
    %998 = arith.addf %988, %997 : vector<8x64xf32>
    %c191 = arith.constant 191 : index
    %999 = memref.load %arg13[%c191] : memref<250xf32, #tpu.memory_space<smem>>
    %c15_318 = arith.constant 15 : index
    %c0_319 = arith.constant 0 : index
    %1000 = vector.load %arg17[%c15_318, %c0_319] : memref<48x64xf32, #tpu.memory_space<vmem>>, vector<8x64xf32>
    %1001 = vector.broadcast %999 : f32 to vector<8x64xf32>
    %1002 = arith.mulf %1001, %1000 : vector<8x64xf32>
    %1003 = arith.addf %993, %1002 : vector<8x64xf32>
    %c240 = arith.constant 240 : index
    %1004 = memref.load %arg13[%c240] : memref<250xf32, #tpu.memory_space<smem>>
    %c4_320 = arith.constant 4 : index
    %c0_321 = arith.constant 0 : index
    %1005 = vector.load %arg17[%c4_320, %c0_321] : memref<48x64xf32, #tpu.memory_space<vmem>>, vector<8x64xf32>
    %1006 = vector.broadcast %1004 : f32 to vector<8x64xf32>
    %1007 = arith.mulf %1006, %1005 : vector<8x64xf32>
    %1008 = arith.addf %998, %1007 : vector<8x64xf32>
    %c241 = arith.constant 241 : index
    %1009 = memref.load %arg13[%c241] : memref<250xf32, #tpu.memory_space<smem>>
    %c16_322 = arith.constant 16 : index
    %c0_323 = arith.constant 0 : index
    %1010 = vector.load %arg17[%c16_322, %c0_323] : memref<48x64xf32, #tpu.memory_space<vmem>>, vector<8x64xf32>
    %1011 = vector.broadcast %1009 : f32 to vector<8x64xf32>
    %1012 = arith.mulf %1011, %1010 : vector<8x64xf32>
    %1013 = arith.addf %1003, %1012 : vector<8x64xf32>
    %c2_i32 = arith.constant 2 : i32
    %1014 = vector.broadcast %c2_i32 : i32 to vector<8x64xi32>
    %1015 = arith.cmpi sge, %749, %1014 : vector<8x64xi32>
    %c10_i32 = arith.constant 10 : i32
    %1016 = vector.broadcast %c10_i32 : i32 to vector<8x64xi32>
    %1017 = arith.cmpi slt, %749, %1016 : vector<8x64xi32>
    %1018 = arith.andi %1015, %1017 : vector<8x64xi1>
    %cst_324 = arith.constant 0.000000e+00 : f32
    %1019 = vector.broadcast %cst_324 : f32 to vector<8x64xf32>
    %1020 = arith.select %1018, %1008, %1019 : vector<8x64xi1>, vector<8x64xf32>
    %1021 = arith.addf %750, %1020 : vector<8x64xf32>
    %cst_325 = arith.constant 0.000000e+00 : f32
    %1022 = vector.broadcast %cst_325 : f32 to vector<8x64xf32>
    %1023 = arith.select %1018, %1013, %1022 : vector<8x64xi1>, vector<8x64xf32>
    %1024 = arith.addf %751, %1023 : vector<8x64xf32>
    %cst_326 = arith.constant 0.000000e+00 : f32
    %1025 = vector.broadcast %cst_326 : f32 to vector<8x64xf32>
    %cst_327 = arith.constant 0.000000e+00 : f32
    %1026 = vector.broadcast %cst_327 : f32 to vector<8x64xf32>
    %c0_328 = arith.constant 0 : index
    %c1_329 = arith.constant 1 : index
    %1027 = vector.load %arg16[%c0_328, %c1_329] : memref<24x100xf32, #tpu.memory_space<vmem>>, vector<24x64xf32>
    %c24_330 = arith.constant 24 : index
    %c0_331 = arith.constant 0 : index
    %1028 = vector.load %arg17[%c24_330, %c0_331] : memref<48x64xf32, #tpu.memory_space<vmem>>, vector<24x64xf32>
    tpu.vector_store %arg17[%c24_330, %c0_331], %1027 {strides = array<i32>} : memref<48x64xf32, #tpu.memory_space<vmem>>, vector<24x64xf32>,
    %c2_332 = arith.constant 2 : index
    %1029 = memref.load %arg13[%c2_332] : memref<250xf32, #tpu.memory_space<smem>>
    %c24_333 = arith.constant 24 : index
    %c0_334 = arith.constant 0 : index
    %1030 = vector.load %arg17[%c24_333, %c0_334] : memref<48x64xf32, #tpu.memory_space<vmem>>, vector<8x64xf32>
    %1031 = vector.broadcast %1029 : f32 to vector<8x64xf32>
    %1032 = arith.mulf %1031, %1030 : vector<8x64xf32>
    %1033 = arith.addf %1025, %1032 : vector<8x64xf32>
    %c3_335 = arith.constant 3 : index
    %1034 = memref.load %arg13[%c3_335] : memref<250xf32, #tpu.memory_space<smem>>
    %c36_336 = arith.constant 36 : index
    %c0_337 = arith.constant 0 : index
    %1035 = vector.load %arg17[%c36_336, %c0_337] : memref<48x64xf32, #tpu.memory_space<vmem>>, vector<8x64xf32>
    %1036 = vector.broadcast %1034 : f32 to vector<8x64xf32>
    %1037 = arith.mulf %1036, %1035 : vector<8x64xf32>
    %1038 = arith.addf %1026, %1037 : vector<8x64xf32>
    %c52 = arith.constant 52 : index
    %1039 = memref.load %arg13[%c52] : memref<250xf32, #tpu.memory_space<smem>>
    %c25_338 = arith.constant 25 : index
    %c0_339 = arith.constant 0 : index
    %1040 = vector.load %arg17[%c25_338, %c0_339] : memref<48x64xf32, #tpu.memory_space<vmem>>, vector<8x64xf32>
    %1041 = vector.broadcast %1039 : f32 to vector<8x64xf32>
    %1042 = arith.mulf %1041, %1040 : vector<8x64xf32>
    %1043 = arith.addf %1033, %1042 : vector<8x64xf32>
    %c53 = arith.constant 53 : index
    %1044 = memref.load %arg13[%c53] : memref<250xf32, #tpu.memory_space<smem>>
    %c37_340 = arith.constant 37 : index
    %c0_341 = arith.constant 0 : index
    %1045 = vector.load %arg17[%c37_340, %c0_341] : memref<48x64xf32, #tpu.memory_space<vmem>>, vector<8x64xf32>
    %1046 = vector.broadcast %1044 : f32 to vector<8x64xf32>
    %1047 = arith.mulf %1046, %1045 : vector<8x64xf32>
    %1048 = arith.addf %1038, %1047 : vector<8x64xf32>
    %c102 = arith.constant 102 : index
    %1049 = memref.load %arg13[%c102] : memref<250xf32, #tpu.memory_space<smem>>
    %c26_342 = arith.constant 26 : index
    %c0_343 = arith.constant 0 : index
    %1050 = vector.load %arg17[%c26_342, %c0_343] : memref<48x64xf32, #tpu.memory_space<vmem>>, vector<8x64xf32>
    %1051 = vector.broadcast %1049 : f32 to vector<8x64xf32>
    %1052 = arith.mulf %1051, %1050 : vector<8x64xf32>
    %1053 = arith.addf %1043, %1052 : vector<8x64xf32>
    %c103 = arith.constant 103 : index
    %1054 = memref.load %arg13[%c103] : memref<250xf32, #tpu.memory_space<smem>>
    %c38_344 = arith.constant 38 : index
    %c0_345 = arith.constant 0 : index
    %1055 = vector.load %arg17[%c38_344, %c0_345] : memref<48x64xf32, #tpu.memory_space<vmem>>, vector<8x64xf32>
    %1056 = vector.broadcast %1054 : f32 to vector<8x64xf32>
    %1057 = arith.mulf %1056, %1055 : vector<8x64xf32>
    %1058 = arith.addf %1048, %1057 : vector<8x64xf32>
    %c152 = arith.constant 152 : index
    %1059 = memref.load %arg13[%c152] : memref<250xf32, #tpu.memory_space<smem>>
    %c27_346 = arith.constant 27 : index
    %c0_347 = arith.constant 0 : index
    %1060 = vector.load %arg17[%c27_346, %c0_347] : memref<48x64xf32, #tpu.memory_space<vmem>>, vector<8x64xf32>
    %1061 = vector.broadcast %1059 : f32 to vector<8x64xf32>
    %1062 = arith.mulf %1061, %1060 : vector<8x64xf32>
    %1063 = arith.addf %1053, %1062 : vector<8x64xf32>
    %c153 = arith.constant 153 : index
    %1064 = memref.load %arg13[%c153] : memref<250xf32, #tpu.memory_space<smem>>
    %c39_348 = arith.constant 39 : index
    %c0_349 = arith.constant 0 : index
    %1065 = vector.load %arg17[%c39_348, %c0_349] : memref<48x64xf32, #tpu.memory_space<vmem>>, vector<8x64xf32>
    %1066 = vector.broadcast %1064 : f32 to vector<8x64xf32>
    %1067 = arith.mulf %1066, %1065 : vector<8x64xf32>
    %1068 = arith.addf %1058, %1067 : vector<8x64xf32>
    %c202 = arith.constant 202 : index
    %1069 = memref.load %arg13[%c202] : memref<250xf32, #tpu.memory_space<smem>>
    %c28_350 = arith.constant 28 : index
    %c0_351 = arith.constant 0 : index
    %1070 = vector.load %arg17[%c28_350, %c0_351] : memref<48x64xf32, #tpu.memory_space<vmem>>, vector<8x64xf32>
    %1071 = vector.broadcast %1069 : f32 to vector<8x64xf32>
    %1072 = arith.mulf %1071, %1070 : vector<8x64xf32>
    %1073 = arith.addf %1063, %1072 : vector<8x64xf32>
    %c203 = arith.constant 203 : index
    %1074 = memref.load %arg13[%c203] : memref<250xf32, #tpu.memory_space<smem>>
    %c40_352 = arith.constant 40 : index
    %c0_353 = arith.constant 0 : index
    %1075 = vector.load %arg17[%c40_352, %c0_353] : memref<48x64xf32, #tpu.memory_space<vmem>>, vector<8x64xf32>
    %1076 = vector.broadcast %1074 : f32 to vector<8x64xf32>
    %1077 = arith.mulf %1076, %1075 : vector<8x64xf32>
    %1078 = arith.addf %1068, %1077 : vector<8x64xf32>
    %c0_354 = arith.constant 0 : index
    %c9_355 = arith.constant 9 : index
    %1079 = vector.load %arg16[%c0_354, %c9_355] : memref<24x100xf32, #tpu.memory_space<vmem>>, vector<24x64xf32>
    %c0_356 = arith.constant 0 : index
    %c0_357 = arith.constant 0 : index
    %1080 = vector.load %arg17[%c0_356, %c0_357] : memref<48x64xf32, #tpu.memory_space<vmem>>, vector<24x64xf32>
    tpu.vector_store %arg17[%c0_356, %c0_357], %1079 {strides = array<i32>} : memref<48x64xf32, #tpu.memory_space<vmem>>, vector<24x64xf32>,
    %c12_358 = arith.constant 12 : index
    %1081 = memref.load %arg13[%c12_358] : memref<250xf32, #tpu.memory_space<smem>>
    %c0_359 = arith.constant 0 : index
    %c0_360 = arith.constant 0 : index
    %1082 = vector.load %arg17[%c0_359, %c0_360] : memref<48x64xf32, #tpu.memory_space<vmem>>, vector<8x64xf32>
    %1083 = vector.broadcast %1081 : f32 to vector<8x64xf32>
    %1084 = arith.mulf %1083, %1082 : vector<8x64xf32>
    %1085 = arith.addf %1073, %1084 : vector<8x64xf32>
    %c13_361 = arith.constant 13 : index
    %1086 = memref.load %arg13[%c13_361] : memref<250xf32, #tpu.memory_space<smem>>
    %c12_362 = arith.constant 12 : index
    %c0_363 = arith.constant 0 : index
    %1087 = vector.load %arg17[%c12_362, %c0_363] : memref<48x64xf32, #tpu.memory_space<vmem>>, vector<8x64xf32>
    %1088 = vector.broadcast %1086 : f32 to vector<8x64xf32>
    %1089 = arith.mulf %1088, %1087 : vector<8x64xf32>
    %1090 = arith.addf %1078, %1089 : vector<8x64xf32>
    %c62 = arith.constant 62 : index
    %1091 = memref.load %arg13[%c62] : memref<250xf32, #tpu.memory_space<smem>>
    %c1_364 = arith.constant 1 : index
    %c0_365 = arith.constant 0 : index
    %1092 = vector.load %arg17[%c1_364, %c0_365] : memref<48x64xf32, #tpu.memory_space<vmem>>, vector<8x64xf32>
    %1093 = vector.broadcast %1091 : f32 to vector<8x64xf32>
    %1094 = arith.mulf %1093, %1092 : vector<8x64xf32>
    %1095 = arith.addf %1085, %1094 : vector<8x64xf32>
    %c63 = arith.constant 63 : index
    %1096 = memref.load %arg13[%c63] : memref<250xf32, #tpu.memory_space<smem>>
    %c13_366 = arith.constant 13 : index
    %c0_367 = arith.constant 0 : index
    %1097 = vector.load %arg17[%c13_366, %c0_367] : memref<48x64xf32, #tpu.memory_space<vmem>>, vector<8x64xf32>
    %1098 = vector.broadcast %1096 : f32 to vector<8x64xf32>
    %1099 = arith.mulf %1098, %1097 : vector<8x64xf32>
    %1100 = arith.addf %1090, %1099 : vector<8x64xf32>
    %c112 = arith.constant 112 : index
    %1101 = memref.load %arg13[%c112] : memref<250xf32, #tpu.memory_space<smem>>
    %c2_368 = arith.constant 2 : index
    %c0_369 = arith.constant 0 : index
    %1102 = vector.load %arg17[%c2_368, %c0_369] : memref<48x64xf32, #tpu.memory_space<vmem>>, vector<8x64xf32>
    %1103 = vector.broadcast %1101 : f32 to vector<8x64xf32>
    %1104 = arith.mulf %1103, %1102 : vector<8x64xf32>
    %1105 = arith.addf %1095, %1104 : vector<8x64xf32>
    %c113 = arith.constant 113 : index
    %1106 = memref.load %arg13[%c113] : memref<250xf32, #tpu.memory_space<smem>>
    %c14_370 = arith.constant 14 : index
    %c0_371 = arith.constant 0 : index
    %1107 = vector.load %arg17[%c14_370, %c0_371] : memref<48x64xf32, #tpu.memory_space<vmem>>, vector<8x64xf32>
    %1108 = vector.broadcast %1106 : f32 to vector<8x64xf32>
    %1109 = arith.mulf %1108, %1107 : vector<8x64xf32>
    %1110 = arith.addf %1100, %1109 : vector<8x64xf32>
    %c162 = arith.constant 162 : index
    %1111 = memref.load %arg13[%c162] : memref<250xf32, #tpu.memory_space<smem>>
    %c3_372 = arith.constant 3 : index
    %c0_373 = arith.constant 0 : index
    %1112 = vector.load %arg17[%c3_372, %c0_373] : memref<48x64xf32, #tpu.memory_space<vmem>>, vector<8x64xf32>
    %1113 = vector.broadcast %1111 : f32 to vector<8x64xf32>
    %1114 = arith.mulf %1113, %1112 : vector<8x64xf32>
    %1115 = arith.addf %1105, %1114 : vector<8x64xf32>
    %c163 = arith.constant 163 : index
    %1116 = memref.load %arg13[%c163] : memref<250xf32, #tpu.memory_space<smem>>
    %c15_374 = arith.constant 15 : index
    %c0_375 = arith.constant 0 : index
    %1117 = vector.load %arg17[%c15_374, %c0_375] : memref<48x64xf32, #tpu.memory_space<vmem>>, vector<8x64xf32>
    %1118 = vector.broadcast %1116 : f32 to vector<8x64xf32>
    %1119 = arith.mulf %1118, %1117 : vector<8x64xf32>
    %1120 = arith.addf %1110, %1119 : vector<8x64xf32>
    %c212 = arith.constant 212 : index
    %1121 = memref.load %arg13[%c212] : memref<250xf32, #tpu.memory_space<smem>>
    %c4_376 = arith.constant 4 : index
    %c0_377 = arith.constant 0 : index
    %1122 = vector.load %arg17[%c4_376, %c0_377] : memref<48x64xf32, #tpu.memory_space<vmem>>, vector<8x64xf32>
    %1123 = vector.broadcast %1121 : f32 to vector<8x64xf32>
    %1124 = arith.mulf %1123, %1122 : vector<8x64xf32>
    %1125 = arith.addf %1115, %1124 : vector<8x64xf32>
    %c213 = arith.constant 213 : index
    %1126 = memref.load %arg13[%c213] : memref<250xf32, #tpu.memory_space<smem>>
    %c16_378 = arith.constant 16 : index
    %c0_379 = arith.constant 0 : index
    %1127 = vector.load %arg17[%c16_378, %c0_379] : memref<48x64xf32, #tpu.memory_space<vmem>>, vector<8x64xf32>
    %1128 = vector.broadcast %1126 : f32 to vector<8x64xf32>
    %1129 = arith.mulf %1128, %1127 : vector<8x64xf32>
    %1130 = arith.addf %1120, %1129 : vector<8x64xf32>
    %c0_380 = arith.constant 0 : index
    %c17_381 = arith.constant 17 : index
    %1131 = vector.load %arg16[%c0_380, %c17_381] : memref<24x100xf32, #tpu.memory_space<vmem>>, vector<24x64xf32>
    %c24_382 = arith.constant 24 : index
    %c0_383 = arith.constant 0 : index
    %1132 = vector.load %arg17[%c24_382, %c0_383] : memref<48x64xf32, #tpu.memory_space<vmem>>, vector<24x64xf32>
    tpu.vector_store %arg17[%c24_382, %c0_383], %1131 {strides = array<i32>} : memref<48x64xf32, #tpu.memory_space<vmem>>, vector<24x64xf32>,
    %c22_384 = arith.constant 22 : index
    %1133 = memref.load %arg13[%c22_384] : memref<250xf32, #tpu.memory_space<smem>>
    %c24_385 = arith.constant 24 : index
    %c0_386 = arith.constant 0 : index
    %1134 = vector.load %arg17[%c24_385, %c0_386] : memref<48x64xf32, #tpu.memory_space<vmem>>, vector<8x64xf32>
    %1135 = vector.broadcast %1133 : f32 to vector<8x64xf32>
    %1136 = arith.mulf %1135, %1134 : vector<8x64xf32>
    %1137 = arith.addf %1125, %1136 : vector<8x64xf32>
    %c23_387 = arith.constant 23 : index
    %1138 = memref.load %arg13[%c23_387] : memref<250xf32, #tpu.memory_space<smem>>
    %c36_388 = arith.constant 36 : index
    %c0_389 = arith.constant 0 : index
    %1139 = vector.load %arg17[%c36_388, %c0_389] : memref<48x64xf32, #tpu.memory_space<vmem>>, vector<8x64xf32>
    %1140 = vector.broadcast %1138 : f32 to vector<8x64xf32>
    %1141 = arith.mulf %1140, %1139 : vector<8x64xf32>
    %1142 = arith.addf %1130, %1141 : vector<8x64xf32>
    %c72 = arith.constant 72 : index
    %1143 = memref.load %arg13[%c72] : memref<250xf32, #tpu.memory_space<smem>>
    %c25_390 = arith.constant 25 : index
    %c0_391 = arith.constant 0 : index
    %1144 = vector.load %arg17[%c25_390, %c0_391] : memref<48x64xf32, #tpu.memory_space<vmem>>, vector<8x64xf32>
    %1145 = vector.broadcast %1143 : f32 to vector<8x64xf32>
    %1146 = arith.mulf %1145, %1144 : vector<8x64xf32>
    %1147 = arith.addf %1137, %1146 : vector<8x64xf32>
    %c73 = arith.constant 73 : index
    %1148 = memref.load %arg13[%c73] : memref<250xf32, #tpu.memory_space<smem>>
    %c37_392 = arith.constant 37 : index
    %c0_393 = arith.constant 0 : index
    %1149 = vector.load %arg17[%c37_392, %c0_393] : memref<48x64xf32, #tpu.memory_space<vmem>>, vector<8x64xf32>
    %1150 = vector.broadcast %1148 : f32 to vector<8x64xf32>
    %1151 = arith.mulf %1150, %1149 : vector<8x64xf32>
    %1152 = arith.addf %1142, %1151 : vector<8x64xf32>
    %c122 = arith.constant 122 : index
    %1153 = memref.load %arg13[%c122] : memref<250xf32, #tpu.memory_space<smem>>
    %c26_394 = arith.constant 26 : index
    %c0_395 = arith.constant 0 : index
    %1154 = vector.load %arg17[%c26_394, %c0_395] : memref<48x64xf32, #tpu.memory_space<vmem>>, vector<8x64xf32>
    %1155 = vector.broadcast %1153 : f32 to vector<8x64xf32>
    %1156 = arith.mulf %1155, %1154 : vector<8x64xf32>
    %1157 = arith.addf %1147, %1156 : vector<8x64xf32>
    %c123 = arith.constant 123 : index
    %1158 = memref.load %arg13[%c123] : memref<250xf32, #tpu.memory_space<smem>>
    %c38_396 = arith.constant 38 : index
    %c0_397 = arith.constant 0 : index
    %1159 = vector.load %arg17[%c38_396, %c0_397] : memref<48x64xf32, #tpu.memory_space<vmem>>, vector<8x64xf32>
    %1160 = vector.broadcast %1158 : f32 to vector<8x64xf32>
    %1161 = arith.mulf %1160, %1159 : vector<8x64xf32>
    %1162 = arith.addf %1152, %1161 : vector<8x64xf32>
    %c172 = arith.constant 172 : index
    %1163 = memref.load %arg13[%c172] : memref<250xf32, #tpu.memory_space<smem>>
    %c27_398 = arith.constant 27 : index
    %c0_399 = arith.constant 0 : index
    %1164 = vector.load %arg17[%c27_398, %c0_399] : memref<48x64xf32, #tpu.memory_space<vmem>>, vector<8x64xf32>
    %1165 = vector.broadcast %1163 : f32 to vector<8x64xf32>
    %1166 = arith.mulf %1165, %1164 : vector<8x64xf32>
    %1167 = arith.addf %1157, %1166 : vector<8x64xf32>
    %c173 = arith.constant 173 : index
    %1168 = memref.load %arg13[%c173] : memref<250xf32, #tpu.memory_space<smem>>
    %c39_400 = arith.constant 39 : index
    %c0_401 = arith.constant 0 : index
    %1169 = vector.load %arg17[%c39_400, %c0_401] : memref<48x64xf32, #tpu.memory_space<vmem>>, vector<8x64xf32>
    %1170 = vector.broadcast %1168 : f32 to vector<8x64xf32>
    %1171 = arith.mulf %1170, %1169 : vector<8x64xf32>
    %1172 = arith.addf %1162, %1171 : vector<8x64xf32>
    %c222 = arith.constant 222 : index
    %1173 = memref.load %arg13[%c222] : memref<250xf32, #tpu.memory_space<smem>>
    %c28_402 = arith.constant 28 : index
    %c0_403 = arith.constant 0 : index
    %1174 = vector.load %arg17[%c28_402, %c0_403] : memref<48x64xf32, #tpu.memory_space<vmem>>, vector<8x64xf32>
    %1175 = vector.broadcast %1173 : f32 to vector<8x64xf32>
    %1176 = arith.mulf %1175, %1174 : vector<8x64xf32>
    %1177 = arith.addf %1167, %1176 : vector<8x64xf32>
    %c223 = arith.constant 223 : index
    %1178 = memref.load %arg13[%c223] : memref<250xf32, #tpu.memory_space<smem>>
    %c40_404 = arith.constant 40 : index
    %c0_405 = arith.constant 0 : index
    %1179 = vector.load %arg17[%c40_404, %c0_405] : memref<48x64xf32, #tpu.memory_space<vmem>>, vector<8x64xf32>
    %1180 = vector.broadcast %1178 : f32 to vector<8x64xf32>
    %1181 = arith.mulf %1180, %1179 : vector<8x64xf32>
    %1182 = arith.addf %1172, %1181 : vector<8x64xf32>
    %c0_406 = arith.constant 0 : index
    %c25_407 = arith.constant 25 : index
    %1183 = vector.load %arg16[%c0_406, %c25_407] : memref<24x100xf32, #tpu.memory_space<vmem>>, vector<24x64xf32>
    %c0_408 = arith.constant 0 : index
    %c0_409 = arith.constant 0 : index
    %1184 = vector.load %arg17[%c0_408, %c0_409] : memref<48x64xf32, #tpu.memory_space<vmem>>, vector<24x64xf32>
    tpu.vector_store %arg17[%c0_408, %c0_409], %1183 {strides = array<i32>} : memref<48x64xf32, #tpu.memory_space<vmem>>, vector<24x64xf32>,
    %c32_410 = arith.constant 32 : index
    %1185 = memref.load %arg13[%c32_410] : memref<250xf32, #tpu.memory_space<smem>>
    %c0_411 = arith.constant 0 : index
    %c0_412 = arith.constant 0 : index
    %1186 = vector.load %arg17[%c0_411, %c0_412] : memref<48x64xf32, #tpu.memory_space<vmem>>, vector<8x64xf32>
    %1187 = vector.broadcast %1185 : f32 to vector<8x64xf32>
    %1188 = arith.mulf %1187, %1186 : vector<8x64xf32>
    %1189 = arith.addf %1177, %1188 : vector<8x64xf32>
    %c33 = arith.constant 33 : index
    %1190 = memref.load %arg13[%c33] : memref<250xf32, #tpu.memory_space<smem>>
    %c12_413 = arith.constant 12 : index
    %c0_414 = arith.constant 0 : index
    %1191 = vector.load %arg17[%c12_413, %c0_414] : memref<48x64xf32, #tpu.memory_space<vmem>>, vector<8x64xf32>
    %1192 = vector.broadcast %1190 : f32 to vector<8x64xf32>
    %1193 = arith.mulf %1192, %1191 : vector<8x64xf32>
    %1194 = arith.addf %1182, %1193 : vector<8x64xf32>
    %c82 = arith.constant 82 : index
    %1195 = memref.load %arg13[%c82] : memref<250xf32, #tpu.memory_space<smem>>
    %c1_415 = arith.constant 1 : index
    %c0_416 = arith.constant 0 : index
    %1196 = vector.load %arg17[%c1_415, %c0_416] : memref<48x64xf32, #tpu.memory_space<vmem>>, vector<8x64xf32>
    %1197 = vector.broadcast %1195 : f32 to vector<8x64xf32>
    %1198 = arith.mulf %1197, %1196 : vector<8x64xf32>
    %1199 = arith.addf %1189, %1198 : vector<8x64xf32>
    %c83 = arith.constant 83 : index
    %1200 = memref.load %arg13[%c83] : memref<250xf32, #tpu.memory_space<smem>>
    %c13_417 = arith.constant 13 : index
    %c0_418 = arith.constant 0 : index
    %1201 = vector.load %arg17[%c13_417, %c0_418] : memref<48x64xf32, #tpu.memory_space<vmem>>, vector<8x64xf32>
    %1202 = vector.broadcast %1200 : f32 to vector<8x64xf32>
    %1203 = arith.mulf %1202, %1201 : vector<8x64xf32>
    %1204 = arith.addf %1194, %1203 : vector<8x64xf32>
    %c132 = arith.constant 132 : index
    %1205 = memref.load %arg13[%c132] : memref<250xf32, #tpu.memory_space<smem>>
    %c2_419 = arith.constant 2 : index
    %c0_420 = arith.constant 0 : index
    %1206 = vector.load %arg17[%c2_419, %c0_420] : memref<48x64xf32, #tpu.memory_space<vmem>>, vector<8x64xf32>
    %1207 = vector.broadcast %1205 : f32 to vector<8x64xf32>
    %1208 = arith.mulf %1207, %1206 : vector<8x64xf32>
    %1209 = arith.addf %1199, %1208 : vector<8x64xf32>
    %c133 = arith.constant 133 : index
    %1210 = memref.load %arg13[%c133] : memref<250xf32, #tpu.memory_space<smem>>
    %c14_421 = arith.constant 14 : index
    %c0_422 = arith.constant 0 : index
    %1211 = vector.load %arg17[%c14_421, %c0_422] : memref<48x64xf32, #tpu.memory_space<vmem>>, vector<8x64xf32>
    %1212 = vector.broadcast %1210 : f32 to vector<8x64xf32>
    %1213 = arith.mulf %1212, %1211 : vector<8x64xf32>
    %1214 = arith.addf %1204, %1213 : vector<8x64xf32>
    %c182 = arith.constant 182 : index
    %1215 = memref.load %arg13[%c182] : memref<250xf32, #tpu.memory_space<smem>>
    %c3_423 = arith.constant 3 : index
    %c0_424 = arith.constant 0 : index
    %1216 = vector.load %arg17[%c3_423, %c0_424] : memref<48x64xf32, #tpu.memory_space<vmem>>, vector<8x64xf32>
    %1217 = vector.broadcast %1215 : f32 to vector<8x64xf32>
    %1218 = arith.mulf %1217, %1216 : vector<8x64xf32>
    %1219 = arith.addf %1209, %1218 : vector<8x64xf32>
    %c183 = arith.constant 183 : index
    %1220 = memref.load %arg13[%c183] : memref<250xf32, #tpu.memory_space<smem>>
    %c15_425 = arith.constant 15 : index
    %c0_426 = arith.constant 0 : index
    %1221 = vector.load %arg17[%c15_425, %c0_426] : memref<48x64xf32, #tpu.memory_space<vmem>>, vector<8x64xf32>
    %1222 = vector.broadcast %1220 : f32 to vector<8x64xf32>
    %1223 = arith.mulf %1222, %1221 : vector<8x64xf32>
    %1224 = arith.addf %1214, %1223 : vector<8x64xf32>
    %c232 = arith.constant 232 : index
    %1225 = memref.load %arg13[%c232] : memref<250xf32, #tpu.memory_space<smem>>
    %c4_427 = arith.constant 4 : index
    %c0_428 = arith.constant 0 : index
    %1226 = vector.load %arg17[%c4_427, %c0_428] : memref<48x64xf32, #tpu.memory_space<vmem>>, vector<8x64xf32>
    %1227 = vector.broadcast %1225 : f32 to vector<8x64xf32>
    %1228 = arith.mulf %1227, %1226 : vector<8x64xf32>
    %1229 = arith.addf %1219, %1228 : vector<8x64xf32>
    %c233 = arith.constant 233 : index
    %1230 = memref.load %arg13[%c233] : memref<250xf32, #tpu.memory_space<smem>>
    %c16_429 = arith.constant 16 : index
    %c0_430 = arith.constant 0 : index
    %1231 = vector.load %arg17[%c16_429, %c0_430] : memref<48x64xf32, #tpu.memory_space<vmem>>, vector<8x64xf32>
    %1232 = vector.broadcast %1230 : f32 to vector<8x64xf32>
    %1233 = arith.mulf %1232, %1231 : vector<8x64xf32>
    %1234 = arith.addf %1224, %1233 : vector<8x64xf32>
    %c0_431 = arith.constant 0 : index
    %c33_432 = arith.constant 33 : index
    %1235 = vector.load %arg16[%c0_431, %c33_432] : memref<24x100xf32, #tpu.memory_space<vmem>>, vector<24x64xf32>
    %c24_433 = arith.constant 24 : index
    %c0_434 = arith.constant 0 : index
    %1236 = vector.load %arg17[%c24_433, %c0_434] : memref<48x64xf32, #tpu.memory_space<vmem>>, vector<24x64xf32>
    tpu.vector_store %arg17[%c24_433, %c0_434], %1235 {strides = array<i32>} : memref<48x64xf32, #tpu.memory_space<vmem>>, vector<24x64xf32>,
    %c42 = arith.constant 42 : index
    %1237 = memref.load %arg13[%c42] : memref<250xf32, #tpu.memory_space<smem>>
    %c24_435 = arith.constant 24 : index
    %c0_436 = arith.constant 0 : index
    %1238 = vector.load %arg17[%c24_435, %c0_436] : memref<48x64xf32, #tpu.memory_space<vmem>>, vector<8x64xf32>
    %1239 = vector.broadcast %1237 : f32 to vector<8x64xf32>
    %1240 = arith.mulf %1239, %1238 : vector<8x64xf32>
    %1241 = arith.addf %1229, %1240 : vector<8x64xf32>
    %c43 = arith.constant 43 : index
    %1242 = memref.load %arg13[%c43] : memref<250xf32, #tpu.memory_space<smem>>
    %c36_437 = arith.constant 36 : index
    %c0_438 = arith.constant 0 : index
    %1243 = vector.load %arg17[%c36_437, %c0_438] : memref<48x64xf32, #tpu.memory_space<vmem>>, vector<8x64xf32>
    %1244 = vector.broadcast %1242 : f32 to vector<8x64xf32>
    %1245 = arith.mulf %1244, %1243 : vector<8x64xf32>
    %1246 = arith.addf %1234, %1245 : vector<8x64xf32>
    %c92 = arith.constant 92 : index
    %1247 = memref.load %arg13[%c92] : memref<250xf32, #tpu.memory_space<smem>>
    %c25_439 = arith.constant 25 : index
    %c0_440 = arith.constant 0 : index
    %1248 = vector.load %arg17[%c25_439, %c0_440] : memref<48x64xf32, #tpu.memory_space<vmem>>, vector<8x64xf32>
    %1249 = vector.broadcast %1247 : f32 to vector<8x64xf32>
    %1250 = arith.mulf %1249, %1248 : vector<8x64xf32>
    %1251 = arith.addf %1241, %1250 : vector<8x64xf32>
    %c93 = arith.constant 93 : index
    %1252 = memref.load %arg13[%c93] : memref<250xf32, #tpu.memory_space<smem>>
    %c37_441 = arith.constant 37 : index
    %c0_442 = arith.constant 0 : index
    %1253 = vector.load %arg17[%c37_441, %c0_442] : memref<48x64xf32, #tpu.memory_space<vmem>>, vector<8x64xf32>
    %1254 = vector.broadcast %1252 : f32 to vector<8x64xf32>
    %1255 = arith.mulf %1254, %1253 : vector<8x64xf32>
    %1256 = arith.addf %1246, %1255 : vector<8x64xf32>
    %c142 = arith.constant 142 : index
    %1257 = memref.load %arg13[%c142] : memref<250xf32, #tpu.memory_space<smem>>
    %c26_443 = arith.constant 26 : index
    %c0_444 = arith.constant 0 : index
    %1258 = vector.load %arg17[%c26_443, %c0_444] : memref<48x64xf32, #tpu.memory_space<vmem>>, vector<8x64xf32>
    %1259 = vector.broadcast %1257 : f32 to vector<8x64xf32>
    %1260 = arith.mulf %1259, %1258 : vector<8x64xf32>
    %1261 = arith.addf %1251, %1260 : vector<8x64xf32>
    %c143 = arith.constant 143 : index
    %1262 = memref.load %arg13[%c143] : memref<250xf32, #tpu.memory_space<smem>>
    %c38_445 = arith.constant 38 : index
    %c0_446 = arith.constant 0 : index
    %1263 = vector.load %arg17[%c38_445, %c0_446] : memref<48x64xf32, #tpu.memory_space<vmem>>, vector<8x64xf32>
    %1264 = vector.broadcast %1262 : f32 to vector<8x64xf32>
    %1265 = arith.mulf %1264, %1263 : vector<8x64xf32>
    %1266 = arith.addf %1256, %1265 : vector<8x64xf32>
    %c192 = arith.constant 192 : index
    %1267 = memref.load %arg13[%c192] : memref<250xf32, #tpu.memory_space<smem>>
    %c27_447 = arith.constant 27 : index
    %c0_448 = arith.constant 0 : index
    %1268 = vector.load %arg17[%c27_447, %c0_448] : memref<48x64xf32, #tpu.memory_space<vmem>>, vector<8x64xf32>
    %1269 = vector.broadcast %1267 : f32 to vector<8x64xf32>
    %1270 = arith.mulf %1269, %1268 : vector<8x64xf32>
    %1271 = arith.addf %1261, %1270 : vector<8x64xf32>
    %c193 = arith.constant 193 : index
    %1272 = memref.load %arg13[%c193] : memref<250xf32, #tpu.memory_space<smem>>
    %c39_449 = arith.constant 39 : index
    %c0_450 = arith.constant 0 : index
    %1273 = vector.load %arg17[%c39_449, %c0_450] : memref<48x64xf32, #tpu.memory_space<vmem>>, vector<8x64xf32>
    %1274 = vector.broadcast %1272 : f32 to vector<8x64xf32>
    %1275 = arith.mulf %1274, %1273 : vector<8x64xf32>
    %1276 = arith.addf %1266, %1275 : vector<8x64xf32>
    %c242 = arith.constant 242 : index
    %1277 = memref.load %arg13[%c242] : memref<250xf32, #tpu.memory_space<smem>>
    %c28_451 = arith.constant 28 : index
    %c0_452 = arith.constant 0 : index
    %1278 = vector.load %arg17[%c28_451, %c0_452] : memref<48x64xf32, #tpu.memory_space<vmem>>, vector<8x64xf32>
    %1279 = vector.broadcast %1277 : f32 to vector<8x64xf32>
    %1280 = arith.mulf %1279, %1278 : vector<8x64xf32>
    %1281 = arith.addf %1271, %1280 : vector<8x64xf32>
    %c243 = arith.constant 243 : index
    %1282 = memref.load %arg13[%c243] : memref<250xf32, #tpu.memory_space<smem>>
    %c40_453 = arith.constant 40 : index
    %c0_454 = arith.constant 0 : index
    %1283 = vector.load %arg17[%c40_453, %c0_454] : memref<48x64xf32, #tpu.memory_space<vmem>>, vector<8x64xf32>
    %1284 = vector.broadcast %1282 : f32 to vector<8x64xf32>
    %1285 = arith.mulf %1284, %1283 : vector<8x64xf32>
    %1286 = arith.addf %1276, %1285 : vector<8x64xf32>
    %c1_i32_455 = arith.constant 1 : i32
    %1287 = vector.broadcast %c1_i32_455 : i32 to vector<8x64xi32>
    %1288 = arith.cmpi sge, %749, %1287 : vector<8x64xi32>
    %c9_i32 = arith.constant 9 : i32
    %1289 = vector.broadcast %c9_i32 : i32 to vector<8x64xi32>
    %1290 = arith.cmpi slt, %749, %1289 : vector<8x64xi32>
    %1291 = arith.andi %1288, %1290 : vector<8x64xi1>
    %cst_456 = arith.constant 0.000000e+00 : f32
    %1292 = vector.broadcast %cst_456 : f32 to vector<8x64xf32>
    %1293 = arith.select %1291, %1281, %1292 : vector<8x64xi1>, vector<8x64xf32>
    %1294 = arith.addf %1021, %1293 : vector<8x64xf32>
    %cst_457 = arith.constant 0.000000e+00 : f32
    %1295 = vector.broadcast %cst_457 : f32 to vector<8x64xf32>
    %1296 = arith.select %1291, %1286, %1295 : vector<8x64xi1>, vector<8x64xf32>
    %1297 = arith.addf %1024, %1296 : vector<8x64xf32>
    %cst_458 = arith.constant 0.000000e+00 : f32
    %1298 = vector.broadcast %cst_458 : f32 to vector<8x64xf32>
    %cst_459 = arith.constant 0.000000e+00 : f32
    %1299 = vector.broadcast %cst_459 : f32 to vector<8x64xf32>
    %c0_460 = arith.constant 0 : index
    %c2_461 = arith.constant 2 : index
    %1300 = vector.load %arg16[%c0_460, %c2_461] : memref<24x100xf32, #tpu.memory_space<vmem>>, vector<24x64xf32>
    %c0_462 = arith.constant 0 : index
    %c0_463 = arith.constant 0 : index
    %1301 = vector.load %arg17[%c0_462, %c0_463] : memref<48x64xf32, #tpu.memory_space<vmem>>, vector<24x64xf32>
    tpu.vector_store %arg17[%c0_462, %c0_463], %1300 {strides = array<i32>} : memref<48x64xf32, #tpu.memory_space<vmem>>, vector<24x64xf32>,
    %c4_464 = arith.constant 4 : index
    %1302 = memref.load %arg13[%c4_464] : memref<250xf32, #tpu.memory_space<smem>>
    %c0_465 = arith.constant 0 : index
    %c0_466 = arith.constant 0 : index
    %1303 = vector.load %arg17[%c0_465, %c0_466] : memref<48x64xf32, #tpu.memory_space<vmem>>, vector<8x64xf32>
    %1304 = vector.broadcast %1302 : f32 to vector<8x64xf32>
    %1305 = arith.mulf %1304, %1303 : vector<8x64xf32>
    %1306 = arith.addf %1298, %1305 : vector<8x64xf32>
    %c5_467 = arith.constant 5 : index
    %1307 = memref.load %arg13[%c5_467] : memref<250xf32, #tpu.memory_space<smem>>
    %c12_468 = arith.constant 12 : index
    %c0_469 = arith.constant 0 : index
    %1308 = vector.load %arg17[%c12_468, %c0_469] : memref<48x64xf32, #tpu.memory_space<vmem>>, vector<8x64xf32>
    %1309 = vector.broadcast %1307 : f32 to vector<8x64xf32>
    %1310 = arith.mulf %1309, %1308 : vector<8x64xf32>
    %1311 = arith.addf %1299, %1310 : vector<8x64xf32>
    %c54 = arith.constant 54 : index
    %1312 = memref.load %arg13[%c54] : memref<250xf32, #tpu.memory_space<smem>>
    %c1_470 = arith.constant 1 : index
    %c0_471 = arith.constant 0 : index
    %1313 = vector.load %arg17[%c1_470, %c0_471] : memref<48x64xf32, #tpu.memory_space<vmem>>, vector<8x64xf32>
    %1314 = vector.broadcast %1312 : f32 to vector<8x64xf32>
    %1315 = arith.mulf %1314, %1313 : vector<8x64xf32>
    %1316 = arith.addf %1306, %1315 : vector<8x64xf32>
    %c55 = arith.constant 55 : index
    %1317 = memref.load %arg13[%c55] : memref<250xf32, #tpu.memory_space<smem>>
    %c13_472 = arith.constant 13 : index
    %c0_473 = arith.constant 0 : index
    %1318 = vector.load %arg17[%c13_472, %c0_473] : memref<48x64xf32, #tpu.memory_space<vmem>>, vector<8x64xf32>
    %1319 = vector.broadcast %1317 : f32 to vector<8x64xf32>
    %1320 = arith.mulf %1319, %1318 : vector<8x64xf32>
    %1321 = arith.addf %1311, %1320 : vector<8x64xf32>
    %c104 = arith.constant 104 : index
    %1322 = memref.load %arg13[%c104] : memref<250xf32, #tpu.memory_space<smem>>
    %c2_474 = arith.constant 2 : index
    %c0_475 = arith.constant 0 : index
    %1323 = vector.load %arg17[%c2_474, %c0_475] : memref<48x64xf32, #tpu.memory_space<vmem>>, vector<8x64xf32>
    %1324 = vector.broadcast %1322 : f32 to vector<8x64xf32>
    %1325 = arith.mulf %1324, %1323 : vector<8x64xf32>
    %1326 = arith.addf %1316, %1325 : vector<8x64xf32>
    %c105 = arith.constant 105 : index
    %1327 = memref.load %arg13[%c105] : memref<250xf32, #tpu.memory_space<smem>>
    %c14_476 = arith.constant 14 : index
    %c0_477 = arith.constant 0 : index
    %1328 = vector.load %arg17[%c14_476, %c0_477] : memref<48x64xf32, #tpu.memory_space<vmem>>, vector<8x64xf32>
    %1329 = vector.broadcast %1327 : f32 to vector<8x64xf32>
    %1330 = arith.mulf %1329, %1328 : vector<8x64xf32>
    %1331 = arith.addf %1321, %1330 : vector<8x64xf32>
    %c154 = arith.constant 154 : index
    %1332 = memref.load %arg13[%c154] : memref<250xf32, #tpu.memory_space<smem>>
    %c3_478 = arith.constant 3 : index
    %c0_479 = arith.constant 0 : index
    %1333 = vector.load %arg17[%c3_478, %c0_479] : memref<48x64xf32, #tpu.memory_space<vmem>>, vector<8x64xf32>
    %1334 = vector.broadcast %1332 : f32 to vector<8x64xf32>
    %1335 = arith.mulf %1334, %1333 : vector<8x64xf32>
    %1336 = arith.addf %1326, %1335 : vector<8x64xf32>
    %c155 = arith.constant 155 : index
    %1337 = memref.load %arg13[%c155] : memref<250xf32, #tpu.memory_space<smem>>
    %c15_480 = arith.constant 15 : index
    %c0_481 = arith.constant 0 : index
    %1338 = vector.load %arg17[%c15_480, %c0_481] : memref<48x64xf32, #tpu.memory_space<vmem>>, vector<8x64xf32>
    %1339 = vector.broadcast %1337 : f32 to vector<8x64xf32>
    %1340 = arith.mulf %1339, %1338 : vector<8x64xf32>
    %1341 = arith.addf %1331, %1340 : vector<8x64xf32>
    %c204 = arith.constant 204 : index
    %1342 = memref.load %arg13[%c204] : memref<250xf32, #tpu.memory_space<smem>>
    %c4_482 = arith.constant 4 : index
    %c0_483 = arith.constant 0 : index
    %1343 = vector.load %arg17[%c4_482, %c0_483] : memref<48x64xf32, #tpu.memory_space<vmem>>, vector<8x64xf32>
    %1344 = vector.broadcast %1342 : f32 to vector<8x64xf32>
    %1345 = arith.mulf %1344, %1343 : vector<8x64xf32>
    %1346 = arith.addf %1336, %1345 : vector<8x64xf32>
    %c205 = arith.constant 205 : index
    %1347 = memref.load %arg13[%c205] : memref<250xf32, #tpu.memory_space<smem>>
    %c16_484 = arith.constant 16 : index
    %c0_485 = arith.constant 0 : index
    %1348 = vector.load %arg17[%c16_484, %c0_485] : memref<48x64xf32, #tpu.memory_space<vmem>>, vector<8x64xf32>
    %1349 = vector.broadcast %1347 : f32 to vector<8x64xf32>
    %1350 = arith.mulf %1349, %1348 : vector<8x64xf32>
    %1351 = arith.addf %1341, %1350 : vector<8x64xf32>
    %c0_486 = arith.constant 0 : index
    %c10_487 = arith.constant 10 : index
    %1352 = vector.load %arg16[%c0_486, %c10_487] : memref<24x100xf32, #tpu.memory_space<vmem>>, vector<24x64xf32>
    %c24_488 = arith.constant 24 : index
    %c0_489 = arith.constant 0 : index
    %1353 = vector.load %arg17[%c24_488, %c0_489] : memref<48x64xf32, #tpu.memory_space<vmem>>, vector<24x64xf32>
    tpu.vector_store %arg17[%c24_488, %c0_489], %1352 {strides = array<i32>} : memref<48x64xf32, #tpu.memory_space<vmem>>, vector<24x64xf32>,
    %c14_490 = arith.constant 14 : index
    %1354 = memref.load %arg13[%c14_490] : memref<250xf32, #tpu.memory_space<smem>>
    %c24_491 = arith.constant 24 : index
    %c0_492 = arith.constant 0 : index
    %1355 = vector.load %arg17[%c24_491, %c0_492] : memref<48x64xf32, #tpu.memory_space<vmem>>, vector<8x64xf32>
    %1356 = vector.broadcast %1354 : f32 to vector<8x64xf32>
    %1357 = arith.mulf %1356, %1355 : vector<8x64xf32>
    %1358 = arith.addf %1346, %1357 : vector<8x64xf32>
    %c15_493 = arith.constant 15 : index
    %1359 = memref.load %arg13[%c15_493] : memref<250xf32, #tpu.memory_space<smem>>
    %c36_494 = arith.constant 36 : index
    %c0_495 = arith.constant 0 : index
    %1360 = vector.load %arg17[%c36_494, %c0_495] : memref<48x64xf32, #tpu.memory_space<vmem>>, vector<8x64xf32>
    %1361 = vector.broadcast %1359 : f32 to vector<8x64xf32>
    %1362 = arith.mulf %1361, %1360 : vector<8x64xf32>
    %1363 = arith.addf %1351, %1362 : vector<8x64xf32>
    %c64 = arith.constant 64 : index
    %1364 = memref.load %arg13[%c64] : memref<250xf32, #tpu.memory_space<smem>>
    %c25_496 = arith.constant 25 : index
    %c0_497 = arith.constant 0 : index
    %1365 = vector.load %arg17[%c25_496, %c0_497] : memref<48x64xf32, #tpu.memory_space<vmem>>, vector<8x64xf32>
    %1366 = vector.broadcast %1364 : f32 to vector<8x64xf32>
    %1367 = arith.mulf %1366, %1365 : vector<8x64xf32>
    %1368 = arith.addf %1358, %1367 : vector<8x64xf32>
    %c65 = arith.constant 65 : index
    %1369 = memref.load %arg13[%c65] : memref<250xf32, #tpu.memory_space<smem>>
    %c37_498 = arith.constant 37 : index
    %c0_499 = arith.constant 0 : index
    %1370 = vector.load %arg17[%c37_498, %c0_499] : memref<48x64xf32, #tpu.memory_space<vmem>>, vector<8x64xf32>
    %1371 = vector.broadcast %1369 : f32 to vector<8x64xf32>
    %1372 = arith.mulf %1371, %1370 : vector<8x64xf32>
    %1373 = arith.addf %1363, %1372 : vector<8x64xf32>
    %c114 = arith.constant 114 : index
    %1374 = memref.load %arg13[%c114] : memref<250xf32, #tpu.memory_space<smem>>
    %c26_500 = arith.constant 26 : index
    %c0_501 = arith.constant 0 : index
    %1375 = vector.load %arg17[%c26_500, %c0_501] : memref<48x64xf32, #tpu.memory_space<vmem>>, vector<8x64xf32>
    %1376 = vector.broadcast %1374 : f32 to vector<8x64xf32>
    %1377 = arith.mulf %1376, %1375 : vector<8x64xf32>
    %1378 = arith.addf %1368, %1377 : vector<8x64xf32>
    %c115 = arith.constant 115 : index
    %1379 = memref.load %arg13[%c115] : memref<250xf32, #tpu.memory_space<smem>>
    %c38_502 = arith.constant 38 : index
    %c0_503 = arith.constant 0 : index
    %1380 = vector.load %arg17[%c38_502, %c0_503] : memref<48x64xf32, #tpu.memory_space<vmem>>, vector<8x64xf32>
    %1381 = vector.broadcast %1379 : f32 to vector<8x64xf32>
    %1382 = arith.mulf %1381, %1380 : vector<8x64xf32>
    %1383 = arith.addf %1373, %1382 : vector<8x64xf32>
    %c164 = arith.constant 164 : index
    %1384 = memref.load %arg13[%c164] : memref<250xf32, #tpu.memory_space<smem>>
    %c27_504 = arith.constant 27 : index
    %c0_505 = arith.constant 0 : index
    %1385 = vector.load %arg17[%c27_504, %c0_505] : memref<48x64xf32, #tpu.memory_space<vmem>>, vector<8x64xf32>
    %1386 = vector.broadcast %1384 : f32 to vector<8x64xf32>
    %1387 = arith.mulf %1386, %1385 : vector<8x64xf32>
    %1388 = arith.addf %1378, %1387 : vector<8x64xf32>
    %c165 = arith.constant 165 : index
    %1389 = memref.load %arg13[%c165] : memref<250xf32, #tpu.memory_space<smem>>
    %c39_506 = arith.constant 39 : index
    %c0_507 = arith.constant 0 : index
    %1390 = vector.load %arg17[%c39_506, %c0_507] : memref<48x64xf32, #tpu.memory_space<vmem>>, vector<8x64xf32>
    %1391 = vector.broadcast %1389 : f32 to vector<8x64xf32>
    %1392 = arith.mulf %1391, %1390 : vector<8x64xf32>
    %1393 = arith.addf %1383, %1392 : vector<8x64xf32>
    %c214 = arith.constant 214 : index
    %1394 = memref.load %arg13[%c214] : memref<250xf32, #tpu.memory_space<smem>>
    %c28_508 = arith.constant 28 : index
    %c0_509 = arith.constant 0 : index
    %1395 = vector.load %arg17[%c28_508, %c0_509] : memref<48x64xf32, #tpu.memory_space<vmem>>, vector<8x64xf32>
    %1396 = vector.broadcast %1394 : f32 to vector<8x64xf32>
    %1397 = arith.mulf %1396, %1395 : vector<8x64xf32>
    %1398 = arith.addf %1388, %1397 : vector<8x64xf32>
    %c215 = arith.constant 215 : index
    %1399 = memref.load %arg13[%c215] : memref<250xf32, #tpu.memory_space<smem>>
    %c40_510 = arith.constant 40 : index
    %c0_511 = arith.constant 0 : index
    %1400 = vector.load %arg17[%c40_510, %c0_511] : memref<48x64xf32, #tpu.memory_space<vmem>>, vector<8x64xf32>
    %1401 = vector.broadcast %1399 : f32 to vector<8x64xf32>
    %1402 = arith.mulf %1401, %1400 : vector<8x64xf32>
    %1403 = arith.addf %1393, %1402 : vector<8x64xf32>
    %c0_512 = arith.constant 0 : index
    %c18_513 = arith.constant 18 : index
    %1404 = vector.load %arg16[%c0_512, %c18_513] : memref<24x100xf32, #tpu.memory_space<vmem>>, vector<24x64xf32>
    %c0_514 = arith.constant 0 : index
    %c0_515 = arith.constant 0 : index
    %1405 = vector.load %arg17[%c0_514, %c0_515] : memref<48x64xf32, #tpu.memory_space<vmem>>, vector<24x64xf32>
    tpu.vector_store %arg17[%c0_514, %c0_515], %1404 {strides = array<i32>} : memref<48x64xf32, #tpu.memory_space<vmem>>, vector<24x64xf32>,
    %c24_516 = arith.constant 24 : index
    %1406 = memref.load %arg13[%c24_516] : memref<250xf32, #tpu.memory_space<smem>>
    %c0_517 = arith.constant 0 : index
    %c0_518 = arith.constant 0 : index
    %1407 = vector.load %arg17[%c0_517, %c0_518] : memref<48x64xf32, #tpu.memory_space<vmem>>, vector<8x64xf32>
    %1408 = vector.broadcast %1406 : f32 to vector<8x64xf32>
    %1409 = arith.mulf %1408, %1407 : vector<8x64xf32>
    %1410 = arith.addf %1398, %1409 : vector<8x64xf32>
    %c25_519 = arith.constant 25 : index
    %1411 = memref.load %arg13[%c25_519] : memref<250xf32, #tpu.memory_space<smem>>
    %c12_520 = arith.constant 12 : index
    %c0_521 = arith.constant 0 : index
    %1412 = vector.load %arg17[%c12_520, %c0_521] : memref<48x64xf32, #tpu.memory_space<vmem>>, vector<8x64xf32>
    %1413 = vector.broadcast %1411 : f32 to vector<8x64xf32>
    %1414 = arith.mulf %1413, %1412 : vector<8x64xf32>
    %1415 = arith.addf %1403, %1414 : vector<8x64xf32>
    %c74 = arith.constant 74 : index
    %1416 = memref.load %arg13[%c74] : memref<250xf32, #tpu.memory_space<smem>>
    %c1_522 = arith.constant 1 : index
    %c0_523 = arith.constant 0 : index
    %1417 = vector.load %arg17[%c1_522, %c0_523] : memref<48x64xf32, #tpu.memory_space<vmem>>, vector<8x64xf32>
    %1418 = vector.broadcast %1416 : f32 to vector<8x64xf32>
    %1419 = arith.mulf %1418, %1417 : vector<8x64xf32>
    %1420 = arith.addf %1410, %1419 : vector<8x64xf32>
    %c75 = arith.constant 75 : index
    %1421 = memref.load %arg13[%c75] : memref<250xf32, #tpu.memory_space<smem>>
    %c13_524 = arith.constant 13 : index
    %c0_525 = arith.constant 0 : index
    %1422 = vector.load %arg17[%c13_524, %c0_525] : memref<48x64xf32, #tpu.memory_space<vmem>>, vector<8x64xf32>
    %1423 = vector.broadcast %1421 : f32 to vector<8x64xf32>
    %1424 = arith.mulf %1423, %1422 : vector<8x64xf32>
    %1425 = arith.addf %1415, %1424 : vector<8x64xf32>
    %c124 = arith.constant 124 : index
    %1426 = memref.load %arg13[%c124] : memref<250xf32, #tpu.memory_space<smem>>
    %c2_526 = arith.constant 2 : index
    %c0_527 = arith.constant 0 : index
    %1427 = vector.load %arg17[%c2_526, %c0_527] : memref<48x64xf32, #tpu.memory_space<vmem>>, vector<8x64xf32>
    %1428 = vector.broadcast %1426 : f32 to vector<8x64xf32>
    %1429 = arith.mulf %1428, %1427 : vector<8x64xf32>
    %1430 = arith.addf %1420, %1429 : vector<8x64xf32>
    %c125 = arith.constant 125 : index
    %1431 = memref.load %arg13[%c125] : memref<250xf32, #tpu.memory_space<smem>>
    %c14_528 = arith.constant 14 : index
    %c0_529 = arith.constant 0 : index
    %1432 = vector.load %arg17[%c14_528, %c0_529] : memref<48x64xf32, #tpu.memory_space<vmem>>, vector<8x64xf32>
    %1433 = vector.broadcast %1431 : f32 to vector<8x64xf32>
    %1434 = arith.mulf %1433, %1432 : vector<8x64xf32>
    %1435 = arith.addf %1425, %1434 : vector<8x64xf32>
    %c174 = arith.constant 174 : index
    %1436 = memref.load %arg13[%c174] : memref<250xf32, #tpu.memory_space<smem>>
    %c3_530 = arith.constant 3 : index
    %c0_531 = arith.constant 0 : index
    %1437 = vector.load %arg17[%c3_530, %c0_531] : memref<48x64xf32, #tpu.memory_space<vmem>>, vector<8x64xf32>
    %1438 = vector.broadcast %1436 : f32 to vector<8x64xf32>
    %1439 = arith.mulf %1438, %1437 : vector<8x64xf32>
    %1440 = arith.addf %1430, %1439 : vector<8x64xf32>
    %c175 = arith.constant 175 : index
    %1441 = memref.load %arg13[%c175] : memref<250xf32, #tpu.memory_space<smem>>
    %c15_532 = arith.constant 15 : index
    %c0_533 = arith.constant 0 : index
    %1442 = vector.load %arg17[%c15_532, %c0_533] : memref<48x64xf32, #tpu.memory_space<vmem>>, vector<8x64xf32>
    %1443 = vector.broadcast %1441 : f32 to vector<8x64xf32>
    %1444 = arith.mulf %1443, %1442 : vector<8x64xf32>
    %1445 = arith.addf %1435, %1444 : vector<8x64xf32>
    %c224 = arith.constant 224 : index
    %1446 = memref.load %arg13[%c224] : memref<250xf32, #tpu.memory_space<smem>>
    %c4_534 = arith.constant 4 : index
    %c0_535 = arith.constant 0 : index
    %1447 = vector.load %arg17[%c4_534, %c0_535] : memref<48x64xf32, #tpu.memory_space<vmem>>, vector<8x64xf32>
    %1448 = vector.broadcast %1446 : f32 to vector<8x64xf32>
    %1449 = arith.mulf %1448, %1447 : vector<8x64xf32>
    %1450 = arith.addf %1440, %1449 : vector<8x64xf32>
    %c225 = arith.constant 225 : index
    %1451 = memref.load %arg13[%c225] : memref<250xf32, #tpu.memory_space<smem>>
    %c16_536 = arith.constant 16 : index
    %c0_537 = arith.constant 0 : index
    %1452 = vector.load %arg17[%c16_536, %c0_537] : memref<48x64xf32, #tpu.memory_space<vmem>>, vector<8x64xf32>
    %1453 = vector.broadcast %1451 : f32 to vector<8x64xf32>
    %1454 = arith.mulf %1453, %1452 : vector<8x64xf32>
    %1455 = arith.addf %1445, %1454 : vector<8x64xf32>
    %c0_538 = arith.constant 0 : index
    %c26_539 = arith.constant 26 : index
    %1456 = vector.load %arg16[%c0_538, %c26_539] : memref<24x100xf32, #tpu.memory_space<vmem>>, vector<24x64xf32>
    %c24_540 = arith.constant 24 : index
    %c0_541 = arith.constant 0 : index
    %1457 = vector.load %arg17[%c24_540, %c0_541] : memref<48x64xf32, #tpu.memory_space<vmem>>, vector<24x64xf32>
    tpu.vector_store %arg17[%c24_540, %c0_541], %1456 {strides = array<i32>} : memref<48x64xf32, #tpu.memory_space<vmem>>, vector<24x64xf32>,
    %c34 = arith.constant 34 : index
    %1458 = memref.load %arg13[%c34] : memref<250xf32, #tpu.memory_space<smem>>
    %c24_542 = arith.constant 24 : index
    %c0_543 = arith.constant 0 : index
    %1459 = vector.load %arg17[%c24_542, %c0_543] : memref<48x64xf32, #tpu.memory_space<vmem>>, vector<8x64xf32>
    %1460 = vector.broadcast %1458 : f32 to vector<8x64xf32>
    %1461 = arith.mulf %1460, %1459 : vector<8x64xf32>
    %1462 = arith.addf %1450, %1461 : vector<8x64xf32>
    %c35 = arith.constant 35 : index
    %1463 = memref.load %arg13[%c35] : memref<250xf32, #tpu.memory_space<smem>>
    %c36_544 = arith.constant 36 : index
    %c0_545 = arith.constant 0 : index
    %1464 = vector.load %arg17[%c36_544, %c0_545] : memref<48x64xf32, #tpu.memory_space<vmem>>, vector<8x64xf32>
    %1465 = vector.broadcast %1463 : f32 to vector<8x64xf32>
    %1466 = arith.mulf %1465, %1464 : vector<8x64xf32>
    %1467 = arith.addf %1455, %1466 : vector<8x64xf32>
    %c84 = arith.constant 84 : index
    %1468 = memref.load %arg13[%c84] : memref<250xf32, #tpu.memory_space<smem>>
    %c25_546 = arith.constant 25 : index
    %c0_547 = arith.constant 0 : index
    %1469 = vector.load %arg17[%c25_546, %c0_547] : memref<48x64xf32, #tpu.memory_space<vmem>>, vector<8x64xf32>
    %1470 = vector.broadcast %1468 : f32 to vector<8x64xf32>
    %1471 = arith.mulf %1470, %1469 : vector<8x64xf32>
    %1472 = arith.addf %1462, %1471 : vector<8x64xf32>
    %c85 = arith.constant 85 : index
    %1473 = memref.load %arg13[%c85] : memref<250xf32, #tpu.memory_space<smem>>
    %c37_548 = arith.constant 37 : index
    %c0_549 = arith.constant 0 : index
    %1474 = vector.load %arg17[%c37_548, %c0_549] : memref<48x64xf32, #tpu.memory_space<vmem>>, vector<8x64xf32>
    %1475 = vector.broadcast %1473 : f32 to vector<8x64xf32>
    %1476 = arith.mulf %1475, %1474 : vector<8x64xf32>
    %1477 = arith.addf %1467, %1476 : vector<8x64xf32>
    %c134 = arith.constant 134 : index
    %1478 = memref.load %arg13[%c134] : memref<250xf32, #tpu.memory_space<smem>>
    %c26_550 = arith.constant 26 : index
    %c0_551 = arith.constant 0 : index
    %1479 = vector.load %arg17[%c26_550, %c0_551] : memref<48x64xf32, #tpu.memory_space<vmem>>, vector<8x64xf32>
    %1480 = vector.broadcast %1478 : f32 to vector<8x64xf32>
    %1481 = arith.mulf %1480, %1479 : vector<8x64xf32>
    %1482 = arith.addf %1472, %1481 : vector<8x64xf32>
    %c135 = arith.constant 135 : index
    %1483 = memref.load %arg13[%c135] : memref<250xf32, #tpu.memory_space<smem>>
    %c38_552 = arith.constant 38 : index
    %c0_553 = arith.constant 0 : index
    %1484 = vector.load %arg17[%c38_552, %c0_553] : memref<48x64xf32, #tpu.memory_space<vmem>>, vector<8x64xf32>
    %1485 = vector.broadcast %1483 : f32 to vector<8x64xf32>
    %1486 = arith.mulf %1485, %1484 : vector<8x64xf32>
    %1487 = arith.addf %1477, %1486 : vector<8x64xf32>
    %c184 = arith.constant 184 : index
    %1488 = memref.load %arg13[%c184] : memref<250xf32, #tpu.memory_space<smem>>
    %c27_554 = arith.constant 27 : index
    %c0_555 = arith.constant 0 : index
    %1489 = vector.load %arg17[%c27_554, %c0_555] : memref<48x64xf32, #tpu.memory_space<vmem>>, vector<8x64xf32>
    %1490 = vector.broadcast %1488 : f32 to vector<8x64xf32>
    %1491 = arith.mulf %1490, %1489 : vector<8x64xf32>
    %1492 = arith.addf %1482, %1491 : vector<8x64xf32>
    %c185 = arith.constant 185 : index
    %1493 = memref.load %arg13[%c185] : memref<250xf32, #tpu.memory_space<smem>>
    %c39_556 = arith.constant 39 : index
    %c0_557 = arith.constant 0 : index
    %1494 = vector.load %arg17[%c39_556, %c0_557] : memref<48x64xf32, #tpu.memory_space<vmem>>, vector<8x64xf32>
    %1495 = vector.broadcast %1493 : f32 to vector<8x64xf32>
    %1496 = arith.mulf %1495, %1494 : vector<8x64xf32>
    %1497 = arith.addf %1487, %1496 : vector<8x64xf32>
    %c234 = arith.constant 234 : index
    %1498 = memref.load %arg13[%c234] : memref<250xf32, #tpu.memory_space<smem>>
    %c28_558 = arith.constant 28 : index
    %c0_559 = arith.constant 0 : index
    %1499 = vector.load %arg17[%c28_558, %c0_559] : memref<48x64xf32, #tpu.memory_space<vmem>>, vector<8x64xf32>
    %1500 = vector.broadcast %1498 : f32 to vector<8x64xf32>
    %1501 = arith.mulf %1500, %1499 : vector<8x64xf32>
    %1502 = arith.addf %1492, %1501 : vector<8x64xf32>
    %c235 = arith.constant 235 : index
    %1503 = memref.load %arg13[%c235] : memref<250xf32, #tpu.memory_space<smem>>
    %c40_560 = arith.constant 40 : index
    %c0_561 = arith.constant 0 : index
    %1504 = vector.load %arg17[%c40_560, %c0_561] : memref<48x64xf32, #tpu.memory_space<vmem>>, vector<8x64xf32>
    %1505 = vector.broadcast %1503 : f32 to vector<8x64xf32>
    %1506 = arith.mulf %1505, %1504 : vector<8x64xf32>
    %1507 = arith.addf %1497, %1506 : vector<8x64xf32>
    %c0_562 = arith.constant 0 : index
    %c34_563 = arith.constant 34 : index
    %1508 = vector.load %arg16[%c0_562, %c34_563] : memref<24x100xf32, #tpu.memory_space<vmem>>, vector<24x64xf32>
    %c0_564 = arith.constant 0 : index
    %c0_565 = arith.constant 0 : index
    %1509 = vector.load %arg17[%c0_564, %c0_565] : memref<48x64xf32, #tpu.memory_space<vmem>>, vector<24x64xf32>
    tpu.vector_store %arg17[%c0_564, %c0_565], %1508 {strides = array<i32>} : memref<48x64xf32, #tpu.memory_space<vmem>>, vector<24x64xf32>,
    %c44 = arith.constant 44 : index
    %1510 = memref.load %arg13[%c44] : memref<250xf32, #tpu.memory_space<smem>>
    %c0_566 = arith.constant 0 : index
    %c0_567 = arith.constant 0 : index
    %1511 = vector.load %arg17[%c0_566, %c0_567] : memref<48x64xf32, #tpu.memory_space<vmem>>, vector<8x64xf32>
    %1512 = vector.broadcast %1510 : f32 to vector<8x64xf32>
    %1513 = arith.mulf %1512, %1511 : vector<8x64xf32>
    %1514 = arith.addf %1502, %1513 : vector<8x64xf32>
    %c45 = arith.constant 45 : index
    %1515 = memref.load %arg13[%c45] : memref<250xf32, #tpu.memory_space<smem>>
    %c12_568 = arith.constant 12 : index
    %c0_569 = arith.constant 0 : index
    %1516 = vector.load %arg17[%c12_568, %c0_569] : memref<48x64xf32, #tpu.memory_space<vmem>>, vector<8x64xf32>
    %1517 = vector.broadcast %1515 : f32 to vector<8x64xf32>
    %1518 = arith.mulf %1517, %1516 : vector<8x64xf32>
    %1519 = arith.addf %1507, %1518 : vector<8x64xf32>
    %c94 = arith.constant 94 : index
    %1520 = memref.load %arg13[%c94] : memref<250xf32, #tpu.memory_space<smem>>
    %c1_570 = arith.constant 1 : index
    %c0_571 = arith.constant 0 : index
    %1521 = vector.load %arg17[%c1_570, %c0_571] : memref<48x64xf32, #tpu.memory_space<vmem>>, vector<8x64xf32>
    %1522 = vector.broadcast %1520 : f32 to vector<8x64xf32>
    %1523 = arith.mulf %1522, %1521 : vector<8x64xf32>
    %1524 = arith.addf %1514, %1523 : vector<8x64xf32>
    %c95 = arith.constant 95 : index
    %1525 = memref.load %arg13[%c95] : memref<250xf32, #tpu.memory_space<smem>>
    %c13_572 = arith.constant 13 : index
    %c0_573 = arith.constant 0 : index
    %1526 = vector.load %arg17[%c13_572, %c0_573] : memref<48x64xf32, #tpu.memory_space<vmem>>, vector<8x64xf32>
    %1527 = vector.broadcast %1525 : f32 to vector<8x64xf32>
    %1528 = arith.mulf %1527, %1526 : vector<8x64xf32>
    %1529 = arith.addf %1519, %1528 : vector<8x64xf32>
    %c144 = arith.constant 144 : index
    %1530 = memref.load %arg13[%c144] : memref<250xf32, #tpu.memory_space<smem>>
    %c2_574 = arith.constant 2 : index
    %c0_575 = arith.constant 0 : index
    %1531 = vector.load %arg17[%c2_574, %c0_575] : memref<48x64xf32, #tpu.memory_space<vmem>>, vector<8x64xf32>
    %1532 = vector.broadcast %1530 : f32 to vector<8x64xf32>
    %1533 = arith.mulf %1532, %1531 : vector<8x64xf32>
    %1534 = arith.addf %1524, %1533 : vector<8x64xf32>
    %c145 = arith.constant 145 : index
    %1535 = memref.load %arg13[%c145] : memref<250xf32, #tpu.memory_space<smem>>
    %c14_576 = arith.constant 14 : index
    %c0_577 = arith.constant 0 : index
    %1536 = vector.load %arg17[%c14_576, %c0_577] : memref<48x64xf32, #tpu.memory_space<vmem>>, vector<8x64xf32>
    %1537 = vector.broadcast %1535 : f32 to vector<8x64xf32>
    %1538 = arith.mulf %1537, %1536 : vector<8x64xf32>
    %1539 = arith.addf %1529, %1538 : vector<8x64xf32>
    %c194 = arith.constant 194 : index
    %1540 = memref.load %arg13[%c194] : memref<250xf32, #tpu.memory_space<smem>>
    %c3_578 = arith.constant 3 : index
    %c0_579 = arith.constant 0 : index
    %1541 = vector.load %arg17[%c3_578, %c0_579] : memref<48x64xf32, #tpu.memory_space<vmem>>, vector<8x64xf32>
    %1542 = vector.broadcast %1540 : f32 to vector<8x64xf32>
    %1543 = arith.mulf %1542, %1541 : vector<8x64xf32>
    %1544 = arith.addf %1534, %1543 : vector<8x64xf32>
    %c195 = arith.constant 195 : index
    %1545 = memref.load %arg13[%c195] : memref<250xf32, #tpu.memory_space<smem>>
    %c15_580 = arith.constant 15 : index
    %c0_581 = arith.constant 0 : index
    %1546 = vector.load %arg17[%c15_580, %c0_581] : memref<48x64xf32, #tpu.memory_space<vmem>>, vector<8x64xf32>
    %1547 = vector.broadcast %1545 : f32 to vector<8x64xf32>
    %1548 = arith.mulf %1547, %1546 : vector<8x64xf32>
    %1549 = arith.addf %1539, %1548 : vector<8x64xf32>
    %c244 = arith.constant 244 : index
    %1550 = memref.load %arg13[%c244] : memref<250xf32, #tpu.memory_space<smem>>
    %c4_582 = arith.constant 4 : index
    %c0_583 = arith.constant 0 : index
    %1551 = vector.load %arg17[%c4_582, %c0_583] : memref<48x64xf32, #tpu.memory_space<vmem>>, vector<8x64xf32>
    %1552 = vector.broadcast %1550 : f32 to vector<8x64xf32>
    %1553 = arith.mulf %1552, %1551 : vector<8x64xf32>
    %1554 = arith.addf %1544, %1553 : vector<8x64xf32>
    %c245 = arith.constant 245 : index
    %1555 = memref.load %arg13[%c245] : memref<250xf32, #tpu.memory_space<smem>>
    %c16_584 = arith.constant 16 : index
    %c0_585 = arith.constant 0 : index
    %1556 = vector.load %arg17[%c16_584, %c0_585] : memref<48x64xf32, #tpu.memory_space<vmem>>, vector<8x64xf32>
    %1557 = vector.broadcast %1555 : f32 to vector<8x64xf32>
    %1558 = arith.mulf %1557, %1556 : vector<8x64xf32>
    %1559 = arith.addf %1549, %1558 : vector<8x64xf32>
    %c0_i32_586 = arith.constant 0 : i32
    %1560 = vector.broadcast %c0_i32_586 : i32 to vector<8x64xi32>
    %1561 = arith.cmpi sge, %749, %1560 : vector<8x64xi32>
    %c8_i32_587 = arith.constant 8 : i32
    %1562 = vector.broadcast %c8_i32_587 : i32 to vector<8x64xi32>
    %1563 = arith.cmpi slt, %749, %1562 : vector<8x64xi32>
    %1564 = arith.andi %1561, %1563 : vector<8x64xi1>
    %cst_588 = arith.constant 0.000000e+00 : f32
    %1565 = vector.broadcast %cst_588 : f32 to vector<8x64xf32>
    %1566 = arith.select %1564, %1554, %1565 : vector<8x64xi1>, vector<8x64xf32>
    %1567 = arith.addf %1294, %1566 : vector<8x64xf32>
    %cst_589 = arith.constant 0.000000e+00 : f32
    %1568 = vector.broadcast %cst_589 : f32 to vector<8x64xf32>
    %1569 = arith.select %1564, %1559, %1568 : vector<8x64xi1>, vector<8x64xf32>
    %1570 = arith.addf %1297, %1569 : vector<8x64xf32>
    %cst_590 = arith.constant 0.000000e+00 : f32
    %1571 = vector.broadcast %cst_590 : f32 to vector<8x64xf32>
    %cst_591 = arith.constant 0.000000e+00 : f32
    %1572 = vector.broadcast %cst_591 : f32 to vector<8x64xf32>
    %c0_592 = arith.constant 0 : index
    %c3_593 = arith.constant 3 : index
    %1573 = vector.load %arg16[%c0_592, %c3_593] : memref<24x100xf32, #tpu.memory_space<vmem>>, vector<24x64xf32>
    %c24_594 = arith.constant 24 : index
    %c0_595 = arith.constant 0 : index
    %1574 = vector.load %arg17[%c24_594, %c0_595] : memref<48x64xf32, #tpu.memory_space<vmem>>, vector<24x64xf32>
    tpu.vector_store %arg17[%c24_594, %c0_595], %1573 {strides = array<i32>} : memref<48x64xf32, #tpu.memory_space<vmem>>, vector<24x64xf32>,
    %c6_596 = arith.constant 6 : index
    %1575 = memref.load %arg13[%c6_596] : memref<250xf32, #tpu.memory_space<smem>>
    %c24_597 = arith.constant 24 : index
    %c0_598 = arith.constant 0 : index
    %1576 = vector.load %arg17[%c24_597, %c0_598] : memref<48x64xf32, #tpu.memory_space<vmem>>, vector<8x64xf32>
    %1577 = vector.broadcast %1575 : f32 to vector<8x64xf32>
    %1578 = arith.mulf %1577, %1576 : vector<8x64xf32>
    %1579 = arith.addf %1571, %1578 : vector<8x64xf32>
    %c7_599 = arith.constant 7 : index
    %1580 = memref.load %arg13[%c7_599] : memref<250xf32, #tpu.memory_space<smem>>
    %c36_600 = arith.constant 36 : index
    %c0_601 = arith.constant 0 : index
    %1581 = vector.load %arg17[%c36_600, %c0_601] : memref<48x64xf32, #tpu.memory_space<vmem>>, vector<8x64xf32>
    %1582 = vector.broadcast %1580 : f32 to vector<8x64xf32>
    %1583 = arith.mulf %1582, %1581 : vector<8x64xf32>
    %1584 = arith.addf %1572, %1583 : vector<8x64xf32>
    %c56 = arith.constant 56 : index
    %1585 = memref.load %arg13[%c56] : memref<250xf32, #tpu.memory_space<smem>>
    %c25_602 = arith.constant 25 : index
    %c0_603 = arith.constant 0 : index
    %1586 = vector.load %arg17[%c25_602, %c0_603] : memref<48x64xf32, #tpu.memory_space<vmem>>, vector<8x64xf32>
    %1587 = vector.broadcast %1585 : f32 to vector<8x64xf32>
    %1588 = arith.mulf %1587, %1586 : vector<8x64xf32>
    %1589 = arith.addf %1579, %1588 : vector<8x64xf32>
    %c57 = arith.constant 57 : index
    %1590 = memref.load %arg13[%c57] : memref<250xf32, #tpu.memory_space<smem>>
    %c37_604 = arith.constant 37 : index
    %c0_605 = arith.constant 0 : index
    %1591 = vector.load %arg17[%c37_604, %c0_605] : memref<48x64xf32, #tpu.memory_space<vmem>>, vector<8x64xf32>
    %1592 = vector.broadcast %1590 : f32 to vector<8x64xf32>
    %1593 = arith.mulf %1592, %1591 : vector<8x64xf32>
    %1594 = arith.addf %1584, %1593 : vector<8x64xf32>
    %c106 = arith.constant 106 : index
    %1595 = memref.load %arg13[%c106] : memref<250xf32, #tpu.memory_space<smem>>
    %c26_606 = arith.constant 26 : index
    %c0_607 = arith.constant 0 : index
    %1596 = vector.load %arg17[%c26_606, %c0_607] : memref<48x64xf32, #tpu.memory_space<vmem>>, vector<8x64xf32>
    %1597 = vector.broadcast %1595 : f32 to vector<8x64xf32>
    %1598 = arith.mulf %1597, %1596 : vector<8x64xf32>
    %1599 = arith.addf %1589, %1598 : vector<8x64xf32>
    %c107 = arith.constant 107 : index
    %1600 = memref.load %arg13[%c107] : memref<250xf32, #tpu.memory_space<smem>>
    %c38_608 = arith.constant 38 : index
    %c0_609 = arith.constant 0 : index
    %1601 = vector.load %arg17[%c38_608, %c0_609] : memref<48x64xf32, #tpu.memory_space<vmem>>, vector<8x64xf32>
    %1602 = vector.broadcast %1600 : f32 to vector<8x64xf32>
    %1603 = arith.mulf %1602, %1601 : vector<8x64xf32>
    %1604 = arith.addf %1594, %1603 : vector<8x64xf32>
    %c156 = arith.constant 156 : index
    %1605 = memref.load %arg13[%c156] : memref<250xf32, #tpu.memory_space<smem>>
    %c27_610 = arith.constant 27 : index
    %c0_611 = arith.constant 0 : index
    %1606 = vector.load %arg17[%c27_610, %c0_611] : memref<48x64xf32, #tpu.memory_space<vmem>>, vector<8x64xf32>
    %1607 = vector.broadcast %1605 : f32 to vector<8x64xf32>
    %1608 = arith.mulf %1607, %1606 : vector<8x64xf32>
    %1609 = arith.addf %1599, %1608 : vector<8x64xf32>
    %c157 = arith.constant 157 : index
    %1610 = memref.load %arg13[%c157] : memref<250xf32, #tpu.memory_space<smem>>
    %c39_612 = arith.constant 39 : index
    %c0_613 = arith.constant 0 : index
    %1611 = vector.load %arg17[%c39_612, %c0_613] : memref<48x64xf32, #tpu.memory_space<vmem>>, vector<8x64xf32>
    %1612 = vector.broadcast %1610 : f32 to vector<8x64xf32>
    %1613 = arith.mulf %1612, %1611 : vector<8x64xf32>
    %1614 = arith.addf %1604, %1613 : vector<8x64xf32>
    %c206 = arith.constant 206 : index
    %1615 = memref.load %arg13[%c206] : memref<250xf32, #tpu.memory_space<smem>>
    %c28_614 = arith.constant 28 : index
    %c0_615 = arith.constant 0 : index
    %1616 = vector.load %arg17[%c28_614, %c0_615] : memref<48x64xf32, #tpu.memory_space<vmem>>, vector<8x64xf32>
    %1617 = vector.broadcast %1615 : f32 to vector<8x64xf32>
    %1618 = arith.mulf %1617, %1616 : vector<8x64xf32>
    %1619 = arith.addf %1609, %1618 : vector<8x64xf32>
    %c207 = arith.constant 207 : index
    %1620 = memref.load %arg13[%c207] : memref<250xf32, #tpu.memory_space<smem>>
    %c40_616 = arith.constant 40 : index
    %c0_617 = arith.constant 0 : index
    %1621 = vector.load %arg17[%c40_616, %c0_617] : memref<48x64xf32, #tpu.memory_space<vmem>>, vector<8x64xf32>
    %1622 = vector.broadcast %1620 : f32 to vector<8x64xf32>
    %1623 = arith.mulf %1622, %1621 : vector<8x64xf32>
    %1624 = arith.addf %1614, %1623 : vector<8x64xf32>
    %c0_618 = arith.constant 0 : index
    %c11_619 = arith.constant 11 : index
    %1625 = vector.load %arg16[%c0_618, %c11_619] : memref<24x100xf32, #tpu.memory_space<vmem>>, vector<24x64xf32>
    %c0_620 = arith.constant 0 : index
    %c0_621 = arith.constant 0 : index
    %1626 = vector.load %arg17[%c0_620, %c0_621] : memref<48x64xf32, #tpu.memory_space<vmem>>, vector<24x64xf32>
    tpu.vector_store %arg17[%c0_620, %c0_621], %1625 {strides = array<i32>} : memref<48x64xf32, #tpu.memory_space<vmem>>, vector<24x64xf32>,
    %c16_622 = arith.constant 16 : index
    %1627 = memref.load %arg13[%c16_622] : memref<250xf32, #tpu.memory_space<smem>>
    %c0_623 = arith.constant 0 : index
    %c0_624 = arith.constant 0 : index
    %1628 = vector.load %arg17[%c0_623, %c0_624] : memref<48x64xf32, #tpu.memory_space<vmem>>, vector<8x64xf32>
    %1629 = vector.broadcast %1627 : f32 to vector<8x64xf32>
    %1630 = arith.mulf %1629, %1628 : vector<8x64xf32>
    %1631 = arith.addf %1619, %1630 : vector<8x64xf32>
    %c17_625 = arith.constant 17 : index
    %1632 = memref.load %arg13[%c17_625] : memref<250xf32, #tpu.memory_space<smem>>
    %c12_626 = arith.constant 12 : index
    %c0_627 = arith.constant 0 : index
    %1633 = vector.load %arg17[%c12_626, %c0_627] : memref<48x64xf32, #tpu.memory_space<vmem>>, vector<8x64xf32>
    %1634 = vector.broadcast %1632 : f32 to vector<8x64xf32>
    %1635 = arith.mulf %1634, %1633 : vector<8x64xf32>
    %1636 = arith.addf %1624, %1635 : vector<8x64xf32>
    %c66 = arith.constant 66 : index
    %1637 = memref.load %arg13[%c66] : memref<250xf32, #tpu.memory_space<smem>>
    %c1_628 = arith.constant 1 : index
    %c0_629 = arith.constant 0 : index
    %1638 = vector.load %arg17[%c1_628, %c0_629] : memref<48x64xf32, #tpu.memory_space<vmem>>, vector<8x64xf32>
    %1639 = vector.broadcast %1637 : f32 to vector<8x64xf32>
    %1640 = arith.mulf %1639, %1638 : vector<8x64xf32>
    %1641 = arith.addf %1631, %1640 : vector<8x64xf32>
    %c67 = arith.constant 67 : index
    %1642 = memref.load %arg13[%c67] : memref<250xf32, #tpu.memory_space<smem>>
    %c13_630 = arith.constant 13 : index
    %c0_631 = arith.constant 0 : index
    %1643 = vector.load %arg17[%c13_630, %c0_631] : memref<48x64xf32, #tpu.memory_space<vmem>>, vector<8x64xf32>
    %1644 = vector.broadcast %1642 : f32 to vector<8x64xf32>
    %1645 = arith.mulf %1644, %1643 : vector<8x64xf32>
    %1646 = arith.addf %1636, %1645 : vector<8x64xf32>
    %c116 = arith.constant 116 : index
    %1647 = memref.load %arg13[%c116] : memref<250xf32, #tpu.memory_space<smem>>
    %c2_632 = arith.constant 2 : index
    %c0_633 = arith.constant 0 : index
    %1648 = vector.load %arg17[%c2_632, %c0_633] : memref<48x64xf32, #tpu.memory_space<vmem>>, vector<8x64xf32>
    %1649 = vector.broadcast %1647 : f32 to vector<8x64xf32>
    %1650 = arith.mulf %1649, %1648 : vector<8x64xf32>
    %1651 = arith.addf %1641, %1650 : vector<8x64xf32>
    %c117 = arith.constant 117 : index
    %1652 = memref.load %arg13[%c117] : memref<250xf32, #tpu.memory_space<smem>>
    %c14_634 = arith.constant 14 : index
    %c0_635 = arith.constant 0 : index
    %1653 = vector.load %arg17[%c14_634, %c0_635] : memref<48x64xf32, #tpu.memory_space<vmem>>, vector<8x64xf32>
    %1654 = vector.broadcast %1652 : f32 to vector<8x64xf32>
    %1655 = arith.mulf %1654, %1653 : vector<8x64xf32>
    %1656 = arith.addf %1646, %1655 : vector<8x64xf32>
    %c166 = arith.constant 166 : index
    %1657 = memref.load %arg13[%c166] : memref<250xf32, #tpu.memory_space<smem>>
    %c3_636 = arith.constant 3 : index
    %c0_637 = arith.constant 0 : index
    %1658 = vector.load %arg17[%c3_636, %c0_637] : memref<48x64xf32, #tpu.memory_space<vmem>>, vector<8x64xf32>
    %1659 = vector.broadcast %1657 : f32 to vector<8x64xf32>
    %1660 = arith.mulf %1659, %1658 : vector<8x64xf32>
    %1661 = arith.addf %1651, %1660 : vector<8x64xf32>
    %c167 = arith.constant 167 : index
    %1662 = memref.load %arg13[%c167] : memref<250xf32, #tpu.memory_space<smem>>
    %c15_638 = arith.constant 15 : index
    %c0_639 = arith.constant 0 : index
    %1663 = vector.load %arg17[%c15_638, %c0_639] : memref<48x64xf32, #tpu.memory_space<vmem>>, vector<8x64xf32>
    %1664 = vector.broadcast %1662 : f32 to vector<8x64xf32>
    %1665 = arith.mulf %1664, %1663 : vector<8x64xf32>
    %1666 = arith.addf %1656, %1665 : vector<8x64xf32>
    %c216 = arith.constant 216 : index
    %1667 = memref.load %arg13[%c216] : memref<250xf32, #tpu.memory_space<smem>>
    %c4_640 = arith.constant 4 : index
    %c0_641 = arith.constant 0 : index
    %1668 = vector.load %arg17[%c4_640, %c0_641] : memref<48x64xf32, #tpu.memory_space<vmem>>, vector<8x64xf32>
    %1669 = vector.broadcast %1667 : f32 to vector<8x64xf32>
    %1670 = arith.mulf %1669, %1668 : vector<8x64xf32>
    %1671 = arith.addf %1661, %1670 : vector<8x64xf32>
    %c217 = arith.constant 217 : index
    %1672 = memref.load %arg13[%c217] : memref<250xf32, #tpu.memory_space<smem>>
    %c16_642 = arith.constant 16 : index
    %c0_643 = arith.constant 0 : index
    %1673 = vector.load %arg17[%c16_642, %c0_643] : memref<48x64xf32, #tpu.memory_space<vmem>>, vector<8x64xf32>
    %1674 = vector.broadcast %1672 : f32 to vector<8x64xf32>
    %1675 = arith.mulf %1674, %1673 : vector<8x64xf32>
    %1676 = arith.addf %1666, %1675 : vector<8x64xf32>
    %c0_644 = arith.constant 0 : index
    %c19_645 = arith.constant 19 : index
    %1677 = vector.load %arg16[%c0_644, %c19_645] : memref<24x100xf32, #tpu.memory_space<vmem>>, vector<24x64xf32>
    %c24_646 = arith.constant 24 : index
    %c0_647 = arith.constant 0 : index
    %1678 = vector.load %arg17[%c24_646, %c0_647] : memref<48x64xf32, #tpu.memory_space<vmem>>, vector<24x64xf32>
    tpu.vector_store %arg17[%c24_646, %c0_647], %1677 {strides = array<i32>} : memref<48x64xf32, #tpu.memory_space<vmem>>, vector<24x64xf32>,
    %c26_648 = arith.constant 26 : index
    %1679 = memref.load %arg13[%c26_648] : memref<250xf32, #tpu.memory_space<smem>>
    %c24_649 = arith.constant 24 : index
    %c0_650 = arith.constant 0 : index
    %1680 = vector.load %arg17[%c24_649, %c0_650] : memref<48x64xf32, #tpu.memory_space<vmem>>, vector<8x64xf32>
    %1681 = vector.broadcast %1679 : f32 to vector<8x64xf32>
    %1682 = arith.mulf %1681, %1680 : vector<8x64xf32>
    %1683 = arith.addf %1671, %1682 : vector<8x64xf32>
    %c27_651 = arith.constant 27 : index
    %1684 = memref.load %arg13[%c27_651] : memref<250xf32, #tpu.memory_space<smem>>
    %c36_652 = arith.constant 36 : index
    %c0_653 = arith.constant 0 : index
    %1685 = vector.load %arg17[%c36_652, %c0_653] : memref<48x64xf32, #tpu.memory_space<vmem>>, vector<8x64xf32>
    %1686 = vector.broadcast %1684 : f32 to vector<8x64xf32>
    %1687 = arith.mulf %1686, %1685 : vector<8x64xf32>
    %1688 = arith.addf %1676, %1687 : vector<8x64xf32>
    %c76 = arith.constant 76 : index
    %1689 = memref.load %arg13[%c76] : memref<250xf32, #tpu.memory_space<smem>>
    %c25_654 = arith.constant 25 : index
    %c0_655 = arith.constant 0 : index
    %1690 = vector.load %arg17[%c25_654, %c0_655] : memref<48x64xf32, #tpu.memory_space<vmem>>, vector<8x64xf32>
    %1691 = vector.broadcast %1689 : f32 to vector<8x64xf32>
    %1692 = arith.mulf %1691, %1690 : vector<8x64xf32>
    %1693 = arith.addf %1683, %1692 : vector<8x64xf32>
    %c77 = arith.constant 77 : index
    %1694 = memref.load %arg13[%c77] : memref<250xf32, #tpu.memory_space<smem>>
    %c37_656 = arith.constant 37 : index
    %c0_657 = arith.constant 0 : index
    %1695 = vector.load %arg17[%c37_656, %c0_657] : memref<48x64xf32, #tpu.memory_space<vmem>>, vector<8x64xf32>
    %1696 = vector.broadcast %1694 : f32 to vector<8x64xf32>
    %1697 = arith.mulf %1696, %1695 : vector<8x64xf32>
    %1698 = arith.addf %1688, %1697 : vector<8x64xf32>
    %c126 = arith.constant 126 : index
    %1699 = memref.load %arg13[%c126] : memref<250xf32, #tpu.memory_space<smem>>
    %c26_658 = arith.constant 26 : index
    %c0_659 = arith.constant 0 : index
    %1700 = vector.load %arg17[%c26_658, %c0_659] : memref<48x64xf32, #tpu.memory_space<vmem>>, vector<8x64xf32>
    %1701 = vector.broadcast %1699 : f32 to vector<8x64xf32>
    %1702 = arith.mulf %1701, %1700 : vector<8x64xf32>
    %1703 = arith.addf %1693, %1702 : vector<8x64xf32>
    %c127 = arith.constant 127 : index
    %1704 = memref.load %arg13[%c127] : memref<250xf32, #tpu.memory_space<smem>>
    %c38_660 = arith.constant 38 : index
    %c0_661 = arith.constant 0 : index
    %1705 = vector.load %arg17[%c38_660, %c0_661] : memref<48x64xf32, #tpu.memory_space<vmem>>, vector<8x64xf32>
    %1706 = vector.broadcast %1704 : f32 to vector<8x64xf32>
    %1707 = arith.mulf %1706, %1705 : vector<8x64xf32>
    %1708 = arith.addf %1698, %1707 : vector<8x64xf32>
    %c176 = arith.constant 176 : index
    %1709 = memref.load %arg13[%c176] : memref<250xf32, #tpu.memory_space<smem>>
    %c27_662 = arith.constant 27 : index
    %c0_663 = arith.constant 0 : index
    %1710 = vector.load %arg17[%c27_662, %c0_663] : memref<48x64xf32, #tpu.memory_space<vmem>>, vector<8x64xf32>
    %1711 = vector.broadcast %1709 : f32 to vector<8x64xf32>
    %1712 = arith.mulf %1711, %1710 : vector<8x64xf32>
    %1713 = arith.addf %1703, %1712 : vector<8x64xf32>
    %c177 = arith.constant 177 : index
    %1714 = memref.load %arg13[%c177] : memref<250xf32, #tpu.memory_space<smem>>
    %c39_664 = arith.constant 39 : index
    %c0_665 = arith.constant 0 : index
    %1715 = vector.load %arg17[%c39_664, %c0_665] : memref<48x64xf32, #tpu.memory_space<vmem>>, vector<8x64xf32>
    %1716 = vector.broadcast %1714 : f32 to vector<8x64xf32>
    %1717 = arith.mulf %1716, %1715 : vector<8x64xf32>
    %1718 = arith.addf %1708, %1717 : vector<8x64xf32>
    %c226 = arith.constant 226 : index
    %1719 = memref.load %arg13[%c226] : memref<250xf32, #tpu.memory_space<smem>>
    %c28_666 = arith.constant 28 : index
    %c0_667 = arith.constant 0 : index
    %1720 = vector.load %arg17[%c28_666, %c0_667] : memref<48x64xf32, #tpu.memory_space<vmem>>, vector<8x64xf32>
    %1721 = vector.broadcast %1719 : f32 to vector<8x64xf32>
    %1722 = arith.mulf %1721, %1720 : vector<8x64xf32>
    %1723 = arith.addf %1713, %1722 : vector<8x64xf32>
    %c227 = arith.constant 227 : index
    %1724 = memref.load %arg13[%c227] : memref<250xf32, #tpu.memory_space<smem>>
    %c40_668 = arith.constant 40 : index
    %c0_669 = arith.constant 0 : index
    %1725 = vector.load %arg17[%c40_668, %c0_669] : memref<48x64xf32, #tpu.memory_space<vmem>>, vector<8x64xf32>
    %1726 = vector.broadcast %1724 : f32 to vector<8x64xf32>
    %1727 = arith.mulf %1726, %1725 : vector<8x64xf32>
    %1728 = arith.addf %1718, %1727 : vector<8x64xf32>
    %c0_670 = arith.constant 0 : index
    %c27_671 = arith.constant 27 : index
    %1729 = vector.load %arg16[%c0_670, %c27_671] : memref<24x100xf32, #tpu.memory_space<vmem>>, vector<24x64xf32>
    %c0_672 = arith.constant 0 : index
    %c0_673 = arith.constant 0 : index
    %1730 = vector.load %arg17[%c0_672, %c0_673] : memref<48x64xf32, #tpu.memory_space<vmem>>, vector<24x64xf32>
    tpu.vector_store %arg17[%c0_672, %c0_673], %1729 {strides = array<i32>} : memref<48x64xf32, #tpu.memory_space<vmem>>, vector<24x64xf32>,
    %c36_674 = arith.constant 36 : index
    %1731 = memref.load %arg13[%c36_674] : memref<250xf32, #tpu.memory_space<smem>>
    %c0_675 = arith.constant 0 : index
    %c0_676 = arith.constant 0 : index
    %1732 = vector.load %arg17[%c0_675, %c0_676] : memref<48x64xf32, #tpu.memory_space<vmem>>, vector<8x64xf32>
    %1733 = vector.broadcast %1731 : f32 to vector<8x64xf32>
    %1734 = arith.mulf %1733, %1732 : vector<8x64xf32>
    %1735 = arith.addf %1723, %1734 : vector<8x64xf32>
    %c37_677 = arith.constant 37 : index
    %1736 = memref.load %arg13[%c37_677] : memref<250xf32, #tpu.memory_space<smem>>
    %c12_678 = arith.constant 12 : index
    %c0_679 = arith.constant 0 : index
    %1737 = vector.load %arg17[%c12_678, %c0_679] : memref<48x64xf32, #tpu.memory_space<vmem>>, vector<8x64xf32>
    %1738 = vector.broadcast %1736 : f32 to vector<8x64xf32>
    %1739 = arith.mulf %1738, %1737 : vector<8x64xf32>
    %1740 = arith.addf %1728, %1739 : vector<8x64xf32>
    %c86 = arith.constant 86 : index
    %1741 = memref.load %arg13[%c86] : memref<250xf32, #tpu.memory_space<smem>>
    %c1_680 = arith.constant 1 : index
    %c0_681 = arith.constant 0 : index
    %1742 = vector.load %arg17[%c1_680, %c0_681] : memref<48x64xf32, #tpu.memory_space<vmem>>, vector<8x64xf32>
    %1743 = vector.broadcast %1741 : f32 to vector<8x64xf32>
    %1744 = arith.mulf %1743, %1742 : vector<8x64xf32>
    %1745 = arith.addf %1735, %1744 : vector<8x64xf32>
    %c87 = arith.constant 87 : index
    %1746 = memref.load %arg13[%c87] : memref<250xf32, #tpu.memory_space<smem>>
    %c13_682 = arith.constant 13 : index
    %c0_683 = arith.constant 0 : index
    %1747 = vector.load %arg17[%c13_682, %c0_683] : memref<48x64xf32, #tpu.memory_space<vmem>>, vector<8x64xf32>
    %1748 = vector.broadcast %1746 : f32 to vector<8x64xf32>
    %1749 = arith.mulf %1748, %1747 : vector<8x64xf32>
    %1750 = arith.addf %1740, %1749 : vector<8x64xf32>
    %c136 = arith.constant 136 : index
    %1751 = memref.load %arg13[%c136] : memref<250xf32, #tpu.memory_space<smem>>
    %c2_684 = arith.constant 2 : index
    %c0_685 = arith.constant 0 : index
    %1752 = vector.load %arg17[%c2_684, %c0_685] : memref<48x64xf32, #tpu.memory_space<vmem>>, vector<8x64xf32>
    %1753 = vector.broadcast %1751 : f32 to vector<8x64xf32>
    %1754 = arith.mulf %1753, %1752 : vector<8x64xf32>
    %1755 = arith.addf %1745, %1754 : vector<8x64xf32>
    %c137 = arith.constant 137 : index
    %1756 = memref.load %arg13[%c137] : memref<250xf32, #tpu.memory_space<smem>>
    %c14_686 = arith.constant 14 : index
    %c0_687 = arith.constant 0 : index
    %1757 = vector.load %arg17[%c14_686, %c0_687] : memref<48x64xf32, #tpu.memory_space<vmem>>, vector<8x64xf32>
    %1758 = vector.broadcast %1756 : f32 to vector<8x64xf32>
    %1759 = arith.mulf %1758, %1757 : vector<8x64xf32>
    %1760 = arith.addf %1750, %1759 : vector<8x64xf32>
    %c186 = arith.constant 186 : index
    %1761 = memref.load %arg13[%c186] : memref<250xf32, #tpu.memory_space<smem>>
    %c3_688 = arith.constant 3 : index
    %c0_689 = arith.constant 0 : index
    %1762 = vector.load %arg17[%c3_688, %c0_689] : memref<48x64xf32, #tpu.memory_space<vmem>>, vector<8x64xf32>
    %1763 = vector.broadcast %1761 : f32 to vector<8x64xf32>
    %1764 = arith.mulf %1763, %1762 : vector<8x64xf32>
    %1765 = arith.addf %1755, %1764 : vector<8x64xf32>
    %c187 = arith.constant 187 : index
    %1766 = memref.load %arg13[%c187] : memref<250xf32, #tpu.memory_space<smem>>
    %c15_690 = arith.constant 15 : index
    %c0_691 = arith.constant 0 : index
    %1767 = vector.load %arg17[%c15_690, %c0_691] : memref<48x64xf32, #tpu.memory_space<vmem>>, vector<8x64xf32>
    %1768 = vector.broadcast %1766 : f32 to vector<8x64xf32>
    %1769 = arith.mulf %1768, %1767 : vector<8x64xf32>
    %1770 = arith.addf %1760, %1769 : vector<8x64xf32>
    %c236 = arith.constant 236 : index
    %1771 = memref.load %arg13[%c236] : memref<250xf32, #tpu.memory_space<smem>>
    %c4_692 = arith.constant 4 : index
    %c0_693 = arith.constant 0 : index
    %1772 = vector.load %arg17[%c4_692, %c0_693] : memref<48x64xf32, #tpu.memory_space<vmem>>, vector<8x64xf32>
    %1773 = vector.broadcast %1771 : f32 to vector<8x64xf32>
    %1774 = arith.mulf %1773, %1772 : vector<8x64xf32>
    %1775 = arith.addf %1765, %1774 : vector<8x64xf32>
    %c237 = arith.constant 237 : index
    %1776 = memref.load %arg13[%c237] : memref<250xf32, #tpu.memory_space<smem>>
    %c16_694 = arith.constant 16 : index
    %c0_695 = arith.constant 0 : index
    %1777 = vector.load %arg17[%c16_694, %c0_695] : memref<48x64xf32, #tpu.memory_space<vmem>>, vector<8x64xf32>
    %1778 = vector.broadcast %1776 : f32 to vector<8x64xf32>
    %1779 = arith.mulf %1778, %1777 : vector<8x64xf32>
    %1780 = arith.addf %1770, %1779 : vector<8x64xf32>
    %c0_696 = arith.constant 0 : index
    %c35_697 = arith.constant 35 : index
    %1781 = vector.load %arg16[%c0_696, %c35_697] : memref<24x100xf32, #tpu.memory_space<vmem>>, vector<24x64xf32>
    %c24_698 = arith.constant 24 : index
    %c0_699 = arith.constant 0 : index
    %1782 = vector.load %arg17[%c24_698, %c0_699] : memref<48x64xf32, #tpu.memory_space<vmem>>, vector<24x64xf32>
    tpu.vector_store %arg17[%c24_698, %c0_699], %1781 {strides = array<i32>} : memref<48x64xf32, #tpu.memory_space<vmem>>, vector<24x64xf32>,
    %c46 = arith.constant 46 : index
    %1783 = memref.load %arg13[%c46] : memref<250xf32, #tpu.memory_space<smem>>
    %c24_700 = arith.constant 24 : index
    %c0_701 = arith.constant 0 : index
    %1784 = vector.load %arg17[%c24_700, %c0_701] : memref<48x64xf32, #tpu.memory_space<vmem>>, vector<8x64xf32>
    %1785 = vector.broadcast %1783 : f32 to vector<8x64xf32>
    %1786 = arith.mulf %1785, %1784 : vector<8x64xf32>
    %1787 = arith.addf %1775, %1786 : vector<8x64xf32>
    %c47 = arith.constant 47 : index
    %1788 = memref.load %arg13[%c47] : memref<250xf32, #tpu.memory_space<smem>>
    %c36_702 = arith.constant 36 : index
    %c0_703 = arith.constant 0 : index
    %1789 = vector.load %arg17[%c36_702, %c0_703] : memref<48x64xf32, #tpu.memory_space<vmem>>, vector<8x64xf32>
    %1790 = vector.broadcast %1788 : f32 to vector<8x64xf32>
    %1791 = arith.mulf %1790, %1789 : vector<8x64xf32>
    %1792 = arith.addf %1780, %1791 : vector<8x64xf32>
    %c96 = arith.constant 96 : index
    %1793 = memref.load %arg13[%c96] : memref<250xf32, #tpu.memory_space<smem>>
    %c25_704 = arith.constant 25 : index
    %c0_705 = arith.constant 0 : index
    %1794 = vector.load %arg17[%c25_704, %c0_705] : memref<48x64xf32, #tpu.memory_space<vmem>>, vector<8x64xf32>
    %1795 = vector.broadcast %1793 : f32 to vector<8x64xf32>
    %1796 = arith.mulf %1795, %1794 : vector<8x64xf32>
    %1797 = arith.addf %1787, %1796 : vector<8x64xf32>
    %c97 = arith.constant 97 : index
    %1798 = memref.load %arg13[%c97] : memref<250xf32, #tpu.memory_space<smem>>
    %c37_706 = arith.constant 37 : index
    %c0_707 = arith.constant 0 : index
    %1799 = vector.load %arg17[%c37_706, %c0_707] : memref<48x64xf32, #tpu.memory_space<vmem>>, vector<8x64xf32>
    %1800 = vector.broadcast %1798 : f32 to vector<8x64xf32>
    %1801 = arith.mulf %1800, %1799 : vector<8x64xf32>
    %1802 = arith.addf %1792, %1801 : vector<8x64xf32>
    %c146 = arith.constant 146 : index
    %1803 = memref.load %arg13[%c146] : memref<250xf32, #tpu.memory_space<smem>>
    %c26_708 = arith.constant 26 : index
    %c0_709 = arith.constant 0 : index
    %1804 = vector.load %arg17[%c26_708, %c0_709] : memref<48x64xf32, #tpu.memory_space<vmem>>, vector<8x64xf32>
    %1805 = vector.broadcast %1803 : f32 to vector<8x64xf32>
    %1806 = arith.mulf %1805, %1804 : vector<8x64xf32>
    %1807 = arith.addf %1797, %1806 : vector<8x64xf32>
    %c147 = arith.constant 147 : index
    %1808 = memref.load %arg13[%c147] : memref<250xf32, #tpu.memory_space<smem>>
    %c38_710 = arith.constant 38 : index
    %c0_711 = arith.constant 0 : index
    %1809 = vector.load %arg17[%c38_710, %c0_711] : memref<48x64xf32, #tpu.memory_space<vmem>>, vector<8x64xf32>
    %1810 = vector.broadcast %1808 : f32 to vector<8x64xf32>
    %1811 = arith.mulf %1810, %1809 : vector<8x64xf32>
    %1812 = arith.addf %1802, %1811 : vector<8x64xf32>
    %c196 = arith.constant 196 : index
    %1813 = memref.load %arg13[%c196] : memref<250xf32, #tpu.memory_space<smem>>
    %c27_712 = arith.constant 27 : index
    %c0_713 = arith.constant 0 : index
    %1814 = vector.load %arg17[%c27_712, %c0_713] : memref<48x64xf32, #tpu.memory_space<vmem>>, vector<8x64xf32>
    %1815 = vector.broadcast %1813 : f32 to vector<8x64xf32>
    %1816 = arith.mulf %1815, %1814 : vector<8x64xf32>
    %1817 = arith.addf %1807, %1816 : vector<8x64xf32>
    %c197 = arith.constant 197 : index
    %1818 = memref.load %arg13[%c197] : memref<250xf32, #tpu.memory_space<smem>>
    %c39_714 = arith.constant 39 : index
    %c0_715 = arith.constant 0 : index
    %1819 = vector.load %arg17[%c39_714, %c0_715] : memref<48x64xf32, #tpu.memory_space<vmem>>, vector<8x64xf32>
    %1820 = vector.broadcast %1818 : f32 to vector<8x64xf32>
    %1821 = arith.mulf %1820, %1819 : vector<8x64xf32>
    %1822 = arith.addf %1812, %1821 : vector<8x64xf32>
    %c246 = arith.constant 246 : index
    %1823 = memref.load %arg13[%c246] : memref<250xf32, #tpu.memory_space<smem>>
    %c28_716 = arith.constant 28 : index
    %c0_717 = arith.constant 0 : index
    %1824 = vector.load %arg17[%c28_716, %c0_717] : memref<48x64xf32, #tpu.memory_space<vmem>>, vector<8x64xf32>
    %1825 = vector.broadcast %1823 : f32 to vector<8x64xf32>
    %1826 = arith.mulf %1825, %1824 : vector<8x64xf32>
    %1827 = arith.addf %1817, %1826 : vector<8x64xf32>
    %c247 = arith.constant 247 : index
    %1828 = memref.load %arg13[%c247] : memref<250xf32, #tpu.memory_space<smem>>
    %c40_718 = arith.constant 40 : index
    %c0_719 = arith.constant 0 : index
    %1829 = vector.load %arg17[%c40_718, %c0_719] : memref<48x64xf32, #tpu.memory_space<vmem>>, vector<8x64xf32>
    %1830 = vector.broadcast %1828 : f32 to vector<8x64xf32>
    %1831 = arith.mulf %1830, %1829 : vector<8x64xf32>
    %1832 = arith.addf %1822, %1831 : vector<8x64xf32>
    %c-1_i32 = arith.constant -1 : i32
    %1833 = vector.broadcast %c-1_i32 : i32 to vector<8x64xi32>
    %1834 = arith.cmpi sge, %749, %1833 : vector<8x64xi32>
    %c7_i32 = arith.constant 7 : i32
    %1835 = vector.broadcast %c7_i32 : i32 to vector<8x64xi32>
    %1836 = arith.cmpi slt, %749, %1835 : vector<8x64xi32>
    %1837 = arith.andi %1834, %1836 : vector<8x64xi1>
    %cst_720 = arith.constant 0.000000e+00 : f32
    %1838 = vector.broadcast %cst_720 : f32 to vector<8x64xf32>
    %1839 = arith.select %1837, %1827, %1838 : vector<8x64xi1>, vector<8x64xf32>
    %1840 = arith.addf %1567, %1839 : vector<8x64xf32>
    %cst_721 = arith.constant 0.000000e+00 : f32
    %1841 = vector.broadcast %cst_721 : f32 to vector<8x64xf32>
    %1842 = arith.select %1837, %1832, %1841 : vector<8x64xi1>, vector<8x64xf32>
    %1843 = arith.addf %1570, %1842 : vector<8x64xf32>
    %cst_722 = arith.constant 0.000000e+00 : f32
    %1844 = vector.broadcast %cst_722 : f32 to vector<8x64xf32>
    %cst_723 = arith.constant 0.000000e+00 : f32
    %1845 = vector.broadcast %cst_723 : f32 to vector<8x64xf32>
    %c0_724 = arith.constant 0 : index
    %c4_725 = arith.constant 4 : index
    %1846 = vector.load %arg16[%c0_724, %c4_725] : memref<24x100xf32, #tpu.memory_space<vmem>>, vector<24x64xf32>
    %c0_726 = arith.constant 0 : index
    %c0_727 = arith.constant 0 : index
    %1847 = vector.load %arg17[%c0_726, %c0_727] : memref<48x64xf32, #tpu.memory_space<vmem>>, vector<24x64xf32>
    tpu.vector_store %arg17[%c0_726, %c0_727], %1846 {strides = array<i32>} : memref<48x64xf32, #tpu.memory_space<vmem>>, vector<24x64xf32>,
    %c8_728 = arith.constant 8 : index
    %1848 = memref.load %arg13[%c8_728] : memref<250xf32, #tpu.memory_space<smem>>
    %c0_729 = arith.constant 0 : index
    %c0_730 = arith.constant 0 : index
    %1849 = vector.load %arg17[%c0_729, %c0_730] : memref<48x64xf32, #tpu.memory_space<vmem>>, vector<8x64xf32>
    %1850 = vector.broadcast %1848 : f32 to vector<8x64xf32>
    %1851 = arith.mulf %1850, %1849 : vector<8x64xf32>
    %1852 = arith.addf %1844, %1851 : vector<8x64xf32>
    %c9_731 = arith.constant 9 : index
    %1853 = memref.load %arg13[%c9_731] : memref<250xf32, #tpu.memory_space<smem>>
    %c12_732 = arith.constant 12 : index
    %c0_733 = arith.constant 0 : index
    %1854 = vector.load %arg17[%c12_732, %c0_733] : memref<48x64xf32, #tpu.memory_space<vmem>>, vector<8x64xf32>
    %1855 = vector.broadcast %1853 : f32 to vector<8x64xf32>
    %1856 = arith.mulf %1855, %1854 : vector<8x64xf32>
    %1857 = arith.addf %1845, %1856 : vector<8x64xf32>
    %c58 = arith.constant 58 : index
    %1858 = memref.load %arg13[%c58] : memref<250xf32, #tpu.memory_space<smem>>
    %c1_734 = arith.constant 1 : index
    %c0_735 = arith.constant 0 : index
    %1859 = vector.load %arg17[%c1_734, %c0_735] : memref<48x64xf32, #tpu.memory_space<vmem>>, vector<8x64xf32>
    %1860 = vector.broadcast %1858 : f32 to vector<8x64xf32>
    %1861 = arith.mulf %1860, %1859 : vector<8x64xf32>
    %1862 = arith.addf %1852, %1861 : vector<8x64xf32>
    %c59 = arith.constant 59 : index
    %1863 = memref.load %arg13[%c59] : memref<250xf32, #tpu.memory_space<smem>>
    %c13_736 = arith.constant 13 : index
    %c0_737 = arith.constant 0 : index
    %1864 = vector.load %arg17[%c13_736, %c0_737] : memref<48x64xf32, #tpu.memory_space<vmem>>, vector<8x64xf32>
    %1865 = vector.broadcast %1863 : f32 to vector<8x64xf32>
    %1866 = arith.mulf %1865, %1864 : vector<8x64xf32>
    %1867 = arith.addf %1857, %1866 : vector<8x64xf32>
    %c108 = arith.constant 108 : index
    %1868 = memref.load %arg13[%c108] : memref<250xf32, #tpu.memory_space<smem>>
    %c2_738 = arith.constant 2 : index
    %c0_739 = arith.constant 0 : index
    %1869 = vector.load %arg17[%c2_738, %c0_739] : memref<48x64xf32, #tpu.memory_space<vmem>>, vector<8x64xf32>
    %1870 = vector.broadcast %1868 : f32 to vector<8x64xf32>
    %1871 = arith.mulf %1870, %1869 : vector<8x64xf32>
    %1872 = arith.addf %1862, %1871 : vector<8x64xf32>
    %c109 = arith.constant 109 : index
    %1873 = memref.load %arg13[%c109] : memref<250xf32, #tpu.memory_space<smem>>
    %c14_740 = arith.constant 14 : index
    %c0_741 = arith.constant 0 : index
    %1874 = vector.load %arg17[%c14_740, %c0_741] : memref<48x64xf32, #tpu.memory_space<vmem>>, vector<8x64xf32>
    %1875 = vector.broadcast %1873 : f32 to vector<8x64xf32>
    %1876 = arith.mulf %1875, %1874 : vector<8x64xf32>
    %1877 = arith.addf %1867, %1876 : vector<8x64xf32>
    %c158 = arith.constant 158 : index
    %1878 = memref.load %arg13[%c158] : memref<250xf32, #tpu.memory_space<smem>>
    %c3_742 = arith.constant 3 : index
    %c0_743 = arith.constant 0 : index
    %1879 = vector.load %arg17[%c3_742, %c0_743] : memref<48x64xf32, #tpu.memory_space<vmem>>, vector<8x64xf32>
    %1880 = vector.broadcast %1878 : f32 to vector<8x64xf32>
    %1881 = arith.mulf %1880, %1879 : vector<8x64xf32>
    %1882 = arith.addf %1872, %1881 : vector<8x64xf32>
    %c159 = arith.constant 159 : index
    %1883 = memref.load %arg13[%c159] : memref<250xf32, #tpu.memory_space<smem>>
    %c15_744 = arith.constant 15 : index
    %c0_745 = arith.constant 0 : index
    %1884 = vector.load %arg17[%c15_744, %c0_745] : memref<48x64xf32, #tpu.memory_space<vmem>>, vector<8x64xf32>
    %1885 = vector.broadcast %1883 : f32 to vector<8x64xf32>
    %1886 = arith.mulf %1885, %1884 : vector<8x64xf32>
    %1887 = arith.addf %1877, %1886 : vector<8x64xf32>
    %c208 = arith.constant 208 : index
    %1888 = memref.load %arg13[%c208] : memref<250xf32, #tpu.memory_space<smem>>
    %c4_746 = arith.constant 4 : index
    %c0_747 = arith.constant 0 : index
    %1889 = vector.load %arg17[%c4_746, %c0_747] : memref<48x64xf32, #tpu.memory_space<vmem>>, vector<8x64xf32>
    %1890 = vector.broadcast %1888 : f32 to vector<8x64xf32>
    %1891 = arith.mulf %1890, %1889 : vector<8x64xf32>
    %1892 = arith.addf %1882, %1891 : vector<8x64xf32>
    %c209 = arith.constant 209 : index
    %1893 = memref.load %arg13[%c209] : memref<250xf32, #tpu.memory_space<smem>>
    %c16_748 = arith.constant 16 : index
    %c0_749 = arith.constant 0 : index
    %1894 = vector.load %arg17[%c16_748, %c0_749] : memref<48x64xf32, #tpu.memory_space<vmem>>, vector<8x64xf32>
    %1895 = vector.broadcast %1893 : f32 to vector<8x64xf32>
    %1896 = arith.mulf %1895, %1894 : vector<8x64xf32>
    %1897 = arith.addf %1887, %1896 : vector<8x64xf32>
    %c0_750 = arith.constant 0 : index
    %c12_751 = arith.constant 12 : index
    %1898 = vector.load %arg16[%c0_750, %c12_751] : memref<24x100xf32, #tpu.memory_space<vmem>>, vector<24x64xf32>
    %c24_752 = arith.constant 24 : index
    %c0_753 = arith.constant 0 : index
    %1899 = vector.load %arg17[%c24_752, %c0_753] : memref<48x64xf32, #tpu.memory_space<vmem>>, vector<24x64xf32>
    tpu.vector_store %arg17[%c24_752, %c0_753], %1898 {strides = array<i32>} : memref<48x64xf32, #tpu.memory_space<vmem>>, vector<24x64xf32>,
    %c18_754 = arith.constant 18 : index
    %1900 = memref.load %arg13[%c18_754] : memref<250xf32, #tpu.memory_space<smem>>
    %c24_755 = arith.constant 24 : index
    %c0_756 = arith.constant 0 : index
    %1901 = vector.load %arg17[%c24_755, %c0_756] : memref<48x64xf32, #tpu.memory_space<vmem>>, vector<8x64xf32>
    %1902 = vector.broadcast %1900 : f32 to vector<8x64xf32>
    %1903 = arith.mulf %1902, %1901 : vector<8x64xf32>
    %1904 = arith.addf %1892, %1903 : vector<8x64xf32>
    %c19_757 = arith.constant 19 : index
    %1905 = memref.load %arg13[%c19_757] : memref<250xf32, #tpu.memory_space<smem>>
    %c36_758 = arith.constant 36 : index
    %c0_759 = arith.constant 0 : index
    %1906 = vector.load %arg17[%c36_758, %c0_759] : memref<48x64xf32, #tpu.memory_space<vmem>>, vector<8x64xf32>
    %1907 = vector.broadcast %1905 : f32 to vector<8x64xf32>
    %1908 = arith.mulf %1907, %1906 : vector<8x64xf32>
    %1909 = arith.addf %1897, %1908 : vector<8x64xf32>
    %c68 = arith.constant 68 : index
    %1910 = memref.load %arg13[%c68] : memref<250xf32, #tpu.memory_space<smem>>
    %c25_760 = arith.constant 25 : index
    %c0_761 = arith.constant 0 : index
    %1911 = vector.load %arg17[%c25_760, %c0_761] : memref<48x64xf32, #tpu.memory_space<vmem>>, vector<8x64xf32>
    %1912 = vector.broadcast %1910 : f32 to vector<8x64xf32>
    %1913 = arith.mulf %1912, %1911 : vector<8x64xf32>
    %1914 = arith.addf %1904, %1913 : vector<8x64xf32>
    %c69 = arith.constant 69 : index
    %1915 = memref.load %arg13[%c69] : memref<250xf32, #tpu.memory_space<smem>>
    %c37_762 = arith.constant 37 : index
    %c0_763 = arith.constant 0 : index
    %1916 = vector.load %arg17[%c37_762, %c0_763] : memref<48x64xf32, #tpu.memory_space<vmem>>, vector<8x64xf32>
    %1917 = vector.broadcast %1915 : f32 to vector<8x64xf32>
    %1918 = arith.mulf %1917, %1916 : vector<8x64xf32>
    %1919 = arith.addf %1909, %1918 : vector<8x64xf32>
    %c118 = arith.constant 118 : index
    %1920 = memref.load %arg13[%c118] : memref<250xf32, #tpu.memory_space<smem>>
    %c26_764 = arith.constant 26 : index
    %c0_765 = arith.constant 0 : index
    %1921 = vector.load %arg17[%c26_764, %c0_765] : memref<48x64xf32, #tpu.memory_space<vmem>>, vector<8x64xf32>
    %1922 = vector.broadcast %1920 : f32 to vector<8x64xf32>
    %1923 = arith.mulf %1922, %1921 : vector<8x64xf32>
    %1924 = arith.addf %1914, %1923 : vector<8x64xf32>
    %c119 = arith.constant 119 : index
    %1925 = memref.load %arg13[%c119] : memref<250xf32, #tpu.memory_space<smem>>
    %c38_766 = arith.constant 38 : index
    %c0_767 = arith.constant 0 : index
    %1926 = vector.load %arg17[%c38_766, %c0_767] : memref<48x64xf32, #tpu.memory_space<vmem>>, vector<8x64xf32>
    %1927 = vector.broadcast %1925 : f32 to vector<8x64xf32>
    %1928 = arith.mulf %1927, %1926 : vector<8x64xf32>
    %1929 = arith.addf %1919, %1928 : vector<8x64xf32>
    %c168 = arith.constant 168 : index
    %1930 = memref.load %arg13[%c168] : memref<250xf32, #tpu.memory_space<smem>>
    %c27_768 = arith.constant 27 : index
    %c0_769 = arith.constant 0 : index
    %1931 = vector.load %arg17[%c27_768, %c0_769] : memref<48x64xf32, #tpu.memory_space<vmem>>, vector<8x64xf32>
    %1932 = vector.broadcast %1930 : f32 to vector<8x64xf32>
    %1933 = arith.mulf %1932, %1931 : vector<8x64xf32>
    %1934 = arith.addf %1924, %1933 : vector<8x64xf32>
    %c169 = arith.constant 169 : index
    %1935 = memref.load %arg13[%c169] : memref<250xf32, #tpu.memory_space<smem>>
    %c39_770 = arith.constant 39 : index
    %c0_771 = arith.constant 0 : index
    %1936 = vector.load %arg17[%c39_770, %c0_771] : memref<48x64xf32, #tpu.memory_space<vmem>>, vector<8x64xf32>
    %1937 = vector.broadcast %1935 : f32 to vector<8x64xf32>
    %1938 = arith.mulf %1937, %1936 : vector<8x64xf32>
    %1939 = arith.addf %1929, %1938 : vector<8x64xf32>
    %c218 = arith.constant 218 : index
    %1940 = memref.load %arg13[%c218] : memref<250xf32, #tpu.memory_space<smem>>
    %c28_772 = arith.constant 28 : index
    %c0_773 = arith.constant 0 : index
    %1941 = vector.load %arg17[%c28_772, %c0_773] : memref<48x64xf32, #tpu.memory_space<vmem>>, vector<8x64xf32>
    %1942 = vector.broadcast %1940 : f32 to vector<8x64xf32>
    %1943 = arith.mulf %1942, %1941 : vector<8x64xf32>
    %1944 = arith.addf %1934, %1943 : vector<8x64xf32>
    %c219 = arith.constant 219 : index
    %1945 = memref.load %arg13[%c219] : memref<250xf32, #tpu.memory_space<smem>>
    %c40_774 = arith.constant 40 : index
    %c0_775 = arith.constant 0 : index
    %1946 = vector.load %arg17[%c40_774, %c0_775] : memref<48x64xf32, #tpu.memory_space<vmem>>, vector<8x64xf32>
    %1947 = vector.broadcast %1945 : f32 to vector<8x64xf32>
    %1948 = arith.mulf %1947, %1946 : vector<8x64xf32>
    %1949 = arith.addf %1939, %1948 : vector<8x64xf32>
    %c0_776 = arith.constant 0 : index
    %c20_777 = arith.constant 20 : index
    %1950 = vector.load %arg16[%c0_776, %c20_777] : memref<24x100xf32, #tpu.memory_space<vmem>>, vector<24x64xf32>
    %c0_778 = arith.constant 0 : index
    %c0_779 = arith.constant 0 : index
    %1951 = vector.load %arg17[%c0_778, %c0_779] : memref<48x64xf32, #tpu.memory_space<vmem>>, vector<24x64xf32>
    tpu.vector_store %arg17[%c0_778, %c0_779], %1950 {strides = array<i32>} : memref<48x64xf32, #tpu.memory_space<vmem>>, vector<24x64xf32>,
    %c28_780 = arith.constant 28 : index
    %1952 = memref.load %arg13[%c28_780] : memref<250xf32, #tpu.memory_space<smem>>
    %c0_781 = arith.constant 0 : index
    %c0_782 = arith.constant 0 : index
    %1953 = vector.load %arg17[%c0_781, %c0_782] : memref<48x64xf32, #tpu.memory_space<vmem>>, vector<8x64xf32>
    %1954 = vector.broadcast %1952 : f32 to vector<8x64xf32>
    %1955 = arith.mulf %1954, %1953 : vector<8x64xf32>
    %1956 = arith.addf %1944, %1955 : vector<8x64xf32>
    %c29_783 = arith.constant 29 : index
    %1957 = memref.load %arg13[%c29_783] : memref<250xf32, #tpu.memory_space<smem>>
    %c12_784 = arith.constant 12 : index
    %c0_785 = arith.constant 0 : index
    %1958 = vector.load %arg17[%c12_784, %c0_785] : memref<48x64xf32, #tpu.memory_space<vmem>>, vector<8x64xf32>
    %1959 = vector.broadcast %1957 : f32 to vector<8x64xf32>
    %1960 = arith.mulf %1959, %1958 : vector<8x64xf32>
    %1961 = arith.addf %1949, %1960 : vector<8x64xf32>
    %c78 = arith.constant 78 : index
    %1962 = memref.load %arg13[%c78] : memref<250xf32, #tpu.memory_space<smem>>
    %c1_786 = arith.constant 1 : index
    %c0_787 = arith.constant 0 : index
    %1963 = vector.load %arg17[%c1_786, %c0_787] : memref<48x64xf32, #tpu.memory_space<vmem>>, vector<8x64xf32>
    %1964 = vector.broadcast %1962 : f32 to vector<8x64xf32>
    %1965 = arith.mulf %1964, %1963 : vector<8x64xf32>
    %1966 = arith.addf %1956, %1965 : vector<8x64xf32>
    %c79 = arith.constant 79 : index
    %1967 = memref.load %arg13[%c79] : memref<250xf32, #tpu.memory_space<smem>>
    %c13_788 = arith.constant 13 : index
    %c0_789 = arith.constant 0 : index
    %1968 = vector.load %arg17[%c13_788, %c0_789] : memref<48x64xf32, #tpu.memory_space<vmem>>, vector<8x64xf32>
    %1969 = vector.broadcast %1967 : f32 to vector<8x64xf32>
    %1970 = arith.mulf %1969, %1968 : vector<8x64xf32>
    %1971 = arith.addf %1961, %1970 : vector<8x64xf32>
    %c128 = arith.constant 128 : index
    %1972 = memref.load %arg13[%c128] : memref<250xf32, #tpu.memory_space<smem>>
    %c2_790 = arith.constant 2 : index
    %c0_791 = arith.constant 0 : index
    %1973 = vector.load %arg17[%c2_790, %c0_791] : memref<48x64xf32, #tpu.memory_space<vmem>>, vector<8x64xf32>
    %1974 = vector.broadcast %1972 : f32 to vector<8x64xf32>
    %1975 = arith.mulf %1974, %1973 : vector<8x64xf32>
    %1976 = arith.addf %1966, %1975 : vector<8x64xf32>
    %c129 = arith.constant 129 : index
    %1977 = memref.load %arg13[%c129] : memref<250xf32, #tpu.memory_space<smem>>
    %c14_792 = arith.constant 14 : index
    %c0_793 = arith.constant 0 : index
    %1978 = vector.load %arg17[%c14_792, %c0_793] : memref<48x64xf32, #tpu.memory_space<vmem>>, vector<8x64xf32>
    %1979 = vector.broadcast %1977 : f32 to vector<8x64xf32>
    %1980 = arith.mulf %1979, %1978 : vector<8x64xf32>
    %1981 = arith.addf %1971, %1980 : vector<8x64xf32>
    %c178 = arith.constant 178 : index
    %1982 = memref.load %arg13[%c178] : memref<250xf32, #tpu.memory_space<smem>>
    %c3_794 = arith.constant 3 : index
    %c0_795 = arith.constant 0 : index
    %1983 = vector.load %arg17[%c3_794, %c0_795] : memref<48x64xf32, #tpu.memory_space<vmem>>, vector<8x64xf32>
    %1984 = vector.broadcast %1982 : f32 to vector<8x64xf32>
    %1985 = arith.mulf %1984, %1983 : vector<8x64xf32>
    %1986 = arith.addf %1976, %1985 : vector<8x64xf32>
    %c179 = arith.constant 179 : index
    %1987 = memref.load %arg13[%c179] : memref<250xf32, #tpu.memory_space<smem>>
    %c15_796 = arith.constant 15 : index
    %c0_797 = arith.constant 0 : index
    %1988 = vector.load %arg17[%c15_796, %c0_797] : memref<48x64xf32, #tpu.memory_space<vmem>>, vector<8x64xf32>
    %1989 = vector.broadcast %1987 : f32 to vector<8x64xf32>
    %1990 = arith.mulf %1989, %1988 : vector<8x64xf32>
    %1991 = arith.addf %1981, %1990 : vector<8x64xf32>
    %c228 = arith.constant 228 : index
    %1992 = memref.load %arg13[%c228] : memref<250xf32, #tpu.memory_space<smem>>
    %c4_798 = arith.constant 4 : index
    %c0_799 = arith.constant 0 : index
    %1993 = vector.load %arg17[%c4_798, %c0_799] : memref<48x64xf32, #tpu.memory_space<vmem>>, vector<8x64xf32>
    %1994 = vector.broadcast %1992 : f32 to vector<8x64xf32>
    %1995 = arith.mulf %1994, %1993 : vector<8x64xf32>
    %1996 = arith.addf %1986, %1995 : vector<8x64xf32>
    %c229 = arith.constant 229 : index
    %1997 = memref.load %arg13[%c229] : memref<250xf32, #tpu.memory_space<smem>>
    %c16_800 = arith.constant 16 : index
    %c0_801 = arith.constant 0 : index
    %1998 = vector.load %arg17[%c16_800, %c0_801] : memref<48x64xf32, #tpu.memory_space<vmem>>, vector<8x64xf32>
    %1999 = vector.broadcast %1997 : f32 to vector<8x64xf32>
    %2000 = arith.mulf %1999, %1998 : vector<8x64xf32>
    %2001 = arith.addf %1991, %2000 : vector<8x64xf32>
    %c0_802 = arith.constant 0 : index
    %c28_803 = arith.constant 28 : index
    %2002 = vector.load %arg16[%c0_802, %c28_803] : memref<24x100xf32, #tpu.memory_space<vmem>>, vector<24x64xf32>
    %c24_804 = arith.constant 24 : index
    %c0_805 = arith.constant 0 : index
    %2003 = vector.load %arg17[%c24_804, %c0_805] : memref<48x64xf32, #tpu.memory_space<vmem>>, vector<24x64xf32>
    tpu.vector_store %arg17[%c24_804, %c0_805], %2002 {strides = array<i32>} : memref<48x64xf32, #tpu.memory_space<vmem>>, vector<24x64xf32>,
    %c38_806 = arith.constant 38 : index
    %2004 = memref.load %arg13[%c38_806] : memref<250xf32, #tpu.memory_space<smem>>
    %c24_807 = arith.constant 24 : index
    %c0_808 = arith.constant 0 : index
    %2005 = vector.load %arg17[%c24_807, %c0_808] : memref<48x64xf32, #tpu.memory_space<vmem>>, vector<8x64xf32>
    %2006 = vector.broadcast %2004 : f32 to vector<8x64xf32>
    %2007 = arith.mulf %2006, %2005 : vector<8x64xf32>
    %2008 = arith.addf %1996, %2007 : vector<8x64xf32>
    %c39_809 = arith.constant 39 : index
    %2009 = memref.load %arg13[%c39_809] : memref<250xf32, #tpu.memory_space<smem>>
    %c36_810 = arith.constant 36 : index
    %c0_811 = arith.constant 0 : index
    %2010 = vector.load %arg17[%c36_810, %c0_811] : memref<48x64xf32, #tpu.memory_space<vmem>>, vector<8x64xf32>
    %2011 = vector.broadcast %2009 : f32 to vector<8x64xf32>
    %2012 = arith.mulf %2011, %2010 : vector<8x64xf32>
    %2013 = arith.addf %2001, %2012 : vector<8x64xf32>
    %c88 = arith.constant 88 : index
    %2014 = memref.load %arg13[%c88] : memref<250xf32, #tpu.memory_space<smem>>
    %c25_812 = arith.constant 25 : index
    %c0_813 = arith.constant 0 : index
    %2015 = vector.load %arg17[%c25_812, %c0_813] : memref<48x64xf32, #tpu.memory_space<vmem>>, vector<8x64xf32>
    %2016 = vector.broadcast %2014 : f32 to vector<8x64xf32>
    %2017 = arith.mulf %2016, %2015 : vector<8x64xf32>
    %2018 = arith.addf %2008, %2017 : vector<8x64xf32>
    %c89 = arith.constant 89 : index
    %2019 = memref.load %arg13[%c89] : memref<250xf32, #tpu.memory_space<smem>>
    %c37_814 = arith.constant 37 : index
    %c0_815 = arith.constant 0 : index
    %2020 = vector.load %arg17[%c37_814, %c0_815] : memref<48x64xf32, #tpu.memory_space<vmem>>, vector<8x64xf32>
    %2021 = vector.broadcast %2019 : f32 to vector<8x64xf32>
    %2022 = arith.mulf %2021, %2020 : vector<8x64xf32>
    %2023 = arith.addf %2013, %2022 : vector<8x64xf32>
    %c138 = arith.constant 138 : index
    %2024 = memref.load %arg13[%c138] : memref<250xf32, #tpu.memory_space<smem>>
    %c26_816 = arith.constant 26 : index
    %c0_817 = arith.constant 0 : index
    %2025 = vector.load %arg17[%c26_816, %c0_817] : memref<48x64xf32, #tpu.memory_space<vmem>>, vector<8x64xf32>
    %2026 = vector.broadcast %2024 : f32 to vector<8x64xf32>
    %2027 = arith.mulf %2026, %2025 : vector<8x64xf32>
    %2028 = arith.addf %2018, %2027 : vector<8x64xf32>
    %c139 = arith.constant 139 : index
    %2029 = memref.load %arg13[%c139] : memref<250xf32, #tpu.memory_space<smem>>
    %c38_818 = arith.constant 38 : index
    %c0_819 = arith.constant 0 : index
    %2030 = vector.load %arg17[%c38_818, %c0_819] : memref<48x64xf32, #tpu.memory_space<vmem>>, vector<8x64xf32>
    %2031 = vector.broadcast %2029 : f32 to vector<8x64xf32>
    %2032 = arith.mulf %2031, %2030 : vector<8x64xf32>
    %2033 = arith.addf %2023, %2032 : vector<8x64xf32>
    %c188 = arith.constant 188 : index
    %2034 = memref.load %arg13[%c188] : memref<250xf32, #tpu.memory_space<smem>>
    %c27_820 = arith.constant 27 : index
    %c0_821 = arith.constant 0 : index
    %2035 = vector.load %arg17[%c27_820, %c0_821] : memref<48x64xf32, #tpu.memory_space<vmem>>, vector<8x64xf32>
    %2036 = vector.broadcast %2034 : f32 to vector<8x64xf32>
    %2037 = arith.mulf %2036, %2035 : vector<8x64xf32>
    %2038 = arith.addf %2028, %2037 : vector<8x64xf32>
    %c189 = arith.constant 189 : index
    %2039 = memref.load %arg13[%c189] : memref<250xf32, #tpu.memory_space<smem>>
    %c39_822 = arith.constant 39 : index
    %c0_823 = arith.constant 0 : index
    %2040 = vector.load %arg17[%c39_822, %c0_823] : memref<48x64xf32, #tpu.memory_space<vmem>>, vector<8x64xf32>
    %2041 = vector.broadcast %2039 : f32 to vector<8x64xf32>
    %2042 = arith.mulf %2041, %2040 : vector<8x64xf32>
    %2043 = arith.addf %2033, %2042 : vector<8x64xf32>
    %c238 = arith.constant 238 : index
    %2044 = memref.load %arg13[%c238] : memref<250xf32, #tpu.memory_space<smem>>
    %c28_824 = arith.constant 28 : index
    %c0_825 = arith.constant 0 : index
    %2045 = vector.load %arg17[%c28_824, %c0_825] : memref<48x64xf32, #tpu.memory_space<vmem>>, vector<8x64xf32>
    %2046 = vector.broadcast %2044 : f32 to vector<8x64xf32>
    %2047 = arith.mulf %2046, %2045 : vector<8x64xf32>
    %2048 = arith.addf %2038, %2047 : vector<8x64xf32>
    %c239 = arith.constant 239 : index
    %2049 = memref.load %arg13[%c239] : memref<250xf32, #tpu.memory_space<smem>>
    %c40_826 = arith.constant 40 : index
    %c0_827 = arith.constant 0 : index
    %2050 = vector.load %arg17[%c40_826, %c0_827] : memref<48x64xf32, #tpu.memory_space<vmem>>, vector<8x64xf32>
    %2051 = vector.broadcast %2049 : f32 to vector<8x64xf32>
    %2052 = arith.mulf %2051, %2050 : vector<8x64xf32>
    %2053 = arith.addf %2043, %2052 : vector<8x64xf32>
    %c0_828 = arith.constant 0 : index
    %c36_829 = arith.constant 36 : index
    %2054 = vector.load %arg16[%c0_828, %c36_829] : memref<24x100xf32, #tpu.memory_space<vmem>>, vector<24x64xf32>
    %c0_830 = arith.constant 0 : index
    %c0_831 = arith.constant 0 : index
    %2055 = vector.load %arg17[%c0_830, %c0_831] : memref<48x64xf32, #tpu.memory_space<vmem>>, vector<24x64xf32>
    tpu.vector_store %arg17[%c0_830, %c0_831], %2054 {strides = array<i32>} : memref<48x64xf32, #tpu.memory_space<vmem>>, vector<24x64xf32>,
    %c48 = arith.constant 48 : index
    %2056 = memref.load %arg13[%c48] : memref<250xf32, #tpu.memory_space<smem>>
    %c0_832 = arith.constant 0 : index
    %c0_833 = arith.constant 0 : index
    %2057 = vector.load %arg17[%c0_832, %c0_833] : memref<48x64xf32, #tpu.memory_space<vmem>>, vector<8x64xf32>
    %2058 = vector.broadcast %2056 : f32 to vector<8x64xf32>
    %2059 = arith.mulf %2058, %2057 : vector<8x64xf32>
    %2060 = arith.addf %2048, %2059 : vector<8x64xf32>
    %c49 = arith.constant 49 : index
    %2061 = memref.load %arg13[%c49] : memref<250xf32, #tpu.memory_space<smem>>
    %c12_834 = arith.constant 12 : index
    %c0_835 = arith.constant 0 : index
    %2062 = vector.load %arg17[%c12_834, %c0_835] : memref<48x64xf32, #tpu.memory_space<vmem>>, vector<8x64xf32>
    %2063 = vector.broadcast %2061 : f32 to vector<8x64xf32>
    %2064 = arith.mulf %2063, %2062 : vector<8x64xf32>
    %2065 = arith.addf %2053, %2064 : vector<8x64xf32>
    %c98 = arith.constant 98 : index
    %2066 = memref.load %arg13[%c98] : memref<250xf32, #tpu.memory_space<smem>>
    %c1_836 = arith.constant 1 : index
    %c0_837 = arith.constant 0 : index
    %2067 = vector.load %arg17[%c1_836, %c0_837] : memref<48x64xf32, #tpu.memory_space<vmem>>, vector<8x64xf32>
    %2068 = vector.broadcast %2066 : f32 to vector<8x64xf32>
    %2069 = arith.mulf %2068, %2067 : vector<8x64xf32>
    %2070 = arith.addf %2060, %2069 : vector<8x64xf32>
    %c99 = arith.constant 99 : index
    %2071 = memref.load %arg13[%c99] : memref<250xf32, #tpu.memory_space<smem>>
    %c13_838 = arith.constant 13 : index
    %c0_839 = arith.constant 0 : index
    %2072 = vector.load %arg17[%c13_838, %c0_839] : memref<48x64xf32, #tpu.memory_space<vmem>>, vector<8x64xf32>
    %2073 = vector.broadcast %2071 : f32 to vector<8x64xf32>
    %2074 = arith.mulf %2073, %2072 : vector<8x64xf32>
    %2075 = arith.addf %2065, %2074 : vector<8x64xf32>
    %c148 = arith.constant 148 : index
    %2076 = memref.load %arg13[%c148] : memref<250xf32, #tpu.memory_space<smem>>
    %c2_840 = arith.constant 2 : index
    %c0_841 = arith.constant 0 : index
    %2077 = vector.load %arg17[%c2_840, %c0_841] : memref<48x64xf32, #tpu.memory_space<vmem>>, vector<8x64xf32>
    %2078 = vector.broadcast %2076 : f32 to vector<8x64xf32>
    %2079 = arith.mulf %2078, %2077 : vector<8x64xf32>
    %2080 = arith.addf %2070, %2079 : vector<8x64xf32>
    %c149 = arith.constant 149 : index
    %2081 = memref.load %arg13[%c149] : memref<250xf32, #tpu.memory_space<smem>>
    %c14_842 = arith.constant 14 : index
    %c0_843 = arith.constant 0 : index
    %2082 = vector.load %arg17[%c14_842, %c0_843] : memref<48x64xf32, #tpu.memory_space<vmem>>, vector<8x64xf32>
    %2083 = vector.broadcast %2081 : f32 to vector<8x64xf32>
    %2084 = arith.mulf %2083, %2082 : vector<8x64xf32>
    %2085 = arith.addf %2075, %2084 : vector<8x64xf32>
    %c198 = arith.constant 198 : index
    %2086 = memref.load %arg13[%c198] : memref<250xf32, #tpu.memory_space<smem>>
    %c3_844 = arith.constant 3 : index
    %c0_845 = arith.constant 0 : index
    %2087 = vector.load %arg17[%c3_844, %c0_845] : memref<48x64xf32, #tpu.memory_space<vmem>>, vector<8x64xf32>
    %2088 = vector.broadcast %2086 : f32 to vector<8x64xf32>
    %2089 = arith.mulf %2088, %2087 : vector<8x64xf32>
    %2090 = arith.addf %2080, %2089 : vector<8x64xf32>
    %c199 = arith.constant 199 : index
    %2091 = memref.load %arg13[%c199] : memref<250xf32, #tpu.memory_space<smem>>
    %c15_846 = arith.constant 15 : index
    %c0_847 = arith.constant 0 : index
    %2092 = vector.load %arg17[%c15_846, %c0_847] : memref<48x64xf32, #tpu.memory_space<vmem>>, vector<8x64xf32>
    %2093 = vector.broadcast %2091 : f32 to vector<8x64xf32>
    %2094 = arith.mulf %2093, %2092 : vector<8x64xf32>
    %2095 = arith.addf %2085, %2094 : vector<8x64xf32>
    %c248 = arith.constant 248 : index
    %2096 = memref.load %arg13[%c248] : memref<250xf32, #tpu.memory_space<smem>>
    %c4_848 = arith.constant 4 : index
    %c0_849 = arith.constant 0 : index
    %2097 = vector.load %arg17[%c4_848, %c0_849] : memref<48x64xf32, #tpu.memory_space<vmem>>, vector<8x64xf32>
    %2098 = vector.broadcast %2096 : f32 to vector<8x64xf32>
    %2099 = arith.mulf %2098, %2097 : vector<8x64xf32>
    %2100 = arith.addf %2090, %2099 : vector<8x64xf32>
    %c249 = arith.constant 249 : index
    %2101 = memref.load %arg13[%c249] : memref<250xf32, #tpu.memory_space<smem>>
    %c16_850 = arith.constant 16 : index
    %c0_851 = arith.constant 0 : index
    %2102 = vector.load %arg17[%c16_850, %c0_851] : memref<48x64xf32, #tpu.memory_space<vmem>>, vector<8x64xf32>
    %2103 = vector.broadcast %2101 : f32 to vector<8x64xf32>
    %2104 = arith.mulf %2103, %2102 : vector<8x64xf32>
    %2105 = arith.addf %2095, %2104 : vector<8x64xf32>
    %c-2_i32 = arith.constant -2 : i32
    %2106 = vector.broadcast %c-2_i32 : i32 to vector<8x64xi32>
    %2107 = arith.cmpi sge, %749, %2106 : vector<8x64xi32>
    %c6_i32 = arith.constant 6 : i32
    %2108 = vector.broadcast %c6_i32 : i32 to vector<8x64xi32>
    %2109 = arith.cmpi slt, %749, %2108 : vector<8x64xi32>
    %2110 = arith.andi %2107, %2109 : vector<8x64xi1>
    %cst_852 = arith.constant 0.000000e+00 : f32
    %2111 = vector.broadcast %cst_852 : f32 to vector<8x64xf32>
    %2112 = arith.select %2110, %2100, %2111 : vector<8x64xi1>, vector<8x64xf32>
    %2113 = arith.addf %1840, %2112 : vector<8x64xf32>
    %cst_853 = arith.constant 0.000000e+00 : f32
    %2114 = vector.broadcast %cst_853 : f32 to vector<8x64xf32>
    %2115 = arith.select %2110, %2105, %2114 : vector<8x64xi1>, vector<8x64xf32>
    %2116 = arith.addf %1843, %2115 : vector<8x64xf32>
    %c0_854 = arith.constant 0 : index
    %2117 = memref.load %arg14[%c0_854] : memref<2xf32, #tpu.memory_space<smem>>
    %2118 = vector.broadcast %2117 : f32 to vector<8x64xf32>
    %2119 = arith.mulf %2118, %2113 : vector<8x64xf32>
    %c1_855 = arith.constant 1 : index
    %2120 = memref.load %arg14[%c1_855] : memref<2xf32, #tpu.memory_space<smem>>
    %2121 = vector.broadcast %2120 : f32 to vector<8x64xf32>
    %2122 = arith.mulf %2121, %2116 : vector<8x64xf32>
    %2123 = arith.addf %2119, %2122 : vector<8x64xf32>
    %cst_856 = arith.constant 0.000000e+00 : f32
    %2124 = vector.broadcast %cst_856 : f32 to vector<8x64xf32>
    %2125 = arith.subf %2124, %2123 : vector<8x64xf32>
    %2126 = math.exp %2125 : vector<8x64xf32>
    %cst_857 = arith.constant 1.000000e+00 : f32
    %2127 = vector.broadcast %cst_857 : f32 to vector<8x64xf32>
    %2128 = arith.addf %2127, %2126 : vector<8x64xf32>
    %cst_858 = arith.constant 1.000000e+00 : f32
    %2129 = vector.broadcast %cst_858 : f32 to vector<8x64xf32>
    %2130 = arith.divf %2129, %2128 : vector<8x64xf32>
    %c0_859 = arith.constant 0 : index
    %2131 = memref.load %arg11[%c0_859] : memref<32xf32, #tpu.memory_space<smem>>
    %2132 = vector.broadcast %2131 : f32 to vector<8x64xf32>
    %2133 = arith.mulf %2132, %710 : vector<8x64xf32>
    %c1_860 = arith.constant 1 : index
    %2134 = memref.load %arg11[%c1_860] : memref<32xf32, #tpu.memory_space<smem>>
    %2135 = vector.broadcast %2134 : f32 to vector<8x64xf32>
    %2136 = arith.mulf %2135, %711 : vector<8x64xf32>
    %2137 = arith.addf %2133, %2136 : vector<8x64xf32>
    %c2_861 = arith.constant 2 : index
    %2138 = memref.load %arg11[%c2_861] : memref<32xf32, #tpu.memory_space<smem>>
    %2139 = vector.broadcast %2138 : f32 to vector<8x64xf32>
    %2140 = arith.mulf %2139, %712 : vector<8x64xf32>
    %2141 = arith.addf %2137, %2140 : vector<8x64xf32>
    %c3_862 = arith.constant 3 : index
    %2142 = memref.load %arg11[%c3_862] : memref<32xf32, #tpu.memory_space<smem>>
    %2143 = vector.broadcast %2142 : f32 to vector<8x64xf32>
    %2144 = arith.mulf %2143, %713 : vector<8x64xf32>
    %2145 = arith.addf %2141, %2144 : vector<8x64xf32>
    %c4_863 = arith.constant 4 : index
    %2146 = memref.load %arg11[%c4_863] : memref<32xf32, #tpu.memory_space<smem>>
    %2147 = vector.broadcast %2146 : f32 to vector<8x64xf32>
    %2148 = arith.mulf %2147, %1 : vector<8x64xf32>
    %2149 = arith.addf %2145, %2148 : vector<8x64xf32>
    %c5_864 = arith.constant 5 : index
    %2150 = memref.load %arg11[%c5_864] : memref<32xf32, #tpu.memory_space<smem>>
    %2151 = vector.broadcast %2150 : f32 to vector<8x64xf32>
    %2152 = arith.mulf %2151, %3 : vector<8x64xf32>
    %2153 = arith.addf %2149, %2152 : vector<8x64xf32>
    %c6_865 = arith.constant 6 : index
    %2154 = memref.load %arg11[%c6_865] : memref<32xf32, #tpu.memory_space<smem>>
    %2155 = vector.broadcast %2154 : f32 to vector<8x64xf32>
    %2156 = arith.mulf %2155, %5 : vector<8x64xf32>
    %2157 = arith.addf %2153, %2156 : vector<8x64xf32>
    %c7_866 = arith.constant 7 : index
    %2158 = memref.load %arg11[%c7_866] : memref<32xf32, #tpu.memory_space<smem>>
    %2159 = vector.broadcast %2158 : f32 to vector<8x64xf32>
    %2160 = arith.mulf %2159, %7 : vector<8x64xf32>
    %2161 = arith.addf %2157, %2160 : vector<8x64xf32>
    %c0_867 = arith.constant 0 : index
    %2162 = memref.load %arg9[%c0_867] : memref<16xf32, #tpu.memory_space<smem>>
    %2163 = vector.broadcast %2162 : f32 to vector<8x64xf32>
    %2164 = arith.mulf %2163, %1 : vector<8x64xf32>
    %c1_868 = arith.constant 1 : index
    %2165 = memref.load %arg9[%c1_868] : memref<16xf32, #tpu.memory_space<smem>>
    %2166 = vector.broadcast %2165 : f32 to vector<8x64xf32>
    %2167 = arith.mulf %2166, %3 : vector<8x64xf32>
    %2168 = arith.addf %2164, %2167 : vector<8x64xf32>
    %c2_869 = arith.constant 2 : index
    %2169 = memref.load %arg9[%c2_869] : memref<16xf32, #tpu.memory_space<smem>>
    %2170 = vector.broadcast %2169 : f32 to vector<8x64xf32>
    %2171 = arith.mulf %2170, %5 : vector<8x64xf32>
    %2172 = arith.addf %2168, %2171 : vector<8x64xf32>
    %c3_870 = arith.constant 3 : index
    %2173 = memref.load %arg9[%c3_870] : memref<16xf32, #tpu.memory_space<smem>>
    %2174 = vector.broadcast %2173 : f32 to vector<8x64xf32>
    %2175 = arith.mulf %2174, %7 : vector<8x64xf32>
    %2176 = arith.addf %2172, %2175 : vector<8x64xf32>
    %2177 = arith.mulf %2130, %2161 : vector<8x64xf32>
    %2178 = arith.addf %2177, %2176 : vector<8x64xf32>
    %c0_871 = arith.constant 0 : index
    %2179 = memref.load %arg10[%c0_871] : memref<4xf32, #tpu.memory_space<smem>>
    %c0_872 = arith.constant 0 : index
    %2180 = memref.load %arg12[%c0_872] : memref<4xf32, #tpu.memory_space<smem>>
    %2181 = arith.addf %2179, %2180 : f32
    %2182 = vector.broadcast %2181 : f32 to vector<8x64xf32>
    %2183 = arith.addf %2178, %2182 : vector<8x64xf32>
    %c0_873 = arith.constant 0 : index
    %c0_874 = arith.constant 0 : index
    %c0_875 = arith.constant 0 : index
    %2184 = vector.load %arg15[%c0_873, %c0_874, %c0_875] : memref<1x32x64xf32, #tpu.memory_space<vmem>>, vector<1x8x64xf32>
    %2185 = vector.shape_cast %2184 : vector<1x8x64xf32> to vector<8x64xf32>
    %2186 = vector.shape_cast %2183 : vector<8x64xf32> to vector<1x8x64xf32>
    tpu.vector_store %arg15[%c0_873, %c0_874, %c0_875], %2186 {strides = array<i32>} : memref<1x32x64xf32, #tpu.memory_space<vmem>>, vector<1x8x64xf32>,
    %c8_876 = arith.constant 8 : index
    %2187 = memref.load %arg11[%c8_876] : memref<32xf32, #tpu.memory_space<smem>>
    %2188 = vector.broadcast %2187 : f32 to vector<8x64xf32>
    %2189 = arith.mulf %2188, %710 : vector<8x64xf32>
    %c9_877 = arith.constant 9 : index
    %2190 = memref.load %arg11[%c9_877] : memref<32xf32, #tpu.memory_space<smem>>
    %2191 = vector.broadcast %2190 : f32 to vector<8x64xf32>
    %2192 = arith.mulf %2191, %711 : vector<8x64xf32>
    %2193 = arith.addf %2189, %2192 : vector<8x64xf32>
    %c10_878 = arith.constant 10 : index
    %2194 = memref.load %arg11[%c10_878] : memref<32xf32, #tpu.memory_space<smem>>
    %2195 = vector.broadcast %2194 : f32 to vector<8x64xf32>
    %2196 = arith.mulf %2195, %712 : vector<8x64xf32>
    %2197 = arith.addf %2193, %2196 : vector<8x64xf32>
    %c11_879 = arith.constant 11 : index
    %2198 = memref.load %arg11[%c11_879] : memref<32xf32, #tpu.memory_space<smem>>
    %2199 = vector.broadcast %2198 : f32 to vector<8x64xf32>
    %2200 = arith.mulf %2199, %713 : vector<8x64xf32>
    %2201 = arith.addf %2197, %2200 : vector<8x64xf32>
    %c12_880 = arith.constant 12 : index
    %2202 = memref.load %arg11[%c12_880] : memref<32xf32, #tpu.memory_space<smem>>
    %2203 = vector.broadcast %2202 : f32 to vector<8x64xf32>
    %2204 = arith.mulf %2203, %1 : vector<8x64xf32>
    %2205 = arith.addf %2201, %2204 : vector<8x64xf32>
    %c13_881 = arith.constant 13 : index
    %2206 = memref.load %arg11[%c13_881] : memref<32xf32, #tpu.memory_space<smem>>
    %2207 = vector.broadcast %2206 : f32 to vector<8x64xf32>
    %2208 = arith.mulf %2207, %3 : vector<8x64xf32>
    %2209 = arith.addf %2205, %2208 : vector<8x64xf32>
    %c14_882 = arith.constant 14 : index
    %2210 = memref.load %arg11[%c14_882] : memref<32xf32, #tpu.memory_space<smem>>
    %2211 = vector.broadcast %2210 : f32 to vector<8x64xf32>
    %2212 = arith.mulf %2211, %5 : vector<8x64xf32>
    %2213 = arith.addf %2209, %2212 : vector<8x64xf32>
    %c15_883 = arith.constant 15 : index
    %2214 = memref.load %arg11[%c15_883] : memref<32xf32, #tpu.memory_space<smem>>
    %2215 = vector.broadcast %2214 : f32 to vector<8x64xf32>
    %2216 = arith.mulf %2215, %7 : vector<8x64xf32>
    %2217 = arith.addf %2213, %2216 : vector<8x64xf32>
    %c4_884 = arith.constant 4 : index
    %2218 = memref.load %arg9[%c4_884] : memref<16xf32, #tpu.memory_space<smem>>
    %2219 = vector.broadcast %2218 : f32 to vector<8x64xf32>
    %2220 = arith.mulf %2219, %1 : vector<8x64xf32>
    %c5_885 = arith.constant 5 : index
    %2221 = memref.load %arg9[%c5_885] : memref<16xf32, #tpu.memory_space<smem>>
    %2222 = vector.broadcast %2221 : f32 to vector<8x64xf32>
    %2223 = arith.mulf %2222, %3 : vector<8x64xf32>
    %2224 = arith.addf %2220, %2223 : vector<8x64xf32>
    %c6_886 = arith.constant 6 : index
    %2225 = memref.load %arg9[%c6_886] : memref<16xf32, #tpu.memory_space<smem>>
    %2226 = vector.broadcast %2225 : f32 to vector<8x64xf32>
    %2227 = arith.mulf %2226, %5 : vector<8x64xf32>
    %2228 = arith.addf %2224, %2227 : vector<8x64xf32>
    %c7_887 = arith.constant 7 : index
    %2229 = memref.load %arg9[%c7_887] : memref<16xf32, #tpu.memory_space<smem>>
    %2230 = vector.broadcast %2229 : f32 to vector<8x64xf32>
    %2231 = arith.mulf %2230, %7 : vector<8x64xf32>
    %2232 = arith.addf %2228, %2231 : vector<8x64xf32>
    %2233 = arith.mulf %2130, %2217 : vector<8x64xf32>
    %2234 = arith.addf %2233, %2232 : vector<8x64xf32>
    %c1_888 = arith.constant 1 : index
    %2235 = memref.load %arg10[%c1_888] : memref<4xf32, #tpu.memory_space<smem>>
    %c1_889 = arith.constant 1 : index
    %2236 = memref.load %arg12[%c1_889] : memref<4xf32, #tpu.memory_space<smem>>
    %2237 = arith.addf %2235, %2236 : f32
    %2238 = vector.broadcast %2237 : f32 to vector<8x64xf32>
    %2239 = arith.addf %2234, %2238 : vector<8x64xf32>
    %c0_890 = arith.constant 0 : index
    %c8_891 = arith.constant 8 : index
    %c0_892 = arith.constant 0 : index
    %2240 = vector.load %arg15[%c0_890, %c8_891, %c0_892] : memref<1x32x64xf32, #tpu.memory_space<vmem>>, vector<1x8x64xf32>
    %2241 = vector.shape_cast %2240 : vector<1x8x64xf32> to vector<8x64xf32>
    %2242 = vector.shape_cast %2239 : vector<8x64xf32> to vector<1x8x64xf32>
    tpu.vector_store %arg15[%c0_890, %c8_891, %c0_892], %2242 {strides = array<i32>} : memref<1x32x64xf32, #tpu.memory_space<vmem>>, vector<1x8x64xf32>,
    %c16_893 = arith.constant 16 : index
    %2243 = memref.load %arg11[%c16_893] : memref<32xf32, #tpu.memory_space<smem>>
    %2244 = vector.broadcast %2243 : f32 to vector<8x64xf32>
    %2245 = arith.mulf %2244, %710 : vector<8x64xf32>
    %c17_894 = arith.constant 17 : index
    %2246 = memref.load %arg11[%c17_894] : memref<32xf32, #tpu.memory_space<smem>>
    %2247 = vector.broadcast %2246 : f32 to vector<8x64xf32>
    %2248 = arith.mulf %2247, %711 : vector<8x64xf32>
    %2249 = arith.addf %2245, %2248 : vector<8x64xf32>
    %c18_895 = arith.constant 18 : index
    %2250 = memref.load %arg11[%c18_895] : memref<32xf32, #tpu.memory_space<smem>>
    %2251 = vector.broadcast %2250 : f32 to vector<8x64xf32>
    %2252 = arith.mulf %2251, %712 : vector<8x64xf32>
    %2253 = arith.addf %2249, %2252 : vector<8x64xf32>
    %c19_896 = arith.constant 19 : index
    %2254 = memref.load %arg11[%c19_896] : memref<32xf32, #tpu.memory_space<smem>>
    %2255 = vector.broadcast %2254 : f32 to vector<8x64xf32>
    %2256 = arith.mulf %2255, %713 : vector<8x64xf32>
    %2257 = arith.addf %2253, %2256 : vector<8x64xf32>
    %c20_897 = arith.constant 20 : index
    %2258 = memref.load %arg11[%c20_897] : memref<32xf32, #tpu.memory_space<smem>>
    %2259 = vector.broadcast %2258 : f32 to vector<8x64xf32>
    %2260 = arith.mulf %2259, %1 : vector<8x64xf32>
    %2261 = arith.addf %2257, %2260 : vector<8x64xf32>
    %c21_898 = arith.constant 21 : index
    %2262 = memref.load %arg11[%c21_898] : memref<32xf32, #tpu.memory_space<smem>>
    %2263 = vector.broadcast %2262 : f32 to vector<8x64xf32>
    %2264 = arith.mulf %2263, %3 : vector<8x64xf32>
    %2265 = arith.addf %2261, %2264 : vector<8x64xf32>
    %c22_899 = arith.constant 22 : index
    %2266 = memref.load %arg11[%c22_899] : memref<32xf32, #tpu.memory_space<smem>>
    %2267 = vector.broadcast %2266 : f32 to vector<8x64xf32>
    %2268 = arith.mulf %2267, %5 : vector<8x64xf32>
    %2269 = arith.addf %2265, %2268 : vector<8x64xf32>
    %c23_900 = arith.constant 23 : index
    %2270 = memref.load %arg11[%c23_900] : memref<32xf32, #tpu.memory_space<smem>>
    %2271 = vector.broadcast %2270 : f32 to vector<8x64xf32>
    %2272 = arith.mulf %2271, %7 : vector<8x64xf32>
    %2273 = arith.addf %2269, %2272 : vector<8x64xf32>
    %c8_901 = arith.constant 8 : index
    %2274 = memref.load %arg9[%c8_901] : memref<16xf32, #tpu.memory_space<smem>>
    %2275 = vector.broadcast %2274 : f32 to vector<8x64xf32>
    %2276 = arith.mulf %2275, %1 : vector<8x64xf32>
    %c9_902 = arith.constant 9 : index
    %2277 = memref.load %arg9[%c9_902] : memref<16xf32, #tpu.memory_space<smem>>
    %2278 = vector.broadcast %2277 : f32 to vector<8x64xf32>
    %2279 = arith.mulf %2278, %3 : vector<8x64xf32>
    %2280 = arith.addf %2276, %2279 : vector<8x64xf32>
    %c10_903 = arith.constant 10 : index
    %2281 = memref.load %arg9[%c10_903] : memref<16xf32, #tpu.memory_space<smem>>
    %2282 = vector.broadcast %2281 : f32 to vector<8x64xf32>
    %2283 = arith.mulf %2282, %5 : vector<8x64xf32>
    %2284 = arith.addf %2280, %2283 : vector<8x64xf32>
    %c11_904 = arith.constant 11 : index
    %2285 = memref.load %arg9[%c11_904] : memref<16xf32, #tpu.memory_space<smem>>
    %2286 = vector.broadcast %2285 : f32 to vector<8x64xf32>
    %2287 = arith.mulf %2286, %7 : vector<8x64xf32>
    %2288 = arith.addf %2284, %2287 : vector<8x64xf32>
    %2289 = arith.mulf %2130, %2273 : vector<8x64xf32>
    %2290 = arith.addf %2289, %2288 : vector<8x64xf32>
    %c2_905 = arith.constant 2 : index
    %2291 = memref.load %arg10[%c2_905] : memref<4xf32, #tpu.memory_space<smem>>
    %c2_906 = arith.constant 2 : index
    %2292 = memref.load %arg12[%c2_906] : memref<4xf32, #tpu.memory_space<smem>>
    %2293 = arith.addf %2291, %2292 : f32
    %2294 = vector.broadcast %2293 : f32 to vector<8x64xf32>
    %2295 = arith.addf %2290, %2294 : vector<8x64xf32>
    %c0_907 = arith.constant 0 : index
    %c16_908 = arith.constant 16 : index
    %c0_909 = arith.constant 0 : index
    %2296 = vector.load %arg15[%c0_907, %c16_908, %c0_909] : memref<1x32x64xf32, #tpu.memory_space<vmem>>, vector<1x8x64xf32>
    %2297 = vector.shape_cast %2296 : vector<1x8x64xf32> to vector<8x64xf32>
    %2298 = vector.shape_cast %2295 : vector<8x64xf32> to vector<1x8x64xf32>
    tpu.vector_store %arg15[%c0_907, %c16_908, %c0_909], %2298 {strides = array<i32>} : memref<1x32x64xf32, #tpu.memory_space<vmem>>, vector<1x8x64xf32>,
    %c24_910 = arith.constant 24 : index
    %2299 = memref.load %arg11[%c24_910] : memref<32xf32, #tpu.memory_space<smem>>
    %2300 = vector.broadcast %2299 : f32 to vector<8x64xf32>
    %2301 = arith.mulf %2300, %710 : vector<8x64xf32>
    %c25_911 = arith.constant 25 : index
    %2302 = memref.load %arg11[%c25_911] : memref<32xf32, #tpu.memory_space<smem>>
    %2303 = vector.broadcast %2302 : f32 to vector<8x64xf32>
    %2304 = arith.mulf %2303, %711 : vector<8x64xf32>
    %2305 = arith.addf %2301, %2304 : vector<8x64xf32>
    %c26_912 = arith.constant 26 : index
    %2306 = memref.load %arg11[%c26_912] : memref<32xf32, #tpu.memory_space<smem>>
    %2307 = vector.broadcast %2306 : f32 to vector<8x64xf32>
    %2308 = arith.mulf %2307, %712 : vector<8x64xf32>
    %2309 = arith.addf %2305, %2308 : vector<8x64xf32>
    %c27_913 = arith.constant 27 : index
    %2310 = memref.load %arg11[%c27_913] : memref<32xf32, #tpu.memory_space<smem>>
    %2311 = vector.broadcast %2310 : f32 to vector<8x64xf32>
    %2312 = arith.mulf %2311, %713 : vector<8x64xf32>
    %2313 = arith.addf %2309, %2312 : vector<8x64xf32>
    %c28_914 = arith.constant 28 : index
    %2314 = memref.load %arg11[%c28_914] : memref<32xf32, #tpu.memory_space<smem>>
    %2315 = vector.broadcast %2314 : f32 to vector<8x64xf32>
    %2316 = arith.mulf %2315, %1 : vector<8x64xf32>
    %2317 = arith.addf %2313, %2316 : vector<8x64xf32>
    %c29_915 = arith.constant 29 : index
    %2318 = memref.load %arg11[%c29_915] : memref<32xf32, #tpu.memory_space<smem>>
    %2319 = vector.broadcast %2318 : f32 to vector<8x64xf32>
    %2320 = arith.mulf %2319, %3 : vector<8x64xf32>
    %2321 = arith.addf %2317, %2320 : vector<8x64xf32>
    %c30_916 = arith.constant 30 : index
    %2322 = memref.load %arg11[%c30_916] : memref<32xf32, #tpu.memory_space<smem>>
    %2323 = vector.broadcast %2322 : f32 to vector<8x64xf32>
    %2324 = arith.mulf %2323, %5 : vector<8x64xf32>
    %2325 = arith.addf %2321, %2324 : vector<8x64xf32>
    %c31_917 = arith.constant 31 : index
    %2326 = memref.load %arg11[%c31_917] : memref<32xf32, #tpu.memory_space<smem>>
    %2327 = vector.broadcast %2326 : f32 to vector<8x64xf32>
    %2328 = arith.mulf %2327, %7 : vector<8x64xf32>
    %2329 = arith.addf %2325, %2328 : vector<8x64xf32>
    %c12_918 = arith.constant 12 : index
    %2330 = memref.load %arg9[%c12_918] : memref<16xf32, #tpu.memory_space<smem>>
    %2331 = vector.broadcast %2330 : f32 to vector<8x64xf32>
    %2332 = arith.mulf %2331, %1 : vector<8x64xf32>
    %c13_919 = arith.constant 13 : index
    %2333 = memref.load %arg9[%c13_919] : memref<16xf32, #tpu.memory_space<smem>>
    %2334 = vector.broadcast %2333 : f32 to vector<8x64xf32>
    %2335 = arith.mulf %2334, %3 : vector<8x64xf32>
    %2336 = arith.addf %2332, %2335 : vector<8x64xf32>
    %c14_920 = arith.constant 14 : index
    %2337 = memref.load %arg9[%c14_920] : memref<16xf32, #tpu.memory_space<smem>>
    %2338 = vector.broadcast %2337 : f32 to vector<8x64xf32>
    %2339 = arith.mulf %2338, %5 : vector<8x64xf32>
    %2340 = arith.addf %2336, %2339 : vector<8x64xf32>
    %c15_921 = arith.constant 15 : index
    %2341 = memref.load %arg9[%c15_921] : memref<16xf32, #tpu.memory_space<smem>>
    %2342 = vector.broadcast %2341 : f32 to vector<8x64xf32>
    %2343 = arith.mulf %2342, %7 : vector<8x64xf32>
    %2344 = arith.addf %2340, %2343 : vector<8x64xf32>
    %2345 = arith.mulf %2130, %2329 : vector<8x64xf32>
    %2346 = arith.addf %2345, %2344 : vector<8x64xf32>
    %c3_922 = arith.constant 3 : index
    %2347 = memref.load %arg10[%c3_922] : memref<4xf32, #tpu.memory_space<smem>>
    %c3_923 = arith.constant 3 : index
    %2348 = memref.load %arg12[%c3_923] : memref<4xf32, #tpu.memory_space<smem>>
    %2349 = arith.addf %2347, %2348 : f32
    %2350 = vector.broadcast %2349 : f32 to vector<8x64xf32>
    %2351 = arith.addf %2346, %2350 : vector<8x64xf32>
    %c0_924 = arith.constant 0 : index
    %c24_925 = arith.constant 24 : index
    %c0_926 = arith.constant 0 : index
    %2352 = vector.load %arg15[%c0_924, %c24_925, %c0_926] : memref<1x32x64xf32, #tpu.memory_space<vmem>>, vector<1x8x64xf32>
    %2353 = vector.shape_cast %2352 : vector<1x8x64xf32> to vector<8x64xf32>
    %2354 = vector.shape_cast %2351 : vector<8x64xf32> to vector<1x8x64xf32>
    tpu.vector_store %arg15[%c0_924, %c24_925, %c0_926], %2354 {strides = array<i32>} : memref<1x32x64xf32, #tpu.memory_space<vmem>>, vector<1x8x64xf32>,
    return
  }
  func.func @transform_0(%arg0: i32) -> (i32, i32, i32) {
    %c0_i32 = arith.constant 0 : i32
    %c0_i32_0 = arith.constant 0 : i32
    %c0_i32_1 = arith.constant 0 : i32
    return %arg0, %c0_i32, %c0_i32_0 : i32, i32, i32
  }
  func.func @transform_1(%arg0: i32) -> (i32, i32, i32) {
    %c0_i32 = arith.constant 0 : i32
    %c0_i32_0 = arith.constant 0 : i32
    %c0_i32_1 = arith.constant 0 : i32
    return %arg0, %c0_i32, %c0_i32_0 : i32, i32, i32
  }
  func.func @transform_2(%arg0: i32) -> i32 {
    %c0_i32 = arith.constant 0 : i32
    %c0_i32_0 = arith.constant 0 : i32
    return %c0_i32 : i32
  }
  func.func @transform_3(%arg0: i32) -> i32 {
    %c0_i32 = arith.constant 0 : i32
    %c0_i32_0 = arith.constant 0 : i32
    return %c0_i32 : i32
  }
  func.func @transform_4(%arg0: i32) -> i32 {
    %c0_i32 = arith.constant 0 : i32
    %c0_i32_0 = arith.constant 0 : i32
    return %c0_i32 : i32
  }
  func.func @transform_5(%arg0: i32) -> i32 {
    %c0_i32 = arith.constant 0 : i32
    %c0_i32_0 = arith.constant 0 : i32
    return %c0_i32 : i32
  }
  func.func @transform_6(%arg0: i32) -> i32 {
    %c0_i32 = arith.constant 0 : i32
    %c0_i32_0 = arith.constant 0 : i32
    return %c0_i32 : i32
  }
  func.func @transform_7(%arg0: i32) -> i32 {
    %c0_i32 = arith.constant 0 : i32
    %c0_i32_0 = arith.constant 0 : i32
    return %c0_i32 : i32
  }
  func.func @transform_8(%arg0: i32) -> i32 {
    %c0_i32 = arith.constant 0 : i32
    %c0_i32_0 = arith.constant 0 : i32
    return %c0_i32 : i32
  }
  func.func @transform_9(%arg0: i32) -> i32 {
    %c0_i32 = arith.constant 0 : i32
    %c0_i32_0 = arith.constant 0 : i32
    return %c0_i32 : i32
  }
  func.func @transform_10(%arg0: i32) -> i32 {
    %c0_i32 = arith.constant 0 : i32
    %c0_i32_0 = arith.constant 0 : i32
    return %c0_i32 : i32
  }
  func.func @transform_11(%arg0: i32) -> i32 {
    %c0_i32 = arith.constant 0 : i32
    %c0_i32_0 = arith.constant 0 : i32
    return %c0_i32 : i32
  }
  func.func @transform_12(%arg0: i32) -> i32 {
    %c0_i32 = arith.constant 0 : i32
    %c0_i32_0 = arith.constant 0 : i32
    return %c0_i32 : i32
  }
  func.func @transform_13(%arg0: i32) -> i32 {
    %c0_i32 = arith.constant 0 : i32
    %c0_i32_0 = arith.constant 0 : i32
    return %c0_i32 : i32
  }
  func.func @transform_14(%arg0: i32) -> (i32, i32, i32) {
    %c0_i32 = arith.constant 0 : i32
    %c0_i32_0 = arith.constant 0 : i32
    %c0_i32_1 = arith.constant 0 : i32
    return %arg0, %c0_i32, %c0_i32_0 : i32, i32, i32
  }
}

</mosaic_0001>

<bundles_post_ra>
// kernel: cmfa_forward.1
= control target key start
LH: loop header
LB: loop body
LE: loop exit
PB: predicated region body
PF: predicated region fallthrough
CT: control target
= control target key end

     0   :  { %s7540_s0 = inlined_call_operand.vmem [shape: f32[2,32,64], index: 0, kind: input, shape index: {}]   ;;  %s7541_s1 = inlined_call_operand.vmem [shape: f32[2,32,64], index: 1, kind: input, shape index: {}]   ;;  %s7542_s2 = inlined_call_operand.vmem [shape: f32[32], index: 2, kind: input, shape index: {}]   ;;  %s7543_s3 = inlined_call_operand.vmem [shape: f32[8], index: 3, kind: input, shape index: {}]   ;;  %s7544_s4 = inlined_call_operand.vmem [shape: f32[32], index: 4, kind: input, shape index: {}]   ;;  %s7545_s5 = inlined_call_operand.vmem [shape: f32[8], index: 5, kind: input, shape index: {}]   ;;  %s7546_s6 = inlined_call_operand.vmem [shape: f32[8], index: 6, kind: input, shape index: {}]   ;;  %s7547_s7 = inlined_call_operand.<no memory space> [shape: f32[1], index: 7, kind: input, shape index: {}]   ;;  %s7548_s8 = inlined_call_operand.vmem [shape: f32[16], index: 8, kind: input, shape index: {}]   ;;  %s7549_s9 = inlined_call_operand.vmem [shape: f32[4], index: 9, kind: input, shape index: {}]   ;;  %s7550_s10 = inlined_call_operand.vmem [shape: f32[32], index: 10, kind: input, shape index: {}]   ;;  %s7551_s11 = inlined_call_operand.vmem [shape: f32[4], index: 11, kind: input, shape index: {}]   ;;  %s7552_s12 = inlined_call_operand.vmem [shape: f32[250], index: 12, kind: input, shape index: {}]   ;;  %s7553_s13 = inlined_call_operand.vmem [shape: f32[2], index: 13, kind: input, shape index: {}]   ;;  %s7554_s14 = inlined_call_operand.vmem [shape: f32[2,32,64], index: 14, kind: output, shape index: {}]  }
   0x1   :  { %7733 = sst [smem:[#allocation155_spill]] %s7540_s0 }
   0x2   :  { %7734 = sst [smem:[#allocation156_spill]] %s7541_s1 }
   0x3   :  { %7735 = sst [smem:[#allocation157_spill]] %s7542_s2 }
   0x4   :  { %7736 = sst [smem:[#allocation158_spill]] %s7543_s3 }
   0x5   :  { %7737 = sst [smem:[#allocation159_spill]] %s7544_s4 }
   0x6   :  { %7738 = sst [smem:[#allocation160_spill]] %s7545_s5 }
   0x7   :  { %7739 = sst [smem:[#allocation161_spill]] %s7546_s6 }
   0x8   :  { %7740 = sst [smem:[#allocation162_spill]] %s7548_s8 }
   0x9   :  { %7741 = sst [smem:[#allocation163_spill]] %s7549_s9 }
   0xa   :  { %7742 = sst [smem:[#allocation164_spill]] %s7550_s10 }
   0xb   :  { %7743 = sst [smem:[#allocation165_spill]] %s7551_s11 }
   0xc   :  { %7744 = sst [smem:[#allocation166_spill]] %s7552_s12 }
   0xd   :  { %7745 = sst [smem:[#allocation167_spill]] %s7553_s13 }
   0xe   :  { %7746 = sst [smem:[#allocation168_spill]] %s7554_s14 }
   0xf   :  { %19 = sst [smem:[#allocation4]] %s7547_s7 }
  0x10   :  { %20 = vsyncpa [#allocation6], 0 }
  0x11   :  { %21 = vsyncpa [#allocation8], 0 }
  0x12   :  { %22 = vsyncpa [#allocation11], 0 }
  0x13   :  { %23 = vsyncpa [#allocation14], 0 }
  0x14   :  { %24 = vsyncpa [#allocation17], 0 }
  0x15   :  { %25 = vsyncpa [#allocation20], 0  ;;  %s4759_s15 = smov 0  }
  0x16 LB: > { %7747 = sst [smem:[#allocation28_spill]] %s4642_s15  ;;  %s7748_s3 = sld [smem:[#allocation158_spill]]  ;;  %s4642_s15 = sphi %s4759_s15, %s31_s15  }
  0x17   : > { %s4768_s18 = sadd.s32 4294967295, %s4642_s15   ;;  %p3725_p0 = scmp.ge.s32.totalorder %s4642_s15, 1 }
  0x18   : > { %p366_p1 = scmp.lt.s32.totalorder %s4642_s15, 3  ;;  %p7555_p2 = scmp.eq.s32.totalorder %s4768_s18, 0 }
  0x19   : > { %s7750_s5 = sld [smem:[#allocation160_spill]]  ;;  %s7751_s8 = sld [smem:[#allocation162_spill]] }
  0x1a   : > { %p4773_p3 = pnand %p3725_p0, %p366_p1  ;;  %s7753_s10 = sld [smem:[#allocation164_spill]] }
  0x1b   : > { %s7754_s12 = sld [smem:[#allocation166_spill]] }
  0x1c   : > { %s390_s7 = sshll.u32 %s7748_s3, 4  ;;  %p4292_p4 = pneg %p4773_p3  ;;  %s391_s7 = int_to_ptr.vmem [resolvable:$true] %s390_s7 }
  0x1d   : > { %s7749_s19 = scalar_select %p4773_p3, 1, 0 }
  0x1e   : > { %p4791_p5 = pnand %p7555_p2, %p4292_p4  ;;  %s4447_s20 = scalar_lea.vmem %s391_s7, 16 }
  0x1f   : > { %s412_s22 = sshll.u32 %s7750_s5, 4  ;;  %s437_s25 = sshll.u32 %s7751_s8, 4  ;;  %s4780_s22 = int_to_ptr.vmem [resolvable:$true] %s412_s22  ;;  %s4787_s25 = int_to_ptr.vmem [resolvable:$true] %s437_s25 }
  0x20   : > { %s459_s29 = sshll.u32 %s7753_s10, 4  ;;  %p4448_p6 = scmp.ne.s32.totalorder %s391_s7, %s4447_s20  ;;  %s4798_s29 = int_to_ptr.vmem [resolvable:$true] %s459_s29 }
  0x21   : > { %s481_s17 = sshll.u32 %s7754_s12, 4  ;;  %p4805_p7 = pneg %p4791_p5  ;;  %s482_s17 = int_to_ptr.vmem [resolvable:$true] %s481_s17 }
  0x22   : > { %p4455_p10 = scmp.lt.s32.totalorder %s391_s7, %s391_s7  ;;  %p4456_p11 = scmp.lt.s32.totalorder %s4447_s20, %s4447_s20 }
  0x23   : > { %p4450_p8 = pnand %p4805_p7, %p4448_p6 }
  0x24   : > { %p4457_p12 = por %p4456_p11, %p4455_p10 }
  0x25   : > { %p4451_p9 = pneg %p4450_p8 }
  0x27   : > { %p4458_p13 = pnand %p4457_p12, %p4451_p9 }
  0x29   : > { %4461 = shalt.err (!%p4458_p13)
}
  0x2a   : > { %s4644_s23 = smov [#allocation7]   ;;  %s4462_s24 = scalar_lea.vmem %s4780_s22, 16 }
  0x2b   : > { %4298 = dma.vmem_to_smem (!%p4791_p5), %s391_s7, 16, %s4644_s23, [#allocation8]  }
  0x2c   : > { %p4463_p0 = scmp.ne.s32.totalorder %s4780_s22, %s4462_s24  ;;  %p4470_p6 = scmp.lt.s32.totalorder %s4780_s22, %s4780_s22 }
  0x2d   : > { %p4471_p8 = scmp.lt.s32.totalorder %s4462_s24, %s4462_s24 }
  0x2e   : > { %p4465_p1 = pnand %p4463_p0, %p4805_p7 }
  0x2f   : > { %p4472_p2 = por %p4471_p8, %p4470_p6 }
  0x30   : > { %p4466_p4 = pneg %p4465_p1 }
  0x32   : > { %p4473_p10 = pnand %p4472_p2, %p4466_p4 }
  0x34   : > { %4476 = shalt.err (!%p4473_p10)
}
  0x35   : > { %s4645_s27 = smov [#allocation10]   ;;  %s4477_s7 = scalar_lea.vmem %s4787_s25, 16 }
  0x36   : > { %4304 = dma.vmem_to_smem (!%p4791_p5), %s4780_s22, 16, %s4645_s27, [#allocation11]  }
  0x37   : > { %p4478_p9 = scmp.ne.s32.totalorder %s4787_s25, %s4477_s7  ;;  %p4485_p13 = scmp.lt.s32.totalorder %s4787_s25, %s4787_s25 }
  0x38   : > { %p4486_p0 = scmp.lt.s32.totalorder %s4477_s7, %s4477_s7 }
  0x39   : > { %p4480_p11 = pnand %p4478_p9, %p4805_p7 }
  0x3a   : > { %p4487_p1 = por %p4486_p0, %p4485_p13 }
  0x3b   : > { %p4481_p12 = pneg %p4480_p11 }
  0x3d   : > { %p4488_p2 = pnand %p4487_p1, %p4481_p12 }
  0x3f   : > { %4491 = shalt.err (!%p4488_p2)
}
  0x40   : > { %s4646_s28 = smov [#allocation13]   ;;  %s4492_s22 = scalar_lea.vmem %s4798_s29, 16 }
  0x41   : > { %4310 = dma.vmem_to_smem (!%p4791_p5), %s4787_s25, 16, %s4646_s28, [#allocation14]  }
  0x42   : > { %p4493_p4 = scmp.ne.s32.totalorder %s4798_s29, %s4492_s22  ;;  %p4500_p10 = scmp.lt.s32.totalorder %s4798_s29, %s4798_s29 }
  0x43   : > { %p4501_p9 = scmp.lt.s32.totalorder %s4492_s22, %s4492_s22 }
  0x44   : > { %p4495_p6 = pnand %p4493_p4, %p4805_p7 }
  0x45   : > { %p4502_p11 = por %p4501_p9, %p4500_p10 }
  0x46   : > { %p4496_p8 = pneg %p4495_p6 }
  0x48   : > { %p4503_p12 = pnand %p4502_p11, %p4496_p8 }
  0x4a   : > { %4506 = shalt.err (!%p4503_p12)
}
  0x4b   : > { %s4647_s30 = smov [#allocation16]   ;;  %s4507_s25 = scalar_lea.vmem %s482_s17, 32 }
  0x4c   : > { %4316 = dma.vmem_to_smem (!%p4791_p5), %s4798_s29, 16, %s4647_s30, [#allocation17]  }
  0x4d   : > { %p4508_p13 = scmp.ne.s32.totalorder %s482_s17, %s4507_s25  ;;  %p4515_p2 = scmp.lt.s32.totalorder %s482_s17, %s482_s17 }
  0x4e   : > { %p4516_p4 = scmp.lt.s32.totalorder %s4507_s25, %s4507_s25 }
  0x4f   : > { %p4510_p0 = pnand %p4508_p13, %p4805_p7 }
  0x50   : > { %p4517_p6 = por %p4516_p4, %p4515_p2 }
  0x51   : > { %p4511_p1 = pneg %p4510_p0 }
  0x53   : > { %p4518_p8 = pnand %p4517_p6, %p4511_p1 }
  0x55   : > { %4521 = shalt.err (!%p4518_p8)
}
  0x56   : > { %s4648_s23 = smov [#allocation19]   ;;  %s7756_s2 = sld [smem:[#allocation157_spill]] }
  0x57   : > { %4322 = dma.vmem_to_smem (!%p4791_p5), %s482_s17, 32, %s4648_s23, [#allocation20]  }
  0x58   : > { %s7757_s4 = sld [smem:[#allocation159_spill]] }
  0x5c   : > { %s379_s27 = sshll.u32 %s7756_s2, 4  ;;  %s380_s27 = int_to_ptr.vmem [resolvable:$true] %s379_s27 }
  0x5d   : > { %s4522_s30 = scalar_lea.vmem %s380_s27, 16  ;;  %p4530_p12 = scmp.lt.s32.totalorder %s380_s27, %s380_s27 }
  0x5e   : > { %s401_s22 = sshll.u32 %s7757_s4, 4  ;;  %p4523_p10 = scmp.ne.s32.totalorder %s380_s27, %s4522_s30  ;;  %s402_s22 = int_to_ptr.vmem [resolvable:$true] %s401_s22 }
  0x5f   : > { %p4531_p13 = scmp.lt.s32.totalorder %s4522_s30, %s4522_s30 }
  0x60   : > { %p4525_p9 = pnand %p4523_p10, %p4805_p7 }
  0x61   : > { %p4532_p0 = por %p4531_p13, %p4530_p12 }
  0x62   : > { %p4526_p11 = pneg %p4525_p9 }
  0x64   : > { %p4533_p1 = pnand %p4532_p0, %p4526_p11 }
  0x66   : > { %4536 = shalt.err (!%p4533_p1)
}
  0x67   : > { %s4649_s17 = smov [#allocation5]   ;;  %s4537_s16 = scalar_lea.vmem %s402_s22, 16 }
  0x68   : > { %4295 = dma.vmem_to_smem (!%p4791_p5), %s380_s27, 16, %s4649_s17, [#allocation6]  }
  0x69   : > { %p4538_p2 = scmp.ne.s32.totalorder %s402_s22, %s4537_s16  ;;  %p4545_p8 = scmp.lt.s32.totalorder %s402_s22, %s402_s22 }
  0x6a   : > { %p4546_p3 = scmp.lt.s32.totalorder %s4537_s16, %s4537_s16 }
  0x6b   : > { %p4540_p4 = pnand %p4538_p2, %p4805_p7 }
  0x6c   : > { %p4547_p10 = por %p4546_p3, %p4545_p8 }
  0x6d   : > { %p4541_p6 = pneg %p4540_p4 }
  0x6f   : > { %p4548_p9 = pnand %p4547_p10, %p4541_p6 }
  0x71   : > { %4551 = shalt.err (!%p4548_p9)
}
  0x72   : > { %s4650_s20 = smov [#allocation9]   ;;  %s7758_s6 = sld [smem:[#allocation161_spill]] }
  0x73   : > { %4301 = dma.vmem_to_smem (!%p4791_p5), %s402_s22, 16, %s4650_s20, [#allocation8]  }
  0x74   : > { %s7759_s9 = sld [smem:[#allocation163_spill]] }
  0x78   : > { %s423_s29 = sshll.u32 %s7758_s6, 4  ;;  %s424_s29 = int_to_ptr.vmem [resolvable:$true] %s423_s29 }
  0x79   : > { %s4552_s28 = scalar_lea.vmem %s424_s29, 16  ;;  %p4560_p13 = scmp.lt.s32.totalorder %s424_s29, %s424_s29 }
  0x7a   : > { %s448_s7 = sshll.u32 %s7759_s9, 4  ;;  %p4553_p11 = scmp.ne.s32.totalorder %s424_s29, %s4552_s28  ;;  %s449_s7 = int_to_ptr.vmem [resolvable:$true] %s448_s7 }
  0x7b   : > { %p4561_p0 = scmp.lt.s32.totalorder %s4552_s28, %s4552_s28 }
  0x7c   : > { %p4555_p3 = pnand %p4553_p11, %p4805_p7 }
  0x7d   : > { %p4562_p1 = por %p4561_p0, %p4560_p13 }
  0x7e   : > { %p4556_p12 = pneg %p4555_p3 }
  0x80   : > { %p4563_p2 = pnand %p4562_p1, %p4556_p12 }
  0x82   : > { %4566 = shalt.err (!%p4563_p2)
}
  0x83   : > { %s4651_s22 = smov [#allocation12]   ;;  %s4567_s30 = scalar_lea.vmem %s449_s7, 16 }
  0x84   : > { %4307 = dma.vmem_to_smem (!%p4791_p5), %s424_s29, 16, %s4651_s22, [#allocation11]  }
  0x85   : > { %p4568_p4 = scmp.ne.s32.totalorder %s449_s7, %s4567_s30  ;;  %p4575_p10 = scmp.lt.s32.totalorder %s449_s7, %s449_s7 }
  0x86   : > { %p4576_p9 = scmp.lt.s32.totalorder %s4567_s30, %s4567_s30 }
  0x87   : > { %p4570_p6 = pnand %p4568_p4, %p4805_p7 }
  0x88   : > { %p4577_p11 = por %p4576_p9, %p4575_p10 }
  0x89   : > { %p4571_p8 = pneg %p4570_p6 }
  0x8b   : > { %p4578_p3 = pnand %p4577_p11, %p4571_p8 }
  0x8d   : > { %4581 = shalt.err (!%p4578_p3)
}
  0x8e   : > { %s4652_s17 = smov [#allocation15]   ;;  %s7760_s11 = sld [smem:[#allocation165_spill]] }
  0x8f   : > { %4313 = dma.vmem_to_smem (!%p4791_p5), %s449_s7, 16, %s4652_s17, [#allocation14]  }
  0x90   : > { %s7761_s13 = sld [smem:[#allocation167_spill]] }
  0x94   : > { %s470_s25 = sshll.u32 %s7760_s11, 4  ;;  %s471_s25 = int_to_ptr.vmem [resolvable:$true] %s470_s25 }
  0x95   : > { %s4582_s27 = scalar_lea.vmem %s471_s25, 16  ;;  %p4590_p1 = scmp.lt.s32.totalorder %s471_s25, %s471_s25 }
  0x96   : > { %s492_s24 = sshll.u32 %s7761_s13, 4  ;;  %p4583_p12 = scmp.ne.s32.totalorder %s471_s25, %s4582_s27  ;;  %s493_s24 = int_to_ptr.vmem [resolvable:$true] %s492_s24 }
  0x97   : > { %p4591_p2 = scmp.lt.s32.totalorder %s4582_s27, %s4582_s27 }
  0x98   : > { %p4585_p13 = pnand %p4583_p12, %p4805_p7 }
  0x99   : > { %p4592_p4 = por %p4591_p2, %p4590_p1 }
  0x9a   : > { %p4586_p0 = pneg %p4585_p13 }
  0x9c   : > { %p4593_p6 = pnand %p4592_p4, %p4586_p0 }
  0x9e   : > { %4596 = shalt.err (!%p4593_p6)
}
  0x9f   : > { %s4653_s7 = smov [#allocation18]   ;;  %s4597_s28 = scalar_lea.vmem %s493_s24, 16 }
  0xa0   : > { %4319 = dma.vmem_to_smem (!%p4791_p5), %s471_s25, 16, %s4653_s7, [#allocation17]  }
  0xa1   : > { %p4598_p8 = scmp.ne.s32.totalorder %s493_s24, %s4597_s28  ;;  %p4605_p11 = scmp.lt.s32.totalorder %s493_s24, %s493_s24 }
  0xa2   : > { %p4606_p3 = scmp.lt.s32.totalorder %s4597_s28, %s4597_s28 }
  0xa3   : > { %p4600_p10 = pnand %p4598_p8, %p4805_p7 }
  0xa4   : > { %p4607_p12 = por %p4606_p3, %p4605_p11 }
  0xa5   : > { %p4601_p9 = pneg %p4600_p10 }
  0xa7   : > { %p4608_p13 = pnand %p4607_p12, %p4601_p9 }
  0xa9   : > { %4611 = shalt.err (!%p4608_p13)
}
  0xaa   : > { %s4654_s22 = smov [#allocation21]   ;;  %p7762_p0 = scmp.ne.s32.totalorder %s7749_s19, 0 }
  0xab   : > { %4325 = dma.vmem_to_smem (!%p4791_p5), %s493_s24, 16, %s4654_s22, [#allocation20]  }
  0xac   : > { %521 = sbr.rel (%p7762_p0) target bundleno = 2426 (0x97a), region = 76 }
  0xb3   : > { %p7763_p1 = scmp.eq.s32.totalorder %s4768_s18, 0 }
  0xb5   : > { %4617 = dma.done.wait (%p7763_p1), [#allocation6], 16   ;;  %p7764_p2 = pmov %p7763_p1 }
  0xb6   : > { %p7765_p7 = pmov %p7763_p1 }
  0xb7   : > { %4619 = vsyncadd (%p7764_p2), [#allocation6], 4294967280 }
  0xb8   : > { %4621 = dma.done.wait (%p7765_p7), [#allocation8], 32   ;;  %p7766_p4 = pmov %p7763_p1 }
  0xb9   : > { %p7767_p6 = pmov %p7763_p1 }
  0xba   : > { %4623 = vsyncadd (%p7766_p4), [#allocation8], 4294967264 }
  0xbb   : > { %4625 = dma.done.wait (%p7767_p6), [#allocation11], 32   ;;  %p7768_p5 = pmov %p7763_p1 }
  0xbc   : > { %p7769_p8 = pmov %p7763_p1 }
  0xbd   : > { %4627 = vsyncadd (%p7768_p5), [#allocation11], 4294967264 }
  0xbe   : > { %4629 = dma.done.wait (%p7769_p8), [#allocation14], 32   ;;  %p7770_p10 = pmov %p7763_p1 }
  0xbf   : > { %p7771_p9 = pmov %p7763_p1 }
  0xc0   : > { %4631 = vsyncadd (%p7770_p10), [#allocation14], 4294967264 }
  0xc1   : > { %4633 = dma.done.wait (%p7771_p9), [#allocation17], 32   ;;  %p7772_p11 = pmov %p7763_p1 }
  0xc2   : > { %p7773_p3 = pmov %p7763_p1 }
  0xc3   : > { %4635 = vsyncadd (%p7772_p11), [#allocation17], 4294967264 }
  0xc4   : > { %4637 = dma.done.wait (%p7773_p3), [#allocation20], 48   ;;  %p7774_p12 = pmov %p7763_p1 }
  0xc6   : > { %4639 = vsyncadd (%p7774_p12), [#allocation20], 4294967248 }
  0xc7   : > { %567 = sfence }
  0xc8   : > { %p613_p13 = scmp.lt.s32.totalorder %s4768_s18, 1  ;;  %s636_s19 = sld [smem:[#allocation5]]  ;;  %vm669_vm0 = vcmask 523264   ;;  %vm1568_vm1 = vcmask 818176   ;;  %vm1576_vm2 = vcmask 670864  }
  0xc9   : > { %s3756_s26 = sld [smem:[#allocation5 + $0x1]]  ;;  %s3758_s21 = sld [smem:[#allocation5 + $0x2]] }
  0xca   : > { %s8341_s18 = smov (!%p613_p13, %s4768_s18), 1  ;;  %s3760_s30 = sld [smem:[#allocation5 + $0x3]] }
  0xcb   : > { %s4918_s17 = sshll.u32 %s8341_s18, 5  ;;  %s7776_s0 = sld [smem:[#allocation155_spill]] }
  0xcc   : > { %7775 = sst [smem:[#allocation29_spill]] %s4918_s17  ;;  %s666_s23 = sld [smem:[#allocation7]] }
  0xcd   : > { %s639_s18 = sld [smem:[#allocation9]]  ;;  %s3757_s29 = sld [smem:[#allocation9 + $0x1]] }
  0xce   : > { %v637_v3 = vstv %s636_s19  ;;  %s7778_s1 = sld [smem:[#allocation156_spill]]  ;;  %s3759_s28 = sld [smem:[#allocation9 + $0x2]] }
  0xcf   : > { %v643_v6 = vstv %s3756_s26  ;;  %v651_v7 = vstv %s3758_s21  ;;  %s3761_s22 = sld [smem:[#allocation9 + $0x3]]  ;;  %s3762_s19 = sld [smem:[#allocation5 + $0x4]] }
  0xd0   : > { %v659_v10 = vstv %s3760_s30  ;;  %s3764_s26 = sld [smem:[#allocation5 + $0x5]]  ;;  %s3766_s21 = sld [smem:[#allocation5 + $0x6]] }
  0xd1   : > { %s4924_s25 = scalar_lea.vmem %s7776_s0, %s4918_s17  ;;  %s3768_s30 = sld [smem:[#allocation5 + $0x7]] }
  0xd2   : > { %7777 = sst [smem:[#allocation30_spill]] %s4924_s25  ;;  %v4927_v0 = vld [vmem:[%s4924_s25] sm:$0xff]  ;;  %v4930_v1 = vld [vmem:[%s4924_s25 + $0x8] sm:$0xff]  ;;  %v4933_v2 = vld [vmem:[%s4924_s25 + $0x10] sm:$0xff]  ;;  %v667_v14 = vstv %s666_s23  ;;  %s704_s16 = sld [smem:[#allocation10]] }
  0xd3   : > { %v4936_v4 = vld [vmem:[%s4924_s25 + $0x18] sm:$0xff]  ;;  %v638_v5 = vmul.f32 %v637_v3, %v4927_v0  ;;  %v644_v8 = vmul.f32 %v643_v6, %v4930_v1  ;;  %v652_v9 = vmul.f32 %v651_v7, %v4933_v2  ;;  %v640_v23 = vstv %s639_s18  ;;  %s3770_s20 = sld [smem:[#allocation7 + $0x1]]  ;;  %s3763_s23 = sld [smem:[#allocation9 + $0x4]] }
  0xd4   : > { %v660_v12 = vmul.f32 %v659_v10, %v4936_v4  ;;  %s4948_s7 = scalar_lea.vmem %s7778_s1, %s4918_s17  ;;  %v647_v24 = vstv %s3757_s29  ;;  %v655_v28 = vstv %s3759_s28  ;;  %s3765_s18 = sld [smem:[#allocation9 + $0x5]] }
  0xd5   : > { %v645_v11 = vadd.f32 %v644_v8, %v638_v5  ;;  %v4953_v18 = vld [vmem:[%s4948_s7] sm:$0xff]  ;;  %v4956_v19 = vld [vmem:[%s4948_s7 + $0x8] sm:$0xff]  ;;  %v4961_v21 = vld [vmem:[%s4948_s7 + $0x10] sm:$0xff]  ;;  %v663_v29 = vstv %s3761_s22  ;;  %s3767_s29 = sld [smem:[#allocation9 + $0x6]]  ;;  %s3769_s24 = sld [smem:[#allocation9 + $0x7]] }
  0xd6   : > { %v4964_v22 = vld [vmem:[%s4948_s7 + $0x18] sm:$0xff]  ;;  %v641_v25 = vmul.f32 %v640_v23, %v4953_v18  ;;  %v648_v26 = vmul.f32 %v647_v24, %v4956_v19  ;;  %v656_v31 = vmul.f32 %v655_v28, %v4961_v21  ;;  %v746_v33 = vstv %s3762_s19  ;;  %s3771_s27 = sld [smem:[#allocation10 + $0x1]]  ;;  %s3773_s28 = sld [smem:[#allocation5 + $0x8]] }
  0xd7   : > { %v653_v13 = vadd.f32 %v652_v9, %v645_v11  ;;  %v664_v32 = vmul.f32 %v663_v29, %v4964_v22  ;;  %v752_v34 = vstv %s3764_s26  ;;  %v760_v35 = vstv %s3766_s21  ;;  %s3775_s22 = sld [smem:[#allocation5 + $0x9]]  ;;  %s3777_s19 = sld [smem:[#allocation5 + $0xa]] }
  0xd8   : > { %v649_v30 = vadd.f32 %v648_v26, %v641_v25  ;;  %v768_v36 = vstv %s3768_s30  ;;  %v747_v38 = vmul.f32 %v746_v33, %v4927_v0  ;;  %v753_v39 = vmul.f32 %v752_v34, %v4930_v1  ;;  %s3779_s26 = sld [smem:[#allocation5 + $0xb]]  ;;  %s3781_s21 = sld [smem:[#allocation7 + $0x2]] }
  0xd9   : > { %v661_v15 = vadd.f32 %v660_v12, %v653_v13  ;;  %v705_v40 = vstv %s704_s16  ;;  %v761_v41 = vmul.f32 %v760_v35, %v4933_v2  ;;  %v769_v44 = vmul.f32 %v768_v36, %v4936_v4  ;;  %s5313_s0 = sld [smem:[#allocation16 + $0x1a]]  ;;  %s5315_s1 = sld [smem:[#allocation16 + $0x1b]] }
  0xda   : > { %v657_v37 = vadd.f32 %v656_v31, %v649_v30  ;;  %v754_v43 = vadd.f32 %v753_v39, %v747_v38  ;;  %v776_v47 = vstv %s3770_s20  ;;  %v749_v56 = vstv %s3763_s23  ;;  %s3774_s20 = sld [smem:[#allocation9 + $0x8]]  ;;  %s3776_s23 = sld [smem:[#allocation9 + $0x9]] }
  0xdb   : > { %v4942_v16 = vadd.f32 %v667_v14, %v661_v15  ;;  %v756_v57 = vstv %s3765_s18  ;;  %v750_v58 = vmul.f32 %v749_v56, %v4953_v18  ;;  %v764_v60 = vstv %s3767_s29  ;;  %s3778_s18 = sld [smem:[#allocation9 + $0xa]]  ;;  %s7790_s2 = smov 117  }
  0xdc   : > { %v665_v42 = vadd.f32 %v664_v32, %v657_v37  ;;  %v762_v46 = vadd.f32 %v761_v41, %v754_v43  ;;  %v757_v59 = vmul.f32 %v756_v57, %v4956_v19  ;;  %v765_v62 = vmul.f32 %v764_v60, %v4961_v21  ;;  %s5496_s3 = sld [smem:[#allocation19 + $0x46]]  ;;  %s5498_s4 = sld [smem:[#allocation19 + $0x78]] }
  0xdd   : > { %v670_v17 = vsel %vm669_vm0, %v4942_v16, 0.0  ;;  %v681_v20 = vmul.f32 %v4942_v16, %v4942_v16  ;;  %v772_v63 = vstv %s3769_s24  ;;  %v813_v7 = vstv %s3771_s27  ;;  %s3780_s27 = sld [smem:[#allocation9 + $0xb]]  ;;  %s5500_s5 = sld [smem:[#allocation19 + $0xaa]] }
  0xde   : > { %671 = vadd.xlane.f32.xlu0 %v670_v17  ;;  %v4975_v45 = vadd.f32 %v705_v40, %v665_v42  ;;  %v770_v50 = vadd.f32 %v769_v44, %v762_v46  ;;  %v758_v61 = vadd.f32 %v757_v59, %v750_v58  ;;  %v773_v5 = vmul.f32 %v772_v63, %v4964_v22  ;;  %s5504_s6 = sld [smem:[#allocation19 + $0xb]]  ;;  %s5506_s8 = sld [smem:[#allocation19 + $0x3d]] }
  0xdf   : > { %v682_v27 = vsel %vm669_vm0, %v681_v20, 0.0  ;;  %v855_v13 = vstv %s3773_s28  ;;  %v861_v14 = vstv %s3775_s22  ;;  %v869_v23 = vstv %s3777_s19  ;;  %s3782_s19 = sld [smem:[#allocation10 + $0x2]]  ;;  %s5508_s9 = sld [smem:[#allocation19 + $0x6f]] }
  0xe0   : > { %v707_v48 = vsel %vm669_vm0, %v4975_v45, 0.0  ;;  %v718_v49 = vmul.f32 %v4975_v45, %v4975_v45  ;;  %v4982_v52 = vadd.f32 %v776_v47, %v770_v50  ;;  %v766_v3 = vadd.f32 %v765_v62, %v758_v61  ;;  %s5510_s10 = sld [smem:[#allocation19 + $0xa1]]  ;;  %s5518_s11 = sld [smem:[#allocation19 + $0x6e]] }
  0xe1   : > { %708 = vadd.xlane.f32.xlu1 %v707_v48  ;;  %v856_v17 = vmul.f32 %v855_v13, %v4927_v0  ;;  %v862_v20 = vmul.f32 %v861_v14, %v4930_v1  ;;  %v870_v26 = vmul.f32 %v869_v23, %v4933_v2  ;;  %v885_v35 = vstv %s3781_s21  ;;  %s3784_s21 = sld [smem:[#allocation5 + $0xc]]  ;;  %s5520_s12 = sld [smem:[#allocation19 + $0xa0]] }
  0xe2   : > { %683 = vadd.xlane.f32.xlu0 %v682_v27  ;;  %v719_v51 = vsel %vm669_vm0, %v718_v49, 0.0  ;;  %v778_v53 = vsel %vm669_vm0, %v4982_v52, 0.0  ;;  %v789_v54 = vmul.f32 %v4982_v52, %v4982_v52  ;;  %v774_v6 = vadd.f32 %v773_v5, %v766_v3  ;;  %7791 = sst [smem:[#allocation38_spill]] %s5496_s3  ;;  %s5522_s13 = sld [smem:[#allocation19 + $0xd2]] }
  0xe3   : > { %v863_v25 = vadd.f32 %v862_v20, %v856_v17  ;;  %v877_v27 = vstv %s3779_s26  ;;  %v865_v57 = vstv %s3776_s23  ;;  %v873_v59 = vstv %s3778_s18  ;;  %s3788_s18 = sld [smem:[#allocation5 + $0xe]]  ;;  %7792 = sst [smem:[#allocation39_spill]] %s5498_s4 }
  0xe4   : > { %v790_v55 = vsel %vm669_vm0, %v789_v54, 0.0  ;;  %v4993_v8 = vadd.f32 %v813_v7, %v774_v6  ;;  %v878_v30 = vmul.f32 %v877_v27, %v4936_v4  ;;  %v858_v54 = vstv %s3774_s20  ;;  %7793 = sst [smem:[#allocation40_spill]] %s5500_s5  ;;  %s5524_s15 = sld [smem:[#allocation19 + $0x15]] }
  0xe5   : > { %720 = vadd.xlane.f32.xlu1 %v719_v51  ;;  %v871_v29 = vadd.f32 %v870_v26, %v863_v25  ;;  %v859_v56 = vmul.f32 %v858_v54, %v4953_v18  ;;  %v866_v58 = vmul.f32 %v865_v57, %v4956_v19  ;;  %v874_v60 = vmul.f32 %v873_v59, %v4961_v21  ;;  %7795 = sst [smem:[#allocation42_spill]] %s5504_s6  ;;  %s5526_s14 = sld [smem:[#allocation19 + $0x47]] }
  0xe6   : > { %779 = vadd.xlane.f32.xlu0 %v778_v53  ;;  %v815_v9 = vsel %vm669_vm0, %v4993_v8, 0.0  ;;  %v826_v10 = vmul.f32 %v4993_v8, %v4993_v8  ;;  %v881_v63 = vstv %s3780_s27  ;;  %7796 = sst [smem:[#allocation43_spill]] %s5506_s8  ;;  %s5528_s17 = sld [smem:[#allocation19 + $0x79]] }
  0xe7   : > { %v879_v33 = vadd.f32 %v878_v30, %v871_v29  ;;  %v867_v62 = vadd.f32 %v866_v58, %v859_v56  ;;  %v882_v6 = vmul.f32 %v881_v63, %v4964_v22  ;;  %7797 = sst [smem:[#allocation44_spill]] %s5508_s9  ;;  %s5780_s5 = sld [smem:[#allocation19 + $0x36]] }
  0xe8   : > { %v827_v11 = vsel %vm669_vm0, %v826_v10, 0.0  ;;  %7798 = sst [smem:[#allocation45_spill]] %s5510_s10  ;;  %s7808_s10 = smov 124  }
  0xe9   : > { %791 = vadd.xlane.f32.xlu1 %v790_v55  ;;  %v5004_v37 = vadd.f32 %v885_v35, %v879_v33  ;;  %v875_v7 = vadd.f32 %v874_v60, %v867_v62  ;;  %7801 = sst [smem:[#allocation47_spill]] %s5518_s11  ;;  %s5538_s11 = sld [smem:[#allocation19 + $0x28]] }
  0xea   : > { %816 = vadd.xlane.f32.xlu0 %v815_v9  ;;  %7802 = sst [smem:[#allocation48_spill]] %s5520_s12  ;;  %s5540_s12 = sld [smem:[#allocation19 + $0x1e]] }
  0xeb   : > { %v887_v40 = vsel %vm669_vm0, %v5004_v37, 0.0  ;;  %v898_v41 = vmul.f32 %v5004_v37, %v5004_v37  ;;  %v883_v10 = vadd.f32 %v882_v6, %v875_v7  ;;  %7803 = sst [smem:[#allocation49_spill]] %s5522_s13  ;;  %s5542_s13 = sld [smem:[#allocation19 + $0x1f]] }
  0xec   : > { %7804 = sst [smem:[#allocation50_spill]] %s5524_s15 }
  0xed   : > { %828 = vadd.xlane.f32.xlu1 %v827_v11  ;;  %v899_v43 = vsel %vm669_vm0, %v898_v41, 0.0  ;;  %v922_v11 = vstv %s3782_s19  ;;  %v978_v41 = vstv %s3788_s18  ;;  %s3792_s19 = sld [smem:[#allocation7 + $0x3]]  ;;  %s3789_s18 = sld [smem:[#allocation9 + $0xe]] }
  0xee   : > { %888 = vadd.xlane.f32.xlu0 %v887_v40  ;;  %v5019_v13 = vadd.f32 %v922_v11, %v883_v10  ;;  %7805 = sst [smem:[#allocation51_spill]] %s5526_s14  ;;  %s5551_s14 = sld [smem:[#allocation19 + $0x82]] }
  0xef   : > { %7806 = sst [smem:[#allocation52_spill]] %s5528_s17  ;;  %s5546_s17 = sld [smem:[#allocation19 + $0x50]] }
  0xf0   : > { %v935_v17 = vmul.f32 %v5019_v13, %v5019_v13  ;;  %7811 = sst [smem:[#allocation55_spill]] %s5538_s11  ;;  %s5559_s11 = sld [smem:[#allocation19 + $0xb4]] }
  0xf1   : > { %900 = vadd.xlane.f32.xlu1 %v899_v43  ;;  %v979_v43 = vmul.f32 %v978_v41, %v4933_v2  ;;  %7812 = sst [smem:[#allocation56_spill]] %s5540_s12  ;;  %s5885_s12 = sld [smem:[#allocation19 + $0x22]] }
  0xf2   : > { %v936_v23 = vsel %vm669_vm0, %v935_v17, 0.0  ;;  %7813 = sst [smem:[#allocation57_spill]] %s5542_s13  ;;  %s5561_s13 = sld [smem:[#allocation19 + $0xb5]] }
  0xf3   : > { %v994_v54 = vstv %s3792_s19  ;;  %s3793_s19 = sld [smem:[#allocation10 + $0x3]]  ;;  %7906 = sst [smem:[#allocation123_spill]] %s5780_s5 }
  0xf4   : > { %7816 = sst [smem:[#allocation60_spill]] %s5551_s14  ;;  %s5565_s14 = sld [smem:[#allocation19 + $0xe7]] }
  0xf5   : > { %937 = vadd.xlane.f32.xlu1 %v936_v23  ;;  %7814 = sst [smem:[#allocation58_spill]] %s5546_s17  ;;  %s5798_s17 = sld [smem:[#allocation19 + $0x37]] }
  0xf6   : > { %7818 = sst [smem:[#allocation62_spill]] %s5559_s11  ;;  %s5580_s11 = sld [smem:[#allocation19 + $0x8c]] }
  0xf7   : > { %7963 = sst [smem:[#allocation147_spill]] %s5885_s12  ;;  %s5948_s5 = sld [smem:[#allocation19 + $0x86]] }
  0xf8   : > { %7819 = sst [smem:[#allocation63_spill]] %s5561_s13  ;;  %s5578_s13 = sld [smem:[#allocation19 + $0x5b]] }
  0xf9   : > { %s6018_s12 = sld [smem:[#allocation19 + $0x2d]] }
  0xfa   : > { %7821 = sst [smem:[#allocation65_spill]] %s5565_s14  ;;  %s5586_s14 = sld [smem:[#allocation19 + $0x8d]] }
  0xfb   : > { %7912 = sst [smem:[#allocation128_spill]] %s5798_s17  ;;  %s5824_s17 = sld [smem:[#allocation19 + $0x40]] }
  0xfc   : > { %7825 = sst [smem:[#allocation69_spill]] %s5580_s11  ;;  %s5599_s11 = sld [smem:[#allocation19 + $0xf1]] }
  0xfe   : > { %7824 = sst [smem:[#allocation68_spill]] %s5578_s13  ;;  %s5601_s13 = sld [smem:[#allocation19 + $0x2]] }
 0x100   : > { %7827 = sst [smem:[#allocation70_spill]] %s5586_s14 }
 0x101   : > { %s5606_s14 = sld [smem:[#allocation19 + $0x66]] }
 0x102   : > { %7831 = sst [smem:[#allocation74_spill]] %s5599_s11  ;;  %s5614_s11 = sld [smem:[#allocation19 + $0x98]] }
 0x104   : > { %7832 = sst [smem:[#allocation75_spill]] %s5601_s13 }
 0x105   : > { %s6016_s13 = sld [smem:[#allocation19 + $0xeb]] }
 0x107   : > { %7834 = sst [smem:[#allocation77_spill]] %s5606_s14  ;;  %s5620_s14 = sld [smem:[#allocation19 + $0x3e]] }
 0x108   : > { %7835 = sst [smem:[#allocation78_spill]] %s5614_s11  ;;  %s5875_s11 = sld [smem:[#allocation19 + $0x73]] }
 0x10d   : > { %7838 = sst [smem:[#allocation81_spill]] %s5620_s14  ;;  %s7611_s14 = smov 100  }
 0x10e   : > { %7958 = sst [smem:[#allocation145_spill]] %s5875_s11  ;;  %s8023_s11 = sld [smem:[#allocation40_spill]] }
 0x16b   : > { %v672_v12 = vpop.xlane.xlu0 %671 }
 0x16c   : > { %v673_v15 = vrot.slane %v672_v12, 4 }
 0x16e   : > { %v674_v24 = vadd.f32 %v673_v15, %v672_v12  ;;  %v709_v48 = vpop.xlane.xlu1 %708  ;;  %v924_v15 = vsel %vm669_vm0, %v5019_v13, 0.0 }
 0x16f   : > { %v684_v31 = vpop.xlane.xlu0 %683  ;;  %v710_v50 = vrot.slane %v709_v48, 4  ;;  %925 = vadd.xlane.f32.xlu0 %v924_v15 }
 0x170   : > { %v675_v28 = vrot.slane %v674_v24, 2  ;;  %v685_v34 = vrot.slane %v684_v31, 4 }
 0x171   : > { %v711_v53 = vadd.f32 %v710_v50, %v709_v48 }
 0x172   : > { %v676_v32 = vadd.f32 %v675_v28, %v674_v24  ;;  %v686_v38 = vadd.f32 %v685_v34, %v684_v31  ;;  %v721_v49 = vpop.xlane.xlu1 %720 }
 0x173   : > { %v722_v51 = vrot.slane %v721_v49, 4  ;;  %v712_v61 = vrot.slane %v711_v53, 2  ;;  %v780_v28 = vpop.xlane.xlu0 %779 }
 0x174   : > { %v677_v36 = vrot.slane %v676_v32, 1  ;;  %v687_v42 = vrot.slane %v686_v38, 2 }
 0x175   : > { %v723_v55 = vadd.f32 %v722_v51, %v721_v49  ;;  %v713_v9 = vadd.f32 %v712_v61, %v711_v53 }
 0x176   : > { %v678_v39 = vadd.f32 %v677_v36, %v676_v32  ;;  %v688_v44 = vadd.f32 %v687_v42, %v686_v38  ;;  %v792_v29 = vpop.xlane.xlu1 %791  ;;  %v781_v32 = vrot.slane %v780_v28, 4  ;;  %v964_v36 = vstv %s3784_s21  ;;  %s3785_s21 = sld [smem:[#allocation9 + $0xc]] }
 0x177   : > { %v724_v5 = vrot.slane %v723_v55, 2  ;;  %v714_v14 = vrot.slane %v713_v9, 1  ;;  %v793_v34 = vrot.slane %v792_v29, 4  ;;  %v817_v6 = vpop.xlane.xlu0 %816 }
 0x178   : > { %4146 = vpush %v678_v39  ;;  %v689_v46 = vrot.slane %v688_v44, 1  ;;  %v782_v35 = vadd.f32 %v781_v32, %v780_v28  ;;  %v965_v39 = vmul.f32 %v964_v36, %v4927_v0  ;;  %v818_v11 = vrot.slane %v817_v6, 4 }
 0x179   : > { %v725_v12 = vadd.f32 %v724_v5, %v723_v55  ;;  %v715_v25 = vadd.f32 %v714_v14, %v713_v9  ;;  %v982_v28 = vstv %s3789_s18  ;;  %s3799_s18 = sld [smem:[#allocation5 + $0x12]] }
 0x17a   : > { %v690_v47 = vadd.f32 %v689_v46, %v688_v44  ;;  %v783_v44 = vrot.slane %v782_v35, 2  ;;  %v829_v7 = vpop.xlane.xlu1 %828 }
 0x17b   : > { %v726_v20 = vrot.slane %v725_v12, 1  ;;  %v830_v14 = vrot.slane %v829_v7, 4 }
 0x17c   : > { %4148 = vpush %v690_v47  ;;  %v784_v53 = vadd.f32 %v783_v44, %v782_v35 }
 0x17d   : > { %v727_v26 = vadd.f32 %v726_v20, %v725_v12  ;;  %v819_v20 = vadd.f32 %v818_v11, %v817_v6 }
 0x17e   : > { %v785_v59 = vrot.slane %v784_v53, 1 }
 0x17f   : > { %v1087_v6 = vstv %s3799_s18 }
 0x180   : > { %v786_v63 = vadd.f32 %v785_v59, %v784_v53  ;;  %v889_v53 = vpop.xlane.xlu0 %888 }
 0x1a9   : > { %s4147_s30 = spop %4146 }
 0x1aa   : > { %s5011_s16 = smul.f32 0.001953125, %s4147_s30  ;;  %s3786_s30 = sld [smem:[#allocation5 + $0xd]] }
 0x1ac   : > { %s693_s29 = smul.f32 %s5011_s16, %s5011_s16  ;;  %v695_v27 = vstv %s5011_s16  ;;  %s3790_s16 = sld [smem:[#allocation5 + $0xf]] }
 0x1ad   : > { %s4149_s24 = spop %4148  ;;  %v696_v30 = vsub.f32 %v4942_v16, %v695_v27  ;;  %v794_v16 = vadd.f32 %v793_v34, %v792_v29 }
 0x1ae   : > { %s692_s28 = smul.f32 0.001953125, %s4149_s24 }
 0x1af   : > { %v795_v48 = vrot.slane %v794_v16, 2 }
 0x1b0   : > { %s694_s22 = ssub.f32 %s692_s28, %s693_s29  ;;  %v970_v38 = vstv %s3786_s30  ;;  %s3787_s30 = sld [smem:[#allocation9 + $0xd]] }
 0x1b1   : > { %v971_v40 = vmul.f32 %v970_v38, %v4930_v1  ;;  %v796_v55 = vadd.f32 %v795_v48, %v794_v16 }
 0x1b2   : > { %s697_s26 = sadd.f32 1e-05, %s694_s22  ;;  %v986_v46 = vstv %s3790_s16 }
 0x1b3   : > { %v972_v42 = vadd.f32 %v971_v40, %v965_v39  ;;  %v987_v50 = vmul.f32 %v986_v46, %v4936_v4  ;;  %v797_v60 = vrot.slane %v796_v55, 1  ;;  %v1031_v39 = vstv %s3793_s19  ;;  %s3803_s19 = sld [smem:[#allocation7 + $0x4]] }
 0x1b4   : > { %v698_v3 = vstv %s697_s26 }
 0x1b5   : > { %4393 = vrsqrt.f32 %v698_v3  ;;  %v980_v49 = vadd.f32 %v979_v43, %v972_v42  ;;  %v798_v3 = vadd.f32 %v797_v60, %v796_v55 }
 0x1b6   : > { %v974_v23 = vstv %s3787_s30  ;;  %s3797_s30 = sld [smem:[#allocation5 + $0x11]] }
 0x1b7   : > { %v988_v51 = vadd.f32 %v987_v50, %v980_v49  ;;  %v975_v27 = vmul.f32 %v974_v23, %v4956_v19 }
 0x1b9   : > { %v5038_v56 = vadd.f32 %v994_v54, %v988_v51  ;;  %v901_v54 = vpop.xlane.xlu1 %900  ;;  %v1103_v23 = vstv %s3803_s19 }
 0x1ba   : > { %v902_v60 = vrot.slane %v901_v54, 4 }
 0x1bb   : > { %v996_v57 = vsel %vm669_vm0, %v5038_v56, 0.0  ;;  %v1007_v58 = vmul.f32 %v5038_v56, %v5038_v56 }
 0x1bc   : > { %997 = vadd.xlane.f32.xlu0 %v996_v57 }
 0x1bd   : > { %v1008_v61 = vsel %vm669_vm0, %v1007_v58, 0.0  ;;  %v890_v58 = vrot.slane %v889_v53, 4 }
 0x1be   : > { %1009 = vadd.xlane.f32.xlu1 %v1008_v61 }
 0x1bf   : > { %v4394_v24 = vpop.eup %4393  ;;  %v891_v61 = vadd.f32 %v890_v58, %v889_v53 }
 0x1c0   : > { %4150 = vpush %v4394_v24 }
 0x1c1   : > { %4152 = vpush %v715_v25  ;;  %v831_v25 = vadd.f32 %v830_v14, %v829_v7 }
 0x1c2   : > { %4154 = vpush %v727_v26 }
 0x1c3   : > { %v832_v34 = vrot.slane %v831_v25, 2 }
 0x1c5   : > { %v833_v40 = vadd.f32 %v832_v34, %v831_v25 }
 0x1c7   : > { %v834_v46 = vrot.slane %v833_v40, 1 }
 0x1c9   : > { %v835_v50 = vadd.f32 %v834_v46, %v833_v40 }
 0x1f1   : > { %s4151_s20 = spop %4150 }
 0x1f2   : > { %v701_v31 = vstv %s4151_s20  ;;  %s4153_s23 = spop %4152 }
 0x1f3   : > { %v5028_v33 = vmul.f32 %v701_v31, %v696_v30  ;;  %s5030_s29 = smul.f32 0.001953125, %s4153_s23  ;;  %s4155_s24 = spop %4154  ;;  %v983_v30 = vmul.f32 %v982_v28, %v4961_v21  ;;  %v820_v31 = vrot.slane %v819_v20, 2 }
 0x1f4   : > { %s729_s27 = smul.f32 0.001953125, %s4155_s24 }
 0x1f5   : > { %s730_s28 = smul.f32 %s5030_s29, %s5030_s29  ;;  %v732_v5 = vstv %s5030_s29  ;;  %v703_v15 = vmax.f32 %v5028_v33, 0.0  ;;  %v821_v16 = vadd.f32 %v820_v31, %v819_v20 }
 0x1f6   : > { %v733_v9 = vsub.f32 %v4975_v45, %v732_v5  ;;  %v967_v45 = vstv %s3785_s21  ;;  %s3795_s21 = sld [smem:[#allocation5 + $0x10]] }
 0x1f7   : > { %s731_s22 = ssub.f32 %s729_s27, %s730_s28  ;;  %s3791_s28 = sld [smem:[#allocation9 + $0xf]]  ;;  %v968_v26 = vmul.f32 %v967_v45, %v4953_v18  ;;  %v822_v44 = vrot.slane %v821_v16, 1 }
 0x1f9   : > { %s734_s26 = sadd.f32 1e-05, %s731_s22  ;;  %v976_v29 = vadd.f32 %v975_v27, %v968_v26  ;;  %v823_v49 = vadd.f32 %v822_v44, %v821_v16 }
 0x1fb   : > { %v735_v47 = vstv %s734_s26  ;;  %v984_v35 = vadd.f32 %v983_v30, %v976_v29 }
 0x1fc   : > { %4395 = vrsqrt.f32 %v735_v47 }
 0x1fd   : > { %v990_v32 = vstv %s3791_s28 }
 0x1fe   : > { %v991_v36 = vmul.f32 %v990_v32, %v4964_v22 }
 0x200   : > { %v992_v38 = vadd.f32 %v991_v36, %v984_v35  ;;  %v926_v36 = vpop.xlane.xlu0 %925 }
 0x202   : > { %v5058_v41 = vadd.f32 %v1031_v39, %v992_v38  ;;  %v938_v38 = vpop.xlane.xlu1 %937  ;;  %v927_v39 = vrot.slane %v926_v36, 4 }
 0x204   : > { %v1033_v42 = vsel %vm669_vm0, %v5058_v41, 0.0  ;;  %v1044_v43 = vmul.f32 %v5058_v41, %v5058_v41 }
 0x205   : > { %1034 = vadd.xlane.f32.xlu0 %v1033_v42  ;;  %v939_v42 = vrot.slane %v938_v38, 4 }
 0x206   : > { %v4396_v62 = vpop.eup %4395  ;;  %v1045_v47 = vsel %vm669_vm0, %v1044_v43, 0.0 }
 0x207   : > { %4156 = vpush %v4396_v62  ;;  %1046 = vadd.xlane.f32.xlu1 %v1045_v47  ;;  %v1073_v62 = vstv %s3795_s21  ;;  %s5084_s21 = sld [smem:[#allocation12]] }
 0x208   : > { %4158 = vpush %v786_v63  ;;  %v1079_v63 = vstv %s3797_s30  ;;  %s5087_s30 = sld [smem:[#allocation12 + $0x1]] }
 0x209   : > { %4160 = vpush %v798_v3  ;;  %v1074_v3 = vmul.f32 %v1073_v62, %v4927_v0  ;;  %v1080_v5 = vmul.f32 %v1079_v63, %v4930_v1 }
 0x20b   : > { %v1081_v7 = vadd.f32 %v1080_v5, %v1074_v3 }
 0x20d   : > { %v743_v44 = vstv %s5084_s21 }
 0x238   : > { %s4157_s20 = spop %4156 }
 0x239   : > { %v738_v10 = vstv %s4157_s20  ;;  %s4159_s23 = spop %4158 }
 0x23a   : > { %v739_v12 = vmul.f32 %v738_v10, %v733_v9  ;;  %s5047_s24 = smul.f32 0.001953125, %s4159_s23  ;;  %s4161_s27 = spop %4160  ;;  %v1088_v9 = vmul.f32 %v1087_v6, %v4933_v2  ;;  %v892_v10 = vrot.slane %v891_v61, 2 }
 0x23b   : > { %s800_s16 = smul.f32 0.001953125, %s4161_s27 }
 0x23c   : > { %v740_v17 = vmax.f32 %v739_v12, 0.0  ;;  %s801_s29 = smul.f32 %s5047_s24, %s5047_s24  ;;  %v803_v51 = vstv %s5047_s24  ;;  %s3801_s24 = sld [smem:[#allocation5 + $0x13]]  ;;  %v893_v45 = vadd.f32 %v892_v10, %v891_v61 }
 0x23d   : > { %v804_v55 = vsub.f32 %v4982_v52, %v803_v51  ;;  %v903_v52 = vadd.f32 %v902_v60, %v901_v54 }
 0x23e   : > { %v5052_v24 = vadd.f32 %v740_v17, %v703_v15  ;;  %s802_s22 = ssub.f32 %s800_s16, %s801_s29  ;;  %v1089_v15 = vadd.f32 %v1088_v9, %v1081_v7  ;;  %v894_v29 = vrot.slane %v893_v45, 1 }
 0x23f   : > { %v904_v14 = vrot.slane %v903_v52, 2 }
 0x240   : > { %s805_s26 = sadd.f32 1e-05, %s802_s22  ;;  %v744_v58 = vmul.f32 %v743_v44, %v5052_v24 }
 0x241   : > { %v905_v25 = vadd.f32 %v904_v14, %v903_v52 }
 0x242   : > { %v806_v33 = vstv %s805_s26  ;;  %v1095_v11 = vstv %s3801_s24 }
 0x243   : > { %4397 = vrsqrt.f32 %v806_v33  ;;  %v1096_v17 = vmul.f32 %v1095_v11, %v4936_v4  ;;  %v906_v30 = vrot.slane %v905_v25, 1  ;;  %v895_v33 = vadd.f32 %v894_v29, %v893_v45 }
 0x245   : > { %v1097_v20 = vadd.f32 %v1096_v17, %v1089_v15  ;;  %v907_v34 = vadd.f32 %v906_v30, %v905_v25 }
 0x247   : > { %v5077_v26 = vadd.f32 %v1103_v23, %v1097_v20 }
 0x249   : > { %v1105_v27 = vsel %vm669_vm0, %v5077_v26, 0.0  ;;  %v1116_v28 = vmul.f32 %v5077_v26, %v5077_v26  ;;  %v998_v29 = vpop.xlane.xlu0 %997 }
 0x24a   : > { %1106 = vadd.xlane.f32.xlu0 %v1105_v27 }
 0x24b   : > { %v1117_v31 = vsel %vm669_vm0, %v1116_v28, 0.0  ;;  %v1010_v30 = vpop.xlane.xlu1 %1009 }
 0x24c   : > { %1118 = vadd.xlane.f32.xlu1 %v1117_v31 }
 0x24d   : > { %v4398_v48 = vpop.eup %4397 }
 0x24e   : > { %4162 = vpush %v4398_v48  ;;  %v851_v48 = vstv %s5087_s30  ;;  %s3806_s30 = sld [smem:[#allocation5 + $0x14]] }
 0x24f   : > { %4164 = vpush %v823_v49  ;;  %v940_v49 = vadd.f32 %v939_v42, %v938_v38 }
 0x250   : > { %4166 = vpush %v835_v50 }
 0x251   : > { %v941_v63 = vrot.slane %v940_v49, 2 }
 0x253   : > { %v942_v24 = vadd.f32 %v941_v63, %v940_v49 }
 0x254   : > { %v1182_v38 = vstv %s3806_s30  ;;  %s5131_s30 = sld [smem:[#allocation12 + $0x2]] }
 0x255   : > { %v943_v20 = vrot.slane %v942_v24, 1 }
 0x257   : > { %v944_v27 = vadd.f32 %v943_v20, %v942_v24 }
 0x27f   : > { %s4163_s20 = spop %4162 }
 0x280   : > { %v809_v57 = vstv %s4163_s20  ;;  %s4165_s23 = spop %4164  ;;  %s3796_s20 = sld [smem:[#allocation9 + $0x10]] }
 0x281   : > { %v5067_v59 = vmul.f32 %v809_v57, %v804_v55  ;;  %s5069_s27 = smul.f32 0.001953125, %s4165_s23  ;;  %s4167_s16 = spop %4166 }
 0x282   : > { %s837_s28 = smul.f32 0.001953125, %s4167_s16  ;;  %s3798_s23 = sld [smem:[#allocation9 + $0x11]] }
 0x283   : > { %s838_s29 = smul.f32 %s5069_s27, %s5069_s27  ;;  %v840_v35 = vstv %s5069_s27  ;;  %v811_v46 = vmax.f32 %v5067_v59, 0.0 }
 0x284   : > { %v841_v16 = vsub.f32 %v4993_v8, %v840_v35  ;;  %v928_v8 = vadd.f32 %v927_v39, %v926_v36  ;;  %v1011_v35 = vrot.slane %v1010_v30, 4  ;;  %v1183_v39 = vmul.f32 %v1182_v38, %v4927_v0 }
 0x285   : > { %s839_s22 = ssub.f32 %s837_s28, %s838_s29  ;;  %s3800_s28 = sld [smem:[#allocation9 + $0x12]] }
 0x286   : > { %v1076_v50 = vstv %s3796_s20  ;;  %v929_v62 = vrot.slane %v928_v8, 2  ;;  %s3808_s20 = sld [smem:[#allocation5 + $0x15]] }
 0x287   : > { %s842_s26 = sadd.f32 1e-05, %s839_s22  ;;  %s3802_s22 = sld [smem:[#allocation9 + $0x13]]  ;;  %v1077_v54 = vmul.f32 %v1076_v50, %v4953_v18 }
 0x288   : > { %v1083_v51 = vstv %s3798_s23  ;;  %v930_v10 = vadd.f32 %v929_v62, %v928_v8 }
 0x289   : > { %v843_v12 = vstv %s842_s26  ;;  %v1084_v55 = vmul.f32 %v1083_v51, %v4956_v19 }
 0x28a   : > { %4399 = vrsqrt.f32 %v843_v12  ;;  %v931_v17 = vrot.slane %v930_v10, 1 }
 0x28b   : > { %v1091_v57 = vstv %s3800_s28  ;;  %v1085_v59 = vadd.f32 %v1084_v55, %v1077_v54  ;;  %s3810_s28 = sld [smem:[#allocation5 + $0x16]] }
 0x28c   : > { %v1092_v61 = vmul.f32 %v1091_v57, %v4961_v21  ;;  %v932_v25 = vadd.f32 %v931_v17, %v930_v10 }
 0x28d   : > { %v1099_v52 = vstv %s3802_s22 }
 0x28e   : > { %v1093_v6 = vadd.f32 %v1092_v61, %v1085_v59  ;;  %v1100_v7 = vmul.f32 %v1099_v52, %v4964_v22 }
 0x290   : > { %v1101_v9 = vadd.f32 %v1100_v7, %v1093_v6 }
 0x291   : > { %v1196_v42 = vstv %s3810_s28 }
 0x292   : > { %v1197_v44 = vmul.f32 %v1196_v42, %v4933_v2  ;;  %v1035_v63 = vpop.xlane.xlu0 %1034 }
 0x293   : > { %v1036_v6 = vrot.slane %v1035_v63, 4 }
 0x294   : > { %v4400_v32 = vpop.eup %4399  ;;  %v1047_v52 = vpop.xlane.xlu1 %1046 }
 0x295   : > { %4168 = vpush %v4400_v32 }
 0x296   : > { %4170 = vpush %v895_v33  ;;  %v999_v33 = vrot.slane %v998_v29, 4 }
 0x297   : > { %4172 = vpush %v907_v34 }
 0x298   : > { %v1000_v36 = vadd.f32 %v999_v33, %v998_v29 }
 0x2c6   : > { %s4169_s18 = spop %4168 }
 0x2c7   : > { %v846_v40 = vstv %s4169_s18  ;;  %s4171_s16 = spop %4170  ;;  %s3804_s18 = sld [smem:[#allocation10 + $0x4]] }
 0x2c8   : > { %v847_v43 = vmul.f32 %v846_v40, %v841_v16  ;;  %s5090_s24 = smul.f32 0.001953125, %s4171_s16  ;;  %s4173_s27 = spop %4172  ;;  %v1188_v16 = vstv %s3808_s20 }
 0x2c9   : > { %s909_s29 = smul.f32 0.001953125, %s4173_s27  ;;  %v1189_v40 = vmul.f32 %v1188_v16, %v4930_v1  ;;  %s3807_s20 = sld [smem:[#allocation9 + $0x14]] }
 0x2ca   : > { %v848_v47 = vmax.f32 %v847_v43, 0.0  ;;  %s910_s19 = smul.f32 %s5090_s24, %s5090_s24  ;;  %v912_v28 = vstv %s5090_s24  ;;  %s3812_s24 = sld [smem:[#allocation5 + $0x17]] }
 0x2cb   : > { %v913_v31 = vsub.f32 %v5004_v37, %v912_v28  ;;  %v1012_v37 = vadd.f32 %v1011_v35, %v1010_v30  ;;  %v1190_v43 = vadd.f32 %v1189_v40, %v1183_v39 }
 0x2cc   : > { %v850_v53 = vadd.f32 %v848_v47, %v811_v46  ;;  %s911_s26 = ssub.f32 %s909_s29, %s910_s19  ;;  %v1001_v46 = vrot.slane %v1000_v36, 2 }
 0x2cd   : > { %v1140_v11 = vstv %s3804_s18  ;;  %s3814_s18 = sld [smem:[#allocation7 + $0x5]]  ;;  %v1198_v49 = vadd.f32 %v1197_v44, %v1190_v43 }
 0x2ce   : > { %v852_v60 = vmul.f32 %v851_v48, %v850_v53  ;;  %s914_s21 = sadd.f32 1e-05, %s911_s26  ;;  %v5104_v12 = vadd.f32 %v1140_v11, %v1101_v9  ;;  %v1013_v48 = vrot.slane %v1012_v37, 2  ;;  %v1002_v53 = vadd.f32 %v1001_v46, %v1000_v36 }
 0x2cf   : > { %v1048_v9 = vrot.slane %v1047_v52, 4  ;;  %v1185_v17 = vstv %s3807_s20  ;;  %s3819_s20 = sld [smem:[#allocation5 + $0x19]] }
 0x2d0   : > { %v5101_v3 = vadd.f32 %v852_v60, %v744_v58  ;;  %v915_v5 = vstv %s914_s21  ;;  %v1142_v14 = vsel %vm669_vm0, %v5104_v12, 0.0  ;;  %v1153_v15 = vmul.f32 %v5104_v12, %v5104_v12 }
 0x2d1   : > { %4401 = vrsqrt.f32 %v915_v5  ;;  %1143 = vadd.xlane.f32.xlu0 %v1142_v14  ;;  %v1204_v47 = vstv %s3812_s24  ;;  %v1014_v0 = vadd.f32 %v1013_v48, %v1012_v37  ;;  %v1003_v57 = vrot.slane %v1002_v53, 1 }
 0x2d2   : > { %v1154_v45 = vsel %vm669_vm0, %v1153_v15, 0.0  ;;  %v1205_v50 = vmul.f32 %v1204_v47, %v4936_v4  ;;  %v960_v14 = vstv %s5131_s30  ;;  %v1049_v15 = vadd.f32 %v1048_v9, %v1047_v52  ;;  %s3817_s30 = sld [smem:[#allocation5 + $0x18]] }
 0x2d3   : > { %1155 = vadd.xlane.f32.xlu1 %v1154_v45  ;;  %v1212_v54 = vstv %s3814_s18  ;;  %v1015_v58 = vrot.slane %v1014_v0, 1  ;;  %v1004_v59 = vadd.f32 %v1003_v57, %v1002_v53  ;;  %v5163_v57 = vld [vmem:[%s4924_s25] sm:$0xff] }
 0x2d4   : > { %v1206_v51 = vadd.f32 %v1205_v50, %v1198_v49 }
 0x2d5   : > { %v1016_v61 = vadd.f32 %v1015_v58, %v1014_v0 }
 0x2d6   : > { %v5123_v1 = vadd.f32 %v1212_v54, %v1206_v51 }
 0x2d8   : > { %v1214_v55 = vsel %vm669_vm0, %v5123_v1, 0.0  ;;  %v1225_v2 = vmul.f32 %v5123_v1, %v5123_v1  ;;  %v1291_v0 = vstv %s3817_s30  ;;  %s5186_s30 = sld [smem:[#allocation12 + $0x3]] }
 0x2d9   : > { %1215 = vadd.xlane.f32.xlu0 %v1214_v55  ;;  %v1119_v48 = vpop.xlane.xlu1 %1118  ;;  %v1297_v55 = vstv %s3819_s20  ;;  %v1292_v58 = vmul.f32 %v5163_v57, %v1291_v0  ;;  %s3818_s20 = sld [smem:[#allocation9 + $0x18]] }
 0x2da   : > { %v1226_v60 = vsel %vm669_vm0, %v1225_v2, 0.0  ;;  %v1120_v54 = vrot.slane %v1119_v48, 4 }
 0x2db   : > { %v4402_v23 = vpop.eup %4401  ;;  %1227 = vadd.xlane.f32.xlu1 %v1226_v60  ;;  %v5167_v60 = vld [vmem:[%s4924_s25 + $0x8] sm:$0xff] }
 0x2dc   : > { %4174 = vpush %v4402_v23  ;;  %v1186_v23 = vmul.f32 %v1185_v17, %v4953_v18  ;;  %v1121_v2 = vadd.f32 %v1120_v54, %v1119_v48 }
 0x2dd   : > { %4176 = vpush %v932_v25 }
 0x2de   : > { %4178 = vpush %v944_v27 }
 0x30d   : > { %s4175_s23 = spop %4174 }
 0x30e   : > { %v918_v32 = vstv %s4175_s23  ;;  %s4177_s16 = spop %4176  ;;  %s3809_s23 = sld [smem:[#allocation9 + $0x15]] }
 0x30f   : > { %v5113_v34 = vmul.f32 %v918_v32, %v913_v31  ;;  %s5115_s27 = smul.f32 0.001953125, %s4177_s16  ;;  %s4179_s29 = spop %4178  ;;  %v1050_v32 = vrot.slane %v1049_v15, 2 }
 0x310   : > { %s946_s22 = smul.f32 0.001953125, %s4179_s29  ;;  %s3811_s29 = sld [smem:[#allocation9 + $0x16]] }
 0x311   : > { %s947_s19 = smul.f32 %s5115_s27, %s5115_s27  ;;  %v949_v62 = vstv %s5115_s27  ;;  %v920_v11 = vmax.f32 %v5113_v34, 0.0  ;;  %v1051_v37 = vadd.f32 %v1050_v32, %v1049_v15 }
 0x312   : > { %v950_v5 = vsub.f32 %v5019_v13, %v949_v62  ;;  %v1037_v13 = vadd.f32 %v1036_v6, %v1035_v63  ;;  %v5171_v62 = vld [vmem:[%s4924_s25 + $0x10] sm:$0xff] }
 0x313   : > { %s948_s26 = ssub.f32 %s946_s22, %s947_s19  ;;  %s3813_s19 = sld [smem:[#allocation9 + $0x17]]  ;;  %v1052_v42 = vrot.slane %v1051_v37, 1 }
 0x314   : > { %v1192_v20 = vstv %s3809_s23  ;;  %v1038_v31 = vrot.slane %v1037_v13, 2 }
 0x315   : > { %s951_s21 = sadd.f32 1e-05, %s948_s26  ;;  %v1193_v25 = vmul.f32 %v1192_v20, %v4956_v19  ;;  %v1053_v46 = vadd.f32 %v1052_v42, %v1051_v37 }
 0x316   : > { %v1200_v27 = vstv %s3811_s29  ;;  %v1039_v19 = vadd.f32 %v1038_v31, %v1037_v13  ;;  %s3821_s29 = sld [smem:[#allocation5 + $0x1a]] }
 0x317   : > { %v952_v8 = vstv %s951_s21  ;;  %s3815_s21 = sld [smem:[#allocation10 + $0x5]]  ;;  %v1194_v29 = vadd.f32 %v1193_v25, %v1186_v23  ;;  %v1201_v30 = vmul.f32 %v1200_v27, %v4961_v21 }
 0x318   : > { %4403 = vrsqrt.f32 %v952_v8  ;;  %v1107_v8 = vpop.xlane.xlu0 %1106 }
 0x319   : > { %v1208_v33 = vstv %s3813_s19  ;;  %v1202_v36 = vadd.f32 %v1201_v30, %v1194_v29  ;;  %v1108_v51 = vrot.slane %v1107_v8, 4  ;;  %s3823_s19 = sld [smem:[#allocation5 + $0x1b]] }
 0x31a   : > { %v1209_v38 = vmul.f32 %v1208_v33, %v4964_v22 }
 0x31c   : > { %v1210_v18 = vadd.f32 %v1209_v38, %v1202_v36 }
 0x31d   : > { %v1249_v16 = vstv %s3815_s21  ;;  %s3825_s21 = sld [smem:[#allocation7 + $0x6]] }
 0x31e   : > { %v5147_v39 = vadd.f32 %v1249_v16, %v1210_v18 }
 0x320   : > { %v1251_v21 = vsel %vm669_vm0, %v5147_v39, 0.0  ;;  %v1262_v40 = vmul.f32 %v5147_v39, %v5147_v39 }
 0x321   : > { %1252 = vadd.xlane.f32.xlu0 %v1251_v21  ;;  %v1069_v21 = vstv %s5186_s30  ;;  %s3830_s30 = sld [smem:[#allocation5 + $0x1d]] }
 0x322   : > { %v4404_v4 = vpop.eup %4403  ;;  %v1263_v43 = vsel %vm669_vm0, %v1262_v40, 0.0 }
 0x323   : > { %4180 = vpush %v4404_v4  ;;  %1264 = vadd.xlane.f32.xlu1 %v1263_v43  ;;  %v1298_v4 = vmul.f32 %v5167_v60, %v1297_v55 }
 0x324   : > { %4182 = vpush %v1004_v59  ;;  %v1305_v59 = vstv %s3821_s29 }
 0x325   : > { %4184 = vpush %v1016_v61  ;;  %v1299_v61 = vadd.f32 %v1298_v4, %v1292_v58  ;;  %v1306_v63 = vmul.f32 %v5171_v62, %v1305_v59  ;;  %v5211_v58 = vld [vmem:[%s4948_s7 + $0x18] sm:$0xff] }
 0x327   : > { %v1307_v9 = vadd.f32 %v1306_v63, %v1299_v61 }
 0x354   : > { %s4181_s16 = spop %4180 }
 0x355   : > { %v955_v7 = vstv %s4181_s16  ;;  %s4183_s28 = spop %4182 }
 0x356   : > { %v956_v10 = vmul.f32 %v955_v7, %v950_v5  ;;  %s5134_s22 = smul.f32 0.001953125, %s4183_s28  ;;  %s4185_s27 = spop %4184  ;;  %v1313_v5 = vstv %s3823_s19  ;;  %v1122_v7 = vrot.slane %v1121_v2, 2 }
 0x357   : > { %s1018_s24 = smul.f32 0.001953125, %s4185_s27 }
 0x358   : > { %v957_v24 = vmax.f32 %v956_v10, 0.0  ;;  %s1019_s26 = smul.f32 %s5134_s22, %s5134_s22  ;;  %v1021_v47 = vstv %s5134_s22  ;;  %v5175_v10 = vld [vmem:[%s4924_s25 + $0x18] sm:$0xff]  ;;  %v1123_v15 = vadd.f32 %v1122_v7, %v1121_v2  ;;  %s5530_s25 = sld [smem:[#allocation19 + $0xab]] }
 0x359   : > { %v1022_v49 = vsub.f32 %v5038_v56, %v1021_v47  ;;  %v1109_v56 = vadd.f32 %v1108_v51, %v1107_v8 }
 0x35a   : > { %v959_v45 = vadd.f32 %v957_v24, %v920_v11  ;;  %s1020_s18 = ssub.f32 %s1018_s24, %s1019_s26  ;;  %v1314_v11 = vmul.f32 %v5175_v10, %v1313_v5  ;;  %v1124_v25 = vrot.slane %v1123_v15, 1 }
 0x35b   : > { %v1110_v52 = vrot.slane %v1109_v56, 2 }
 0x35c   : > { %v961_v28 = vmul.f32 %v960_v14, %v959_v45  ;;  %s1023_s16 = sadd.f32 1e-05, %s1020_s18  ;;  %v1315_v24 = vadd.f32 %v1314_v11, %v1307_v9  ;;  %v1321_v14 = vstv %s3825_s21  ;;  %v1125_v30 = vadd.f32 %v1124_v25, %v1123_v15 }
 0x35d   : > { %v1111_v13 = vadd.f32 %v1110_v52, %v1109_v56 }
 0x35e   : > { %v5144_v34 = vadd.f32 %v961_v28, %v5101_v3  ;;  %v1024_v35 = vstv %s1023_s16  ;;  %v1040_v3 = vrot.slane %v1039_v19, 1  ;;  %v5178_v17 = vadd.f32 %v1321_v14, %v1315_v24  ;;  %v1144_v32 = vpop.xlane.xlu0 %1143  ;;  %7807 = sst [smem:[#allocation53_spill]] %s5530_s25  ;;  %s5548_s25 = sld [smem:[#allocation19 + $0x51]] }
 0x35f   : > { %4405 = vrsqrt.f32 %v1024_v35  ;;  %v1112_v23 = vrot.slane %v1111_v13, 1  ;;  %v1145_v36 = vrot.slane %v1144_v32, 4 }
 0x360   : > { %v1041_v44 = vadd.f32 %v1040_v3, %v1039_v19  ;;  %v1323_v20 = vsel %vm669_vm0, %v5178_v17, 0.0  ;;  %v1334_v45 = vmul.f32 %v5178_v17, %v5178_v17  ;;  %v1156_v33 = vpop.xlane.xlu1 %1155  ;;  %v1294_v3 = vstv %s3818_s20 }
 0x361   : > { %1324 = vadd.xlane.f32.xlu0 %v1323_v20  ;;  %v1113_v29 = vadd.f32 %v1112_v23, %v1111_v13  ;;  %v1157_v18 = vrot.slane %v1156_v33, 4 }
 0x362   : > { %v1335_v27 = vsel %vm669_vm0, %v1334_v45, 0.0 }
 0x363   : > { %1336 = vadd.xlane.f32.xlu1 %v1335_v27  ;;  %v1158_v40 = vadd.f32 %v1157_v18, %v1156_v33 }
 0x364   : > { %7815 = sst [smem:[#allocation59_spill]] %s5548_s25  ;;  %s5563_s25 = sld [smem:[#allocation19 + $0xe6]] }
 0x365   : > { %v1159_v54 = vrot.slane %v1158_v40, 2 }
 0x366   : > { %v1216_v20 = vpop.xlane.xlu0 %1215 }
 0x367   : > { %v1160_v52 = vadd.f32 %v1159_v54, %v1158_v40  ;;  %v1217_v27 = vrot.slane %v1216_v20, 4 }
 0x368   : > { %v1228_v45 = vpop.xlane.xlu1 %1227 }
 0x369   : > { %v4406_v22 = vpop.eup %4405  ;;  %v1161_v9 = vrot.slane %v1160_v52, 1 }
 0x36a   : > { %4186 = vpush %v4406_v22  ;;  %v5196_v22 = vld [vmem:[%s4948_s7] sm:$0xff]  ;;  %7820 = sst [smem:[#allocation64_spill]] %s5563_s25  ;;  %s7826_s25 = smov 116  }
 0x36b   : > { %4188 = vpush %v1041_v44  ;;  %v1295_v44 = vmul.f32 %v5196_v22, %v1294_v3  ;;  %v1162_v14 = vadd.f32 %v1161_v9, %v1160_v52 }
 0x36c   : > { %4190 = vpush %v1053_v46  ;;  %v5200_v46 = vld [vmem:[%s4948_s7 + $0x8] sm:$0xff] }
 0x39b   : > { %s4187_s23 = spop %4186 }
 0x39c   : > { %v1027_v50 = vstv %s4187_s23  ;;  %s4189_s28 = spop %4188  ;;  %s3820_s23 = sld [smem:[#allocation9 + $0x19]] }
 0x39d   : > { %v5156_v53 = vmul.f32 %v1027_v50, %v1022_v49  ;;  %s5158_s27 = smul.f32 0.001953125, %s4189_s28  ;;  %s4191_s24 = spop %4190  ;;  %v5204_v50 = vld [vmem:[%s4948_s7 + $0x10] sm:$0xff] }
 0x39e   : > { %s1055_s22 = smul.f32 0.001953125, %s4191_s24  ;;  %s3822_s24 = sld [smem:[#allocation9 + $0x1a]] }
 0x39f   : > { %s1056_s26 = smul.f32 %s5158_s27, %s5158_s27  ;;  %v1058_v31 = vstv %s5158_s27  ;;  %v1029_v16 = vmax.f32 %v5156_v53, 0.0  ;;  %s3828_s7 = sld [smem:[#allocation5 + $0x1c]] }
 0x3a0   : > { %v1059_v35 = vsub.f32 %v5058_v41, %v1058_v31  ;;  %v1146_v41 = vadd.f32 %v1145_v36, %v1144_v32  ;;  %v1406_v32 = vstv %s3830_s30  ;;  %s3831_s30 = sld [smem:[#allocation9 + $0x1d]] }
 0x3a1   : > { %s1057_s18 = ssub.f32 %s1055_s22, %s1056_s26  ;;  %s3824_s26 = sld [smem:[#allocation9 + $0x1b]] }
 0x3a2   : > { %v1301_v42 = vstv %s3820_s23  ;;  %v1147_v53 = vrot.slane %v1146_v41, 2 }
 0x3a3   : > { %s1060_s16 = sadd.f32 1e-05, %s1057_s18  ;;  %v1302_v47 = vmul.f32 %v5200_v46, %v1301_v42 }
 0x3a4   : > { %v1309_v8 = vstv %s3822_s24  ;;  %v1148_v61 = vadd.f32 %v1147_v53, %v1146_v41 }
 0x3a5   : > { %v1061_v6 = vstv %s1060_s16  ;;  %s3826_s16 = sld [smem:[#allocation10 + $0x6]]  ;;  %v1303_v49 = vadd.f32 %v1302_v47, %v1295_v44  ;;  %v1310_v51 = vmul.f32 %v5204_v50, %v1309_v8  ;;  %v1400_v31 = vstv %s3828_s7  ;;  %s3829_s7 = sld [smem:[#allocation9 + $0x1c]] }
 0x3a6   : > { %4407 = vrsqrt.f32 %v1061_v6  ;;  %v1149_v7 = vrot.slane %v1148_v61, 1  ;;  %v1401_v33 = vmul.f32 %v5163_v57, %v1400_v31 }
 0x3a7   : > { %v1317_v56 = vstv %s3824_s26  ;;  %v1311_v2 = vadd.f32 %v1310_v51, %v1303_v49 }
 0x3a8   : > { %v1318_v4 = vmul.f32 %v5211_v58, %v1317_v56  ;;  %v1150_v13 = vadd.f32 %v1149_v7, %v1148_v61 }
 0x3aa   : > { %v1319_v59 = vadd.f32 %v1318_v4, %v1311_v2 }
 0x3ab   : > { %v1358_v63 = vstv %s3826_s16 }
 0x3ac   : > { %v5214_v5 = vadd.f32 %v1358_v63, %v1319_v59 }
 0x3ae   : > { %v1360_v6 = vsel %vm669_vm0, %v5214_v5, 0.0  ;;  %v1253_v4 = vpop.xlane.xlu0 %1252 }
 0x3af   : > { %1361 = vadd.xlane.f32.xlu0 %v1360_v6  ;;  %v1254_v63 = vrot.slane %v1253_v4, 4 }
 0x3b0   : > { %v4408_v28 = vpop.eup %4407  ;;  %v1265_v59 = vpop.xlane.xlu1 %1264 }
 0x3b1   : > { %4192 = vpush %v4408_v28  ;;  %v1266_v6 = vrot.slane %v1265_v59, 4 }
 0x3b2   : > { %4194 = vpush %v1113_v29  ;;  %v1229_v29 = vrot.slane %v1228_v45, 4 }
 0x3b3   : > { %4196 = vpush %v1125_v30  ;;  %v1218_v30 = vadd.f32 %v1217_v27, %v1216_v20 }
 0x3e2   : > { %s4193_s28 = spop %4192 }
 0x3e3   : > { %v1064_v38 = vstv %s4193_s28  ;;  %s4195_s29 = spop %4194 }
 0x3e4   : > { %v1065_v19 = vmul.f32 %v1064_v38, %v1059_v35  ;;  %s5189_s22 = smul.f32 0.001953125, %s4195_s29  ;;  %s4197_s27 = spop %4196  ;;  %v1407_v35 = vmul.f32 %v5167_v60, %v1406_v32 }
 0x3e5   : > { %s1127_s19 = smul.f32 0.001953125, %s4197_s27  ;;  %s3832_s29 = sld [smem:[#allocation5 + $0x1e]] }
 0x3e6   : > { %v1066_v37 = vmax.f32 %v1065_v19, 0.0  ;;  %s1128_s18 = smul.f32 %s5189_s22, %s5189_s22  ;;  %v1130_v15 = vstv %s5189_s22  ;;  %s3834_s22 = sld [smem:[#allocation5 + $0x1f]]  ;;  %v1408_v38 = vadd.f32 %v1407_v35, %v1401_v33  ;;  %v1219_v19 = vrot.slane %v1218_v30, 2 }
 0x3e7   : > { %v1131_v23 = vsub.f32 %v5077_v26, %v1130_v15  ;;  %v1230_v26 = vadd.f32 %v1229_v29, %v1228_v45 }
 0x3e8   : > { %v1068_v43 = vadd.f32 %v1066_v37, %v1029_v16  ;;  %s1129_s21 = ssub.f32 %s1127_s19, %s1128_s18  ;;  %v1220_v42 = vadd.f32 %v1219_v19, %v1218_v30 }
 0x3e9   : > { %v1231_v41 = vrot.slane %v1230_v26, 2 }
 0x3ea   : > { %v1070_v48 = vmul.f32 %v1069_v21, %v1068_v43  ;;  %s1132_s28 = sadd.f32 1e-05, %s1129_s21  ;;  %s3836_s21 = sld [smem:[#allocation7 + $0x7]]  ;;  %v1221_v49 = vrot.slane %v1220_v42, 1 }
 0x3eb   : > { %v1414_v36 = vstv %s3832_s29  ;;  %v1232_v44 = vadd.f32 %v1231_v41, %v1230_v26  ;;  %s3833_s29 = sld [smem:[#allocation9 + $0x1e]] }
 0x3ec   : > { %v5208_v0 = vadd.f32 %v1070_v48, %v5144_v34  ;;  %v1133_v55 = vstv %s1132_s28  ;;  %v1371_v34 = vmul.f32 %v5214_v5, %v5214_v5  ;;  %v1415_v18 = vmul.f32 %v5171_v62, %v1414_v36  ;;  %s5241_s28 = sld [smem:[#allocation12 + $0x4]] }
 0x3ed   : > { %4409 = vrsqrt.f32 %v1133_v55  ;;  %v1422_v16 = vstv %s3834_s22  ;;  %v1233_v51 = vrot.slane %v1232_v44, 1  ;;  %v1222_v56 = vadd.f32 %v1221_v49, %v1220_v42  ;;  %s3835_s22 = sld [smem:[#allocation9 + $0x1f]] }
 0x3ee   : > { %v1372_v11 = vsel %vm669_vm0, %v1371_v34, 0.0  ;;  %v1416_v21 = vadd.f32 %v1415_v18, %v1408_v38  ;;  %v1423_v40 = vmul.f32 %v5175_v10, %v1422_v16 }
 0x3ef   : > { %1373 = vadd.xlane.f32.xlu1 %v1372_v11  ;;  %v1234_v55 = vadd.f32 %v1233_v51, %v1232_v44 }
 0x3f0   : > { %v1424_v3 = vadd.f32 %v1423_v40, %v1416_v21  ;;  %v1430_v43 = vstv %s3836_s21  ;;  %s3837_s21 = sld [smem:[#allocation10 + $0x7]]  ;;  %v1337_v42 = vpop.xlane.xlu1 %1336 }
 0x3f1   : > { %v1338_v49 = vrot.slane %v1337_v42, 4 }
 0x3f2   : > { %v5233_v47 = vadd.f32 %v1430_v43, %v1424_v3  ;;  %v1178_v11 = vstv %s5241_s28  ;;  %v1325_v3 = vpop.xlane.xlu0 %1324 }
 0x3f3   : > { %v1426_v31 = vstv %s3835_s22 }
 0x3f4   : > { %v1432_v8 = vsel %vm669_vm0, %v5233_v47, 0.0  ;;  %v1443_v48 = vmul.f32 %v5233_v47, %v5233_v47  ;;  %v1427_v35 = vmul.f32 %v5211_v58, %v1426_v31 }
 0x3f5   : > { %1433 = vadd.xlane.f32.xlu0 %v1432_v8  ;;  %v1326_v8 = vrot.slane %v1325_v3, 4 }
 0x3f6   : > { %v1444_v53 = vsel %vm669_vm0, %v1443_v48, 0.0  ;;  %v1467_v36 = vstv %s3837_s21 }
 0x3f7   : > { %v4410_v24 = vpop.eup %4409  ;;  %1445 = vadd.xlane.f32.xlu1 %v1444_v53  ;;  %v1327_v51 = vadd.f32 %v1326_v8, %v1325_v3  ;;  %v1339_v53 = vadd.f32 %v1338_v49, %v1337_v42 }
 0x3f8   : > { %4198 = vpush %v4410_v24  ;;  %v1267_v24 = vadd.f32 %v1266_v6, %v1265_v59 }
 0x3f9   : > { %4200 = vpush %v1150_v13  ;;  %v1403_v13 = vstv %s3829_s7 }
 0x3fa   : > { %4202 = vpush %v1162_v14  ;;  %v1410_v14 = vstv %s3831_s30  ;;  %v1404_v20 = vmul.f32 %v5196_v22, %v1403_v13  ;;  %v1268_v30 = vrot.slane %v1267_v24, 2 }
 0x3fb   : > { %v1411_v45 = vmul.f32 %v5200_v46, %v1410_v14 }
 0x3fc   : > { %v1269_v38 = vadd.f32 %v1268_v30, %v1267_v24 }
 0x3fd   : > { %v1412_v27 = vadd.f32 %v1411_v45, %v1404_v20 }
 0x3fe   : > { %v1270_v16 = vrot.slane %v1269_v38, 1 }
 0x400   : > { %v1271_v21 = vadd.f32 %v1270_v16, %v1269_v38 }
 0x429   : > { %s4199_s20 = spop %4198 }
 0x42a   : > { %v1136_v25 = vstv %s4199_s20  ;;  %s4201_s23 = spop %4200 }
 0x42b   : > { %v5223_v28 = vmul.f32 %v1136_v25, %v1131_v23  ;;  %s5225_s24 = smul.f32 0.001953125, %s4201_s23  ;;  %s4203_s27 = spop %4202  ;;  %v1418_v23 = vstv %s3833_s29 }
 0x42c   : > { %s1164_s19 = smul.f32 0.001953125, %s4203_s27 }
 0x42d   : > { %s1165_s26 = smul.f32 %s5225_s24, %s5225_s24  ;;  %v1167_v2 = vstv %s5225_s24  ;;  %v1138_v7 = vmax.f32 %v5223_v28, 0.0  ;;  %v1419_v28 = vmul.f32 %v5204_v50, %v1418_v23 }
 0x42e   : > { %v1168_v61 = vsub.f32 %v5104_v12, %v1167_v2  ;;  %v1255_v12 = vadd.f32 %v1254_v63, %v1253_v4 }
 0x42f   : > { %s1166_s18 = ssub.f32 %s1164_s19, %s1165_s26  ;;  %v1420_v33 = vadd.f32 %v1419_v28, %v1412_v27 }
 0x430   : > { %v1256_v29 = vrot.slane %v1255_v12, 2 }
 0x431   : > { %s1169_s16 = sadd.f32 1e-05, %s1166_s18  ;;  %v1428_v22 = vadd.f32 %v1427_v35, %v1420_v33 }
 0x432   : > { %v1257_v46 = vadd.f32 %v1256_v29, %v1255_v12 }
 0x433   : > { %v1170_v37 = vstv %s1169_s16  ;;  %v5257_v18 = vadd.f32 %v1467_v36, %v1428_v22 }
 0x434   : > { %4411 = vrsqrt.f32 %v1170_v37 }
 0x435   : > { %v1469_v50 = vsel %vm669_vm0, %v5257_v18, 0.0  ;;  %v1480_v19 = vmul.f32 %v5257_v18, %v5257_v18 }
 0x436   : > { %1470 = vadd.xlane.f32.xlu0 %v1469_v50 }
 0x437   : > { %v1481_v37 = vsel %vm669_vm0, %v1480_v19, 0.0 }
 0x438   : > { %1482 = vadd.xlane.f32.xlu1 %v1481_v37 }
 0x43e   : > { %v4412_v54 = vpop.eup %4411 }
 0x43f   : > { %4204 = vpush %v4412_v54  ;;  %v1328_v54 = vrot.slane %v1327_v51, 2 }
 0x440   : > { %4206 = vpush %v1222_v56 }
 0x441   : > { %4208 = vpush %v1234_v55  ;;  %v1340_v55 = vrot.slane %v1339_v53, 2  ;;  %v1329_v2 = vadd.f32 %v1328_v54, %v1327_v51 }
 0x443   : > { %v1330_v4 = vrot.slane %v1329_v2, 1 }
 0x445   : > { %v1331_v63 = vadd.f32 %v1330_v4, %v1329_v2 }
 0x470   : > { %s4205_s20 = spop %4204 }
 0x471   : > { %v1173_v52 = vstv %s4205_s20  ;;  %s4207_s23 = spop %4206 }
 0x472   : > { %v1174_v34 = vmul.f32 %v1173_v52, %v1168_v61  ;;  %s5244_s27 = smul.f32 0.001953125, %s4207_s23  ;;  %s4209_s24 = spop %4208 }
 0x473   : > { %s1236_s19 = smul.f32 0.001953125, %s4209_s24 }
 0x474   : > { %v1175_v9 = vmax.f32 %v1174_v34, 0.0  ;;  %s1237_s26 = smul.f32 %s5244_s27, %s5244_s27  ;;  %v1239_v40 = vstv %s5244_s27  ;;  %s3816_s27 = sld [smem:[#allocation12 + $0x5]]  ;;  %v1362_v34 = vpop.xlane.xlu0 %1361 }
 0x475   : > { %v1240_v43 = vsub.f32 %v5123_v1, %v1239_v40  ;;  %v1341_v1 = vadd.f32 %v1340_v55, %v1339_v53 }
 0x476   : > { %v1177_v15 = vadd.f32 %v1175_v9, %v1138_v7  ;;  %s1238_s18 = ssub.f32 %s1236_s19, %s1237_s26 }
 0x477   : > { %v1342_v59 = vrot.slane %v1341_v1, 1 }
 0x478   : > { %v1179_v25 = vmul.f32 %v1178_v11, %v1177_v15  ;;  %s1241_s16 = sadd.f32 1e-05, %s1238_s18  ;;  %v1363_v11 = vrot.slane %v1362_v34, 4 }
 0x479   : > { %v1343_v52 = vadd.f32 %v1342_v59, %v1341_v1 }
 0x47a   : > { %v5254_v32 = vadd.f32 %v1179_v25, %v5208_v0  ;;  %v1242_v26 = vstv %s1241_s16  ;;  %v1258_v0 = vrot.slane %v1257_v46, 1  ;;  %v1287_v20 = vstv %s3816_s27 }
 0x47b   : > { %4413 = vrsqrt.f32 %v1242_v26  ;;  %v1364_v45 = vadd.f32 %v1363_v11, %v1362_v34 }
 0x47c   : > { %v1259_v41 = vadd.f32 %v1258_v0, %v1257_v46  ;;  %v1374_v7 = vpop.xlane.xlu1 %1373 }
 0x47d   : > { %v1375_v13 = vrot.slane %v1374_v7, 4  ;;  %v1365_v27 = vrot.slane %v1364_v45, 2 }
 0x47f   : > { %v1366_v31 = vadd.f32 %v1365_v27, %v1364_v45 }
 0x481   : > { %v1367_v33 = vrot.slane %v1366_v31, 1 }
 0x482   : > { %v1434_v50 = vpop.xlane.xlu0 %1433 }
 0x483   : > { %v1368_v46 = vadd.f32 %v1367_v33, %v1366_v31  ;;  %v1435_v16 = vrot.slane %v1434_v50, 4 }
 0x484   : > { %v1446_v19 = vpop.xlane.xlu1 %1445 }
 0x485   : > { %v4414_v58 = vpop.eup %4413 }
 0x486   : > { %4210 = vpush %v4414_v58  ;;  %v1447_v58 = vrot.slane %v1446_v19, 4 }
 0x487   : > { %4212 = vpush %v1259_v41  ;;  %v1436_v41 = vadd.f32 %v1435_v16, %v1434_v50 }
 0x488   : > { %4214 = vpush %v1271_v21  ;;  %v1448_v21 = vadd.f32 %v1447_v58, %v1446_v19 }
 0x489   : > { %v1437_v40 = vrot.slane %v1436_v41, 2 }
 0x48a   : > { %v1449_v42 = vrot.slane %v1448_v21, 2 }
 0x4b7   : > { %s4211_s28 = spop %4210 }
 0x4b8   : > { %v1245_v44 = vstv %s4211_s28  ;;  %s4213_s7 = spop %4212 }
 0x4b9   : > { %v1246_v48 = vmul.f32 %v1245_v44, %v1240_v43  ;;  %s1261_s30 = smul.f32 0.001953125, %s4213_s7  ;;  %s4215_s20 = spop %4214  ;;  %v1438_v43 = vadd.f32 %v1437_v40, %v1436_v41 }
 0x4ba   : > { %s1273_s23 = smul.f32 0.001953125, %s4215_s20 }
 0x4bb   : > { %s1274_s29 = smul.f32 %s1261_s30, %s1261_s30  ;;  %v1276_v6 = vstv %s1261_s30  ;;  %v1247_v14 = vmax.f32 %v1246_v48, 0.0  ;;  %v1439_v44 = vrot.slane %v1438_v43, 1 }
 0x4bc   : > { %v1277_v9 = vsub.f32 %v5147_v39, %v1276_v6  ;;  %v1376_v39 = vadd.f32 %v1375_v13, %v1374_v7 }
 0x4bd   : > { %s1275_s24 = ssub.f32 %s1273_s23, %s1274_s29  ;;  %v1440_v49 = vadd.f32 %v1439_v44, %v1438_v43 }
 0x4be   : > { %v1377_v30 = vrot.slane %v1376_v39, 2 }
 0x4bf   : > { %s1278_s19 = sadd.f32 1e-05, %s1275_s24 }
 0x4c0   : > { %v1378_v26 = vadd.f32 %v1377_v30, %v1376_v39 }
 0x4c1   : > { %v1279_v56 = vstv %s1278_s19 }
 0x4c2   : > { %4415 = vrsqrt.f32 %v1279_v56  ;;  %v1379_v35 = vrot.slane %v1378_v26, 1 }
 0x4c3   : > { %v1471_v54 = vpop.xlane.xlu0 %1470 }
 0x4c4   : > { %v1380_v36 = vadd.f32 %v1379_v35, %v1378_v26  ;;  %v1472_v1 = vrot.slane %v1471_v54, 4 }
 0x4c5   : > { %v1483_v56 = vpop.xlane.xlu1 %1482 }
 0x4c6   : > { %v1484_v59 = vrot.slane %v1483_v56, 4  ;;  %v1473_v6 = vadd.f32 %v1472_v1, %v1471_v54  ;;  %v4655_v54 = vmov 0.0  }
 0x4c7   : > { %1569 = vst.msk [vmem:[#allocation2] sm:$0xff] %vm1568_vm1, %v4655_v54  ;;  %1570 = vst.msk [vmem:[#allocation2 + $0x8] sm:$0xff] %vm1568_vm1, %v4655_v54 }
 0x4c8   : > { %v1485_v7 = vadd.f32 %v1484_v59, %v1483_v56  ;;  %1571 = vst.msk [vmem:[#allocation2 + $0x10] sm:$0xff] %vm1568_vm1, %v4655_v54 }
 0x4cc   : > { %v4416_v61 = vpop.eup %4415 }
 0x4cd   : > { %4216 = vpush %v4416_v61 }
 0x4ce   : > { %4218 = vpush %v1331_v63 }
 0x4cf   : > { %4220 = vpush %v1343_v52 }
 0x4fe   : > { %s4217_s22 = spop %4216 }
 0x4ff   : > { %v1282_v12 = vstv %s4217_s22  ;;  %s4219_s26 = spop %4218 }
 0x500   : > { %v1283_v24 = vmul.f32 %v1282_v12, %v1277_v9  ;;  %s5267_s18 = smul.f32 0.001953125, %s4219_s26  ;;  %s4221_s21 = spop %4220 }
 0x501   : > { %s1345_s16 = smul.f32 0.001953125, %s4221_s21 }
 0x502   : > { %v1284_v15 = vmax.f32 %v1283_v24, 0.0  ;;  %s1346_s28 = smul.f32 %s5267_s18, %s5267_s18  ;;  %v1348_v38 = vstv %s5267_s18  ;;  %s3827_s18 = sld [smem:[#allocation12 + $0x6]]  ;;  %v1486_v24 = vrot.slane %v1485_v7, 2 }
 0x503   : > { %v1349_v0 = vsub.f32 %v5178_v17, %v1348_v38  ;;  %v1450_v17 = vadd.f32 %v1449_v42, %v1448_v21 }
 0x504   : > { %v1286_v23 = vadd.f32 %v1284_v15, %v1247_v14  ;;  %s1347_s7 = ssub.f32 %s1345_s16, %s1346_s28  ;;  %v1487_v14 = vadd.f32 %v1486_v24, %v1485_v7 }
 0x505   : > { %v1451_v8 = vrot.slane %v1450_v17, 1 }
 0x506   : > { %v1288_v25 = vmul.f32 %v1287_v20, %v1286_v23  ;;  %s1350_s30 = sadd.f32 1e-05, %s1347_s7  ;;  %v1488_v20 = vrot.slane %v1487_v14, 1 }
 0x507   : > { %v1452_v51 = vadd.f32 %v1451_v8, %v1450_v17 }
 0x508   : > { %v5272_v28 = vadd.f32 %v1288_v25, %v5254_v32  ;;  %v1351_v29 = vstv %s1350_s30  ;;  %v1396_v52 = vstv %s3827_s18  ;;  %v1489_v39 = vadd.f32 %v1488_v20, %v1487_v14 }
 0x509   : > { %4417 = vrsqrt.f32 %v1351_v29 }
 0x513   : > { %v4418_v22 = vpop.eup %4417 }
 0x514   : > { %4222 = vpush %v4418_v22 }
 0x515   : > { %4224 = vpush %v1368_v46 }
 0x516   : > { %4226 = vpush %v1380_v36 }
 0x545   : > { %s4223_s20 = spop %4222 }
 0x546   : > { %v1354_v32 = vstv %s4223_s20  ;;  %s4225_s23 = spop %4224 }
 0x547   : > { %v1355_v37 = vmul.f32 %v1354_v32, %v1349_v0  ;;  %s1370_s29 = smul.f32 0.001953125, %s4225_s23  ;;  %s4227_s24 = spop %4226 }
 0x548   : > { %s1382_s19 = smul.f32 0.001953125, %s4227_s24 }
 0x549   : > { %s1383_s27 = smul.f32 %s1370_s29, %s1370_s29  ;;  %v1385_v53 = vstv %s1370_s29  ;;  %v1356_v61 = vmax.f32 %v1355_v37, 0.0 }
 0x54a   : > { %v1386_v55 = vsub.f32 %v5214_v5, %v1385_v53  ;;  %v1474_v5 = vrot.slane %v1473_v6, 2 }
 0x54b   : > { %s1384_s22 = ssub.f32 %s1382_s19, %s1383_s27 }
 0x54c   : > { %v1475_v13 = vadd.f32 %v1474_v5, %v1473_v6 }
 0x54d   : > { %s1387_s26 = sadd.f32 1e-05, %s1384_s22 }
 0x54e   : > { %v1476_v15 = vrot.slane %v1475_v13, 1 }
 0x54f   : > { %v1388_v3 = vstv %s1387_s26 }
 0x550   : > { %4419 = vrsqrt.f32 %v1388_v3  ;;  %v1477_v23 = vadd.f32 %v1476_v15, %v1475_v13 }
 0x55a   : > { %v4420_v48 = vpop.eup %4419 }
 0x55b   : > { %4228 = vpush %v4420_v48 }
 0x55c   : > { %4230 = vpush %v1440_v49 }
 0x55d   : > { %4232 = vpush %v1452_v51 }
 0x58c   : > { %s4229_s21 = spop %4228 }
 0x58d   : > { %v1391_v2 = vstv %s4229_s21  ;;  %s4231_s16 = spop %4230 }
 0x58e   : > { %v1392_v4 = vmul.f32 %v1391_v2, %v1386_v55  ;;  %s1442_s28 = smul.f32 0.001953125, %s4231_s16  ;;  %s4233_s7 = spop %4232 }
 0x58f   : > { %s1454_s30 = smul.f32 0.001953125, %s4233_s7  ;;  %s3838_s7 = sld [smem:[#allocation12 + $0x7]] }
 0x590   : > { %v1393_v63 = vmax.f32 %v1392_v4, 0.0  ;;  %s1455_s20 = smul.f32 %s1442_s28, %s1442_s28  ;;  %v1457_v25 = vstv %s1442_s28 }
 0x591   : > { %v1458_v27 = vsub.f32 %v5233_v47, %v1457_v25 }
 0x592   : > { %v1395_v34 = vadd.f32 %v1393_v63, %v1356_v61  ;;  %s1456_s23 = ssub.f32 %s1454_s30, %s1455_s20  ;;  %s1508_s30 = sld [smem:[#allocation4]] }
 0x594   : > { %v1397_v9 = vmul.f32 %v1396_v52, %v1395_v34  ;;  %s1459_s29 = sadd.f32 1e-05, %s1456_s23  ;;  %v1556_v34 = vadd.f32 %v5167_v60, %v5163_v57 }
 0x595   : > { %v1505_v36 = vstv %s3838_s7  ;;  %s5290_s7 = sld [smem:[#allocation16 + $0x3]] }
 0x596   : > { %v1398_v12 = vadd.f32 %v1397_v9, %v5272_v28  ;;  %v1460_v11 = vstv %s1459_s29  ;;  %v1559_v7 = vadd.f32 %v5171_v62, %v1556_v34 }
 0x597   : > { %4421 = vrsqrt.f32 %v1460_v11 }
 0x598   : > { %v1509_v19 = vstv %s1508_s30  ;;  %s5294_s30 = sld [smem:[#allocation16 + $0x9]]  ;;  %v1562_v9 = vadd.f32 %v5175_v10, %v1559_v7 }
 0x59b   : > { %v3345_v13 = vstv %s5290_s7  ;;  %s4661_s7 = smov 111  }
 0x5a1   : > { %v4422_v45 = vpop.eup %4421 }
 0x5a2   : > { %4234 = vpush %v4422_v45  ;;  %v3391_v45 = vstv %s5294_s30  ;;  %s4663_s30 = smov 95  }
 0x5a3   : > { %4236 = vpush %v1477_v23 }
 0x5a4   : > { %4238 = vpush %v1489_v39 }
 0x5d3   : > { %s4235_s24 = spop %4234 }
 0x5d4   : > { %v1463_v29 = vstv %s4235_s24  ;;  %s4237_s19 = spop %4236 }
 0x5d5   : > { %v1464_v28 = vmul.f32 %v1463_v29, %v1458_v27  ;;  %s1479_s27 = smul.f32 0.001953125, %s4237_s19  ;;  %s4239_s22 = spop %4238 }
 0x5d6   : > { %s1491_s26 = smul.f32 0.001953125, %s4239_s22 }
 0x5d7   : > { %s1492_s18 = smul.f32 %s1479_s27, %s1479_s27  ;;  %v1494_v26 = vstv %s1479_s27  ;;  %v1465_v22 = vmax.f32 %v1464_v28, 0.0 }
 0x5d8   : > { %v1495_v33 = vsub.f32 %v5257_v18, %v1494_v26 }
 0x5d9   : > { %s1493_s21 = ssub.f32 %s1491_s26, %s1492_s18  ;;  %s5282_s18 = sld [smem:[#allocation16]] }
 0x5db   : > { %s1496_s16 = sadd.f32 1e-05, %s1493_s21  ;;  %s5284_s21 = sld [smem:[#allocation16 + $0x1]] }
 0x5dd   : > { %v1497_v30 = vstv %s1496_s16  ;;  %s5286_s16 = sld [smem:[#allocation16 + $0x2]] }
 0x5de   : > { %4423 = vrsqrt.f32 %v1497_v30 }
 0x5df   : > { %v3334_v5 = vstv %s5282_s18  ;;  %s4656_s18 = smov 18  }
 0x5e1   : > { %v3337_v11 = vstv %s5284_s21  ;;  %s4659_s21 = smov 127  }
 0x5e3   : > { %v3341_v24 = vstv %s5286_s16  ;;  %s4660_s16 = smov 112  }
 0x5e8   : > { %v4424_v31 = vpop.eup %4423 }
 0x5e9   : > { %4240 = vpush %v4424_v31 }
 0x61a   : > { %s4241_s28 = spop %4240 }
 0x61b   : > { %v1500_v47 = vstv %s4241_s28  ;;  %s5292_s28 = sld [smem:[#allocation16 + $0x8]] }
 0x61c   : > { %v1501_v35 = vmul.f32 %v1500_v47, %v1495_v33 }
 0x61e   : > { %v1502_v46 = vmax.f32 %v1501_v35, 0.0 }
 0x620   : > { %v1504_v38 = vadd.f32 %v1502_v46, %v1465_v22 }
 0x621   : > { %v3388_v14 = vstv %s5292_s28  ;;  %s4662_s28 = smov 96  }
 0x622   : > { %v1506_v50 = vmul.f32 %v1505_v36, %v1504_v38 }
 0x624   : > { %v1507_v0 = vadd.f32 %v1506_v50, %v1398_v12  ;;  %v3503_v50 = vstv %s5313_s0  ;;  %s4657_s0 = smov 104  }
 0x626   : > { %v1510_v32 = vadd.f32 %v1509_v19, %v1507_v0 }
 0x628   : > { %v1511_v16 = vsel %vm669_vm0, %v1510_v32, 0.0  ;;  %v1522_v37 = vmul.f32 %v1510_v32, %v1510_v32 }
 0x629   : > { %1512 = vadd.xlane.f32.xlu0 %v1511_v16  ;;  %v3507_v16 = vstv %s5315_s1  ;;  %s4658_s1 = smov 120  }
 0x62a   : > { %v1523_v58 = vsel %vm669_vm0, %v1522_v37, 0.0 }
 0x62b   : > { %1524 = vadd.xlane.f32.xlu1 %v1523_v58 }
 0x6b6   : > { %v1513_v18 = vpop.xlane.xlu0 %1512 }
 0x6b7   : > { %v1514_v41 = vrot.slane %v1513_v18, 4 }
 0x6b8   : > { %v1525_v21 = vpop.xlane.xlu1 %1524 }
 0x6b9   : > { %v1515_v40 = vadd.f32 %v1514_v41, %v1513_v18  ;;  %v1526_v3 = vrot.slane %v1525_v21, 4 }
 0x6bb   : > { %v1516_v42 = vrot.slane %v1515_v40, 2  ;;  %v1527_v43 = vadd.f32 %v1526_v3, %v1525_v21 }
 0x6bd   : > { %v1528_v17 = vrot.slane %v1527_v43, 2  ;;  %v1517_v44 = vadd.f32 %v1516_v42, %v1515_v40 }
 0x6bf   : > { %v1518_v8 = vrot.slane %v1517_v44, 1  ;;  %v1529_v48 = vadd.f32 %v1528_v17, %v1527_v43 }
 0x6c1   : > { %v1519_v49 = vadd.f32 %v1518_v8, %v1517_v44  ;;  %v1530_v51 = vrot.slane %v1529_v48, 1 }
 0x6c3   : > { %4242 = vpush %v1519_v49  ;;  %v1531_v53 = vadd.f32 %v1530_v51, %v1529_v48 }
 0x6c5   : > { %4244 = vpush %v1531_v53 }
 0x6f4   : > { %s4243_s20 = spop %4242 }
 0x6f5   : > { %s1521_s23 = smul.f32 0.001953125, %s4243_s20  ;;  %s5296_s20 = sld [smem:[#allocation16 + $0xa]] }
 0x6f6   : > { %s4245_s29 = spop %4244 }
 0x6f7   : > { %s1534_s24 = smul.f32 %s1521_s23, %s1521_s23  ;;  %v1536_v2 = vstv %s1521_s23  ;;  %s5298_s23 = sld [smem:[#allocation16 + $0xb]] }
 0x6f8   : > { %s1533_s19 = smul.f32 0.001953125, %s4245_s29  ;;  %v1537_v1 = vsub.f32 %v1510_v32, %v1536_v2  ;;  %s5300_s29 = sld [smem:[#allocation16 + $0x10]] }
 0x6fa   : > { %s1535_s27 = ssub.f32 %s1533_s19, %s1534_s24  ;;  %s5302_s24 = sld [smem:[#allocation16 + $0x11]] }
 0x6fb   : > { %s5304_s19 = sld [smem:[#allocation16 + $0x12]]  ;;  %v3395_v23 = vstv %s5296_s20  ;;  %s4664_s20 = smov 119  }
 0x6fc   : > { %s1538_s22 = sadd.f32 1e-05, %s1535_s27  ;;  %s5307_s27 = sld [smem:[#allocation16 + $0x13]] }
 0x6fd   : > { %v3399_v39 = vstv %s5298_s23  ;;  %s7559_s23 = smov 118  }
 0x6fe   : > { %v1539_v56 = vstv %s1538_s22  ;;  %s5309_s22 = sld [smem:[#allocation16 + $0x18]]  ;;  %v3442_v25 = vstv %s5300_s29  ;;  %s4666_s29 = smov 103  }
 0x6ff   : > { %4425 = vrsqrt.f32 %v1539_v56 }
 0x700   : > { %v3445_v27 = vstv %s5302_s24  ;;  %s7557_s24 = smov 102  }
 0x701   : > { %v3449_v29 = vstv %s5304_s19  ;;  %s4668_s19 = smov 126  }
 0x702   : > { %v3453_v47 = vstv %s5307_s27  ;;  %s7561_s27 = smov 125  }
 0x704   : > { %v3496_v35 = vstv %s5309_s22  ;;  %s4670_s22 = smov 110  }
 0x709   : > { %v4426_v55 = vpop.eup %4425 }
 0x70a   : > { %4246 = vpush %v4426_v55 }
 0x73b   : > { %s4247_s26 = spop %4246 }
 0x73c   : > { %v1542_v4 = vstv %s4247_s26  ;;  %s5311_s26 = sld [smem:[#allocation16 + $0x19]] }
 0x73d   : > { %v1543_v59 = vmul.f32 %v1542_v4, %v1537_v1 }
 0x73f   : > { %v1544_v61 = vsub.f32 0.0, %v1543_v59 }
 0x741   : > { %v1545_v63 = vmul.f32 1.442695, %v1544_v61 }
 0x742   : > { %v3499_v22 = vstv %s5311_s26  ;;  %s7563_s26 = smov 109  }
 0x743   : > { %4427 = vpow2.f32 %v1545_v63 }
 0x74d   : > { %v4428_v52 = vpop.eup %4427 }
 0x74e   : > { %v1547_v6 = vadd.f32 1.0, %v4428_v52 }
 0x750   : > { %4429 = vrcp.f32 %v1547_v6 }
 0x75a   : > { %v4430_v12 = vpop.eup %4429 }
 0x75b   : > { %v1550_v15 = vadd.f32 1.0, %v4430_v12  ;;  %v1565_v20 = vadd.f32 2.0, %v4430_v12 }
 0x75d   : > { %v1566_v28 = vmul.f32 %v1565_v20, %v1562_v9  ;;  %v1551_v30 = vmul.f32 %v5163_v57, %v1550_v15  ;;  %v1552_v31 = vmul.f32 %v5167_v60, %v1550_v15  ;;  %v1553_v26 = vmul.f32 %v5171_v62, %v1550_v15 }
 0x75e   : > { %v1554_v33 = vmul.f32 %v5175_v10, %v1550_v15 }
 0x75f   : > { %v1567_v46 = vmul.f32 0.125, %v1566_v28  ;;  %v1555_v36 = vmax.f32 %v1551_v30, %v5163_v57  ;;  %v1557_v38 = vmax.f32 %v1552_v31, %v5167_v60  ;;  %v1560_v19 = vmax.f32 %v1553_v26, %v5171_v62 }
 0x760   : > { %v3335_v0 = vmul.f32 %v3334_v5, %v1551_v30  ;;  %v3338_v32 = vmul.f32 %v3337_v11, %v1552_v31  ;;  %v1563_v58 = vmax.f32 %v1554_v33, %v5175_v10  ;;  %v3389_v18 = vmul.f32 %v3388_v14, %v1551_v30 }
 0x761   : > { %1573 = vrot.lane.b32.xlu0 %v1567_v46, %s4656_s18  ;;  %v1558_v37 = vmax.f32 %v1555_v36, %v1557_v38  ;;  %v3392_v41 = vmul.f32 %v3391_v45, %v1552_v31  ;;  %v3342_v40 = vmul.f32 %v3341_v24, %v1553_v26  ;;  %v3346_v3 = vmul.f32 %v3345_v13, %v1554_v33 }
 0x762   : > { %v3339_v21 = vadd.f32 %v3338_v32, %v3335_v0  ;;  %v3443_v42 = vmul.f32 %v3442_v25, %v1551_v30  ;;  %v3396_v60 = vmul.f32 %v3395_v23, %v1553_v26  ;;  %v3446_v17 = vmul.f32 %v3445_v27, %v1552_v31 }
 0x763   : > { %v1561_v57 = vmax.f32 %v1558_v37, %v1560_v19  ;;  %v3393_v43 = vadd.f32 %v3392_v41, %v3389_v18  ;;  %v3400_v62 = vmul.f32 %v3399_v39, %v1554_v33  ;;  %v3497_v8 = vmul.f32 %v3496_v35, %v1551_v30 }
 0x764   : > { %v3343_v44 = vadd.f32 %v3342_v40, %v3339_v21  ;;  %v3500_v48 = vmul.f32 %v3499_v22, %v1552_v31  ;;  %v3447_v53 = vadd.f32 %v3446_v17, %v3443_v42  ;;  %v3450_v54 = vmul.f32 %v3449_v29, %v1553_v26 }
 0x765   : > { %v1564_v49 = vmax.f32 %v1561_v57, %v1563_v58  ;;  %v3397_v51 = vadd.f32 %v3396_v60, %v3393_v43  ;;  %v3504_v55 = vmul.f32 %v3503_v50, %v1553_v26  ;;  %v3454_v4 = vmul.f32 %v3453_v47, %v1554_v33 }
 0x766   : > { %v5342_v56 = vadd.f32 %v3346_v3, %v3343_v44  ;;  %v3501_v10 = vadd.f32 %v3500_v48, %v3497_v8  ;;  %v3451_v1 = vadd.f32 %v3450_v54, %v3447_v53  ;;  %v3508_v61 = vmul.f32 %v3507_v16, %v1554_v33 }
 0x767   : > { %v5344_v2 = vadd.f32 %v3400_v62, %v3397_v51  ;;  %1579 = vrot.lane.b32.xlu1 %v1564_v49, %s4656_s18  ;;  %s4672_s18 = smov 94  }
 0x768   : > { %7779 = vst [vmem:[#allocation31_spill] sm:$0xff] %v5342_v56  ;;  %v3505_v59 = vadd.f32 %v3504_v55, %v3501_v10  ;;  %v5346_v63 = vadd.f32 %v3454_v4, %v3451_v1 }
 0x769   : > { %7780 = vst [vmem:[#allocation32_spill] sm:$0xff] %v5344_v2 }
 0x76a   : > { %7781 = vst [vmem:[#allocation33_spill] sm:$0xff] %v5346_v63  ;;  %v5348_v52 = vadd.f32 %v3508_v61, %v3505_v59  ;;  %v1751_v61 = vstv %s5496_s3  ;;  %s7879_s3 = sld [smem:[#allocation51_spill]] }
 0x76c   : > { %7782 = vst [vmem:[#allocation34_spill] sm:$0xff] %v5348_v52 }
 0x7d3   : > { %v1574_v6 = vpop.permute.xlu0 %1573 }
 0x7d4   : > { %1577 = vst.msk [vmem:[#allocation2 + $0x2] sm:$0xff] %vm1576_vm2, %v1574_v6  ;;  %v1761_v6 = vstv %s5498_s4  ;;  %s5926_s4 = sld [smem:[#allocation19 + $0x8f]] }
 0x7d9   : > { %v1580_v34 = vpop.permute.xlu1 %1579 }
 0x7da   : > { %1582 = vst.msk [vmem:[#allocation2 + $0xe] sm:$0xff] %vm1576_vm2, %v1580_v34  ;;  %v1678_v34 = vstv %s5504_s6  ;;  %s5850_s6 = sld [smem:[#allocation19 + $0x18]] }
 0x7db   : > { %v5350_v7 = vld [vmem:[#allocation2] sm:$0xff] }
 0x7dc   : > { %1795 = vrot.lane.b32.xlu0 %v5350_v7, %s4657_s0  ;;  %1659 = vrot.lane.b32.xlu1 %v5350_v7, %s4658_s1  ;;  %1600 = vst.msk [vmem:[#allocation3] sm:$0xff] %vm669_vm0, %v5350_v7 }
 0x7e0   : > { %1938 = vrot.lane.b32.xlu0 %v5350_v7, %s4659_s21  ;;  %1727 = vrot.lane.b32.xlu1 %v5350_v7, %s4660_s16  ;;  %7942 = sst [smem:[#allocation139_spill]] %s5850_s6  ;;  %s5938_s6 = sld [smem:[#allocation19 + $0x54]] }
 0x7e1   : > { %v5362_v9 = vld [vmem:[#allocation2 + $0x8] sm:$0xff]  ;;  %v5364_v5 = vld [vmem:[#allocation2 + $0x10] sm:$0xff] }
 0x7e2   : > { %1601 = vst.msk [vmem:[#allocation3 + $0x8] sm:$0xff] %vm669_vm0, %v5362_v9  ;;  %1602 = vst.msk [vmem:[#allocation3 + $0x10] sm:$0xff] %vm669_vm0, %v5364_v5 }
 0x7e3   : > { %v1604_v24 = vld [vmem:[#allocation3] sm:$0xff] }
 0x7e4   : > { %2074 = vrot.lane.b32.xlu0 %v5350_v7, %s4661_s7  ;;  %1863 = vrot.lane.b32.xlu1 %v5350_v7, %s4662_s28 }
 0x7e8   : > { %2210 = vrot.lane.b32.xlu0 %v5350_v7, %s4663_s30  ;;  %2006 = vrot.lane.b32.xlu1 %v5350_v7, %s4664_s20 }
 0x7e9   : > { %v1614_v13 = vld [vmem:[#allocation3 + $0x1] sm:$0xff]  ;;  %v1609_v30 = vld [vmem:[#allocation3 + $0xc] sm:$0xff] }
 0x7ea   : > { %v1624_v14 = vld [vmem:[#allocation3 + $0x2] sm:$0xff]  ;;  %v1619_v31 = vld [vmem:[#allocation3 + $0xd] sm:$0xff] }
 0x7eb   : > { %v5569_v20 = vld [vmem:[#allocation3 + $0x3] sm:$0xff]  ;;  %v1629_v16 = vld [vmem:[#allocation3 + $0xe] sm:$0xff] }
 0x7ec   : > { %2353 = vrot.lane.b32.xlu0 %v5350_v7, %s7559_s23  ;;  %2142 = vrot.lane.b32.xlu1 %v5350_v7, %s4666_s29  ;;  %s7569_s23 = smov 117   ;;  %v5571_v45 = vld [vmem:[#allocation3 + $0x4] sm:$0xff]  ;;  %v1639_v57 = vld [vmem:[#allocation3 + $0xf] sm:$0xff] }
 0x7ed   : > { %v1649_v62 = vld [vmem:[#allocation3 + $0x10] sm:$0xff] }
 0x7f0   : > { %2489 = vrot.lane.b32.xlu0 %v5350_v7, %s7557_s24  ;;  %2285 = vrot.lane.b32.xlu1 %v5350_v7, %s4668_s19  ;;  %s7567_s24 = smov 93  }
 0x7f4   : > { %2632 = vrot.lane.b32.xlu0 %v5350_v7, %s7561_s27  ;;  %2421 = vrot.lane.b32.xlu1 %v5350_v7, %s4670_s22  ;;  %s7570_s27 = smov 101  }
 0x7f8   : > { %2768 = vrot.lane.b32.xlu0 %v5350_v7, %s7563_s26  ;;  %2557 = vrot.lane.b32.xlu1 %v5350_v7, %s4672_s18  ;;  %s7565_s26 = smov 124  }
 0x7fc   : > { %2904 = vrot.lane.b32.xlu0 %v5350_v7, %s7567_s24  ;;  %2700 = vrot.lane.b32.xlu1 %v5350_v7, %s7569_s23  ;;  %s5488_s24 = sld [smem:[#allocation19 + $0x14]] }
 0x800   : > { %2836 = vrot.lane.b32.xlu1 %v5350_v7, %s7570_s27  ;;  %1663 = vrot.lane.b32.xlu0 %v5364_v5, %s4658_s1 }
 0x802   : > { %7788 = sst [smem:[#allocation36_spill]] %s5488_s24  ;;  %v1741_v10 = vstv %s5488_s24  ;;  %s5725_s24 = sld [smem:[#allocation19 + $0x21]] }
 0x804   : > { %2979 = vrot.lane.b32.xlu1 %v5350_v7, %s7565_s26  ;;  %1729 = vrot.lane.b32.xlu0 %v5362_v9, %s4660_s16  ;;  %s5486_s26 = sld [smem:[#allocation19 + $0xc9]] }
 0x808   : > { %1799 = vrot.lane.b32.xlu0 %v5364_v5, %s4657_s0  ;;  %1661 = vrot.lane.b32.xlu1 %v5362_v9, %s4658_s1  ;;  %s7784_s1 = smov 102   ;;  %7873 = sst [smem:[#allocation111_spill]] %s5725_s24 }
 0x809   : > { %s5752_s24 = sld [smem:[#allocation19 + $0x5c]] }
 0x80a   : > { %v1650_v8 = vstv %s5486_s26  ;;  %s5706_s26 = sld [smem:[#allocation19 + $0x49]] }
 0x80b   : > { %v1651_v1 = vmul.f32 %v1650_v8, %v1649_v62 }
 0x80c   : > { %1865 = vrot.lane.b32.xlu0 %v5362_v9, %s4662_s28  ;;  %1731 = vrot.lane.b32.xlu1 %v5364_v5, %s4660_s16  ;;  %s5458_s16 = sld [smem:[#allocation19]] }
 0x80f   : > { %7888 = sst [smem:[#allocation117_spill]] %s5752_s24  ;;  %s5910_s24 = sld [smem:[#allocation19 + $0xaf]] }
 0x810   : > { %1942 = vrot.lane.b32.xlu0 %v5364_v5, %s4659_s21  ;;  %1797 = vrot.lane.b32.xlu1 %v5362_v9, %s4657_s0  ;;  %s7783_s0 = smov 118   ;;  %7865 = sst [smem:[#allocation106_spill]] %s5706_s26 }
 0x812   : > { %v1605_v29 = vstv %s5458_s16  ;;  %s5616_s16 = sld [smem:[#allocation19 + $0xca]] }
 0x813   : > { %v1606_v47 = vmul.f32 %v1605_v29, %v1604_v24 }
 0x814   : > { %2008 = vrot.lane.b32.xlu0 %v5362_v9, %s4664_s20  ;;  %1867 = vrot.lane.b32.xlu1 %v5364_v5, %s4662_s28  ;;  %s5466_s28 = sld [smem:[#allocation19 + $0x64]] }
 0x818   : > { %2078 = vrot.lane.b32.xlu0 %v5364_v5, %s4661_s7  ;;  %1940 = vrot.lane.b32.xlu1 %v5362_v9, %s4659_s21  ;;  %s7785_s21 = smov 125   ;;  %7836 = sst [smem:[#allocation79_spill]] %s5616_s16 }
 0x819   : > { %s5645_s16 = sld [smem:[#allocation19 + $0x99]] }
 0x81a   : > { %v1625_v46 = vstv %s5466_s28  ;;  %s5643_s28 = sld [smem:[#allocation19 + $0x16]] }
 0x81b   : > { %v1626_v19 = vmul.f32 %v1625_v46, %v1624_v14  ;;  %v1698_v14 = vstv %s5508_s9  ;;  %s5796_s9 = sld [smem:[#allocation19 + $0x5]] }
 0x81c   : > { %2144 = vrot.lane.b32.xlu0 %v5362_v9, %s4666_s29  ;;  %2010 = vrot.lane.b32.xlu1 %v5364_v5, %s4664_s20  ;;  %s5470_s20 = sld [smem:[#allocation19 + $0xc8]] }
 0x81f   : > { %7847 = sst [smem:[#allocation89_spill]] %s5645_s16  ;;  %s7852_s16 = smov 100  }
 0x820   : > { %2214 = vrot.lane.b32.xlu0 %v5364_v5, %s4663_s30  ;;  %2076 = vrot.lane.b32.xlu1 %v5362_v9, %s4661_s7  ;;  %s5464_s7 = sld [smem:[#allocation19 + $0x32]]  ;;  %7846 = sst [smem:[#allocation88_spill]] %s5643_s28 }
 0x821   : > { %7911 = sst [smem:[#allocation127_spill]] %s5796_s9  ;;  %s5894_s28 = sld [smem:[#allocation19 + $0x19]] }
 0x822   : > { %v1645_v60 = vstv %s5470_s20  ;;  %s5695_s20 = sld [smem:[#allocation19 + $0xb6]]  ;;  %s6080_s9 = sld [smem:[#allocation19 + $0x11]] }
 0x823   : > { %v1646_v49 = vmul.f32 %v1645_v60, %v5571_v45  ;;  %v1583_v45 = vlaneseq }
 0x824   : > { %2287 = vrot.lane.b32.xlu0 %v5362_v9, %s4668_s19  ;;  %2146 = vrot.lane.b32.xlu1 %v5364_v5, %s4666_s29  ;;  %s5472_s29 = sld [smem:[#allocation19 + $0x1]] }
 0x826   : > { %v1615_v39 = vstv %s5464_s7  ;;  %s7603_s7 = smov 108  }
 0x827   : > { %v1616_v28 = vmul.f32 %v1615_v39, %v1614_v13  ;;  %v1746_v39 = vstv %s5524_s15  ;;  %s5761_s15 = sld [smem:[#allocation19 + $0x8e]]  ;;  %7967 = sst [smem:[#allocation149_spill]] %s5894_s28 }
 0x828   : > { %2357 = vrot.lane.b32.xlu0 %v5364_v5, %s7783_s0  ;;  %2212 = vrot.lane.b32.xlu1 %v5362_v9, %s4663_s30  ;;  %s5468_s30 = sld [smem:[#allocation19 + $0x96]]  ;;  %7862 = sst [smem:[#allocation103_spill]] %s5695_s20 }
 0x829   : > { %v1617_v50 = vadd.f32 %v1616_v28, %v1606_v47  ;;  %s7870_s20 = sld [smem:[#allocation45_spill]]  ;;  %8019 = sst [smem:[#allocation51_spill]] %s6080_s9 }
 0x82a   : > { %v1610_v26 = vstv %s5472_s29  ;;  %s5631_s29 = sld [smem:[#allocation19 + $0xd4]]  ;;  %8005 = sst [smem:[#allocation45_spill]] %s6018_s12 }
 0x82b   : > { %v1611_v36 = vmul.f32 %v1610_v26, %v1609_v30  ;;  %v1627_v41 = vadd.f32 %v1626_v19, %v1617_v50  ;;  %v1756_v26 = vstv %s7879_s3  ;;  %s5842_s3 = sld [smem:[#allocation19 + $0x2b]]  ;;  %s8022_s28 = sld [smem:[#allocation52_spill]] }
 0x82c   : > { %2423 = vrot.lane.b32.xlu0 %v5362_v9, %s4670_s22  ;;  %2289 = vrot.lane.b32.xlu1 %v5364_v5, %s4668_s19  ;;  %s5474_s19 = sld [smem:[#allocation19 + $0x33]]  ;;  %s6150_s12 = sld [smem:[#allocation19 + $0xa7]] }
 0x82d   : > { %7891 = sst [smem:[#allocation118_spill]] %s5761_s15  ;;  %s7977_s15 = sld [smem:[#allocation128_spill]] }
 0x82e   : > { %v1635_v58 = vstv %s5468_s30  ;;  %s5669_s30 = sld [smem:[#allocation19 + $0x20]]  ;;  %7981 = sst [smem:[#allocation128_spill]] %s5938_s6 }
 0x82f   : > { %v1636_v40 = vmul.f32 %v1635_v58, %v5569_v20  ;;  %v1708_v20 = vstv %s7870_s20  ;;  %s5861_s20 = sld [smem:[#allocation19 + $0x7c]]  ;;  %s5958_s6 = sld [smem:[#allocation19 + $0x23]] }
 0x830   : > { %2493 = vrot.lane.b32.xlu0 %v5364_v5, %s7784_s1  ;;  %2355 = vrot.lane.b32.xlu1 %v5362_v9, %s7783_s0  ;;  %s5478_s0 = sld [smem:[#allocation19 + $0x97]]  ;;  %7841 = sst [smem:[#allocation84_spill]] %s5631_s29 }
 0x831   : > { %v1637_v44 = vadd.f32 %v1636_v40, %v1627_v41  ;;  %7936 = sst [smem:[#allocation137_spill]] %s5842_s3  ;;  %s5887_s29 = sld [smem:[#allocation19 + $0xd7]] }
 0x832   : > { %v1620_v33 = vstv %s5474_s19  ;;  %s5633_s19 = sld [smem:[#allocation19 + $0x3]]  ;;  %8030 = sst [smem:[#allocation40_spill]] %s6150_s12 }
 0x833   : > { %v1621_v38 = vmul.f32 %v1620_v33, %v1619_v31  ;;  %v5716_v4 = vadd.f32 %v1646_v49, %v1637_v44  ;;  %s6236_s12 = sld [smem:[#allocation19 + $0xf4]]  ;;  %s8080_s9 = sld [smem:[#allocation81_spill]] }
 0x834   : > { %2559 = vrot.lane.b32.xlu0 %v5362_v9, %s4672_s18  ;;  %2425 = vrot.lane.b32.xlu1 %v5364_v5, %s4670_s22  ;;  %s5476_s22 = sld [smem:[#allocation19 + $0x65]]  ;;  %7855 = sst [smem:[#allocation96_spill]] %s5669_s30 }
 0x835   : > { %v1622_v18 = vadd.f32 %v1621_v38, %v1611_v36  ;;  %s5686_s30 = sld [smem:[#allocation19 + $0x52]]  ;;  %7949 = sst [smem:[#allocation142_spill]] %s5861_s20 }
 0x836   : > { %v1640_v43 = vstv %s5478_s0  ;;  %s5693_s0 = sld [smem:[#allocation19 + $0x84]]  ;;  %s5993_s20 = sld [smem:[#allocation19 + $0x5e]] }
 0x837   : > { %v1641_v48 = vmul.f32 %v1640_v43, %v1639_v57  ;;  %7965 = sst [smem:[#allocation148_spill]] %s5887_s29  ;;  %s5902_s29 = sld [smem:[#allocation19 + $0x4b]] }
 0x838   : > { %2636 = vrot.lane.b32.xlu0 %v5364_v5, %s7785_s21  ;;  %2491 = vrot.lane.b32.xlu1 %v5362_v9, %s7784_s1  ;;  %s7786_s1 = smov 109   ;;  %7842 = sst [smem:[#allocation85_spill]] %s5633_s19 }
 0x839   : > { %s5652_s19 = sld [smem:[#allocation19 + $0xcb]] }
 0x83a   : > { %v1630_v37 = vstv %s5476_s22  ;;  %s5665_s22 = sld [smem:[#allocation19 + $0xa3]] }
 0x83b   : > { %v1631_v21 = vmul.f32 %v1630_v37, %v1629_v16  ;;  %7860 = sst [smem:[#allocation101_spill]] %s5686_s30  ;;  %s5699_s30 = sld [smem:[#allocation19 + $0x17]]  ;;  %v1584_v16 = vand.u32 127, %v1583_v45 }
 0x83c   : > { %2702 = vrot.lane.b32.xlu0 %v5362_v9, %s7569_s23  ;;  %2561 = vrot.lane.b32.xlu1 %v5364_v5, %s4672_s18  ;;  %s5484_s18 = sld [smem:[#allocation19 + $0xa]]  ;;  %s5490_s23 = sld [smem:[#allocation19 + $0xd3]] }
 0x83d   : > { %v1632_v17 = vadd.f32 %v1631_v21, %v1622_v18  ;;  %7861 = sst [smem:[#allocation102_spill]] %s5693_s0  ;;  %s5731_s0 = sld [smem:[#allocation19 + $0x53]]  ;;  %v5810_v45 = vand.u32 7, %v1584_v16 }
 0x83f   : > { %7848 = sst [smem:[#allocation90_spill]] %s5652_s19  ;;  %s5667_s19 = sld [smem:[#allocation19 + $0xd5]]  ;;  %v1642_v55 = vadd.f32 %v1641_v48, %v1632_v17  ;;  %vm1925_vm3 = vcmp.ge.s32.totalorder %v5810_v45, 2  ;;  %vm2272_vm4 = vcmp.ge.s32.totalorder %v5810_v45, 1  ;;  %vm2967_vm5 = vcmp.lt.s32.totalorder %v5810_v45, 7 }
 0x840   : > { %2772 = vrot.lane.b32.xlu0 %v5364_v5, %s7786_s1  ;;  %2634 = vrot.lane.b32.xlu1 %v5362_v9, %s7785_s21  ;;  %s5502_s21 = sld [smem:[#allocation19 + $0xdc]]  ;;  %7853 = sst [smem:[#allocation94_spill]] %s5665_s22  ;;  %vm3314_vm6 = vcmp.lt.s32.totalorder %v5810_v45, 6 }
 0x841   : > { %7864 = sst [smem:[#allocation105_spill]] %s5699_s30  ;;  %s5714_s30 = sld [smem:[#allocation19 + $0xad]]  ;;  %v5756_v31 = vadd.f32 %v1651_v1, %v1642_v55 }
 0x842   : > { %7787 = sst [smem:[#allocation35_spill]] %s5484_s18  ;;  %v1673_v54 = vstv %s5484_s18  ;;  %v1718_v59 = vstv %s5490_s23  ;;  %s5723_s18 = sld [smem:[#allocation19 + $0xdf]] }
 0x843   : > { %7789 = sst [smem:[#allocation37_spill]] %s5490_s23  ;;  %s5980_s22 = sld [smem:[#allocation19 + $0xb9]] }
 0x844   : > { %2838 = vrot.lane.b32.xlu0 %v5362_v9, %s7570_s27  ;;  %2704 = vrot.lane.b32.xlu1 %v5364_v5, %s7790_s2  ;;  %s7799_s27 = smov 93   ;;  %s5516_s2 = sld [smem:[#allocation19 + $0x3c]] }
 0x845   : > { %7854 = sst [smem:[#allocation95_spill]] %s5667_s19  ;;  %s5684_s19 = sld [smem:[#allocation19 + $0xde]] }
 0x846   : > { %7794 = sst [smem:[#allocation41_spill]] %s5502_s21  ;;  %s5877_s23 = sld [smem:[#allocation19 + $0xa5]] }
 0x847   : > { %7868 = sst [smem:[#allocation109_spill]] %s5714_s30  ;;  %s7876_s30 = sld [smem:[#allocation49_spill]] }
 0x848   : > { %2908 = vrot.lane.b32.xlu0 %v5364_v5, %s7799_s27  ;;  %2770 = vrot.lane.b32.xlu1 %v5362_v9, %s7786_s1  ;;  %s7809_s1 = smov 101   ;;  %7872 = sst [smem:[#allocation110_spill]] %s5723_s18 }
 0x849   : > { %7877 = sst [smem:[#allocation112_spill]] %s5731_s0  ;;  %s5744_s21 = sld [smem:[#allocation19 + $0xe9]] }
 0x84a   : > { %7800 = sst [smem:[#allocation46_spill]] %s5516_s2  ;;  %s5536_s2 = sld [smem:[#allocation19 + $0xdd]] }
 0x84b   : > { %7859 = sst [smem:[#allocation100_spill]] %s5684_s19  ;;  %s5697_s19 = sld [smem:[#allocation19 + $0xe8]] }
 0x84c   : > { %2981 = vrot.lane.b32.xlu0 %v5362_v9, %s7808_s10  ;;  %2840 = vrot.lane.b32.xlu1 %v5364_v5, %s7809_s1  ;;  %s5553_s1 = sld [smem:[#allocation19 + $0x83]]  ;;  %s7871_s26 = sld [smem:[#allocation46_spill]] }
 0x84d   : > { %v1713_v30 = vstv %s7876_s30  ;;  %s5750_s0 = sld [smem:[#allocation19 + $0xf3]]  ;;  %s5840_s30 = sld [smem:[#allocation19 + $0xf]] }
 0x84e   : > { %v5544_v12 = vpop.permute.xlu0 %1795  ;;  %v1660_v11 = vpop.permute.xlu1 %1659  ;;  %7959 = sst [smem:[#allocation146_spill]] %s5877_s23  ;;  %s5974_s18 = sld [smem:[#allocation19 + $0x87]] }
 0x84f   : > { %1668 = vst.msk [vmem:[#allocation3 + $0x18] sm:$0xff] %vm669_vm0, %v1660_v11  ;;  %7884 = sst [smem:[#allocation115_spill]] %s5744_s21  ;;  %s5771_s21 = sld [smem:[#allocation19 + $0x4]] }
 0x850   : > { %7810 = sst [smem:[#allocation54_spill]] %s5536_s2  ;;  %s7588_s2 = smov 116   ;;  %2906 = vrot.lane.b32.xlu1 %v5362_v9, %s7799_s27 }
 0x851   : > { %3047 = vrot.lane.b32.xlu0 %v5350_v7, %s7588_s2  ;;  %s5573_s27 = sld [smem:[#allocation19 + $0x29]]  ;;  %s5575_s2 = sld [smem:[#allocation19 + $0x5a]] }
 0x852   : > { %7817 = sst [smem:[#allocation61_spill]] %s5553_s1  ;;  %v5567_v15 = vpop.permute.xlu0 %1938  ;;  %v1728_v23 = vpop.permute.xlu1 %1727  ;;  %s5588_s1 = sld [smem:[#allocation19 + $0xbe]] }
 0x853   : > { %1736 = vst.msk [vmem:[#allocation3] sm:$0xff] %vm669_vm0, %v1728_v23  ;;  %7863 = sst [smem:[#allocation104_spill]] %s5697_s19  ;;  %s7869_s19 = smov 92   ;;  %v1683_v23 = vstv %s7871_s26 }
 0x854   : > { %2983 = vrot.lane.b32.xlu1 %v5364_v5, %s7808_s10  ;;  %s5604_s10 = sld [smem:[#allocation19 + $0x34]]  ;;  %s5804_s26 = sld [smem:[#allocation19 + $0xe]] }
 0x855   : > { %3051 = vrot.lane.b32.xlu0 %v5364_v5, %s7826_s25  ;;  %7887 = sst [smem:[#allocation116_spill]] %s5750_s0  ;;  %s5806_s0 = sld [smem:[#allocation19 + $0x69]] }
 0x856   : > { %v5595_v25 = vpop.permute.xlu0 %2074  ;;  %v5597_v27 = vpop.permute.xlu1 %1863  ;;  %7899 = sst [smem:[#allocation121_spill]] %s5771_s21  ;;  %s5788_s21 = sld [smem:[#allocation19 + $0x9a]] }
 0x857   : > { %7822 = sst [smem:[#allocation66_spill]] %s5573_s27  ;;  %s5591_s27 = sld [smem:[#allocation19 + $0xbf]] }
 0x858   : > { %7823 = sst [smem:[#allocation67_spill]] %s5575_s2  ;;  %s5593_s2 = sld [smem:[#allocation19 + $0xf0]]  ;;  %3049 = vrot.lane.b32.xlu1 %v5362_v9, %s7826_s25 }
 0x859   : > { %7828 = sst [smem:[#allocation71_spill]] %s5588_s1  ;;  %3117 = vrot.lane.b32.xlu0 %v5362_v9, %s7603_s7  ;;  %s5626_s7 = sld [smem:[#allocation19 + $0x70]] }
 0x85a   : > { %7833 = sst [smem:[#allocation76_spill]] %s5604_s10  ;;  %v5622_v35 = vpop.permute.xlu0 %2210  ;;  %v5624_v22 = vpop.permute.xlu1 %2006  ;;  %s5628_s25 = sld [smem:[#allocation19 + $0xa2]]  ;;  %v5930_v57 = vld [vmem:[#allocation3] sm:$0xff] }
 0x85b   : > { %s5618_s10 = sld [smem:[#allocation19 + $0xc]]  ;;  %7916 = sst [smem:[#allocation129_spill]] %s5804_s26 }
 0x85c   : > { %7908 = sst [smem:[#allocation125_spill]] %s5788_s21  ;;  %s5815_s1 = sld [smem:[#allocation19 + $0x9b]] }
 0x85d   : > { %7829 = sst [smem:[#allocation72_spill]] %s5591_s27  ;;  %3183 = vrot.lane.b32.xlu0 %v5350_v7, %s7611_s14  ;;  %s5654_s14 = sld [smem:[#allocation19 + $0xd]] }
 0x85e   : > { %7830 = sst [smem:[#allocation73_spill]] %s5593_s2  ;;  %v5647_v0 = vpop.permute.xlu0 %2353  ;;  %v5649_v32 = vpop.permute.xlu1 %2142  ;;  %s5817_s27 = sld [smem:[#allocation19 + $0xcd]] }
 0x85f   : > { %7839 = sst [smem:[#allocation82_spill]] %s5626_s7  ;;  %s5639_s7 = sld [smem:[#allocation19 + $0x35]] }
 0x860   : > { %7840 = sst [smem:[#allocation83_spill]] %s5628_s25  ;;  %s5641_s25 = sld [smem:[#allocation19 + $0x67]] }
 0x861   : > { %7837 = sst [smem:[#allocation80_spill]] %s5618_s10  ;;  %s7843_s10 = smov 108   ;;  %3187 = vrot.lane.b32.xlu0 %v5364_v5, %s7852_s16 }
 0x862   : > { %3115 = vrot.lane.b32.xlu1 %v5350_v7, %s7843_s10  ;;  %v5674_v3 = vpop.permute.xlu0 %2489  ;;  %v5676_v42 = vpop.permute.xlu1 %2285  ;;  %7917 = sst [smem:[#allocation130_spill]] %s5806_s0  ;;  %s5826_s2 = sld [smem:[#allocation19 + $0x72]] }
 0x863   : > { %7849 = sst [smem:[#allocation91_spill]] %s5654_s14  ;;  %s5671_s14 = sld [smem:[#allocation19 + $0x48]] }
 0x864   : > { %7922 = sst [smem:[#allocation131_spill]] %s5815_s1  ;;  %s5834_s26 = sld [smem:[#allocation19 + $0xd6]] }
 0x865   : > { %7844 = sst [smem:[#allocation86_spill]] %s5639_s7  ;;  %s5657_s7 = sld [smem:[#allocation19 + $0x3f]] }
 0x866   : > { %7845 = sst [smem:[#allocation87_spill]] %s5641_s25  ;;  %s5659_s25 = sld [smem:[#allocation19 + $0x71]]  ;;  %3119 = vrot.lane.b32.xlu1 %v5364_v5, %s7843_s10  ;;  %v5702_v51 = vpop.permute.xlu0 %2632  ;;  %v5704_v53 = vpop.permute.xlu1 %2421 }
 0x867   : > { %s5681_s10 = sld [smem:[#allocation19 + $0xac]]  ;;  %7924 = sst [smem:[#allocation132_spill]] %s5817_s27 }
 0x868   : > { %7927 = sst [smem:[#allocation133_spill]] %s5826_s2  ;;  %s5852_s0 = sld [smem:[#allocation19 + $0x41]] }
 0x869   : > { %7856 = sst [smem:[#allocation97_spill]] %s5671_s14  ;;  %s7624_s14 = smov 92  }
 0x86a   : > { %3253 = vrot.lane.b32.xlu0 %v5362_v9, %s7624_s14  ;;  %3185 = vrot.lane.b32.xlu1 %v5362_v9, %s7852_s16  ;;  %s5708_s16 = sld [smem:[#allocation19 + $0x7b]]  ;;  %s5712_s14 = sld [smem:[#allocation19 + $0x2a]]  ;;  %v1688_v9 = vstv %s5506_s8  ;;  %v5737_v13 = vpop.permute.xlu1 %2557 }
 0x86b   : > { %7850 = sst [smem:[#allocation92_spill]] %s5657_s7  ;;  %s5742_s8 = sld [smem:[#allocation19 + $0xb7]] }
 0x86c   : > { %7851 = sst [smem:[#allocation93_spill]] %s5659_s25  ;;  %s5679_s25 = sld [smem:[#allocation19 + $0x7a]] }
 0x86d   : > { %7858 = sst [smem:[#allocation99_spill]] %s5681_s10  ;;  %s5733_s10 = sld [smem:[#allocation19 + $0x85]] }
 0x86e   : > { %3251 = vrot.lane.b32.xlu1 %v5350_v7, %s7869_s19  ;;  %v5735_v7 = vpop.permute.xlu0 %2768  ;;  %v5775_v19 = vpop.permute.xlu1 %2700  ;;  %s5832_s27 = sld [smem:[#allocation19 + $0xa4]]  ;;  %7932 = sst [smem:[#allocation135_spill]] %s5834_s26 }
 0x86f   : > { %7935 = sst [smem:[#allocation136_spill]] %s5840_s30  ;;  %s5859_s30 = sld [smem:[#allocation19 + $0x4a]] }
 0x870   : > { %7866 = sst [smem:[#allocation107_spill]] %s5708_s16  ;;  %s7874_s16 = sld [smem:[#allocation47_spill]] }
 0x871   : > { %7867 = sst [smem:[#allocation108_spill]] %s5712_s14  ;;  %s7875_s14 = sld [smem:[#allocation48_spill]] }
 0x872   : > { %7857 = sst [smem:[#allocation98_spill]] %s5679_s25  ;;  %3255 = vrot.lane.b32.xlu1 %v5364_v5, %s7869_s19  ;;  %v5773_v50 = vpop.permute.xlu0 %2904  ;;  %v5808_v1 = vpop.permute.xlu1 %2836  ;;  %s5869_s26 = sld [smem:[#allocation19 + $0xe0]] }
 0x873   : > { %7878 = sst [smem:[#allocation113_spill]] %s5733_s10  ;;  %s5769_s19 = sld [smem:[#allocation19 + $0xf2]]  ;;  %7901 = vst [vmem:[#allocation122_spill] sm:$0xff] %v5773_v50 }
 0x874   : > { %7883 = sst [smem:[#allocation114_spill]] %s5742_s8  ;;  %s5782_s10 = sld [smem:[#allocation19 + $0x68]] }
 0x875   : > { %7931 = sst [smem:[#allocation134_spill]] %s5832_s27  ;;  %s5912_s25 = sld [smem:[#allocation19 + $0xe1]] }
 0x876   : > { %v1693_v29 = vstv %s7874_s16  ;;  %v1664_v55 = vpop.permute.xlu0 %1663  ;;  %v5844_v5 = vpop.permute.xlu1 %2979  ;;  %7944 = sst [smem:[#allocation140_spill]] %s5852_s0  ;;  %s5867_s0 = sld [smem:[#allocation19 + $0xae]] }
 0x877   : > { %v1703_v28 = vstv %s7875_s14  ;;  %s5763_s14 = sld [smem:[#allocation19 + $0xc0]]  ;;  %1670 = vst.msk [vmem:[#allocation3 + $0x28] sm:$0xff] %vm669_vm0, %v1664_v55  ;;  %7939 = vst [vmem:[#allocation138_spill] sm:$0xff] %v5844_v5  ;;  %7947 = sst [smem:[#allocation141_spill]] %s5859_s30  ;;  %v1672_v55 = vld [vmem:[#allocation3 + $0x18] sm:$0xff] }
 0x878   : > { %7954 = sst [smem:[#allocation144_spill]] %s5869_s26  ;;  %s5896_s1 = sld [smem:[#allocation19 + $0x5d]]  ;;  %v1674_v58 = vmul.f32 %v1673_v54, %v1672_v55 }
 0x879   : > { %7897 = sst [smem:[#allocation120_spill]] %s5769_s19  ;;  %s5790_s19 = sld [smem:[#allocation19 + $0xcc]] }
 0x87a   : > { %7907 = sst [smem:[#allocation124_spill]] %s5782_s10  ;;  %v1730_v62 = vpop.permute.xlu0 %1729  ;;  %v1662_v16 = vpop.permute.xlu1 %1661  ;;  %s5904_s7 = sld [smem:[#allocation19 + $0x7d]]  ;;  %v1675_v21 = vadd.f32 %v1674_v58, %v5716_v4 }
 0x87b   : > { %1737 = vst.msk [vmem:[#allocation3 + $0x8] sm:$0xff] %vm669_vm0, %v1730_v62  ;;  %1669 = vst.msk [vmem:[#allocation3 + $0x20] sm:$0xff] %vm669_vm0, %v1662_v16  ;;  %7974 = sst [smem:[#allocation35_spill]] %s5910_s24  ;;  %s7979_s3 = sld [smem:[#allocation131_spill]] }
 0x87c   : > { %7953 = sst [smem:[#allocation143_spill]] %s5867_s0  ;;  %s7980_s8 = sld [smem:[#allocation132_spill]] }
 0x87d   : > { %7893 = sst [smem:[#allocation119_spill]] %s5763_s14  ;;  %s5940_s16 = sld [smem:[#allocation19 + $0xc1]] }
 0x87e   : > { %v5879_v17 = vpop.permute.xlu0 %1799  ;;  %7968 = sst [smem:[#allocation150_spill]] %s5896_s1  ;;  %v1732_v16 = vpop.permute.xlu1 %1731  ;;  %s5950_s21 = sld [smem:[#allocation19 + $0xb8]]  ;;  %v1717_v41 = vld [vmem:[#allocation3 + $0x28] sm:$0xff] }
 0x87f   : > { %7909 = sst [smem:[#allocation126_spill]] %s5790_s19  ;;  %1738 = vst.msk [vmem:[#allocation3 + $0x10] sm:$0xff] %vm669_vm0, %v1732_v16  ;;  %s5956_s19 = sld [smem:[#allocation19 + $0xea]] }
 0x880   : > { %7972 = sst [smem:[#allocation151_spill]] %s5904_s7  ;;  %s5991_s26 = sld [smem:[#allocation19 + $0x2c]] }
 0x881   : > { %7975 = sst [smem:[#allocation152_spill]] %s5912_s25  ;;  %s5966_s27 = sld [smem:[#allocation19 + $0x55]] }
 0x882   : > { %v5914_v40 = vld [vmem:[#allocation3 + $0x1] sm:$0xff]  ;;  %v5920_v60 = vpop.permute.xlu0 %1865  ;;  %7985 = sst [smem:[#allocation131_spill]] %s5948_s5  ;;  %v1682_v54 = vld [vmem:[#allocation3 + $0x19] sm:$0xff]  ;;  %v1798_v55 = vpop.permute.xlu1 %1797  ;;  %s6006_s30 = sld [smem:[#allocation19 + $0x90]] }
 0x883   : > { %v5916_v49 = vld [vmem:[#allocation3 + $0x2] sm:$0xff]  ;;  %v1692_v16 = vld [vmem:[#allocation3 + $0x1a] sm:$0xff]  ;;  %v1684_v24 = vmul.f32 %v1683_v23, %v1682_v54  ;;  %7993 = sst [smem:[#allocation42_spill]] %s5974_s18  ;;  %s6027_s0 = sld [smem:[#allocation19 + $0x5f]] }
 0x884   : > { %v5918_v62 = vld [vmem:[#allocation3 + $0x3] sm:$0xff]  ;;  %7987 = sst [smem:[#allocation132_spill]] %s5950_s21  ;;  %v1702_v36 = vld [vmem:[#allocation3 + $0x1b] sm:$0xff]  ;;  %s6029_s1 = sld [smem:[#allocation19 + $0x91]] }
 0x885   : > { %v5932_v43 = vld [vmem:[#allocation3 + $0x4] sm:$0xff]  ;;  %7988 = sst [smem:[#allocation153_spill]] %s5956_s19  ;;  %v1712_v37 = vld [vmem:[#allocation3 + $0x1c] sm:$0xff]  ;;  %v1685_v58 = vadd.f32 %v1684_v24, %v1675_v21  ;;  %s6035_s2 = sld [smem:[#allocation19 + $0xc3]] }
 0x886   : > { %1872 = vst.msk [vmem:[#allocation3] sm:$0xff] %vm669_vm0, %v5597_v27  ;;  %v1677_v27 = vld [vmem:[#allocation3 + $0x24] sm:$0xff]  ;;  %v5960_v44 = vpop.permute.xlu0 %1942  ;;  %7995 = sst [smem:[#allocation46_spill]] %s5980_s22  ;;  %1804 = vst.msk [vmem:[#allocation3 + $0x18] sm:$0xff] %vm669_vm0, %v5544_v12  ;;  %v1745_v12 = vld [vmem:[#allocation3 + $0xc] sm:$0xff]  ;;  %s6037_s23 = sld [smem:[#allocation19 + $0xf5]] }
 0x887   : > { %v1687_v18 = vld [vmem:[#allocation3 + $0x25] sm:$0xff]  ;;  %v1679_v46 = vmul.f32 %v1678_v34, %v1677_v27  ;;  %7999 = sst [smem:[#allocation43_spill]] %s5991_s26  ;;  %v5995_v27 = vld [vmem:[#allocation3 + $0xd] sm:$0xff]  ;;  %s6045_s14 = sld [smem:[#allocation19 + $0x7]] }
 0x888   : > { %v1697_v38 = vld [vmem:[#allocation3 + $0x26] sm:$0xff]  ;;  %v1689_v23 = vmul.f32 %v1688_v9, %v1687_v18  ;;  %8000 = sst [smem:[#allocation47_spill]] %s5993_s20  ;;  %v1694_v9 = vmul.f32 %v1693_v29, %v1692_v16  ;;  %v6010_v33 = vld [vmem:[#allocation3 + $0xf] sm:$0xff]  ;;  %s6047_s7 = sld [smem:[#allocation19 + $0x39]] }
 0x889   : > { %v1707_v8 = vld [vmem:[#allocation3 + $0x27] sm:$0xff]  ;;  %v1680_v34 = vadd.f32 %v1679_v46, %v5756_v31  ;;  %v1868_v31 = vpop.permute.xlu1 %1867  ;;  %8002 = sst [smem:[#allocation44_spill]] %s6006_s30  ;;  %v6012_v11 = vld [vmem:[#allocation3 + $0x10] sm:$0xff]  ;;  %s6053_s10 = sld [smem:[#allocation19 + $0x6b]] }
 0x88a   : > { %1806 = vst.msk [vmem:[#allocation3 + $0x28] sm:$0xff] %vm669_vm0, %v5879_v17  ;;  %1805 = vst.msk [vmem:[#allocation3 + $0x20] sm:$0xff] %vm669_vm0, %v1798_v55  ;;  %v5997_v17 = vld [vmem:[#allocation3 + $0xe] sm:$0xff]  ;;  %v5999_v4 = vpop.permute.xlu0 %2008  ;;  %v1699_v55 = vmul.f32 %v1698_v14, %v1697_v38  ;;  %8004 = sst [smem:[#allocation48_spill]] %s6016_s13  ;;  %v1704_v14 = vmul.f32 %v1703_v28, %v1702_v36  ;;  %v1709_v29 = vmul.f32 %v1708_v20, %v1707_v8  ;;  %s6055_s24 = sld [smem:[#allocation19 + $0x9d]] }
 0x88b   : > { %v1690_v21 = vadd.f32 %v1689_v23, %v1680_v34  ;;  %1873 = vst.msk [vmem:[#allocation3 + $0x8] sm:$0xff] %vm669_vm0, %v5920_v60  ;;  %v1695_v34 = vadd.f32 %v1694_v9, %v1685_v58  ;;  %1874 = vst.msk [vmem:[#allocation3 + $0x10] sm:$0xff] %vm669_vm0, %v1868_v31  ;;  %8007 = sst [smem:[#allocation49_spill]] %s6027_s0  ;;  %v1714_v36 = vmul.f32 %v1713_v30, %v1712_v37  ;;  %s6068_s5 = sld [smem:[#allocation19 + $0xcf]] }
 0x88c   : > { %8009 = sst [smem:[#allocation37_spill]] %s6029_s1  ;;  %v1719_v20 = vmul.f32 %v1718_v59, %v1717_v41  ;;  %v1742_v30 = vmul.f32 %v1741_v10, %v5930_v57  ;;  %v1747_v58 = vmul.f32 %v1746_v39, %v1745_v12  ;;  %v1752_v39 = vmul.f32 %v1751_v61, %v5914_v40  ;;  %s6095_s19 = sld [smem:[#allocation19 + $0x43]] }
 0x88d   : > { %v1700_v46 = vadd.f32 %v1699_v55, %v1690_v21  ;;  %8011 = sst [smem:[#allocation154_spill]] %s6035_s2  ;;  %v1705_v28 = vadd.f32 %v1704_v14, %v1695_v34  ;;  %v1941_v31 = vpop.permute.xlu1 %1940  ;;  %v1808_v12 = vld [vmem:[#allocation3 + $0x18] sm:$0xff]  ;;  %s8025_s25 = sld [smem:[#allocation53_spill]] }
 0x88e   : > { %8013 = sst [smem:[#allocation36_spill]] %s6037_s23  ;;  %v6041_v9 = vpop.permute.xlu0 %2078  ;;  %s8027_s30 = sld [smem:[#allocation41_spill]] }
 0x88f   : > { %v1710_v8 = vadd.f32 %v1709_v29, %v1700_v46  ;;  %v1715_v59 = vadd.f32 %v1714_v36, %v1705_v28  ;;  %s6148_s0 = sld [smem:[#allocation19 + $0x75]]  ;;  %s8034_s2 = sld [smem:[#allocation57_spill]] }
 0x890   : > { %8015 = sst [smem:[#allocation50_spill]] %s6055_s24  ;;  %s8035_s1 = sld [smem:[#allocation75_spill]] }
 0x891   : > { %v6060_v37 = vld [vmem:[#allocation3 + $0x24] sm:$0xff]  ;;  %v6062_v34 = vld [vmem:[#allocation3 + $0x19] sm:$0xff]  ;;  %8017 = sst [smem:[#allocation38_spill]] %s6068_s5  ;;  %v1720_v29 = vadd.f32 %v1719_v20, %v1710_v8  ;;  %v1743_v20 = vadd.f32 %v1742_v30, %v1715_v59  ;;  %v2011_v41 = vpop.permute.xlu1 %2010  ;;  %v1757_v30 = vmul.f32 %v1756_v26, %v5995_v27  ;;  %v1762_v26 = vmul.f32 %v1761_v6, %v5916_v49  ;;  %s8039_s23 = sld [smem:[#allocation58_spill]] }
 0x892   : > { %v6064_v14 = vld [vmem:[#allocation3 + $0x25] sm:$0xff]  ;;  %v6072_v55 = vld [vmem:[#allocation3 + $0x1a] sm:$0xff]  ;;  %v6091_v46 = vpop.permute.xlu0 %2144  ;;  %8021 = sst [smem:[#allocation39_spill]] %s6095_s19  ;;  %v6129_v6 = vld [vmem:[#allocation3 + $0xd] sm:$0xff]  ;;  %s8041_s20 = sld [smem:[#allocation86_spill]] }
 0x893   : > { %v6074_v10 = vld [vmem:[#allocation3 + $0x26] sm:$0xff]  ;;  %v6076_v57 = vld [vmem:[#allocation3 + $0x1b] sm:$0xff]  ;;  %v1748_v21 = vadd.f32 %v1747_v58, %v1720_v29  ;;  %v1753_v58 = vadd.f32 %v1752_v39, %v1743_v20  ;;  %v8024_v20 = vstv %s8022_s28  ;;  %v6131_v49 = vld [vmem:[#allocation3 + $0xe] sm:$0xff]  ;;  %s8028_s28 = sld [smem:[#allocation54_spill]]  ;;  %s8042_s13 = sld [smem:[#allocation59_spill]] }
 0x894   : > { %v6082_v28 = vld [vmem:[#allocation3 + $0x27] sm:$0xff]  ;;  %v6084_v36 = vld [vmem:[#allocation3 + $0x1c] sm:$0xff]  ;;  %v1767_v39 = vmul.f32 %v8024_v20, %v5997_v17  ;;  %v6133_v60 = vld [vmem:[#allocation3 + $0xf] sm:$0xff]  ;;  %8069 = sst [smem:[#allocation54_spill]] %s6236_s12  ;;  %s6255_s19 = sld [smem:[#allocation19 + $0x4d]] }
 0x895   : > { %v6089_v8 = vld [vmem:[#allocation3] sm:$0xff]  ;;  %v6100_v59 = vld [vmem:[#allocation3 + $0x28] sm:$0xff]  ;;  %1947 = vst.msk [vmem:[#allocation3 + $0x18] sm:$0xff] %vm669_vm0, %v5567_v15  ;;  %1948 = vst.msk [vmem:[#allocation3 + $0x20] sm:$0xff] %vm669_vm0, %v1941_v31  ;;  %v1758_v38 = vadd.f32 %v1757_v30, %v1748_v21  ;;  %v1763_v47 = vadd.f32 %v1762_v26, %v1753_v58  ;;  %v8026_v21 = vstv %s8023_s11  ;;  %8029 = sst [smem:[#allocation52_spill]] %s6148_s0  ;;  %s8031_s11 = sld [smem:[#allocation56_spill]]  ;;  %v8032_v58 = vstv %s8025_s25 }
 0x896   : > { %v6102_v61 = vld [vmem:[#allocation3 + $0x1] sm:$0xff]  ;;  %1949 = vst.msk [vmem:[#allocation3 + $0x28] sm:$0xff] %vm669_vm0, %v5960_v44  ;;  %v6120_v23 = vld [vmem:[#allocation3 + $0xc] sm:$0xff]  ;;  %v1772_v30 = vmul.f32 %v8026_v21, %v5918_v62  ;;  %v1777_v26 = vmul.f32 %v8032_v58, %v6010_v33  ;;  %v6156_v21 = vpop.permute.xlu0 %2214  ;;  %v8033_v44 = vstv %s8027_s30  ;;  %s8037_s25 = sld [smem:[#allocation76_spill]]  ;;  %s8040_s30 = sld [smem:[#allocation85_spill]] }
 0x897   : > { %v6104_v40 = vld [vmem:[#allocation3 + $0x2] sm:$0xff]  ;;  %v6140_v17 = vld [vmem:[#allocation3 + $0x10] sm:$0xff]  ;;  %v1768_v62 = vadd.f32 %v1767_v39, %v1758_v38  ;;  %v1782_v31 = vmul.f32 %v8033_v44, %v5932_v43  ;;  %v8047_v54 = vstv %s8039_s23  ;;  %s8054_s23 = sld [smem:[#allocation78_spill]]  ;;  %s8070_s0 = sld [smem:[#allocation80_spill]] }
 0x898   : > { %v6114_v27 = vld [vmem:[#allocation3 + $0x3] sm:$0xff]  ;;  %2017 = vst.msk [vmem:[#allocation3 + $0x10] sm:$0xff] %vm669_vm0, %v2011_v41  ;;  %v1773_v20 = vadd.f32 %v1772_v30, %v1763_v47  ;;  %v1820_v52 = vmul.f32 %v8047_v54, %v6062_v34  ;;  %v8050_v2 = vstv %s8041_s20  ;;  %s8056_s20 = sld [smem:[#allocation62_spill]]  ;;  %s8085_s26 = sld [smem:[#allocation91_spill]] }
 0x899   : > { %v6116_v29 = vld [vmem:[#allocation3 + $0x4] sm:$0xff]  ;;  %v1778_v38 = vadd.f32 %v1777_v26, %v1768_v62  ;;  %v8036_v39 = vstv %s8028_s28  ;;  %v8043_v26 = vstv %s8034_s2  ;;  %s8046_s28 = sld [smem:[#allocation77_spill]]  ;;  %s6208_s2 = sld [smem:[#allocation19 + $0xd9]] }
 0x89a   : > { %2015 = vst.msk [vmem:[#allocation3] sm:$0xff] %vm669_vm0, %v5624_v22  ;;  %2016 = vst.msk [vmem:[#allocation3 + $0x8] sm:$0xff] %vm669_vm0, %v5999_v4  ;;  %v6144_v22 = vpop.permute.xlu1 %2076  ;;  %v1787_v33 = vmul.f32 %v8036_v39, %v6012_v11  ;;  %v1783_v16 = vadd.f32 %v1782_v31, %v1773_v20  ;;  %v1815_v48 = vmul.f32 %v8043_v26, %v6060_v37  ;;  %v8044_v11 = vstv %s8035_s1  ;;  %s8052_s1 = sld [smem:[#allocation61_spill]]  ;;  %v6197_v56 = vpop.permute.xlu0 %2287  ;;  %8079 = sst [smem:[#allocation57_spill]] %s6255_s19 }
 0x89b   : > { %v8038_v4 = vstv %s8031_s11  ;;  %s8048_s11 = sld [smem:[#allocation60_spill]]  ;;  %s8090_s22 = sld [smem:[#allocation82_spill]] }
 0x89c   : > { %v1810_v15 = vmul.f32 %v8038_v4, %v1808_v12  ;;  %v1951_v24 = vld [vmem:[#allocation3 + $0x18] sm:$0xff]  ;;  %v1788_v62 = vadd.f32 %v1787_v33, %v1778_v38  ;;  %v8045_v31 = vstv %s8037_s25  ;;  %v8049_v38 = vstv %s8040_s30  ;;  %s8061_s25 = sld [smem:[#allocation63_spill]]  ;;  %s8088_s5 = sld [smem:[#allocation68_spill]] }
 0x89d   : > { %v1961_v47 = vld [vmem:[#allocation3 + $0x19] sm:$0xff]  ;;  %v1953_v39 = vmul.f32 %v8044_v11, %v1951_v24  ;;  %v1956_v58 = vld [vmem:[#allocation3 + $0x24] sm:$0xff]  ;;  %s8062_s30 = sld [smem:[#allocation79_spill]]  ;;  %s6284_s24 = sld [smem:[#allocation19 + $0x6a]] }
 0x89e   : > { %v1971_v30 = vld [vmem:[#allocation3 + $0x1a] sm:$0xff]  ;;  %v2147_v43 = vpop.permute.xlu1 %2146  ;;  %v1963_v20 = vmul.f32 %v8045_v31, %v1961_v47  ;;  %v1966_v12 = vld [vmem:[#allocation3 + $0x25] sm:$0xff]  ;;  %v1811_v41 = vadd.f32 %v1810_v15, %v1783_v16  ;;  %v1958_v33 = vmul.f32 %v8049_v38, %v1956_v58  ;;  %v1816_v24 = vadd.f32 %v1815_v48, %v1788_v62  ;;  %s8096_s18 = sld [smem:[#allocation83_spill]]  ;;  %s6341_s12 = sld [smem:[#allocation19 + $0x89]] }
 0x89f   : > { %v1976_v4 = vld [vmem:[#allocation3 + $0x26] sm:$0xff]  ;;  %v1981_v18 = vld [vmem:[#allocation3 + $0x1b] sm:$0xff]  ;;  %v1968_v37 = vmul.f32 %v8050_v2, %v1966_v12  ;;  %v8051_v47 = vstv %s8042_s13  ;;  %v8053_v34 = vstv %s8046_s28  ;;  %s8057_s13 = sld [smem:[#allocation87_spill]]  ;;  %8058 = sst [smem:[#allocation53_spill]] %s6208_s2 }
 0x8a0   : > { %v1986_v63 = vld [vmem:[#allocation3 + $0x27] sm:$0xff]  ;;  %v1825_v26 = vmul.f32 %v8051_v47, %v6064_v14  ;;  %v1964_v54 = vadd.f32 %v1963_v20, %v1953_v39  ;;  %v1973_v31 = vmul.f32 %v8053_v34, %v1971_v30  ;;  %v1821_v58 = vadd.f32 %v1820_v52, %v1811_v41  ;;  %v1991_v62 = vld [vmem:[#allocation3 + $0x1c] sm:$0xff]  ;;  %s8063_s28 = sld [smem:[#allocation64_spill]]  ;;  %s8103_s2 = sld [smem:[#allocation84_spill]] }
 0x8a1   : > { %v2019_v44 = vld [vmem:[#allocation3] sm:$0xff]  ;;  %v8055_v2 = vstv %s8048_s11  ;;  %v1996_v14 = vld [vmem:[#allocation3 + $0x28] sm:$0xff]  ;;  %v8059_v30 = vstv %s8052_s1  ;;  %2083 = vst.msk [vmem:[#allocation3 + $0x18] sm:$0xff] %vm669_vm0, %v5595_v25  ;;  %2084 = vst.msk [vmem:[#allocation3 + $0x20] sm:$0xff] %vm669_vm0, %v6144_v22  ;;  %s8065_s11 = sld [smem:[#allocation89_spill]]  ;;  %s6234_s1 = sld [smem:[#allocation19 + $0xc2]] }
 0x8a2   : > { %v2029_v11 = vld [vmem:[#allocation3 + $0x1] sm:$0xff]  ;;  %v1830_v12 = vmul.f32 %v8055_v2, %v6072_v55  ;;  %v6204_v38 = vpop.permute.xlu1 %2212  ;;  %v1826_v39 = vadd.f32 %v1825_v26, %v1816_v24  ;;  %v1835_v20 = vmul.f32 %v8059_v30, %v6074_v10  ;;  %v1974_v52 = vadd.f32 %v1973_v31, %v1964_v54  ;;  %2085 = vst.msk [vmem:[#allocation3 + $0x28] sm:$0xff] %vm669_vm0, %v6041_v9  ;;  %v2024_v34 = vld [vmem:[#allocation3 + $0xc] sm:$0xff]  ;;  %s8111_s19 = sld [smem:[#allocation88_spill]] }
 0x8a3   : > { %v6191_v16 = vld [vmem:[#allocation3 + $0x2] sm:$0xff]  ;;  %v8060_v55 = vstv %s8054_s23  ;;  %v2034_v2 = vld [vmem:[#allocation3 + $0xd] sm:$0xff]  ;;  %v8064_v10 = vstv %s8056_s20  ;;  %v1969_v26 = vadd.f32 %v1968_v37, %v1958_v33  ;;  %s8068_s23 = sld [smem:[#allocation65_spill]]  ;;  %s8073_s20 = sld [smem:[#allocation55_spill]] }
 0x8a4   : > { %v6193_v15 = vld [vmem:[#allocation3 + $0x3] sm:$0xff]  ;;  %v1983_v41 = vmul.f32 %v8060_v55, %v1981_v18  ;;  %v6221_v24 = vld [vmem:[#allocation3 + $0xe] sm:$0xff]  ;;  %v1840_v18 = vmul.f32 %v8064_v10, %v6076_v57  ;;  %v1836_v22 = vadd.f32 %v1835_v20, %v1826_v39  ;;  %v8072_v57 = vstv %s8062_s30  ;;  %s8078_s30 = sld [smem:[#allocation66_spill]]  ;;  %s6391_s21 = sld [smem:[#allocation19 + $0x10]] }
 0x8a5   : > { %v6202_v48 = vld [vmem:[#allocation3 + $0x4] sm:$0xff]  ;;  %v8066_v54 = vstv %s8057_s13  ;;  %v6230_v31 = vld [vmem:[#allocation3 + $0xf] sm:$0xff]  ;;  %v1993_v55 = vmul.f32 %v8072_v57, %v1991_v62  ;;  %s8075_s13 = sld [smem:[#allocation90_spill]]  ;;  %v8082_v62 = vstv %s8070_s0  ;;  %s6275_s0 = sld [smem:[#allocation19 + $0x6]] }
 0x8a6   : > { %2151 = vst.msk [vmem:[#allocation3] sm:$0xff] %vm669_vm0, %v5649_v32  ;;  %v1831_v32 = vadd.f32 %v1830_v12, %v1821_v58  ;;  %v1978_v25 = vmul.f32 %v8066_v54, %v1976_v4  ;;  %v6232_v9 = vld [vmem:[#allocation3 + $0x10] sm:$0xff]  ;;  %v8071_v58 = vstv %s8061_s25  ;;  %v1984_v30 = vadd.f32 %v1983_v41, %v1974_v52  ;;  %2152 = vst.msk [vmem:[#allocation3 + $0x8] sm:$0xff] %vm669_vm0, %v6091_v46  ;;  %v6251_v20 = vpop.permute.xlu1 %2289  ;;  %s6253_s25 = sld [smem:[#allocation19 + $0x1b]]  ;;  %8104 = sst [smem:[#allocation58_spill]] %s6341_s12 }
 0x8a7   : > { %8067 = sst [smem:[#allocation41_spill]] %s6234_s1  ;;  %v1845_v12 = vmul.f32 %v8071_v58, %v6082_v28  ;;  %2153 = vst.msk [vmem:[#allocation3 + $0x10] sm:$0xff] %vm669_vm0, %v2147_v43  ;;  %v8074_v33 = vstv %s8063_s28  ;;  %v8076_v54 = vstv %s8065_s11  ;;  %v2021_v52 = vmul.f32 %v8082_v62, %v2019_v44  ;;  %s6264_s28 = sld [smem:[#allocation19 + $0x7f]] }
 0x8a8   : > { %v1841_v4 = vadd.f32 %v1840_v18, %v1831_v32  ;;  %v1850_v37 = vmul.f32 %v8074_v33, %v6084_v36  ;;  %v1979_v10 = vadd.f32 %v1978_v25, %v1969_v26  ;;  %v1988_v39 = vmul.f32 %v8076_v54, %v1986_v63  ;;  %v6262_v36 = vpop.permute.xlu0 %2357  ;;  %s6266_s11 = sld [smem:[#allocation19 + $0xb1]]  ;;  %s6389_s1 = sld [smem:[#allocation19 + $0xce]] }
 0x8a9   : > { %v1846_v46 = vadd.f32 %v1845_v12, %v1836_v22  ;;  %v8081_v28 = vstv %s8068_s23  ;;  %v1994_v41 = vadd.f32 %v1993_v55, %v1984_v30  ;;  %v8084_v32 = vstv %s8073_s20  ;;  %s6273_s23 = sld [smem:[#allocation19 + $0xe3]]  ;;  %s6282_s20 = sld [smem:[#allocation19 + $0x38]]  ;;  %v6290_v55 = vld [vmem:[#allocation3 + $0x18] sm:$0xff] }
 0x8aa   : > { %v1855_v43 = vmul.f32 %v8081_v28, %v6100_v59  ;;  %v1851_v63 = vadd.f32 %v1850_v37, %v1841_v4  ;;  %v1878_v18 = vmul.f32 %v8084_v32, %v6089_v8  ;;  %v1989_v26 = vadd.f32 %v1988_v39, %v1979_v10  ;;  %v6294_v10 = vld [vmem:[#allocation3 + $0x24] sm:$0xff] }
 0x8ab   : > { %v8086_v25 = vstv %s8075_s13  ;;  %v8087_v44 = vstv %s8078_s30  ;;  %v8089_v12 = vstv %s8080_s9  ;;  %v2022_v57 = vadd.f32 %v2021_v52, %v1994_v41  ;;  %s8091_s13 = sld [smem:[#allocation92_spill]]  ;;  %s8095_s30 = sld [smem:[#allocation70_spill]]  ;;  %v6309_v52 = vld [vmem:[#allocation3 + $0x25] sm:$0xff]  ;;  %v6311_v41 = vld [vmem:[#allocation3 + $0x1a] sm:$0xff] }
 0x8ac   : > { %8077 = sst [smem:[#allocation56_spill]] %s6253_s25  ;;  %v1998_v22 = vmul.f32 %v8086_v25, %v1996_v14  ;;  %v1856_v59 = vadd.f32 %v1855_v43, %v1846_v46  ;;  %v1883_v58 = vmul.f32 %v8087_v44, %v6120_v23  ;;  %v2031_v30 = vmul.f32 %v8089_v12, %v2029_v11  ;;  %v6296_v23 = vpop.permute.xlu1 %2355  ;;  %s6299_s9 = sld [smem:[#allocation19 + $0x9c]] }
 0x8ad   : > { %v6286_v8 = vadd.f32 %v1878_v18, %v1851_v63  ;;  %v6288_v14 = vld [vmem:[#allocation3] sm:$0xff]  ;;  %v8092_v33 = vstv %s8085_s26  ;;  %v8093_v39 = vstv %s8088_s5  ;;  %v8094_v28 = vstv %s8090_s22  ;;  %s6313_s26 = sld [smem:[#allocation19 + $0x25]]  ;;  %s6323_s22 = sld [smem:[#allocation19 + $0x57]] }
 0x8ae   : > { %8083 = sst [smem:[#allocation75_spill]] %s6266_s11  ;;  %v1999_v4 = vadd.f32 %v1998_v22, %v1989_v26  ;;  %v2026_v37 = vmul.f32 %v8092_v33, %v2024_v34  ;;  %v1884_v54 = vadd.f32 %v1883_v58, %v1856_v59  ;;  %v1893_v46 = vmul.f32 %v8093_v39, %v6129_v6  ;;  %v6307_v34 = vld [vmem:[#allocation3 + $0x19] sm:$0xff]  ;;  %v6317_v26 = vld [vmem:[#allocation3 + $0x1] sm:$0xff]  ;;  %s8098_s5 = sld [smem:[#allocation93_spill]] }
 0x8af   : > { %v2041_v43 = vmul.f32 %v8094_v28, %v6191_v16  ;;  %v2032_v62 = vadd.f32 %v2031_v30, %v2022_v57  ;;  %v6319_v6 = vld [vmem:[#allocation3 + $0x2] sm:$0xff]  ;;  %v8101_v12 = vstv %s8096_s18  ;;  %s8106_s18 = sld [smem:[#allocation94_spill]]  ;;  %s8115_s25 = sld [smem:[#allocation97_spill]] }
 0x8b0   : > { %v2027_v63 = vadd.f32 %v2026_v37, %v1999_v4  ;;  %v6321_v25 = vld [vmem:[#allocation3 + $0x3] sm:$0xff]  ;;  %v1894_v59 = vadd.f32 %v1893_v46, %v1884_v54  ;;  %v6337_v33 = vld [vmem:[#allocation3 + $0x1b] sm:$0xff]  ;;  %v6339_v37 = vpop.permute.xlu0 %2423  ;;  %s8119_s11 = sld [smem:[#allocation98_spill]]  ;;  %s8299_s12 = sld [smem:[#allocation56_spill]] }
 0x8b1   : > { %v8097_v32 = vstv %s8091_s13  ;;  %v8100_v44 = vstv %s8095_s30  ;;  %v2042_v30 = vadd.f32 %v2041_v43, %v2032_v62  ;;  %v6333_v57 = vld [vmem:[#allocation3 + $0x4] sm:$0xff]  ;;  %s8102_s13 = sld [smem:[#allocation72_spill]]  ;;  %v6350_v46 = vld [vmem:[#allocation3 + $0x1c] sm:$0xff]  ;;  %v6354_v43 = vpop.permute.xlu1 %2425  ;;  %s6358_s30 = sld [smem:[#allocation19 + $0xbb]] }
 0x8b2   : > { %v2036_v18 = vmul.f32 %v8097_v32, %v2034_v2  ;;  %v1903_v58 = vmul.f32 %v8100_v44, %v6131_v49  ;;  %v2051_v2 = vmul.f32 %v8101_v12, %v6193_v15  ;;  %v6335_v4 = vld [vmem:[#allocation3 + $0x26] sm:$0xff]  ;;  %2294 = vst.msk [vmem:[#allocation3] sm:$0xff] %vm669_vm0, %v5676_v42  ;;  %v8109_v42 = vstv %s8103_s2  ;;  %2219 = vst.msk [vmem:[#allocation3 + $0x18] sm:$0xff] %vm669_vm0, %v5622_v35  ;;  %s6378_s2 = sld [smem:[#allocation19 + $0xed]] }
 0x8b3   : > { %8099 = sst [smem:[#allocation76_spill]] %s6323_s22  ;;  %v6348_v15 = vld [vmem:[#allocation3 + $0x27] sm:$0xff]  ;;  %v2061_v44 = vmul.f32 %v8109_v42, %v6202_v48  ;;  %s8133_s22 = sld [smem:[#allocation123_spill]] }
 0x8b4   : > { %v2037_v54 = vadd.f32 %v2036_v18, %v2027_v63  ;;  %v8105_v49 = vstv %s8098_s5  ;;  %v6352_v28 = vld [vmem:[#allocation3 + $0x28] sm:$0xff]  ;;  %v1904_v63 = vadd.f32 %v1903_v58, %v1894_v59  ;;  %v2052_v12 = vadd.f32 %v2051_v2, %v2042_v30  ;;  %s8110_s5 = sld [smem:[#allocation74_spill]]  ;;  %2220 = vst.msk [vmem:[#allocation3 + $0x20] sm:$0xff] %vm669_vm0, %v6204_v38  ;;  %v6415_v30 = vpop.permute.xlu0 %2493 }
 0x8b5   : > { %v2046_v39 = vmul.f32 %v8105_v49, %v6221_v24  ;;  %2221 = vst.msk [vmem:[#allocation3 + $0x28] sm:$0xff] %vm669_vm0, %v6156_v21  ;;  %v6370_v49 = vld [vmem:[#allocation3 + $0xc] sm:$0xff]  ;;  %v8114_v35 = vstv %s8106_s18  ;;  %s8117_s18 = sld [smem:[#allocation105_spill]] }
 0x8b6   : > { %v6372_v32 = vld [vmem:[#allocation3 + $0xd] sm:$0xff]  ;;  %v2056_v48 = vmul.f32 %v8114_v35, %v6230_v31  ;;  %v2062_v31 = vadd.f32 %v2061_v44, %v2052_v12 }
 0x8b7   : > { %8107 = sst [smem:[#allocation85_spill]] %s6358_s30  ;;  %v8108_v24 = vstv %s8102_s13  ;;  %v6374_v59 = vld [vmem:[#allocation3 + $0xe] sm:$0xff]  ;;  %s8113_s13 = sld [smem:[#allocation95_spill]] }
 0x8b8   : > { %v1913_v18 = vmul.f32 %v8108_v24, %v6133_v60  ;;  %8112 = sst [smem:[#allocation86_spill]] %s6378_s2  ;;  %v2047_v60 = vadd.f32 %v2046_v39, %v2037_v54  ;;  %v6383_v58 = vld [vmem:[#allocation3 + $0xf] sm:$0xff]  ;;  %v8118_v24 = vstv %s8111_s19  ;;  %s8121_s19 = sld [smem:[#allocation106_spill]] }
 0x8b9   : > { %v6385_v21 = vld [vmem:[#allocation3 + $0x10] sm:$0xff]  ;;  %v2089_v42 = vmul.f32 %v8118_v24, %v6290_v55  ;;  %2295 = vst.msk [vmem:[#allocation3 + $0x8] sm:$0xff] %vm669_vm0, %v6197_v56  ;;  %v8122_v56 = vstv %s8115_s25  ;;  %s8127_s25 = sld [smem:[#allocation107_spill]]  ;;  %s8136_s30 = sld [smem:[#allocation96_spill]] }
 0x8ba   : > { %v1914_v38 = vadd.f32 %v1913_v18, %v1904_v63  ;;  %v8116_v54 = vstv %s8110_s5  ;;  %2296 = vst.msk [vmem:[#allocation3 + $0x10] sm:$0xff] %vm669_vm0, %v6251_v20  ;;  %v2057_v35 = vadd.f32 %v2056_v48, %v2047_v60  ;;  %v2099_v24 = vmul.f32 %v8122_v56, %v6307_v34  ;;  %s8124_s5 = sld [smem:[#allocation99_spill]]  ;;  %v6428_v56 = vld [vmem:[#allocation3 + $0x18] sm:$0xff]  ;;  %s8158_s2 = sld [smem:[#allocation112_spill]] }
 0x8bb   : > { %v1923_v39 = vmul.f32 %v8116_v54, %v6140_v17  ;;  %v6406_v17 = vpop.permute.xlu1 %2491  ;;  %v2090_v55 = vadd.f32 %v2089_v42, %v2062_v31  ;;  %v2298_v42 = vld [vmem:[#allocation3] sm:$0xff] }
 0x8bc   : > { %v6466_v20 = vld [vmem:[#allocation3 + $0x26] sm:$0xff] }
 0x8bd   : > { %v8120_v63 = vstv %s8113_s13  ;;  %v6410_v54 = vadd.f32 %v1923_v39, %v1914_v38  ;;  %s8125_s13 = sld [smem:[#allocation121_spill]]  ;;  %v2100_v38 = vadd.f32 %v2099_v24, %v2090_v55  ;;  %v8126_v39 = vstv %s8119_s11  ;;  %s8129_s11 = sld [smem:[#allocation67_spill]] }
 0x8be   : > { %v2066_v18 = vmul.f32 %v8120_v63, %v6232_v9  ;;  %v8123_v9 = vstv %s8117_s18  ;;  %v2109_v31 = vmul.f32 %v8126_v39, %v6311_v41  ;;  %s8132_s18 = sld [smem:[#allocation100_spill]]  ;;  %v8140_v55 = vstv %s8133_s22  ;;  %s8146_s22 = sld [smem:[#allocation110_spill]] }
 0x8bf   : > { %v2094_v48 = vmul.f32 %v8123_v9, %v6294_v10  ;;  %v6433_v10 = vld [vmem:[#allocation3 + $0x28] sm:$0xff] }
 0x8c0   : > { %v2067_v60 = vadd.f32 %v2066_v18, %v2057_v35  ;;  %v8128_v35 = vstv %s8121_s19  ;;  %v6435_v9 = vld [vmem:[#allocation3 + $0x24] sm:$0xff]  ;;  %v2110_v41 = vadd.f32 %v2109_v31, %v2100_v38  ;;  %v8130_v39 = vstv %s8124_s5  ;;  %s8134_s19 = sld [smem:[#allocation69_spill]] }
 0x8c1   : > { %v2104_v18 = vmul.f32 %v8128_v35, %v6309_v52  ;;  %v2119_v34 = vmul.f32 %v8130_v39, %v6337_v33  ;;  %v6446_v52 = vld [vmem:[#allocation3 + $0x25] sm:$0xff]  ;;  %v6450_v35 = vpop.permute.xlu1 %2561  ;;  %v8135_v38 = vstv %s8127_s25  ;;  %s8137_s5 = sld [smem:[#allocation109_spill]]  ;;  %s8142_s25 = sld [smem:[#allocation127_spill]] }
 0x8c2   : > { %v2095_v62 = vadd.f32 %v2094_v48, %v2067_v60  ;;  %v6444_v60 = vld [vmem:[#allocation3 + $0x19] sm:$0xff]  ;;  %v2114_v31 = vmul.f32 %v8135_v38, %v6335_v4  ;;  %v2308_v33 = vld [vmem:[#allocation3 + $0x1] sm:$0xff]  ;;  %v6470_v38 = vpop.permute.xlu0 %2559 }
 0x8c3   : > { %v8131_v2 = vstv %s8125_s13  ;;  %v6448_v48 = vld [vmem:[#allocation3 + $0x1a] sm:$0xff]  ;;  %v2318_v39 = vld [vmem:[#allocation3 + $0x2] sm:$0xff]  ;;  %v8138_v5 = vstv %s8129_s11  ;;  %v2120_v47 = vadd.f32 %v2119_v34, %v2110_v41  ;;  %s8141_s13 = sld [smem:[#allocation124_spill]]  ;;  %s8148_s11 = sld [smem:[#allocation101_spill]] }
 0x8c4   : > { %v2300_v11 = vmul.f32 %v8131_v2, %v2298_v42  ;;  %v2105_v24 = vadd.f32 %v2104_v18, %v2095_v62  ;;  %v2328_v2 = vld [vmem:[#allocation3 + $0x3] sm:$0xff]  ;;  %v1888_v16 = vmul.f32 %v8138_v5, %v6102_v61  ;;  %v8139_v44 = vstv %s8132_s18  ;;  %v6468_v4 = vld [vmem:[#allocation3 + $0x1b] sm:$0xff]  ;;  %s8151_s18 = sld [smem:[#allocation111_spill]] }
 0x8c5   : > { %v2129_v63 = vmul.f32 %v8139_v44, %v6350_v46  ;;  %v2310_v62 = vmul.f32 %v8140_v55, %v2308_v33  ;;  %v2338_v18 = vld [vmem:[#allocation3 + $0x4] sm:$0xff]  ;;  %v8144_v5 = vstv %s8136_s30  ;;  %v6483_v55 = vld [vmem:[#allocation3 + $0x1c] sm:$0xff]  ;;  %v2303_v33 = vld [vmem:[#allocation3 + $0xc] sm:$0xff]  ;;  %s8150_s30 = sld [smem:[#allocation125_spill]] }
 0x8c6   : > { %v8143_v22 = vstv %s8134_s19  ;;  %v2157_v61 = vmul.f32 %v8144_v5, %v6288_v14  ;;  %v2115_v34 = vadd.f32 %v2114_v31, %v2105_v24  ;;  %v6481_v41 = vld [vmem:[#allocation3 + $0x27] sm:$0xff]  ;;  %2430 = vst.msk [vmem:[#allocation3] sm:$0xff] %vm669_vm0, %v5704_v53  ;;  %2362 = vst.msk [vmem:[#allocation3 + $0x18] sm:$0xff] %vm669_vm0, %v5647_v0  ;;  %v2333_v5 = vld [vmem:[#allocation3 + $0xf] sm:$0xff]  ;;  %s6497_s19 = sld [smem:[#allocation19 + $0x42]]  ;;  %v1889_v53 = vadd.f32 %v1888_v16, %v6286_v8  ;;  %v6514_v16 = vpop.permute.xlu1 %2634 }
 0x8c7   : > { %v1898_v42 = vmul.f32 %v8143_v22, %v6104_v40  ;;  %v8145_v46 = vstv %s8137_s5  ;;  %v2130_v12 = vadd.f32 %v2129_v63, %v2120_v47  ;;  %v2311_v50 = vadd.f32 %v2310_v62, %v2300_v11  ;;  %2364 = vst.msk [vmem:[#allocation3 + $0x28] sm:$0xff] %vm669_vm0, %v6262_v36  ;;  %v2313_v24 = vld [vmem:[#allocation3 + $0xd] sm:$0xff]  ;;  %2363 = vst.msk [vmem:[#allocation3 + $0x20] sm:$0xff] %vm669_vm0, %v6296_v23  ;;  %s8152_s5 = sld [smem:[#allocation130_spill]] }
 0x8c8   : > { %v2124_v44 = vmul.f32 %v8145_v46, %v6348_v15  ;;  %v8149_v14 = vstv %s8142_s25  ;;  %v2323_v31 = vld [vmem:[#allocation3 + $0xe] sm:$0xff]  ;;  %v8154_v47 = vstv %s8146_s22  ;;  %v8155_v11 = vstv %s7977_s15  ;;  %s8156_s25 = sld [smem:[#allocation126_spill]]  ;;  %s8160_s22 = sld [smem:[#allocation103_spill]] }
 0x8c9   : > { %v8147_v40 = vstv %s8141_s13  ;;  %v2305_v15 = vmul.f32 %v8149_v14, %v2303_v33  ;;  %s8153_s13 = sld [smem:[#allocation102_spill]]  ;;  %v2134_v36 = vmul.f32 %v8154_v47, %v6352_v28  ;;  %v2315_v63 = vmul.f32 %v8155_v11, %v2313_v24  ;;  %2431 = vst.msk [vmem:[#allocation3 + $0x8] sm:$0xff] %vm669_vm0, %v6339_v37  ;;  %s8164_s15 = sld [smem:[#allocation113_spill]] }
 0x8ca   : > { %v2320_v22 = vmul.f32 %v8147_v40, %v2318_v39  ;;  %v2125_v0 = vadd.f32 %v2124_v44, %v2115_v34  ;;  %v2343_v39 = vld [vmem:[#allocation3 + $0x10] sm:$0xff]  ;;  %v8157_v62 = vstv %s8148_s11  ;;  %v2158_v46 = vadd.f32 %v2157_v61, %v2130_v12  ;;  %s8167_s11 = sld [smem:[#allocation104_spill]] }
 0x8cb   : > { %v2167_v23 = vmul.f32 %v8157_v62, %v6317_v26  ;;  %v8159_v40 = vstv %s8150_s30  ;;  %2432 = vst.msk [vmem:[#allocation3 + $0x10] sm:$0xff] %vm669_vm0, %v6354_v43  ;;  %v8161_v34 = vstv %s8151_s18  ;;  %v2316_v37 = vadd.f32 %v2315_v63, %v2305_v15  ;;  %v6526_v43 = vpop.permute.xlu0 %2636  ;;  %s8169_s30 = sld [smem:[#allocation129_spill]]  ;;  %s8171_s18 = sld [smem:[#allocation71_spill]] }
 0x8cc   : > { %v2321_v33 = vadd.f32 %v2320_v22, %v2311_v50  ;;  %v2330_v8 = vmul.f32 %v8159_v40, %v2328_v2  ;;  %v2135_v28 = vadd.f32 %v2134_v36, %v2125_v0  ;;  %v2162_v44 = vmul.f32 %v8161_v34, %v6370_v49 }
 0x8cd   : > { %v8162_v14 = vstv %s8152_s5  ;;  %v2168_v12 = vadd.f32 %v2167_v23, %v2158_v46  ;;  %v8166_v0 = vstv %s8158_s2  ;;  %v8168_v15 = vstv %s7979_s3  ;;  %v6536_v46 = vld [vmem:[#allocation3] sm:$0xff]  ;;  %s8173_s2 = sld [smem:[#allocation114_spill]]  ;;  %s8177_s3 = sld [smem:[#allocation108_spill]] }
 0x8ce   : > { %v2325_v24 = vmul.f32 %v8162_v14, %v2323_v31  ;;  %v2331_v61 = vadd.f32 %v2330_v8, %v2321_v33  ;;  %v8165_v2 = vstv %s8156_s25  ;;  %v2163_v47 = vadd.f32 %v2162_v44, %v2135_v28  ;;  %s8181_s5 = sld [smem:[#allocation136_spill]]  ;;  %s8185_s25 = sld [smem:[#allocation133_spill]] }
 0x8cf   : > { %v8163_v26 = vstv %s8153_s13  ;;  %v2340_v22 = vmul.f32 %v8165_v2, %v2338_v18  ;;  %v2172_v36 = vmul.f32 %v8166_v0, %v6372_v32  ;;  %v2335_v31 = vmul.f32 %v8168_v15, %v2333_v5  ;;  %v2366_v32 = vld [vmem:[#allocation3 + $0x18] sm:$0xff]  ;;  %s8184_s13 = sld [smem:[#allocation117_spill]] }
 0x8d0   : > { %v2177_v50 = vmul.f32 %v8163_v26, %v6319_v6  ;;  %v2326_v49 = vadd.f32 %v2325_v24, %v2316_v37  ;;  %v1899_v11 = vadd.f32 %v1898_v42, %v1889_v53  ;;  %v8170_v63 = vstv %s8160_s22  ;;  %v2376_v5 = vld [vmem:[#allocation3 + $0x19] sm:$0xff]  ;;  %v6548_v24 = vld [vmem:[#allocation3 + $0x1] sm:$0xff]  ;;  %s8189_s22 = sld [smem:[#allocation137_spill]] }
 0x8d1   : > { %v2187_v6 = vmul.f32 %v8170_v63, %v6321_v25  ;;  %v2341_v23 = vadd.f32 %v2340_v22, %v2331_v61  ;;  %v2173_v18 = vadd.f32 %v2172_v36, %v2163_v47  ;;  %v8172_v33 = vstv %s8164_s15  ;;  %v2386_v42 = vld [vmem:[#allocation3 + $0x1a] sm:$0xff]  ;;  %v6550_v26 = vld [vmem:[#allocation3 + $0x2] sm:$0xff]  ;;  %s6585_s15 = sld [smem:[#allocation19 + $0x74]] }
 0x8d2   : > { %v2178_v62 = vadd.f32 %v2177_v50, %v2168_v12  ;;  %v2182_v40 = vmul.f32 %v8172_v33, %v6374_v59  ;;  %v2336_v8 = vadd.f32 %v2335_v31, %v2326_v49  ;;  %v8174_v28 = vstv %s7980_s8  ;;  %v6552_v59 = vld [vmem:[#allocation3 + $0x3] sm:$0xff]  ;;  %v6554_v50 = vpop.permute.xlu1 %2704  ;;  %v2396_v36 = vld [vmem:[#allocation3 + $0x1b] sm:$0xff]  ;;  %s8180_s8 = sld [smem:[#allocation115_spill]] }
 0x8d3   : > { %v2345_v34 = vmul.f32 %v8174_v28, %v2343_v39  ;;  %v8175_v53 = vstv %s8167_s11  ;;  %v8176_v37 = vstv %s8169_s30  ;;  %v2724_v12 = vstv %s6497_s19  ;;  %v6563_v0 = vld [vmem:[#allocation3 + $0x4] sm:$0xff]  ;;  %v2406_v49 = vld [vmem:[#allocation3 + $0x1c] sm:$0xff]  ;;  %s8191_s11 = sld [smem:[#allocation118_spill]]  ;;  %s8193_s30 = sld [smem:[#allocation134_spill]] }
 0x8d4   : > { %v2197_v25 = vmul.f32 %v8175_v53, %v6333_v57  ;;  %v2188_v44 = vadd.f32 %v2187_v6, %v2178_v62  ;;  %v2368_v14 = vmul.f32 %v8176_v37, %v2366_v32  ;;  %v8178_v39 = vstv %s8171_s18  ;;  %2498 = vst.msk [vmem:[#allocation3 + $0x18] sm:$0xff] %vm669_vm0, %v5674_v3  ;;  %2566 = vst.msk [vmem:[#allocation3] sm:$0xff] %vm669_vm0, %v5737_v13  ;;  %v2391_v33 = vld [vmem:[#allocation3 + $0x26] sm:$0xff]  ;;  %s8194_s18 = sld [smem:[#allocation73_spill]] }
 0x8d5   : > { %v1908_v61 = vmul.f32 %v8178_v39, %v6114_v27  ;;  %v2183_v2 = vadd.f32 %v2182_v40, %v2173_v18  ;;  %v8179_v57 = vstv %s8173_s2  ;;  %v2346_v47 = vadd.f32 %v2345_v34, %v2336_v8  ;;  %v2381_v18 = vld [vmem:[#allocation3 + $0x25] sm:$0xff]  ;;  %v6575_v40 = vpop.permute.xlu0 %2702  ;;  %v6594_v39 = vld [vmem:[#allocation3 + $0xe] sm:$0xff]  ;;  %s8195_s2 = sld [smem:[#allocation119_spill]]  ;;  %s8302_s19 = sld [smem:[#allocation57_spill]] }
 0x8d6   : > { %v2192_v22 = vmul.f32 %v8179_v57, %v6383_v58  ;;  %v2198_v15 = vadd.f32 %v2197_v25, %v2188_v44  ;;  %v8182_v31 = vstv %s8177_s3  ;;  %v2369_v6 = vadd.f32 %v2368_v14, %v2341_v23  ;;  %v2371_v58 = vld [vmem:[#allocation3 + $0x24] sm:$0xff]  ;;  %v6583_v53 = vld [vmem:[#allocation3 + $0xc] sm:$0xff]  ;;  %s8196_s3 = sld [smem:[#allocation145_spill]] }
 0x8d7   : > { %v2225_v63 = vmul.f32 %v8182_v31, %v6428_v56  ;;  %v8183_v62 = vstv %s5824_s17  ;;  %v1909_v32 = vadd.f32 %v1908_v61, %v1899_v11  ;;  %v8187_v28 = vstv %s8181_s5  ;;  %s8188_s17 = sld [smem:[#allocation140_spill]]  ;;  %v2401_v3 = vld [vmem:[#allocation3 + $0x27] sm:$0xff]  ;;  %v6596_v61 = vld [vmem:[#allocation3 + $0xf] sm:$0xff]  ;;  %s8202_s5 = sld [smem:[#allocation146_spill]] }
 0x8d8   : > { %v2378_v27 = vmul.f32 %v8183_v62, %v2376_v5  ;;  %v2193_v56 = vadd.f32 %v2192_v22, %v2183_v2  ;;  %v8186_v23 = vstv %s8180_s8  ;;  %v2373_v34 = vmul.f32 %v8187_v28, %v2371_v58  ;;  %v2411_v5 = vld [vmem:[#allocation3 + $0x28] sm:$0xff]  ;;  %2499 = vst.msk [vmem:[#allocation3 + $0x20] sm:$0xff] %vm669_vm0, %v6406_v17  ;;  %s8198_s8 = sld [smem:[#allocation135_spill]] }
 0x8d9   : > { %v2202_v8 = vmul.f32 %v8186_v23, %v6385_v21  ;;  %v2226_v13 = vadd.f32 %v2225_v63, %v2198_v15  ;;  %v8190_v25 = vstv %s8184_s13  ;;  %v8192_v37 = vstv %s8185_s25  ;;  %v6592_v21 = vld [vmem:[#allocation3 + $0xd] sm:$0xff]  ;;  %2500 = vst.msk [vmem:[#allocation3 + $0x28] sm:$0xff] %vm669_vm0, %v6415_v30  ;;  %s8203_s13 = sld [smem:[#allocation150_spill]]  ;;  %s8206_s25 = sld [smem:[#allocation120_spill]] }
 0x8da   : > { %v2235_v11 = vmul.f32 %v8190_v25, %v6444_v60  ;;  %v2379_v44 = vadd.f32 %v2378_v27, %v2369_v6  ;;  %v2388_v14 = vmul.f32 %v8192_v37, %v2386_v42  ;;  %v2374_v2 = vadd.f32 %v2373_v34, %v2346_v47  ;;  %v6604_v42 = vld [vmem:[#allocation3 + $0x10] sm:$0xff]  ;;  %2567 = vst.msk [vmem:[#allocation3 + $0x8] sm:$0xff] %vm669_vm0, %v6470_v38  ;;  %v6618_v47 = vpop.permute.xlu1 %2770 }
 0x8db   : > { %v2203_v60 = vadd.f32 %v2202_v8, %v2193_v56  ;;  %v8199_v15 = vstv %s8189_s22  ;;  %v8200_v30 = vstv %s8191_s11  ;;  %v8201_v17 = vstv %s8193_s30  ;;  %2568 = vst.msk [vmem:[#allocation3 + $0x10] sm:$0xff] %vm669_vm0, %v6450_v35  ;;  %s6628_s22 = sld [smem:[#allocation19 + $0xa6]]  ;;  %s8210_s11 = sld [smem:[#allocation148_spill]] }
 0x8dc   : > { %v2230_v31 = vmul.f32 %v8199_v15, %v6435_v9  ;;  %v2236_v63 = vadd.f32 %v2235_v11, %v2226_v13  ;;  %v2245_v6 = vmul.f32 %v8200_v30, %v6448_v48  ;;  %v2389_v62 = vadd.f32 %v2388_v14, %v2379_v44  ;;  %v6632_v13 = vpop.permute.xlu0 %2772  ;;  %s6639_s30 = sld [smem:[#allocation19 + $0xd8]] }
 0x8dd   : > { %v8197_v57 = vstv %s8188_s17  ;;  %v2398_v27 = vmul.f32 %v8201_v17, %v2396_v36  ;;  %v8204_v58 = vstv %s8194_s18  ;;  %v8207_v23 = vstv %s8196_s3  ;;  %s8208_s17 = sld [smem:[#allocation139_spill]]  ;;  %s6641_s18 = sld [smem:[#allocation19 + $0x1a]] }
 0x8de   : > { %v2383_v22 = vmul.f32 %v8197_v57, %v2381_v18  ;;  %v1918_v38 = vmul.f32 %v8204_v58, %v6116_v29  ;;  %v8205_v18 = vstv %s8195_s2  ;;  %v2393_v48 = vmul.f32 %v8207_v23, %v2391_v33  ;;  %s8214_s2 = sld [smem:[#allocation141_spill]]  ;;  %v6649_v57 = vld [vmem:[#allocation3 + $0x18] sm:$0xff]  ;;  %s6651_s3 = sld [smem:[#allocation19 + $0x4c]] }
 0x8df   : > { %v2255_v9 = vmul.f32 %v8205_v18, %v6468_v4  ;;  %v2246_v36 = vadd.f32 %v2245_v6, %v2236_v63  ;;  %v2399_v8 = vadd.f32 %v2398_v27, %v2389_v62  ;;  %v8209_v28 = vstv %s8198_s8  ;;  %s6653_s8 = sld [smem:[#allocation19 + $0x7e]]  ;;  %v6657_v15 = vld [vmem:[#allocation3 + $0x19] sm:$0xff] }
 0x8e0   : > { %v2384_v56 = vadd.f32 %v2383_v22, %v2374_v2  ;;  %v2408_v34 = vmul.f32 %v8209_v28, %v2406_v49  ;;  %v2231_v35 = vadd.f32 %v2230_v31, %v2203_v60  ;;  %v1919_v25 = vadd.f32 %v1918_v38, %v1909_v32  ;;  %v6659_v31 = vld [vmem:[#allocation3 + $0x1a] sm:$0xff] }
 0x8e1   : > { %v8211_v11 = vstv %s8202_s5  ;;  %v8212_v4 = vstv %s8203_s13  ;;  %v2256_v33 = vadd.f32 %v2255_v9, %v2246_v36  ;;  %v8213_v14 = vstv %s8206_s25  ;;  %s8217_s5 = sld [smem:[#allocation149_spill]]  ;;  %s6664_s13 = sld [smem:[#allocation19 + $0xb0]]  ;;  %v6669_v27 = vld [vmem:[#allocation3] sm:$0xff] }
 0x8e2   : > { %v2394_v29 = vadd.f32 %v2393_v48, %v2384_v56  ;;  %v2403_v44 = vmul.f32 %v8211_v11, %v2401_v3  ;;  %v2240_v37 = vmul.f32 %v8212_v4, %v6446_v52  ;;  %v2265_v49 = vmul.f32 %v8213_v14, %v6483_v55  ;;  %v6661_v55 = vld [vmem:[#allocation3 + $0x1b] sm:$0xff]  ;;  %s8219_s25 = sld [smem:[#allocation142_spill]]  ;;  %v6680_v56 = vpop.permute.xlu1 %2840  ;;  %v6707_v4 = vld [vmem:[#allocation3 + $0xc] sm:$0xff] }
 0x8e3   : > { %v8215_v60 = vstv %s8208_s17  ;;  %v2409_v32 = vadd.f32 %v2408_v34, %v2399_v8  ;;  %v8216_v3 = vstv %s8210_s11  ;;  %v6673_v58 = vld [vmem:[#allocation3 + $0x2] sm:$0xff]  ;;  %v8220_v18 = vstv %s5926_s4  ;;  %s6696_s4 = sld [smem:[#allocation19 + $0xe2]]  ;;  %s8224_s17 = sld [smem:[#allocation116_spill]] }
 0x8e4   : > { %v2436_v2 = vmul.f32 %v8215_v60, %v6536_v46  ;;  %v2404_v52 = vadd.f32 %v2403_v44, %v2394_v29  ;;  %v2413_v22 = vmul.f32 %v8216_v3, %v2411_v5  ;;  %v2241_v63 = vadd.f32 %v2240_v37, %v2231_v35  ;;  %v6671_v5 = vld [vmem:[#allocation3 + $0x1] sm:$0xff]  ;;  %v6709_v37 = vpop.permute.xlu0 %2838  ;;  %s6711_s11 = sld [smem:[#allocation19 + $0x24]]  ;;  %v6718_v60 = vld [vmem:[#allocation3 + $0xd] sm:$0xff] }
 0x8e5   : > { %v2734_v46 = vstv %s6585_s15  ;;  %v2266_v30 = vadd.f32 %v2265_v49, %v2256_v33  ;;  %v8218_v6 = vstv %s8214_s2  ;;  %v6675_v38 = vld [vmem:[#allocation3 + $0x1c] sm:$0xff]  ;;  %v2250_v9 = vmul.f32 %v8220_v18, %v6466_v20  ;;  %v2507_v34 = vld [vmem:[#allocation3 + $0x24] sm:$0xff]  ;;  %s8227_s2 = sld [smem:[#allocation151_spill]]  ;;  %s7028_s15 = sld [smem:[#allocation19 + $0x76]] }
 0x8e6   : > { %v2446_v62 = vmul.f32 %v8218_v6, %v6548_v24  ;;  %v2437_v17 = vadd.f32 %v2436_v2, %v2409_v32  ;;  %v1928_v23 = vsel %vm1925_vm3, %v1919_v25, 0.0  ;;  %v2414_v48 = vadd.f32 %v2413_v22, %v2404_v52  ;;  %2641 = vst.msk [vmem:[#allocation3 + $0x18] sm:$0xff] %vm669_vm0, %v5702_v51  ;;  %v6692_v35 = vld [vmem:[#allocation3 + $0x25] sm:$0xff]  ;;  %v6720_v2 = vld [vmem:[#allocation3 + $0xe] sm:$0xff] }
 0x8e7   : > { %v8221_v24 = vstv %s8217_s5  ;;  %v8222_v8 = vstv %s5940_s16  ;;  %v6694_v20 = vld [vmem:[#allocation3 + $0x26] sm:$0xff]  ;;  %v2275_v25 = vsel %vm2272_vm4, %v2266_v30, 0.0  ;;  %v2251_v51 = vadd.f32 %v2250_v9, %v2241_v63  ;;  %s8225_s16 = sld [smem:[#allocation143_spill]]  ;;  %v6722_v32 = vld [vmem:[#allocation3 + $0xf] sm:$0xff]  ;;  %s8231_s5 = sld [smem:[#allocation35_spill]] }
 0x8e8   : > { %v2441_v36 = vmul.f32 %v8221_v24, %v6583_v53  ;;  %v2260_v28 = vmul.f32 %v8222_v8, %v6481_v41  ;;  %v8223_v29 = vstv %s8219_s25  ;;  %v2447_v11 = vadd.f32 %v2446_v62, %v2437_v17  ;;  %v6703_v41 = vld [vmem:[#allocation3 + $0x27] sm:$0xff]  ;;  %v6735_v62 = vld [vmem:[#allocation3 + $0x10] sm:$0xff]  ;;  %s6741_s25 = sld [smem:[#allocation19 + $0x56]] }
 0x8e9   : > { %v2456_v53 = vmul.f32 %v8223_v29, %v6550_v26  ;;  %v6705_v44 = vld [vmem:[#allocation3 + $0x28] sm:$0xff]  ;;  %v6713_v33 = vadd.f32 %v2275_v25, %v1928_v23  ;;  %v8226_v26 = vstv %s5902_s29  ;;  %2642 = vst.msk [vmem:[#allocation3 + $0x20] sm:$0xff] %vm669_vm0, %v6514_v16  ;;  %v2744_v52 = vstv %s6628_s22  ;;  %s8229_s29 = sld [smem:[#allocation144_spill]]  ;;  %2711 = vst.msk [vmem:[#allocation3 + $0x10] sm:$0xff] %vm669_vm0, %v6554_v50  ;;  %s8307_s22 = sld [smem:[#allocation75_spill]] }
 0x8ea   : > { %v2442_v14 = vadd.f32 %v2441_v36, %v2414_v48  ;;  %v2451_v49 = vmul.f32 %v8226_v26, %v6592_v21  ;;  %2643 = vst.msk [vmem:[#allocation3 + $0x28] sm:$0xff] %vm669_vm0, %v6526_v43  ;;  %v8228_v3 = vstv %s8224_s17  ;;  %v2261_v6 = vadd.f32 %v2260_v28, %v2251_v51  ;;  %v6737_v17 = vld [vmem:[#allocation3 + $0x3] sm:$0xff]  ;;  %s8234_s17 = sld [smem:[#allocation147_spill]] }
 0x8eb   : > { %v2270_v21 = vmul.f32 %v8228_v3, %v6433_v10  ;;  %v2457_v30 = vadd.f32 %v2456_v53, %v2447_v11  ;;  %v6739_v43 = vld [vmem:[#allocation3 + $0x4] sm:$0xff]  ;;  %v8233_v10 = vstv %s8227_s2  ;;  %v2782_v9 = vstv %s6641_s18  ;;  %s8237_s2 = sld [smem:[#allocation128_spill]]  ;;  %s7078_s18 = sld [smem:[#allocation19 + $0x45]] }
 0x8ec   : > { %v2452_v16 = vadd.f32 %v2451_v49, %v2442_v14  ;;  %v2461_v18 = vmul.f32 %v8233_v10, %v6594_v39  ;;  %2710 = vst.msk [vmem:[#allocation3 + $0x8] sm:$0xff] %vm669_vm0, %v6575_v40  ;;  %2709 = vst.msk [vmem:[#allocation3] sm:$0xff] %vm669_vm0, %v5775_v19  ;;  %v6757_v39 = vpop.permute.xlu1 %2906  ;;  %v2792_v8 = vstv %s6651_s3  ;;  %v2802_v25 = vstv %s6653_s8  ;;  %v6773_v14 = vpop.permute.xlu0 %2908  ;;  %s7106_s3 = sld [smem:[#allocation19 + $0x1c]]  ;;  %s7112_s8 = sld [smem:[#allocation19 + $0x4e]] }
 0x8ed   : > { %v8230_v22 = vstv %s8225_s16  ;;  %s8236_s16 = sld [smem:[#allocation152_spill]]  ;;  %v2271_v36 = vadd.f32 %v2270_v21, %v2261_v6  ;;  %v8238_v28 = vstv %s8231_s5  ;;  %v1930_v29 = vsel %vm1925_vm3, %v6410_v54, 0.0  ;;  %v2645_v26 = vld [vmem:[#allocation3 + $0x18] sm:$0xff]  ;;  %s6786_s5 = sld [smem:[#allocation19 + $0x9]] }
 0x8ee   : > { %v2466_v63 = vmul.f32 %v8230_v22, %v6552_v59  ;;  %8232 = sst [smem:[#allocation59_spill]] %s6741_s25  ;;  %v2754_v59 = vstv %s6639_s30  ;;  %v2462_v40 = vadd.f32 %v2461_v18, %v2452_v16  ;;  %v2471_v50 = vmul.f32 %v8238_v28, %v6596_v61  ;;  %s7047_s30 = sld [smem:[#allocation19 + $0xa8]] }
 0x8ef   : > { %v8235_v23 = vstv %s8229_s29  ;;  %v2277_v51 = vsel %vm2272_vm4, %v2271_v36, 0.0  ;;  %s8242_s29 = sld [smem:[#allocation131_spill]]  ;;  %v8245_v36 = vstv %s6047_s7 }
 0x8f0   : > { %v2476_v48 = vmul.f32 %v8235_v23, %v6563_v0  ;;  %v2467_v24 = vadd.f32 %v2466_v63, %v2457_v30  ;;  %v8239_v53 = vstv %s8234_s17  ;;  %v2472_v61 = vadd.f32 %v2471_v50, %v2462_v40  ;;  %s8250_s7 = sld [smem:[#allocation50_spill]]  ;;  %s6804_s17 = sld [smem:[#allocation19 + $0x3b]] }
 0x8f1   : > { %v2504_v11 = vmul.f32 %v8239_v53, %v6649_v57  ;;  %v6778_v21 = vadd.f32 %v2277_v51, %v1930_v29  ;;  %v8241_v63 = vstv %s8237_s2  ;;  %v8243_v30 = vstv %s5958_s6  ;;  %v2650_v16 = vld [vmem:[#allocation3 + $0x24] sm:$0xff]  ;;  %s8248_s6 = sld [smem:[#allocation132_spill]]  ;;  %s8263_s2 = sld [smem:[#allocation48_spill]] }
 0x8f2   : > { %v2477_v0 = vadd.f32 %v2476_v48, %v2467_v24  ;;  %v2514_v57 = vmul.f32 %v8241_v63, %v6657_v15  ;;  %v2509_v6 = vmul.f32 %v8243_v30, %v2507_v34  ;;  %v2660_v10 = vld [vmem:[#allocation3 + $0x25] sm:$0xff]  ;;  %v2655_v15 = vld [vmem:[#allocation3 + $0x19] sm:$0xff]  ;;  %v8246_v29 = vstv %s6275_s0  ;;  %s8259_s0 = sld [smem:[#allocation38_spill]] }
 0x8f3   : > { %v8240_v49 = vstv %s8236_s16  ;;  %v2670_v18 = vld [vmem:[#allocation3 + $0x26] sm:$0xff]  ;;  %v2662_v40 = vmul.f32 %v8245_v36, %v2660_v10  ;;  %v2647_v34 = vmul.f32 %v8246_v29, %v2645_v26  ;;  %v8251_v26 = vstv %s6282_s20  ;;  %v6816_v36 = vld [vmem:[#allocation3 + $0xf] sm:$0xff]  ;;  %s6834_s20 = sld [smem:[#allocation19 + $0xdb]] }
 0x8f4   : > { %v2481_v3 = vmul.f32 %v8240_v49, %v6604_v42  ;;  %v2505_v22 = vadd.f32 %v2504_v11, %v2477_v0  ;;  %v8244_v42 = vstv %s6045_s14  ;;  %v2680_v28 = vld [vmem:[#allocation3 + $0x27] sm:$0xff]  ;;  %s8249_s14 = sld [smem:[#allocation42_spill]]  ;;  %v2860_v63 = vstv %s6741_s25  ;;  %v6818_v29 = vld [vmem:[#allocation3 + $0x10] sm:$0xff]  ;;  %s8261_s16 = sld [smem:[#allocation43_spill]] }
 0x8f5   : > { %v2652_v24 = vmul.f32 %v8244_v42, %v2650_v16  ;;  %v2690_v50 = vld [vmem:[#allocation3 + $0x28] sm:$0xff]  ;;  %v8247_v53 = vstv %s8242_s29  ;;  %v8253_v10 = vstv %s6053_s10  ;;  %s8258_s10 = sld [smem:[#allocation46_spill]]  ;;  %s8267_s29 = sld [smem:[#allocation51_spill]] }
 0x8f6   : > { %v2482_v48 = vadd.f32 %v2481_v3, %v2472_v61  ;;  %v2515_v0 = vadd.f32 %v2514_v57, %v2505_v22  ;;  %v2524_v11 = vmul.f32 %v8247_v53, %v6659_v31  ;;  %v2718_v51 = vld [vmem:[#allocation3 + $0xc] sm:$0xff]  ;;  %2779 = vst.msk [vmem:[#allocation3 + $0x28] sm:$0xff] %vm669_vm0, %v6632_v13  ;;  %v6806_v3 = vpop.permute.xlu1 %2983  ;;  %v2657_v22 = vmul.f32 %v8251_v26, %v2655_v15  ;;  %v2665_v53 = vld [vmem:[#allocation3 + $0x1a] sm:$0xff]  ;;  %s7008_s25 = sld [smem:[#allocation19 + $0x60]] }
 0x8f7   : > { %v6798_v49 = vld [vmem:[#allocation3 + $0xd] sm:$0xff]  ;;  %v8252_v31 = vstv %s5966_s27  ;;  %v2663_v16 = vadd.f32 %v2662_v40, %v2652_v24  ;;  %v2672_v42 = vmul.f32 %v8253_v10, %v2670_v18  ;;  %v8254_v23 = vstv %s8248_s6  ;;  %s8257_s27 = sld [smem:[#allocation153_spill]]  ;;  %v2685_v18 = vld [vmem:[#allocation3 + $0x1c] sm:$0xff]  ;;  %v6840_v40 = vld [vmem:[#allocation3 + $0x4] sm:$0xff] }
 0x8f8   : > { %v6800_v61 = vld [vmem:[#allocation3 + $0xe] sm:$0xff]  ;;  %v2510_v57 = vadd.f32 %v2509_v6, %v2482_v48  ;;  %v2519_v30 = vmul.f32 %v8252_v31, %v6692_v35  ;;  %v2525_v13 = vadd.f32 %v2524_v11, %v2515_v0  ;;  %v2534_v54 = vmul.f32 %v8254_v23, %v6661_v55  ;;  %v6828_v48 = vpop.permute.xlu0 %2981  ;;  %v2675_v35 = vld [vmem:[#allocation3 + $0x1b] sm:$0xff]  ;;  %s8268_s6 = sld [smem:[#allocation47_spill]] }
 0x8f9   : > { %v8256_v26 = vstv %s8250_s7  ;;  %v6830_v24 = vld [vmem:[#allocation3 + $0x1] sm:$0xff]  ;;  %2847 = vst.msk [vmem:[#allocation3 + $0x10] sm:$0xff] %vm669_vm0, %v6680_v56  ;;  %8260 = sst [smem:[#allocation77_spill]] %s6834_s20  ;;  %v2673_v23 = vadd.f32 %v2672_v42, %v2663_v16  ;;  %2778 = vst.msk [vmem:[#allocation3 + $0x20] sm:$0xff] %vm669_vm0, %v6618_v47  ;;  %v8262_v56 = vstv %s6284_s24  ;;  %v8266_v10 = vstv %s8259_s0  ;;  %s8273_s7 = sld [smem:[#allocation39_spill]] }
 0x8fa   : > { %v8255_v19 = vstv %s8249_s14  ;;  %v2682_v6 = vmul.f32 %v8256_v26, %v2680_v28  ;;  %v2520_v55 = vadd.f32 %v2519_v30, %v2510_v57  ;;  %2777 = vst.msk [vmem:[#allocation3 + $0x18] sm:$0xff] %vm669_vm0, %v5735_v7  ;;  %v2658_v28 = vadd.f32 %v2657_v22, %v2647_v34  ;;  %v2713_v47 = vld [vmem:[#allocation3] sm:$0xff]  ;;  %s6858_s14 = sld [smem:[#allocation19 + $0x6d]]  ;;  %s8279_s0 = sld [smem:[#allocation49_spill]] }
 0x8fb   : > { %v2529_v15 = vmul.f32 %v8255_v19, %v6694_v20  ;;  %v6836_v20 = vld [vmem:[#allocation3 + $0x2] sm:$0xff]  ;;  %v2667_v0 = vmul.f32 %v8262_v56, %v2665_v53  ;;  %v2535_v11 = vadd.f32 %v2534_v54, %v2525_v13  ;;  %v8265_v30 = vstv %s8258_s10  ;;  %s8272_s24 = sld [smem:[#allocation45_spill]]  ;;  %s6883_s10 = sld [smem:[#allocation19 + $0xd1]] }
 0x8fc   : > { %v6838_v19 = vld [vmem:[#allocation3 + $0x3] sm:$0xff]  ;;  %v2539_v16 = vmul.f32 %v8265_v30, %v6703_v41  ;;  %v2692_v42 = vmul.f32 %v8266_v10, %v2690_v50  ;;  %v2683_v34 = vadd.f32 %v2682_v6, %v2673_v23  ;;  %v8269_v54 = vstv %s6299_s9  ;;  %s8276_s9 = sld [smem:[#allocation44_spill]]  ;;  %s8293_s20 = sld [smem:[#allocation154_spill]] }
 0x8fd   : > { %v8264_v57 = vstv %s8257_s27  ;;  %2846 = vst.msk [vmem:[#allocation3 + $0x8] sm:$0xff] %vm669_vm0, %v6709_v37  ;;  %v2530_v7 = vadd.f32 %v2529_v15, %v2520_v55  ;;  %2845 = vst.msk [vmem:[#allocation3] sm:$0xff] %vm669_vm0, %v5808_v1  ;;  %v2677_v22 = vmul.f32 %v8269_v54, %v2675_v35  ;;  %v8270_v41 = vstv %s8261_s16  ;;  %v6871_v15 = vpop.permute.xlu1 %3049  ;;  %s6881_s27 = sld [smem:[#allocation19 + $0x9f]]  ;;  %s8281_s16 = sld [smem:[#allocation52_spill]] }
 0x8fe   : > { %v2544_v31 = vmul.f32 %v8264_v57, %v6675_v38  ;;  %v2668_v38 = vadd.f32 %v2667_v0, %v2658_v28  ;;  %v2572_v50 = vmul.f32 %v8270_v41, %v6669_v27  ;;  %v8271_v37 = vstv %s8263_s2  ;;  %v6878_v27 = vpop.permute.xlu0 %3047  ;;  %s6897_s2 = sld [smem:[#allocation19 + $0x88]] }
 0x8ff   : > { %v2549_v13 = vmul.f32 %v8271_v37, %v6705_v44  ;;  %v2998_v26 = vstv %s6786_s5  ;;  %v2540_v6 = vadd.f32 %v2539_v16, %v2530_v7  ;;  %v2693_v55 = vadd.f32 %v2692_v42, %v2683_v34  ;;  %v6893_v42 = vld [vmem:[#allocation3 + $0x28] sm:$0xff]  ;;  %s7085_s5 = sld [smem:[#allocation19 + $0x26]] }
 0x900   : > { %v2545_v53 = vadd.f32 %v2544_v31, %v2535_v11  ;;  %v8274_v23 = vstv %s8267_s29  ;;  %v2678_v28 = vadd.f32 %v2677_v22, %v2668_v38  ;;  %v8275_v35 = vstv %s8268_s6  ;;  %v6895_v7 = vld [vmem:[#allocation3 + $0x10] sm:$0xff]  ;;  %s6899_s29 = sld [smem:[#allocation19 + $0xba]]  ;;  %v2786_v54 = vld [vmem:[#allocation3 + $0x24] sm:$0xff]  ;;  %s8284_s6 = sld [smem:[#allocation41_spill]] }
 0x901   : > { %v2720_v1 = vmul.f32 %v8274_v23, %v2718_v51  ;;  %v2582_v56 = vmul.f32 %v8275_v35, %v6671_v5  ;;  %v3008_v11 = vstv %s6804_s17  ;;  %v8277_v44 = vstv %s6389_s1  ;;  %v6906_v22 = vld [vmem:[#allocation3 + $0x26] sm:$0xff]  ;;  %s6909_s1 = sld [smem:[#allocation19 + $0x8]] }
 0x902   : > { %v2573_v0 = vadd.f32 %v2572_v50, %v2545_v53  ;;  %v2687_v57 = vmul.f32 %v8277_v44, %v2685_v18  ;;  %v2550_v31 = vadd.f32 %v2549_v13, %v2540_v6  ;;  %v8278_v30 = vstv %s8272_s24  ;;  %s8286_s24 = sld [smem:[#allocation37_spill]]  ;;  %s7114_s17 = sld [smem:[#allocation19 + $0x80]] }
 0x903   : > { %v2577_v51 = vmul.f32 %v8278_v30, %v6707_v4  ;;  %v2721_v16 = vadd.f32 %v2720_v1, %v2693_v55  ;;  %v8280_v10 = vstv %s8273_s7  ;;  %v8282_v18 = vstv %s8276_s9  ;;  %v6904_v4 = vld [vmem:[#allocation3 + $0x25] sm:$0xff]  ;;  %s8287_s7 = sld [smem:[#allocation40_spill]]  ;;  %s6923_s9 = sld [smem:[#allocation19 + $0x3a]] }
 0x904   : > { %v2730_v5 = vmul.f32 %v8280_v10, %v6798_v49  ;;  %v2592_v34 = vmul.f32 %v8282_v18, %v6673_v58  ;;  %v2583_v38 = vadd.f32 %v2582_v56, %v2573_v0  ;;  %v2688_v49 = vadd.f32 %v2687_v57, %v2678_v28  ;;  %v6917_v55 = vld [vmem:[#allocation3 + $0x27] sm:$0xff]  ;;  %v6927_v56 = vld [vmem:[#allocation3 + $0xf] sm:$0xff]  ;;  %v6936_v0 = vpop.permute.xlu1 %3115 }
 0x905   : > { %v2578_v50 = vadd.f32 %v2577_v51, %v2550_v31  ;;  %v8283_v53 = vstv %s8279_s0  ;;  %v8285_v58 = vstv %s8281_s16  ;;  %v6919_v23 = vld [vmem:[#allocation3 + $0xc] sm:$0xff]  ;;  %2915 = vst.msk [vmem:[#allocation3 + $0x28] sm:$0xff] %vm669_vm0, %v6773_v14  ;;  %s6934_s0 = sld [smem:[#allocation19 + $0x6c]]  ;;  %v8289_v31 = vstv %s6391_s21  ;;  %s8291_s16 = sld [smem:[#allocation54_spill]]  ;;  %v6983_v41 = vld [vmem:[#allocation3 + $0x4] sm:$0xff] }
 0x906   : > { %v2587_v37 = vmul.f32 %v8283_v53, %v6718_v60  ;;  %v2731_v13 = vadd.f32 %v2730_v5, %v2721_v16  ;;  %v2740_v6 = vmul.f32 %v8285_v58, %v6800_v61  ;;  %v6921_v1 = vld [vmem:[#allocation3 + $0xd] sm:$0xff]  ;;  %v2593_v28 = vadd.f32 %v2592_v34, %v2583_v38  ;;  %v6931_v60 = vld [vmem:[#allocation3 + $0x19] sm:$0xff]  ;;  %s8294_s21 = sld [smem:[#allocation53_spill]] }
 0x907   : > { %v6925_v35 = vld [vmem:[#allocation3 + $0xe] sm:$0xff]  ;;  %v3018_v61 = vstv %s6858_s14  ;;  %v8288_v44 = vstv %s8284_s6  ;;  %v2715_v30 = vmul.f32 %v8289_v31, %v2713_v47  ;;  %v6949_v34 = vld [vmem:[#allocation3 + $0x1a] sm:$0xff]  ;;  %s6957_s6 = sld [smem:[#allocation19 + $0x9e]]  ;;  %v6967_v47 = vld [vmem:[#allocation3 + $0x3] sm:$0xff]  ;;  %v2725_v58 = vmul.f32 %v2724_v12, %v6830_v24  ;;  %s7129_s14 = sld [smem:[#allocation19 + $0xe4]] }
 0x908   : > { %v2602_v57 = vmul.f32 %v8288_v44, %v6737_v17  ;;  %v2588_v51 = vadd.f32 %v2587_v37, %v2578_v50  ;;  %v8290_v16 = vstv %s8286_s24  ;;  %v2741_v5 = vadd.f32 %v2740_v6, %v2731_v13  ;;  %v6951_v38 = vld [vmem:[#allocation3 + $0x1b] sm:$0xff]  ;;  %2990 = vst.msk [vmem:[#allocation3 + $0x10] sm:$0xff] %vm669_vm0, %v6806_v3  ;;  %v6959_v17 = vpop.permute.xlu0 %3051  ;;  %s6969_s24 = sld [smem:[#allocation19 + $0xd0]] }
 0x909   : > { %v2597_v10 = vmul.f32 %v8290_v16, %v6720_v2  ;;  %v8292_v14 = vstv %s8287_s7  ;;  %v6953_v53 = vld [vmem:[#allocation3 + $0x1c] sm:$0xff]  ;;  %v2716_v13 = vadd.f32 %v2715_v30, %v2688_v49  ;;  %s8297_s7 = sld [smem:[#allocation36_spill]]  ;;  %v3028_v12 = vstv %s6881_s27  ;;  %s7131_s27 = sld [smem:[#allocation19 + $0x77]] }
 0x90a   : > { %v2750_v18 = vmul.f32 %v8292_v14, %v6816_v36  ;;  %2914 = vst.msk [vmem:[#allocation3 + $0x20] sm:$0xff] %vm669_vm0, %v6757_v39  ;;  %v6963_v2 = vld [vmem:[#allocation3 + $0x1] sm:$0xff]  ;;  %v2603_v50 = vadd.f32 %v2602_v57, %v2593_v28  ;;  %v8296_v39 = vstv %s8293_s20  ;;  %v2781_v28 = vld [vmem:[#allocation3 + $0x18] sm:$0xff]  ;;  %v2735_v49 = vmul.f32 %v2734_v46, %v6836_v20  ;;  %s6999_s20 = sld [smem:[#allocation19 + $0x2e]] }
 0x90b   : > { %v6965_v36 = vld [vmem:[#allocation3 + $0x2] sm:$0xff]  ;;  %v8295_v37 = vstv %s8291_s16  ;;  %v2598_v6 = vadd.f32 %v2597_v10, %v2588_v51  ;;  %v2607_v44 = vmul.f32 %v8296_v39, %v6722_v32  ;;  %s6987_s16 = sld [smem:[#allocation19 + $0xec]]  ;;  %v8301_v32 = vld [vmem:[#allocation138_spill] sm:$0xff]  ;;  %v2726_v24 = vadd.f32 %v2725_v58, %v2716_v13 }
 0x90c   : > { %v2612_v3 = vmul.f32 %v8295_v37, %v6739_v43  ;;  %v2751_v31 = vadd.f32 %v2750_v18, %v2741_v5  ;;  %v8298_v16 = vstv %s8294_s21  ;;  %v6985_v57 = vld [vmem:[#allocation3] sm:$0xff]  ;;  %2989 = vst.msk [vmem:[#allocation3 + $0x8] sm:$0xff] %vm669_vm0, %v6828_v48  ;;  %v8300_v43 = vld [vmem:[#allocation122_spill] sm:$0xff]  ;;  %v8304_v5 = vstv %s8299_s12  ;;  %s7006_s21 = sld [smem:[#allocation19 + $0x12]]  ;;  %v3120_v37 = vpop.permute.xlu1 %3119  ;;  %s7020_s12 = sld [smem:[#allocation19 + $0x44]]  ;;  %v7023_v39 = vld [vmem:[#allocation3 + $0x28] sm:$0xff] }
 0x90d   : > { %v2760_v14 = vmul.f32 %v8298_v16, %v6818_v29  ;;  %2913 = vst.msk [vmem:[#allocation3 + $0x18] sm:$0xff] %vm669_vm0, %v8300_v43  ;;  %2988 = vst.msk [vmem:[#allocation3] sm:$0xff] %vm669_vm0, %v8301_v32  ;;  %v2608_v30 = vadd.f32 %v2607_v44, %v2598_v6  ;;  %v2788_v18 = vmul.f32 %v8304_v5, %v2786_v54  ;;  %v8305_v54 = vstv %s8302_s19  ;;  %v7025_v44 = vpop.permute.xlu0 %3117  ;;  %s7207_s19 = sld [smem:[#allocation19 + $0x2f]] }
 0x90e   : > { %v2613_v29 = vadd.f32 %v2612_v3, %v2603_v50  ;;  %v3038_v50 = vstv %s6883_s10  ;;  %v2736_v20 = vadd.f32 %v2735_v49, %v2726_v24  ;;  %v2798_v58 = vmul.f32 %v8305_v54, %v6904_v4  ;;  %s7176_s10 = sld [smem:[#allocation19 + $0x1d]] }
 0x90f   : > { %v8303_v48 = vstv %s8297_s7  ;;  %v2761_v10 = vadd.f32 %v2760_v14, %v2751_v31  ;;  %v2870_v6 = vstv %s6897_s2  ;;  %v8306_v14 = vstv %s6264_s28  ;;  %s7055_s28 = sld [smem:[#allocation19 + $0xda]]  ;;  %s7194_s7 = sld [smem:[#allocation19 + $0x4f]] }
 0x910   : > { %v2617_v51 = vmul.f32 %v8303_v48, %v6735_v62  ;;  %v7012_v46 = vadd.f32 %v2613_v29, %v6713_v33  ;;  %v2745_v62 = vmul.f32 %v2744_v52, %v6838_v19  ;;  %v2993_v33 = vstv %s6909_s1  ;;  %s7059_s1 = sld [smem:[#allocation19 + $0x92]]  ;;  %s7230_s2 = sld [smem:[#allocation19 + $0x93]] }
 0x911   : > { %v2789_v13 = vadd.f32 %v2788_v18, %v2761_v10  ;;  %v2755_v52 = vmul.f32 %v2754_v59, %v6840_v40  ;;  %v2880_v19 = vstv %s6899_s29  ;;  %v2808_v43 = vmul.f32 %v8306_v14, %v6906_v22  ;;  %v7040_v32 = vld [vmem:[#allocation3 + $0x24] sm:$0xff]  ;;  %s7254_s29 = sld [smem:[#allocation19 + $0x27]] }
 0x912   : > { %v2618_v3 = vadd.f32 %v2617_v51, %v2608_v30  ;;  %v2746_v31 = vadd.f32 %v2745_v62, %v2736_v20  ;;  %v7042_v29 = vld [vmem:[#allocation3 + $0x25] sm:$0xff]  ;;  %v3003_v49 = vstv %s6923_s9  ;;  %v3013_v40 = vstv %s6934_s0  ;;  %s7067_s9 = sld [smem:[#allocation19 + $0x13]]  ;;  %s7148_s0 = sld [smem:[#allocation19 + $0xef]] }
 0x913   : > { %v2799_v16 = vadd.f32 %v2798_v58, %v2789_v13  ;;  %v7044_v24 = vld [vmem:[#allocation3 + $0x26] sm:$0xff]  ;;  %v3023_v30 = vstv %s6957_s6  ;;  %v2783_v48 = vmul.f32 %v2782_v9, %v2781_v28  ;;  %v8308_v10 = vstv %s8307_s22  ;;  %v3017_v62 = vld [vmem:[#allocation3 + $0xe] sm:$0xff]  ;;  %s8320_s22 = sld [smem:[#allocation77_spill]] }
 0x914   : > { %v7035_v4 = vadd.f32 %v2618_v3, %v6778_v21  ;;  %v7049_v59 = vld [vmem:[#allocation3 + $0x27] sm:$0xff]  ;;  %v7051_v21 = vld [vmem:[#allocation3 + $0x10] sm:$0xff]  ;;  %v2756_v22 = vadd.f32 %v2755_v52, %v2746_v31  ;;  %v2818_v5 = vmul.f32 %v8308_v10, %v6917_v55  ;;  %v3033_v3 = vstv %s6969_s24  ;;  %v7074_v54 = vld [vmem:[#allocation3 + $0x18] sm:$0xff]  ;;  %s8317_s24 = sld [smem:[#allocation58_spill]]  ;;  %s7330_s6 = sld [smem:[#allocation19 + $0x95]] }
 0x915   : > { %v2809_v51 = vadd.f32 %v2808_v43, %v2799_v16  ;;  %3058 = vst.msk [vmem:[#allocation3 + $0x28] sm:$0xff] %vm669_vm0, %v6959_v17  ;;  %v2997_v18 = vld [vmem:[#allocation3 + $0xc] sm:$0xff]  ;;  %v7076_v58 = vld [vmem:[#allocation3 + $0x19] sm:$0xff]  ;;  %v7080_v17 = vpop.permute.xlu1 %3185  ;;  %v2793_v52 = vmul.f32 %v2792_v8, %v6931_v60  ;;  %v3061_v14 = vstv %s7006_s21  ;;  %v2803_v43 = vmul.f32 %v2802_v25, %v6949_v34  ;;  %v3012_v13 = vld [vmem:[#allocation3 + $0x2] sm:$0xff]  ;;  %s7215_s21 = sld [smem:[#allocation19 + $0x81]] }
 0x916   : > { %v3007_v20 = vld [vmem:[#allocation3 + $0xd] sm:$0xff]  ;;  %v2999_v9 = vmul.f32 %v2998_v26, %v2997_v18  ;;  %v2784_v31 = vadd.f32 %v2783_v48, %v2756_v22  ;;  %v7087_v26 = vld [vmem:[#allocation3 + $0x1a] sm:$0xff]  ;;  %v3019_v60 = vmul.f32 %v3018_v61, %v3017_v62  ;;  %v3184_v18 = vpop.permute.xlu0 %3183  ;;  %v8309_v34 = vstv %s6273_s23  ;;  %v3022_v62 = vld [vmem:[#allocation3 + $0x3] sm:$0xff]  ;;  %s7120_s23 = sld [smem:[#allocation19 + $0xb2]] }
 0x917   : > { %v3009_v28 = vmul.f32 %v3008_v11, %v3007_v20  ;;  %v3027_v55 = vld [vmem:[#allocation3 + $0xf] sm:$0xff]  ;;  %v7089_v11 = vld [vmem:[#allocation3 + $0x1b] sm:$0xff]  ;;  %v2819_v48 = vadd.f32 %v2818_v5, %v2809_v51  ;;  %v2828_v51 = vmul.f32 %v8309_v34, %v6893_v42  ;;  %v3169_v10 = vstv %s7129_s14  ;;  %s7314_s14 = sld [smem:[#allocation19 + $0x31]] }
 0x918   : > { %v7091_v16 = vld [vmem:[#allocation3 + $0x1c] sm:$0xff]  ;;  %3126 = vst.msk [vmem:[#allocation3 + $0x10] sm:$0xff] %vm669_vm0, %v3120_v37  ;;  %v2794_v25 = vadd.f32 %v2793_v52, %v2784_v31  ;;  %v3014_v52 = vmul.f32 %v3013_v40, %v3012_v13  ;;  %v3101_v40 = vstv %s7055_s28  ;;  %s7248_s28 = sld [smem:[#allocation19 + $0xc5]] }
 0x919   : > { %v3010_v8 = vadd.f32 %v3009_v28, %v2999_v9  ;;  %3056 = vst.msk [vmem:[#allocation3 + $0x18] sm:$0xff] %vm669_vm0, %v6878_v27  ;;  %3057 = vst.msk [vmem:[#allocation3 + $0x20] sm:$0xff] %vm669_vm0, %v6871_v15  ;;  %v2992_v20 = vld [vmem:[#allocation3] sm:$0xff]  ;;  %v3071_v9 = vstv %s7020_s12  ;;  %v3029_v28 = vmul.f32 %v3028_v12, %v3027_v55  ;;  %v3081_v12 = vstv %s7028_s15  ;;  %s7222_s12 = sld [smem:[#allocation19 + $0x61]]  ;;  %s8319_s15 = sld [smem:[#allocation85_spill]] }
 0x91a   : > { %v3002_v37 = vld [vmem:[#allocation3 + $0x1] sm:$0xff]  ;;  %v2994_v5 = vmul.f32 %v2993_v33, %v2992_v20  ;;  %v2804_v42 = vadd.f32 %v2803_v43, %v2794_v25  ;;  %v8310_v33 = vstv %s6664_s13  ;;  %v3091_v55 = vstv %s7047_s30  ;;  %s7139_s13 = sld [smem:[#allocation19 + $0xa9]]  ;;  %s7236_s30 = sld [smem:[#allocation19 + $0xe5]] }
 0x91b   : > { %v3004_v61 = vmul.f32 %v3003_v49, %v3002_v37  ;;  %v3032_v27 = vld [vmem:[#allocation3 + $0x4] sm:$0xff]  ;;  %v3020_v15 = vadd.f32 %v3019_v60, %v3010_v8  ;;  %v2813_v49 = vmul.f32 %v8310_v33, %v6951_v38  ;;  %v8311_v43 = vstv %s6696_s4  ;;  %v3252_v38 = vpop.permute.xlu1 %3251  ;;  %s8313_s4 = sld [smem:[#allocation76_spill]] }
 0x91c   : > { %3125 = vst.msk [vmem:[#allocation3 + $0x8] sm:$0xff] %vm669_vm0, %v7025_v44  ;;  %3124 = vst.msk [vmem:[#allocation3] sm:$0xff] %vm669_vm0, %v6936_v0  ;;  %v2829_v44 = vadd.f32 %v2828_v51, %v2819_v48  ;;  %v2823_v60 = vmul.f32 %v8311_v43, %v6953_v53  ;;  %v3024_v37 = vmul.f32 %v3023_v30, %v3022_v62  ;;  %v8312_v25 = vstv %s6313_s26  ;;  %v3188_v51 = vpop.permute.xlu0 %3187  ;;  %v7151_v30 = vld [vmem:[#allocation3 + $0x28] sm:$0xff]  ;;  %s7157_s26 = sld [smem:[#allocation19 + $0xc4]] }
 0x91d   : > { %v3005_v31 = vadd.f32 %v3004_v61, %v2994_v5  ;;  %v3030_v8 = vadd.f32 %v3029_v28, %v3020_v15  ;;  %v2814_v0 = vadd.f32 %v2813_v49, %v2804_v42  ;;  %v2856_v34 = vmul.f32 %v8312_v25, %v6919_v23 }
 0x91e   : > { %v3039_v48 = vmul.f32 %v3038_v50, %v7051_v21  ;;  %v3066_v53 = vstv %s7067_s9  ;;  %v3034_v42 = vmul.f32 %v3033_v3, %v3032_v27  ;;  %v3076_v50 = vstv %s7078_s18  ;;  %s7227_s9 = sld [smem:[#allocation19 + $0xb3]]  ;;  %s8323_s18 = sld [smem:[#allocation86_spill]] }
 0x91f   : > { %v3015_v20 = vadd.f32 %v3014_v52, %v3005_v31  ;;  %v2824_v5 = vadd.f32 %v2823_v60, %v2814_v0  ;;  %v2857_v21 = vadd.f32 %v2856_v34, %v2829_v44  ;;  %v3129_v52 = vstv %s7106_s3  ;;  %v3256_v13 = vpop.permute.xlu1 %3255  ;;  %s7266_s3 = sld [smem:[#allocation19 + $0x59]] }
 0x920   : > { %v3060_v62 = vld [vmem:[#allocation3 + $0x18] sm:$0xff]  ;;  %v3040_v33 = vadd.f32 %v3039_v48, %v3030_v8  ;;  %v3065_v0 = vld [vmem:[#allocation3 + $0x24] sm:$0xff]  ;;  %v8314_v43 = vstv %s6711_s11  ;;  %v3139_v27 = vstv %s7112_s8  ;;  %s7188_s11 = sld [smem:[#allocation19 + $0xf6]]  ;;  %s7281_s8 = sld [smem:[#allocation19 + $0xbc]] }
 0x921   : > { %v3070_v15 = vld [vmem:[#allocation3 + $0x19] sm:$0xff]  ;;  %v3025_v23 = vadd.f32 %v3024_v37, %v3015_v20  ;;  %v2851_v60 = vmul.f32 %v8314_v43, %v6985_v57  ;;  %v3062_v3 = vmul.f32 %v3061_v14, %v3060_v62  ;;  %v8315_v34 = vstv %s8313_s4  ;;  %v3075_v62 = vld [vmem:[#allocation3 + $0x25] sm:$0xff]  ;;  %s7294_s4 = sld [smem:[#allocation19 + $0xee]] }
 0x922   : > { %v3080_v28 = vld [vmem:[#allocation3 + $0x1a] sm:$0xff]  ;;  %v2866_v57 = vmul.f32 %v8315_v34, %v6921_v1  ;;  %v3072_v61 = vmul.f32 %v3071_v9, %v3070_v15  ;;  %v3085_v37 = vld [vmem:[#allocation3 + $0x26] sm:$0xff]  ;;  %v3086_v34 = vstv %s7131_s27  ;;  %s7256_s27 = sld [smem:[#allocation19 + $0x58]] }
 0x923   : > { %v3090_v49 = vld [vmem:[#allocation3 + $0x1b] sm:$0xff]  ;;  %v3035_v20 = vadd.f32 %v3034_v42, %v3025_v23  ;;  %v7182_v48 = vld [vmem:[#allocation3 + $0x3] sm:$0xff]  ;;  %v3067_v23 = vmul.f32 %v3066_v53, %v3065_v0  ;;  %v7186_v42 = vld [vmem:[#allocation3 + $0x10] sm:$0xff]  ;;  %v2852_v43 = vadd.f32 %v2851_v60, %v2824_v5  ;;  %v3077_v0 = vmul.f32 %v3076_v50, %v3075_v62 }
 0x924   : > { %v7159_v31 = vld [vmem:[#allocation3 + $0x1c] sm:$0xff]  ;;  %v7184_v14 = vld [vmem:[#allocation3 + $0x4] sm:$0xff]  ;;  %v2867_v53 = vadd.f32 %v2866_v57, %v2857_v21  ;;  %v3143_v60 = vld [vmem:[#allocation3 + $0xd] sm:$0xff]  ;;  %v3082_v21 = vmul.f32 %v3081_v12, %v3080_v28  ;;  %v2871_v57 = vmul.f32 %v2870_v6, %v6965_v36  ;;  %v3242_v12 = vstv %s7148_s0  ;;  %s7363_s0 = sld [smem:[#allocation21]] }
 0x925   : > { %3192 = vst.msk [vmem:[#allocation3 + $0x18] sm:$0xff] %vm669_vm0, %v3184_v18  ;;  %v7170_v44 = vld [vmem:[#allocation3] sm:$0xff]  ;;  %v3063_v22 = vadd.f32 %v3062_v3, %v3035_v20  ;;  %v3133_v18 = vld [vmem:[#allocation3 + $0xc] sm:$0xff]  ;;  %v3068_v5 = vadd.f32 %v3067_v23, %v3040_v33  ;;  %v3254_v20 = vpop.permute.xlu0 %3253  ;;  %v2861_v3 = vmul.f32 %v2860_v63, %v6963_v2  ;;  %v3096_v33 = vstv %s7139_s13  ;;  %s7271_s13 = sld [smem:[#allocation19 + $0x8a]] }
 0x926   : > { %v7172_v8 = vld [vmem:[#allocation3 + $0x1] sm:$0xff]  ;;  %v7198_v9 = vld [vmem:[#allocation3 + $0xe] sm:$0xff]  ;;  %v3087_v63 = vmul.f32 %v3086_v34, %v3085_v37  ;;  %v3102_v6 = vmul.f32 %v3101_v40, %v7159_v31  ;;  %v3134_v23 = vstv %s7176_s10  ;;  %v8322_v34 = vstv %s8320_s22  ;;  %s7317_s10 = sld [smem:[#allocation19 + $0x62]]  ;;  %s7388_s22 = sld [smem:[#allocation13 + $0x8]] }
 0x927   : > { %v7174_v25 = vld [vmem:[#allocation3 + $0x2] sm:$0xff]  ;;  %v7200_v15 = vld [vmem:[#allocation3 + $0xf] sm:$0xff]  ;;  %v3073_v50 = vadd.f32 %v3072_v61, %v3063_v22  ;;  %v2862_v2 = vadd.f32 %v2861_v3, %v2852_v43  ;;  %v3092_v22 = vmul.f32 %v3091_v55, %v3090_v49  ;;  %v2881_v55 = vmul.f32 %v2880_v19, %v6967_v47 }
 0x928   : > { %v3095_v1 = vld [vmem:[#allocation3 + $0x27] sm:$0xff]  ;;  %3260 = vst.msk [vmem:[#allocation3] sm:$0xff] %vm669_vm0, %v3252_v38  ;;  %v8318_v38 = vstv %s8317_s24  ;;  %3261 = vst.msk [vmem:[#allocation3 + $0x8] sm:$0xff] %vm669_vm0, %v3254_v20  ;;  %v8321_v49 = vstv %s8319_s15  ;;  %v3130_v31 = vmul.f32 %v3129_v52, %v7170_v44  ;;  %v2923_v20 = vstv %s7207_s19  ;;  %s7333_s24 = sld [smem:[#allocation19 + $0xc6]]  ;;  %s7347_s19 = sld [smem:[#allocation19 + $0xf9]] }
 0x929   : > { %3194 = vst.msk [vmem:[#allocation3 + $0x28] sm:$0xff] %vm669_vm0, %v3188_v51  ;;  %3193 = vst.msk [vmem:[#allocation3 + $0x20] sm:$0xff] %vm669_vm0, %v7080_v17  ;;  %v2876_v51 = vmul.f32 %v8318_v38, %v6925_v35  ;;  %v3078_v17 = vadd.f32 %v3077_v0, %v3068_v5  ;;  %v3083_v35 = vadd.f32 %v3082_v21, %v3073_v50  ;;  %v2958_v5 = vstv %s7188_s11  ;;  %s7375_s11 = sld [smem:[#allocation13]]  ;;  %s7382_s15 = sld [smem:[#allocation13 + $0x5]] }
 0x92a   : > { %3262 = vst.msk [vmem:[#allocation3 + $0x10] sm:$0xff] %vm669_vm0, %v3256_v13  ;;  %v2948_v13 = vstv %s7157_s26  ;;  %v3097_v37 = vmul.f32 %v3096_v33, %v3095_v1  ;;  %v2872_v62 = vadd.f32 %v2871_v57, %v2862_v2  ;;  %v2886_v43 = vmul.f32 %v8321_v49, %v6927_v56  ;;  %s7367_s26 = sld [smem:[#allocation21 + $0x1]] }
 0x92b   : > { %v2877_v61 = vadd.f32 %v2876_v51, %v2867_v53  ;;  %v3088_v28 = vadd.f32 %v3087_v63, %v3078_v17  ;;  %v3093_v36 = vadd.f32 %v3092_v22, %v3083_v35  ;;  %v3107_v1 = vmul.f32 %v8322_v34, %v7151_v30 }
 0x92c   : > { %v3144_v0 = vstv %s7194_s7  ;;  %v2882_v47 = vadd.f32 %v2881_v55, %v2872_v62  ;;  %v3135_v30 = vmul.f32 %v3134_v23, %v3133_v18  ;;  %v3140_v38 = vmul.f32 %v3139_v27, %v7172_v8  ;;  %s7341_s7 = sld [smem:[#allocation19 + $0xf8]] }
 0x92d   : > { %v3098_v53 = vadd.f32 %v3097_v37, %v3088_v28  ;;  %v3103_v40 = vadd.f32 %v3102_v6, %v3093_v36  ;;  %v2887_v56 = vadd.f32 %v2886_v43, %v2877_v61  ;;  %v3154_v51 = vstv %s7215_s21  ;;  %v3196_v36 = vld [vmem:[#allocation3 + $0x18] sm:$0xff]  ;;  %s7377_s21 = sld [smem:[#allocation13 + $0x1]] }
 0x92e   : > { %v8324_v52 = vstv %s6987_s16  ;;  %v8325_v50 = vstv %s8323_s18  ;;  %v3145_v18 = vmul.f32 %v3144_v0, %v3143_v60  ;;  %v2933_v17 = vstv %s7222_s12  ;;  %s7278_s16 = sld [smem:[#allocation19 + $0x8b]]  ;;  %s7380_s12 = sld [smem:[#allocation13 + $0x4]] }
 0x92f   : > { %v3108_v19 = vadd.f32 %v3107_v1, %v3098_v53  ;;  %v3131_v3 = vadd.f32 %v3130_v31, %v3103_v40  ;;  %v2891_v44 = vmul.f32 %v8324_v52, %v6983_v41  ;;  %v2896_v21 = vmul.f32 %v8325_v50, %v6895_v7  ;;  %s7401_s18 = sld [smem:[#allocation13 + $0x7]] }
 0x930   : > { %v8326_v27 = vstv %s7114_s17  ;;  %v3164_v2 = vstv %s7227_s9  ;;  %v3155_v7 = vmul.f32 %v3154_v51, %v7198_v9  ;;  %v2943_v60 = vstv %s7230_s2  ;;  %s7291_s17 = sld [smem:[#allocation19 + $0xbd]]  ;;  %v3201_v43 = vld [vmem:[#allocation3 + $0x24] sm:$0xff]  ;;  %v3206_v53 = vld [vmem:[#allocation3 + $0x19] sm:$0xff]  ;;  %s7390_s9 = sld [smem:[#allocation13 + $0x9]] }
 0x931   : > { %v3136_v33 = vadd.f32 %v3135_v30, %v3108_v19  ;;  %v3141_v63 = vadd.f32 %v3140_v38, %v3131_v3  ;;  %v3150_v8 = vmul.f32 %v8326_v27, %v7174_v25  ;;  %v2892_v41 = vadd.f32 %v2891_v44, %v2882_v47  ;;  %v3221_v50 = vld [vmem:[#allocation3 + $0x26] sm:$0xff]  ;;  %s7395_s2 = sld [smem:[#allocation13 + $0x2]] }
 0x932   : > { %v2897_v57 = vadd.f32 %v2896_v21, %v2887_v56  ;;  %v8327_v61 = vstv %s7120_s23  ;;  %v3174_v37 = vstv %s7236_s30  ;;  %v8328_v25 = vstv %s6999_s20  ;;  %s7301_s20 = sld [smem:[#allocation19 + $0xf7]]  ;;  %s7306_s23 = sld [smem:[#allocation19 + $0x30]]  ;;  %v3211_v56 = vld [vmem:[#allocation3 + $0x25] sm:$0xff]  ;;  %v3226_v21 = vld [vmem:[#allocation3 + $0x1b] sm:$0xff] }
 0x933   : > { %v3146_v35 = vadd.f32 %v3145_v18, %v3136_v33  ;;  %v3151_v22 = vadd.f32 %v3150_v8, %v3141_v63  ;;  %v3160_v28 = vmul.f32 %v8327_v61, %v7182_v48  ;;  %v2919_v62 = vmul.f32 %v8328_v25, %v7074_v54  ;;  %s7397_s30 = sld [smem:[#allocation13 + $0x6]] }
 0x934   : > { %v3165_v23 = vmul.f32 %v3164_v2, %v7200_v15  ;;  %v2924_v9 = vmul.f32 %v2923_v20, %v7040_v32  ;;  %v2953_v55 = vstv %s7248_s28  ;;  %v3170_v48 = vmul.f32 %v3169_v10, %v7184_v14  ;;  %v3216_v20 = vld [vmem:[#allocation3 + $0x1a] sm:$0xff]  ;;  %s7399_s28 = sld [smem:[#allocation13 + $0x3]] }
 0x935   : > { %v3156_v6 = vadd.f32 %v3155_v7, %v3146_v35  ;;  %v3161_v49 = vadd.f32 %v3160_v28, %v3151_v22  ;;  %v2920_v54 = vadd.f32 %v2919_v62, %v2892_v41  ;;  %v3202_v34 = vstv %s7254_s29  ;;  %v3231_v41 = vld [vmem:[#allocation3 + $0x27] sm:$0xff]  ;;  %v3236_v35 = vld [vmem:[#allocation3 + $0x1c] sm:$0xff]  ;;  %s8332_s29 = sld [smem:[#allocation30_spill]] }
 0x936   : > { %v3175_v15 = vmul.f32 %v3174_v37, %v7186_v42  ;;  %v3207_v40 = vstv %s7256_s27  ;;  %v2925_v32 = vadd.f32 %v2924_v9, %v2897_v57  ;;  %v8329_v31 = vstv %s7085_s5  ;;  %s7324_s5 = sld [smem:[#allocation19 + $0x94]]  ;;  %v3241_v37 = vld [vmem:[#allocation3 + $0x28] sm:$0xff]  ;;  %s7403_s27 = sld [smem:[#allocation13 + $0xa]] }
 0x937   : > { %v3166_v1 = vadd.f32 %v3165_v23, %v3156_v6  ;;  %v3198_v0 = vmul.f32 %v8329_v31, %v3196_v36  ;;  %v3171_v47 = vadd.f32 %v3170_v48, %v3161_v49  ;;  %v8330_v10 = vstv %s7008_s25  ;;  %s7321_s25 = sld [smem:[#allocation19 + $0x63]] }
 0x938   : > { %v2929_v14 = vmul.f32 %v8330_v10, %v7076_v58  ;;  %v3212_v19 = vstv %s7266_s3  ;;  %v3217_v42 = vstv %s7271_s13  ;;  %v2934_v3 = vmul.f32 %v2933_v17, %v7042_v29  ;;  %s7405_s3 = sld [smem:[#allocation13 + $0xb]]  ;;  %s7409_s13 = sld [smem:[#allocation16 + $0x4]] }
 0x939   : > { %v3176_v30 = vadd.f32 %v3175_v15, %v3166_v1  ;;  %v3203_v38 = vmul.f32 %v3202_v34, %v3201_v43  ;;  %v3199_v51 = vadd.f32 %v3198_v0, %v3171_v47  ;;  %v3208_v44 = vmul.f32 %v3207_v40, %v3206_v53  ;;  %v3269_v34 = vld [vmem:[#allocation3 + $0xc] sm:$0xff]  ;;  %v3274_v53 = vld [vmem:[#allocation3 + $0x1] sm:$0xff] }
 0x93a   : > { %v2930_v52 = vadd.f32 %v2929_v14, %v2920_v54  ;;  %v3222_v58 = vstv %s7278_s16  ;;  %v3227_v33 = vstv %s7281_s8  ;;  %v2935_v18 = vadd.f32 %v2934_v3, %v2925_v32  ;;  %v3279_v47 = vld [vmem:[#allocation3 + $0xd] sm:$0xff]  ;;  %v3284_v14 = vld [vmem:[#allocation3 + $0x2] sm:$0xff]  ;;  %s7411_s16 = sld [smem:[#allocation16 + $0xc]] }
 0x93b   : > { %v3204_v63 = vadd.f32 %v3203_v38, %v3176_v30  ;;  %v3213_v27 = vmul.f32 %v3212_v19, %v3211_v56  ;;  %v8331_v8 = vstv %s7059_s1  ;;  %v3209_v17 = vadd.f32 %v3208_v44, %v3199_v51  ;;  %s7337_s1 = sld [smem:[#allocation19 + $0xc7]]  ;;  %v3294_v38 = vld [vmem:[#allocation3 + $0x3] sm:$0xff]  ;;  %s7413_s8 = sld [smem:[#allocation16 + $0x14]] }
 0x93c   : > { %v2939_v29 = vmul.f32 %v8331_v8, %v7087_v26  ;;  %v3218_v2 = vmul.f32 %v3217_v42, %v3216_v20  ;;  %v3232_v57 = vstv %s7291_s17  ;;  %v3237_v7 = vstv %s7294_s4  ;;  %s7415_s17 = sld [smem:[#allocation16 + $0x1c]] }
 0x93d   : > { %v2944_v22 = vmul.f32 %v2943_v60, %v7044_v24  ;;  %v3214_v61 = vadd.f32 %v3213_v27, %v3204_v63  ;;  %v3223_v28 = vmul.f32 %v3222_v58, %v3221_v50  ;;  %v3228_v62 = vmul.f32 %v3227_v33, %v3226_v21  ;;  %v3264_v24 = vld [vmem:[#allocation3] sm:$0xff]  ;;  %s7419_s4 = sld [smem:[#allocation13 + $0xc]] }
 0x93e   : > { %v2940_v26 = vadd.f32 %v2939_v29, %v2930_v52  ;;  %v3219_v25 = vadd.f32 %v3218_v2, %v3209_v17  ;;  %v2963_v36 = vstv %s7301_s20  ;;  %v3265_v6 = vstv %s7306_s23  ;;  %v3309_v2 = vld [vmem:[#allocation3 + $0x10] sm:$0xff]  ;;  %s7421_s20 = sld [smem:[#allocation13 + $0xd]] }
 0x93f   : > { %v2945_v60 = vadd.f32 %v2944_v22, %v2935_v18  ;;  %v3224_v23 = vadd.f32 %v3223_v28, %v3214_v61  ;;  %v3233_v9 = vmul.f32 %v3232_v57, %v3231_v41  ;;  %v2949_v49 = vmul.f32 %v2948_v13, %v7089_v11  ;;  %v3299_v18 = vld [vmem:[#allocation3 + $0xf] sm:$0xff]  ;;  %s7427_s23 = sld [smem:[#allocation16 + $0x5]] }
 0x940   : > { %v3229_v48 = vadd.f32 %v3228_v62, %v3219_v25  ;;  %v3238_v54 = vmul.f32 %v3237_v7, %v3236_v35  ;;  %v3270_v43 = vstv %s7314_s14  ;;  %v3243_v1 = vmul.f32 %v3242_v12, %v3241_v37  ;;  %s7429_s14 = sld [smem:[#allocation16 + $0xd]] }
 0x941   : > { %v3275_v15 = vstv %s7317_s10  ;;  %v2954_v40 = vmul.f32 %v2953_v55, %v7049_v59  ;;  %v3234_v32 = vadd.f32 %v3233_v9, %v3224_v23  ;;  %v2950_v31 = vadd.f32 %v2949_v49, %v2940_v26  ;;  %v3289_v55 = vld [vmem:[#allocation3 + $0xe] sm:$0xff]  ;;  %s7432_s10 = sld [smem:[#allocation16 + $0x15]] }
 0x942   : > { %v3239_v11 = vadd.f32 %v3238_v54, %v3229_v48  ;;  %v3266_v13 = vmul.f32 %v3265_v6, %v3264_v24  ;;  %v3280_v0 = vstv %s7321_s25  ;;  %v3285_v10 = vstv %s7324_s5  ;;  %s7434_s25 = sld [smem:[#allocation16 + $0x1d]]  ;;  %s7437_s5 = sld [smem:[#allocation13 + $0xe]] }
 0x943   : > { %v2955_v56 = vadd.f32 %v2954_v40, %v2945_v60  ;;  %v3244_v19 = vadd.f32 %v3243_v1, %v3234_v32  ;;  %v3271_v30 = vmul.f32 %v3270_v43, %v3269_v34  ;;  %v2959_v12 = vmul.f32 %v2958_v5, %v7091_v16  ;;  %v3304_v5 = vld [vmem:[#allocation3 + $0x4] sm:$0xff]  ;;  %v4444_v40 = vld [vmem:[%s8332_s29 + $0x8] sm:$0xff] }
 0x944   : > { %v3267_v20 = vadd.f32 %v3266_v13, %v3239_v11  ;;  %v3276_v42 = vmul.f32 %v3275_v15, %v3274_v53  ;;  %v3290_v59 = vstv %s7330_s6  ;;  %v3295_v3 = vstv %s7333_s24  ;;  %v4443_v15 = vld [vmem:[%s8332_s29] sm:$0xff]  ;;  %s7439_s6 = sld [smem:[#allocation13 + $0xf]]  ;;  %s7441_s24 = sld [smem:[#allocation16 + $0x6]] }
 0x945   : > { %v2964_v51 = vmul.f32 %v2963_v36, %v7023_v39  ;;  %v3272_v52 = vadd.f32 %v3271_v30, %v3244_v19  ;;  %v3281_v44 = vmul.f32 %v3280_v0, %v3279_v47  ;;  %v2960_v50 = vadd.f32 %v2959_v12, %v2950_v31  ;;  %v4445_v12 = vld [vmem:[%s8332_s29 + $0x10] sm:$0xff] }
 0x946   : > { %v3277_v58 = vadd.f32 %v3276_v42, %v3267_v20  ;;  %v3286_v21 = vmul.f32 %v3285_v10, %v3284_v14  ;;  %v3300_v33 = vstv %s7337_s1  ;;  %v3305_v16 = vstv %s7341_s7  ;;  %s7443_s1 = sld [smem:[#allocation16 + $0xe]] }
 0x947   : > { %v2965_v63 = vadd.f32 %v2964_v51, %v2955_v56  ;;  %v3282_v27 = vadd.f32 %v3281_v44, %v3272_v52  ;;  %v3291_v8 = vmul.f32 %v3290_v59, %v3289_v55  ;;  %v3296_v17 = vmul.f32 %v3295_v3, %v3294_v38  ;;  %s7452_s7 = sld [smem:[#allocation16 + $0x16]] }
 0x948   : > { %v3287_v29 = vadd.f32 %v3286_v21, %v3277_v58  ;;  %v3310_v39 = vstv %s7347_s19  ;;  %v3301_v57 = vmul.f32 %v3300_v33, %v3299_v18  ;;  %v2969_v35 = vsel %vm2967_vm5, %v2960_v50, 0.0  ;;  %s7454_s19 = sld [smem:[#allocation16 + $0x1e]] }
 0x949   : > { %v3292_v41 = vadd.f32 %v3291_v8, %v3282_v27  ;;  %v3306_v22 = vmul.f32 %v3305_v16, %v3304_v5  ;;  %v2971_v61 = vsel %vm2967_vm5, %v2965_v63, 0.0  ;;  %v3311_v37 = vmul.f32 %v3310_v39, %v3309_v2 }
 0x94a   : > { %v3297_v7 = vadd.f32 %v3296_v17, %v3287_v29  ;;  %v2970_v25 = vadd.f32 %v2969_v35, %v7012_v46  ;;  %v3321_v36 = vstv %s7363_s0  ;;  %v2972_v24 = vadd.f32 %v2971_v61, %v7035_v4  ;;  %s7468_s0 = sld [smem:[#allocation16 + $0x7]] }
 0x94b   : > { %v3302_v28 = vadd.f32 %v3301_v57, %v3292_v41  ;;  %v3324_v23 = vstv %s7367_s26  ;;  %v3365_v45 = vstv %s7375_s11  ;;  %v3368_v48 = vstv %s7377_s21  ;;  %s7470_s26 = sld [smem:[#allocation16 + $0xf]] }
 0x94c   : > { %v3307_v26 = vadd.f32 %v3306_v22, %v3297_v7  ;;  %v3419_v43 = vstv %s7380_s12  ;;  %v3422_v34 = vstv %s7382_s15  ;;  %v3366_v53 = vmul.f32 %v4443_v15, %v3365_v45  ;;  %s7474_s11 = sld [smem:[#allocation16 + $0x17]]  ;;  %s7490_s12 = sld [smem:[#allocation15]] }
 0x94d   : > { %v3312_v62 = vadd.f32 %v3311_v37, %v3302_v28  ;;  %v3369_v32 = vmul.f32 %v4444_v40, %v3368_v48  ;;  %v3473_v31 = vstv %s7388_s22  ;;  %v3476_v11 = vstv %s7390_s9  ;;  %s7476_s21 = sld [smem:[#allocation16 + $0x1f]]  ;;  %s7492_s15 = sld [smem:[#allocation18]] }
 0x94e   : > { %v3316_v6 = vsel %vm3314_vm6, %v3307_v26, 0.0  ;;  %v3372_v13 = vstv %s7395_s2  ;;  %v3420_v47 = vmul.f32 %v4443_v15, %v3419_v43  ;;  %v3423_v10 = vmul.f32 %v4444_v40, %v3422_v34  ;;  %s7494_s22 = sld [smem:[#allocation15 + $0x1]]  ;;  %s7500_s2 = sld [smem:[#allocation15 + $0x2]] }
 0x94f   : > { %v3317_v60 = vadd.f32 %v3316_v6, %v2970_v25  ;;  %v3318_v46 = vsel %vm3314_vm6, %v3312_v62, 0.0  ;;  %v3426_v14 = vstv %s7397_s30  ;;  %v3474_v56 = vmul.f32 %v4443_v15, %v3473_v31  ;;  %s7496_s9 = sld [smem:[#allocation18 + $0x1]]  ;;  %s7502_s30 = sld [smem:[#allocation18 + $0x2]] }
 0x950   : > { %v3319_v9 = vadd.f32 %v3318_v46, %v2972_v24  ;;  %v3477_v19 = vmul.f32 %v4444_v40, %v3476_v11  ;;  %v7445_v30 = vadd.f32 %v3369_v32, %v3366_v53  ;;  %v7448_v20 = vmul.f32 %v4445_v12, %v3372_v13  ;;  %v8333_v24 = vld [vmem:[#allocation31_spill] sm:$0xff] }
 0x951   : > { %v3322_v49 = vmul.f32 %v3321_v36, %v3317_v60  ;;  %v3376_v42 = vstv %s7399_s28  ;;  %v3480_v59 = vstv %s7403_s27  ;;  %v7456_v55 = vmul.f32 %v4445_v12, %v3426_v14  ;;  %s7506_s27 = sld [smem:[#allocation15 + $0x3]] }
 0x952   : > { %v3325_v4 = vmul.f32 %v3324_v23, %v3319_v9  ;;  %v3430_v3 = vstv %s7401_s18  ;;  %v3349_v38 = vstv %s7409_s13  ;;  %v3403_v51 = vstv %s7411_s16  ;;  %v8334_v23 = vld [vmem:[#allocation32_spill] sm:$0xff]  ;;  %v8335_v9 = vld [vmem:[#allocation33_spill] sm:$0xff]  ;;  %s7508_s13 = sld [smem:[#allocation18 + $0x3]]  ;;  %s8337_s16 = sld [smem:[#allocation29_spill]] }
 0x953   : > { %v7461_v52 = vadd.f32 %v3423_v10, %v3420_v47  ;;  %v3484_v44 = vstv %s7405_s3  ;;  %v3457_v50 = vstv %s7413_s8  ;;  %v3511_v58 = vstv %s7415_s17  ;;  %s3383_s28 = sadd.f32 %s7492_s15, %s7490_s12 }
 0x954   : > { %v3326_v54 = vadd.f32 %v3325_v4, %v3322_v49  ;;  %v3478_v21 = vadd.f32 %v3477_v19, %v3474_v56  ;;  %v3481_v33 = vmul.f32 %v4445_v12, %v3480_v59  ;;  %v3527_v18 = vstv %s7419_s4  ;;  %v8336_v4 = vld [vmem:[#allocation34_spill] sm:$0xff]  ;;  %v4446_v56 = vld [vmem:[%s8332_s29 + $0x18] sm:$0xff]  ;;  %s8338_s4 = sld [smem:[#allocation168_spill]] }
 0x955   : > { %v3530_v16 = vstv %s7421_s20  ;;  %v3350_v5 = vmul.f32 %v4443_v15, %v3349_v38  ;;  %v3353_v63 = vstv %s7427_s23  ;;  %v3404_v27 = vmul.f32 %v4443_v15, %v3403_v51  ;;  %s3437_s18 = sadd.f32 %s7496_s9, %s7494_s22 }
 0x956   : > { %v3327_v1 = vsub.f32 0.0, %v3326_v54  ;;  %v3407_v8 = vstv %s7429_s14  ;;  %v3458_v29 = vmul.f32 %v4443_v15, %v3457_v50  ;;  %v3461_v17 = vstv %s7432_s10  ;;  %s3491_s29 = sadd.f32 %s7502_s30, %s7500_s2 }
 0x957   : > { %v3512_v39 = vmul.f32 %v4443_v15, %v3511_v58  ;;  %v3515_v2 = vstv %s7434_s25  ;;  %v3528_v41 = vmul.f32 %v4443_v15, %v3527_v18  ;;  %v3531_v57 = vmul.f32 %v4444_v40, %v3530_v16 }
 0x958   : > { %v3328_v0 = vmul.f32 1.442695, %v3327_v1  ;;  %v3534_v35 = vstv %s7437_s5  ;;  %v3538_v7 = vstv %s7439_s6  ;;  %v3354_v22 = vmul.f32 %v4444_v40, %v3353_v63  ;;  %s3545_s3 = sadd.f32 %s7508_s13, %s7506_s27 }
 0x959   : > { %v3357_v61 = vstv %s7441_s24  ;;  %v3408_v28 = vmul.f32 %v4444_v40, %v3407_v8  ;;  %v3411_v37 = vstv %s7443_s1  ;;  %v3462_v26 = vmul.f32 %v4444_v40, %v3461_v17 }
 0x95a   : > { %4431 = vpow2.f32 %v3328_v0  ;;  %v3465_v25 = vstv %s7452_s7  ;;  %v3516_v62 = vmul.f32 %v4444_v40, %v3515_v2  ;;  %v3519_v36 = vstv %s7454_s19  ;;  %s627_s20 = scalar_lea.vmem %s8338_s4, %s8337_s16 }
 0x95b   : > { %v3351_v60 = vadd.f32 %v3350_v5, %v8333_v24  ;;  %v3405_v46 = vadd.f32 %v3404_v27, %v8334_v23  ;;  %v3459_v49 = vadd.f32 %v3458_v29, %v8335_v9  ;;  %v3513_v45 = vadd.f32 %v3512_v39, %v8336_v4 }
 0x95c   : > { %v3532_v48 = vadd.f32 %v3531_v57, %v3528_v41  ;;  %v3535_v54 = vmul.f32 %v4445_v12, %v3534_v35  ;;  %v3358_v43 = vmul.f32 %v4445_v12, %v3357_v61  ;;  %v3361_v1 = vstv %s7468_s0 }
 0x95d   : > { %v3412_v15 = vmul.f32 %v4445_v12, %v3411_v37  ;;  %v3415_v53 = vstv %s7470_s26  ;;  %v3466_v40 = vmul.f32 %v4445_v12, %v3465_v25  ;;  %v3469_v32 = vstv %s7474_s11 }
 0x95e   : > { %v3520_v31 = vmul.f32 %v4445_v12, %v3519_v36  ;;  %v3523_v11 = vstv %s7476_s21  ;;  %v3355_v13 = vadd.f32 %v3354_v22, %v3351_v60  ;;  %v3409_v0 = vadd.f32 %v3408_v28, %v3405_v46 }
 0x95f   : > { %v3463_v47 = vadd.f32 %v3462_v26, %v3459_v49  ;;  %v3517_v10 = vadd.f32 %v3516_v62, %v3513_v45  ;;  %v3374_v14 = vadd.f32 %v7448_v20, %v7445_v30  ;;  %v3377_v19 = vmul.f32 %v4446_v56, %v3376_v42 }
 0x960   : > { %v3428_v12 = vadd.f32 %v7456_v55, %v7461_v52  ;;  %v3431_v59 = vmul.f32 %v4446_v56, %v3430_v3  ;;  %v3482_v38 = vadd.f32 %v3481_v33, %v3478_v21  ;;  %v3485_v51 = vmul.f32 %v4446_v56, %v3484_v44 }
 0x961   : > { %v3536_v50 = vadd.f32 %v3535_v54, %v3532_v48  ;;  %v3539_v58 = vmul.f32 %v4446_v56, %v3538_v7  ;;  %v3362_v30 = vmul.f32 %v4446_v56, %v3361_v1  ;;  %v3416_v20 = vmul.f32 %v4446_v56, %v3415_v53 }
 0x962   : > { %v3470_v18 = vmul.f32 %v4446_v56, %v3469_v32  ;;  %v3524_v42 = vmul.f32 %v4446_v56, %v3523_v11  ;;  %v3359_v16 = vadd.f32 %v3358_v43, %v3355_v13  ;;  %v3413_v5 = vadd.f32 %v3412_v15, %v3409_v0 }
 0x963   : > { %v3467_v63 = vadd.f32 %v3466_v40, %v3463_v47  ;;  %v3521_v27 = vadd.f32 %v3520_v31, %v3517_v10  ;;  %v3378_v55 = vadd.f32 %v3377_v19, %v3374_v14  ;;  %v3432_v3 = vadd.f32 %v3431_v59, %v3428_v12 }
 0x964   : > { %v4432_v6 = vpop.eup %4431  ;;  %v3486_v52 = vadd.f32 %v3485_v51, %v3482_v38  ;;  %v3540_v21 = vadd.f32 %v3539_v58, %v3536_v50  ;;  %v3363_v44 = vadd.f32 %v3362_v30, %v3359_v16  ;;  %v3417_v33 = vadd.f32 %v3416_v20, %v3413_v5 }
 0x965   : > { %v3330_v34 = vadd.f32 1.0, %v4432_v6  ;;  %v3471_v8 = vadd.f32 %v3470_v18, %v3467_v63  ;;  %v3525_v29 = vadd.f32 %v3524_v42, %v3521_v27  ;;  %v3384_v35 = vstv %s3383_s28 }
 0x966   : > { %v3438_v7 = vstv %s3437_s18  ;;  %v3492_v22 = vstv %s3491_s29  ;;  %v3546_v61 = vstv %s3545_s3 }
 0x967   : > { %4433 = vrcp.f32 %v3330_v34 }
 0x971   : > { %v4434_v17 = vpop.eup %4433 }
 0x972   : > { %v3379_v39 = vmul.f32 %v4434_v17, %v3363_v44  ;;  %v3433_v2 = vmul.f32 %v4434_v17, %v3417_v33  ;;  %v3487_v41 = vmul.f32 %v4434_v17, %v3471_v8  ;;  %v3541_v57 = vmul.f32 %v4434_v17, %v3525_v29 }
 0x974   : > { %v3380_v28 = vadd.f32 %v3379_v39, %v3378_v55  ;;  %v3434_v37 = vadd.f32 %v3433_v2, %v3432_v3  ;;  %v3488_v26 = vadd.f32 %v3487_v41, %v3486_v52  ;;  %v3542_v25 = vadd.f32 %v3541_v57, %v3540_v21 }
 0x976   : > { %v3385_v62 = vadd.f32 %v3384_v35, %v3380_v28  ;;  %v3439_v36 = vadd.f32 %v3438_v7, %v3434_v37  ;;  %v3493_v6 = vadd.f32 %v3492_v22, %v3488_v26  ;;  %v3547_v24 = vadd.f32 %v3546_v61, %v3542_v25 }
 0x978   : > { %3386 = vst.msk [vmem:[%s627_s20] sm:$0xff] %vm669_vm0, %v3385_v62  ;;  %3440 = vst.msk [vmem:[%s627_s20 + $0x8] sm:$0xff] %vm669_vm0, %v3439_v36 }
 0x979   : > { %3494 = vst.msk [vmem:[%s627_s20 + $0x10] sm:$0xff] %vm669_vm0, %v3493_v6  ;;  %3548 = vst.msk [vmem:[%s627_s20 + $0x18] sm:$0xff] %vm669_vm0, %v3547_v24 }
 0x97a PF: > { %s8339_s23 = sld [smem:[#allocation28_spill]] }
 0x980   : > { %s31_s15 = sadd.s32 1, %s8339_s23  }
 0x981   : > { %p28_p0 = scmp.ge.s32.totalorder %s31_s15, 4  }
 0x983   :  { %30 = sbr.rel (!%p28_p0) target bundleno = 22 (0x16), region = 154 }
 0x98a   :  { %3570 = vsyncpa [#allocation6], 1 }
 0x98b   :  { %3572 = vsyncpa [#allocation6 + $0x1], 1 }
 0x98c   :  { %3573 = vsyncpa [#allocation8], 1 }
 0x98d   :  { %3574 = vsyncpa [#allocation11], 1 }
 0x98e   :  { %3575 = vsyncpa [#allocation14], 1 }
 0x98f   :  { %3576 = vsyncpa [#allocation17], 1 }
 0x990   :  { %3577 = vsyncpa [#allocation20], 1 }

</bundles_post_ra>
